<compile_context>
chip_gen: v6e
topology: v6e:2x2x1
jax: 0.10.0
libtpu: 0.0.40
codegen_flags: <defaults>
</compile_context>

<pallas_src>
import functools

import numpy as np
import jax
import jax.numpy as jnp
from jax import lax
from jax.experimental import pallas as pl
from jax.experimental.pallas import tpu as pltpu


def _dpo_pair_kernel(tokens_smem,                     # (C, S) int32  SMEM (prefetch)
                     tokens_ref,                      # (C, S) int32  VMEM
                     emb_hbm,                         # (V, H) f32    HBM (pl.ANY)
                     w1_ref, b1_ref, w2_ref,          # (H,H)/(1,H)/(1,H) f32 VMEM
                     b2_ref,                          # (1, 1) f32    SMEM
                     rewards_ref,                     # (C, 1) f32    out VMEM
                     pair_idx_ref,                    # (2,)  i32     out SMEM
                     paired_rewards_ref,              # (2,)  f32     out SMEM
                     paired_seq_ref,                  # (2, max_pad) i32 out VMEM
                     gather_buf,                      # (2*G, H) f32  scratch VMEM
                     gather_sem,                      # (2*G,) DMA sems
                     pooled_ref,                      # (C, H) f32    scratch VMEM
                     *, pad_id, take, gather_chunk):
    C, S = tokens_ref.shape
    H = gather_buf.shape[-1]
    V = emb_hbm.shape[0]
    G = gather_chunk
    n_chunks = pl.cdiv(S, G)

    # ---- token-driven gather of embedding rows (manual double-buffered DMA) ----
    def issue_fetch(c, chunk, slot):
        # issue G row DMAs: emb[token[c, chunk*G + g]] -> gather_buf[slot*G + g]
        for g in range(G):
            s = jnp.minimum(chunk * G + g, S - 1)        # clamp tail (masked later)
            t = tokens_smem[c, s]                        # SMEM scalar read
            t = jnp.where(t == pad_id, 0, t)             # masked_fill(pad -> 0)
            t = jnp.clip(t, 0, V - 1)                    # DMA-safety clamp
            pltpu.make_async_copy(
                emb_hbm.at[pl.ds(t, 1), :],
                gather_buf.at[pl.ds(slot * G + g, 1), :],
                gather_sem.at[slot * G + g],
            ).start()

    def wait_chunk(slot):
        for g in range(G):
            pltpu.make_async_copy(
                emb_hbm.at[pl.ds(0, 1), :],
                gather_buf.at[pl.ds(slot * G + g, 1), :],
                gather_sem.at[slot * G + g],
            ).wait()

    inv_s = 1.0 / S

    for c in range(C):                                   # C is tiny & static
        issue_fetch(c, 0, 0)                             # prime chunk 0

        def chunk_body(k, acc, c=c):
            slot = k % 2
            wait_chunk(slot)

            @pl.when(k + 1 < n_chunks)                   # prefetch next chunk
            def _():
                issue_fetch(c, k + 1, 1 - slot)

            base = pl.multiple_of(slot * G, G)
            rows = gather_buf[pl.ds(base, G), :]                          # (G, H)
            s_idx = k * G + lax.broadcasted_iota(jnp.int32, (G, 1), 0)
            rows = jnp.where(s_idx < S, rows, 0.0)                        # tail mask
            return acc + jnp.sum(rows, axis=0, keepdims=True)             # (1, H)

        acc = lax.fori_loop(0, n_chunks, chunk_body,
                            jnp.zeros((1, H), jnp.float32))
        pooled_ref[pl.ds(c, 1), :] = acc * inv_s         # mean pooling, row c

    # ---- reward head + pair pick + gather/pad, all fused ----
    pooled = pooled_ref[...]                                              # (C, H)
    h = jnp.tanh(jnp.dot(pooled, w1_ref[...],
                         preferred_element_type=jnp.float32) + b1_ref[...])
    # reward head (H -> 1) as a VPU multiply + lane reduce (w2 passed as (1, H))
    r = jnp.sum(h * w2_ref[...], axis=-1, keepdims=True) + b2_ref[0, 0]   # (C, 1)
    rewards_ref[...] = r

    # default_pick_paired_rewards_fn (+-1e6 NaN sentinels match the torch module)
    is_nan = jnp.isnan(r)
    r_max = jnp.where(is_nan, -1e6, r)
    r_min = jnp.where(is_nan, 1e6, r)
    cidx = lax.broadcasted_iota(jnp.int32, (C, 1), 0)
    amax = jnp.min(jnp.where(r_max == jnp.max(r_max), cidx, C))   # first maximal idx
    amin = jnp.min(jnp.where(r_min == jnp.min(r_min), cidx, C))   # first minimal idx
    pair_idx_ref[0] = amax
    pair_idx_ref[1] = amin

    # paired_rewards = rewards[pair_idx] (masked-select reduce, in-register indices)
    paired_rewards_ref[0] = jnp.sum(jnp.where(cidx == amax, r, 0.0))
    paired_rewards_ref[1] = jnp.sum(jnp.where(cidx == amin, r, 0.0))

    # paired responses + pad_or_slice_to(preference_max_seq_len, pad_value=pad_id):
    # one full-tile pad store, then a masked sublane-reduce row select per pair
    # (raw tokens, pads kept -- matches the torch module).
    paired_seq_ref[...] = jnp.full(paired_seq_ref.shape, pad_id,
                                   dtype=paired_seq_ref.dtype)
    tok = tokens_ref[...]                                                 # (C, S)
    top_row = jnp.sum(jnp.where(cidx == amax, tok, 0), axis=0)            # (S,)
    bot_row = jnp.sum(jnp.where(cidx == amin, tok, 0), axis=0)            # (S,)
    paired_seq_ref[0, :take] = top_row[:take]
    paired_seq_ref[1, :take] = bot_row[:take]


@functools.partial(jax.jit, static_argnames=("preference_max_seq_len", "pad_id",
                                             "gather_chunk"))
def dpo_generate_pair(responses_with_prompt, emb, w1, b1, w2, b2, *,
                      preference_max_seq_len, pad_id, gather_chunk=8):
    C, L = responses_with_prompt.shape
    V, H = emb.shape
    G = gather_chunk

    # lane-dense paired-seq output slab (multiple of 128); slice back afterwards
    max_pad = pl.cdiv(preference_max_seq_len, 128) * 128
    take = min(L, preference_max_seq_len)

    tokens = responses_with_prompt.astype(jnp.int32)
    emb_f32 = emb.astype(jnp.float32)
    w1_f32 = w1.astype(jnp.float32)
    b1_2d = jnp.reshape(b1, (1, H)).astype(jnp.float32)
    w2_row = jnp.reshape(w2, (1, H)).astype(jnp.float32)    # (H,1) -> (1,H) row
    b2_2d = jnp.reshape(b2, (1, 1)).astype(jnp.float32)

    kernel = functools.partial(_dpo_pair_kernel, pad_id=pad_id, take=take,
                               gather_chunk=G)

    rewards, pair_idx, paired_rewards, paired_seq_pad = pl.pallas_call(
        kernel,
        out_shape=(jax.ShapeDtypeStruct((C, 1), jnp.float32),
                   jax.ShapeDtypeStruct((2,), jnp.int32),
                   jax.ShapeDtypeStruct((2,), jnp.float32),
                   jax.ShapeDtypeStruct((2, max_pad), jnp.int32)),
        grid_spec=pltpu.PrefetchScalarGridSpec(
            num_scalar_prefetch=1,                       # tokens -> SMEM (DMA indices)
            grid=(1,),
            in_specs=[
                pl.BlockSpec((C, L), lambda i, tok: (0, 0)),           # tokens (VMEM)
                pl.BlockSpec(memory_space=pl.ANY),                     # emb in HBM
                pl.BlockSpec((H, H), lambda i, tok: (0, 0)),           # w1
                pl.BlockSpec((1, H), lambda i, tok: (0, 0)),           # b1
                pl.BlockSpec((1, H), lambda i, tok: (0, 0)),           # w2 row
                pl.BlockSpec(memory_space=pltpu.MemorySpace.SMEM),     # b2 scalar
            ],
            out_specs=(
                pl.BlockSpec((C, 1), lambda i, tok: (0, 0)),           # rewards
                pl.BlockSpec(memory_space=pltpu.MemorySpace.SMEM),     # pair_idx
                pl.BlockSpec(memory_space=pltpu.MemorySpace.SMEM),     # paired_rewards
                pl.BlockSpec((2, max_pad), lambda i, tok: (0, 0)),     # paired seqs
            ),
            scratch_shapes=[
                pltpu.VMEM((2 * G, H), jnp.float32),                   # gather buffer
                pltpu.SemaphoreType.DMA((2 * G,)),                     # per-row sems
                pltpu.VMEM((C, H), jnp.float32),                       # pooled embs
            ],
        ),
        compiler_params=pltpu.CompilerParams(
            dimension_semantics=("arbitrary",),
            vmem_limit_bytes=32 * 1024 * 1024,
        ),
    )(tokens, tokens, emb_f32, w1_f32, b1_2d, w2_row, b2_2d)

    rewards_flat = rewards[:, 0]                               # rearrange 'b 1 -> b'
    paired_seqs = paired_seq_pad[:, :preference_max_seq_len]
    return rewards_flat, pair_idx, paired_seqs, paired_rewards


def _ref_rewards(tokens, emb, w1, b1, w2, b2, pad_id):
    # pure-JAX mirror of the synthetic reward model (all f32, same as the kernel)
    t = jnp.where(tokens == pad_id, 0, tokens)
    e = emb[t]                                          # (C, S, H)
    pooled = e.mean(axis=1)
    h = jnp.tanh(jnp.dot(pooled, w1) + b1.reshape(1, -1))
    return jnp.sum(h * w2.reshape(1, -1), axis=-1) + b2[0, 0]


if __name__ == "__main__":
    # TODO(synk): LLM sampling (sample/top_p), tokenizer encode/decode, jinja reward
    # templating / regex parsing, DataLoader cycling and numpy memmap file I/O are
    # host-side orchestration in the module and not representable as Pallas kernels.
    key = jax.random.PRNGKey(0)
    kp, kr, klen, ke, k1, k2 = jax.random.split(key, 6)

    C = 4                  # num_candidate_responses
    prompt_len = 8
    resp_max = 16
    L = prompt_len + resp_max
    V, H = 256, 32         # synthetic reward-model vocab / hidden
    pref_max = 64          # preference_max_seq_len (small for the demo)
    pad_id = -1

    prompt = jax.random.randint(kp, (prompt_len,), 0, V, dtype=jnp.int32)
    resp = jax.random.randint(kr, (C, resp_max), 0, V, dtype=jnp.int32)
    lens = jax.random.randint(klen, (C,), resp_max // 2, resp_max + 1)
    # ragged candidate responses padded with pad_id (mimics pad_sequence)
    resp = jnp.where(jnp.arange(resp_max)[None, :] < lens[:, None], resp, pad_id)
    responses_with_prompt = jnp.concatenate(
        [jnp.broadcast_to(prompt, (C, prompt_len)), resp], axis=-1).astype(jnp.int32)

    emb = jax.random.normal(ke, (V, H), jnp.float32) * 0.1
    w1 = jax.random.normal(k1, (H, H), jnp.float32) * 0.1
    b1 = jnp.zeros((1, H), jnp.float32)
    w2 = jax.random.normal(k2, (H, 1), jnp.float32) * 0.1
    b2 = jnp.zeros((1, 1), jnp.float32)

    rewards, pair_idx, paired_seqs, paired_rewards = dpo_generate_pair(
        responses_with_prompt, emb, w1, b1, w2, b2,
        preference_max_seq_len=pref_max, pad_id=pad_id)
    jax.block_until_ready((rewards, pair_idx, paired_seqs, paired_rewards))

    # ---- checks ----
    # 1) reward values against pure-JAX reference
    ref_r = np.asarray(_ref_rewards(responses_with_prompt, emb, w1, b1, w2, b2, pad_id))
    r_np = np.asarray(rewards)
    np.testing.assert_allclose(r_np, ref_r, rtol=1e-3, atol=1e-4)

    # 2) pair indices = nan-masked argmax/argmin of the kernel's own rewards
    r_mx = np.where(np.isnan(r_np), -1e6, r_np)
    r_mn = np.where(np.isnan(r_np), 1e6, r_np)
    expect_idx = np.array([int(np.argmax(r_mx)), int(np.argmin(r_mn))], np.int32)
    assert np.array_equal(np.asarray(pair_idx), expect_idx)

    # 3) gathered + pad_or_slice_to sequences
    expected_seqs = np.full((2, pref_max), pad_id, np.int32)
    tk = min(L, pref_max)
    expected_seqs[:, :tk] = np.asarray(responses_with_prompt)[expect_idx][:, :tk]
    assert np.array_equal(np.asarray(paired_seqs), expected_seqs)

    # 4) paired rewards = rewards[pair_idx]
    np.testing.assert_allclose(np.asarray(paired_rewards), r_np[expect_idx],
                               rtol=1e-6, atol=1e-7)

    print("KERNEL_OK")
</pallas_src>

<mosaic_0001>
module attributes {stable_mosaic.version = 11 : i64} {
  func.func @_dpo_pair_kernel(%arg0: i32, %arg1: memref<4x24xi32, #tpu.memory_space<smem>>, %arg2: memref<4x24xi32, #tpu.memory_space<vmem>>, %arg3: memref<256x32xf32, #tpu.memory_space<any>>, %arg4: memref<32x32xf32, #tpu.memory_space<vmem>>, %arg5: memref<1x32xf32, #tpu.memory_space<vmem>>, %arg6: memref<1x32xf32, #tpu.memory_space<vmem>>, %arg7: memref<1x1xf32, #tpu.memory_space<smem>>, %arg8: memref<4x1xf32, #tpu.memory_space<vmem>>, %arg9: memref<2xi32, #tpu.memory_space<smem>>, %arg10: memref<2xf32, #tpu.memory_space<smem>>, %arg11: memref<2x128xi32, #tpu.memory_space<vmem>>, %arg12: memref<16x32xf32, #tpu.memory_space<vmem>>, %arg13: memref<16x!tpu.dma_semaphore, #tpu.memory_space<semaphore_mem>>, %arg14: memref<4x32xf32, #tpu.memory_space<vmem>>) attributes {dimension_semantics = [#tpu.dimension_semantics<arbitrary>], iteration_bounds = array<i64: 1>, scalar_prefetch = 1 : i64, scratch_operands = 3 : i64, tpu.core_type = #tpu.core_type<tc>, window_params = [{pipeline_mode = #tpu.pipeline_mode<synchronous>, transform_indices = @transform_0, window_bounds = array<i64: 4, 24>}, {}, {pipeline_mode = #tpu.pipeline_mode<synchronous>, transform_indices = @transform_2, window_bounds = array<i64: 32, 32>}, {pipeline_mode = #tpu.pipeline_mode<synchronous>, transform_indices = @transform_3, window_bounds = array<i64: 1, 32>}, {pipeline_mode = #tpu.pipeline_mode<synchronous>, transform_indices = @transform_4, window_bounds = array<i64: 1, 32>}, {transform_indices = @transform_5, window_bounds = array<i64: 1, 1>}, {pipeline_mode = #tpu.pipeline_mode<synchronous>, transform_indices = @transform_6, window_bounds = array<i64: 4, 1>}, {transform_indices = @transform_7, window_bounds = array<i64: 2>}, {transform_indices = @transform_8, window_bounds = array<i64: 2>}, {pipeline_mode = #tpu.pipeline_mode<synchronous>, transform_indices = @transform_9, window_bounds = array<i64: 2, 128>}]} {
    %c0_i32 = arith.constant 0 : i32
    %c23_i32 = arith.constant 23 : i32
    %0 = arith.minsi %c0_i32, %c23_i32 : i32
    %c0 = arith.constant 0 : index
    %1 = arith.index_cast %0 : i32 to index
    %2 = memref.load %arg1[%c0, %1] : memref<4x24xi32, #tpu.memory_space<smem>>
    %c-1_i32 = arith.constant -1 : i32
    %3 = arith.cmpi eq, %2, %c-1_i32 : i32
    %c0_i32_0 = arith.constant 0 : i32
    %4 = arith.select %3, %c0_i32_0, %2 : i32
    %c0_i32_1 = arith.constant 0 : i32
    %c255_i32 = arith.constant 255 : i32
    %5 = arith.maxsi %c0_i32_1, %4 : i32
    %6 = arith.minsi %c255_i32, %5 : i32
    %c0_i32_2 = arith.constant 0 : i32
    %c0_i32_3 = arith.constant 0 : i32
    %7 = tpu.memref_slice %arg3[%6, %c0_i32_3] : memref<256x32xf32, #tpu.memory_space<any>> -> memref<1x32xf32, #tpu.memory_space<any>>
    %c0_i32_4 = arith.constant 0 : i32
    %c0_i32_5 = arith.constant 0 : i32
    %8 = tpu.memref_slice %arg12[%c0_i32_4, %c0_i32_5] : memref<16x32xf32, #tpu.memory_space<vmem>> -> memref<1x32xf32, #tpu.memory_space<vmem>>
    %9 = tpu.memref_slice %arg13[%c0_i32_2] : memref<16x!tpu.dma_semaphore, #tpu.memory_space<semaphore_mem>> -> memref<1x!tpu.dma_semaphore, #tpu.memory_space<semaphore_mem>>
    %10 = tpu.memref_squeeze %9 : memref<1x!tpu.dma_semaphore, #tpu.memory_space<semaphore_mem>> -> memref<!tpu.dma_semaphore, #tpu.memory_space<semaphore_mem>>
    tpu.enqueue_dma source(%7 : memref<1x32xf32, #tpu.memory_space<any>>) target(%8 : memref<1x32xf32, #tpu.memory_space<vmem>>) target_semaphore(%10 : memref<!tpu.dma_semaphore, #tpu.memory_space<semaphore_mem>>)
    %c1_i32 = arith.constant 1 : i32
    %c23_i32_6 = arith.constant 23 : i32
    %11 = arith.minsi %c1_i32, %c23_i32_6 : i32
    %c0_7 = arith.constant 0 : index
    %12 = arith.index_cast %11 : i32 to index
    %13 = memref.load %arg1[%c0_7, %12] : memref<4x24xi32, #tpu.memory_space<smem>>
    %c-1_i32_8 = arith.constant -1 : i32
    %14 = arith.cmpi eq, %13, %c-1_i32_8 : i32
    %c0_i32_9 = arith.constant 0 : i32
    %15 = arith.select %14, %c0_i32_9, %13 : i32
    %c0_i32_10 = arith.constant 0 : i32
    %c255_i32_11 = arith.constant 255 : i32
    %16 = arith.maxsi %c0_i32_10, %15 : i32
    %17 = arith.minsi %c255_i32_11, %16 : i32
    %c1_i32_12 = arith.constant 1 : i32
    %c0_i32_13 = arith.constant 0 : i32
    %18 = tpu.memref_slice %arg3[%17, %c0_i32_13] : memref<256x32xf32, #tpu.memory_space<any>> -> memref<1x32xf32, #tpu.memory_space<any>>
    %c1_i32_14 = arith.constant 1 : i32
    %c0_i32_15 = arith.constant 0 : i32
    %19 = tpu.memref_slice %arg12[%c1_i32_14, %c0_i32_15] : memref<16x32xf32, #tpu.memory_space<vmem>> -> memref<1x32xf32, #tpu.memory_space<vmem>>
    %20 = tpu.memref_slice %arg13[%c1_i32_12] : memref<16x!tpu.dma_semaphore, #tpu.memory_space<semaphore_mem>> -> memref<1x!tpu.dma_semaphore, #tpu.memory_space<semaphore_mem>>
    %21 = tpu.memref_squeeze %20 : memref<1x!tpu.dma_semaphore, #tpu.memory_space<semaphore_mem>> -> memref<!tpu.dma_semaphore, #tpu.memory_space<semaphore_mem>>
    tpu.enqueue_dma source(%18 : memref<1x32xf32, #tpu.memory_space<any>>) target(%19 : memref<1x32xf32, #tpu.memory_space<vmem>>) target_semaphore(%21 : memref<!tpu.dma_semaphore, #tpu.memory_space<semaphore_mem>>)
    %c2_i32 = arith.constant 2 : i32
    %c23_i32_16 = arith.constant 23 : i32
    %22 = arith.minsi %c2_i32, %c23_i32_16 : i32
    %c0_17 = arith.constant 0 : index
    %23 = arith.index_cast %22 : i32 to index
    %24 = memref.load %arg1[%c0_17, %23] : memref<4x24xi32, #tpu.memory_space<smem>>
    %c-1_i32_18 = arith.constant -1 : i32
    %25 = arith.cmpi eq, %24, %c-1_i32_18 : i32
    %c0_i32_19 = arith.constant 0 : i32
    %26 = arith.select %25, %c0_i32_19, %24 : i32
    %c0_i32_20 = arith.constant 0 : i32
    %c255_i32_21 = arith.constant 255 : i32
    %27 = arith.maxsi %c0_i32_20, %26 : i32
    %28 = arith.minsi %c255_i32_21, %27 : i32
    %c2_i32_22 = arith.constant 2 : i32
    %c0_i32_23 = arith.constant 0 : i32
    %29 = tpu.memref_slice %arg3[%28, %c0_i32_23] : memref<256x32xf32, #tpu.memory_space<any>> -> memref<1x32xf32, #tpu.memory_space<any>>
    %c2_i32_24 = arith.constant 2 : i32
    %c0_i32_25 = arith.constant 0 : i32
    %30 = tpu.memref_slice %arg12[%c2_i32_24, %c0_i32_25] : memref<16x32xf32, #tpu.memory_space<vmem>> -> memref<1x32xf32, #tpu.memory_space<vmem>>
    %31 = tpu.memref_slice %arg13[%c2_i32_22] : memref<16x!tpu.dma_semaphore, #tpu.memory_space<semaphore_mem>> -> memref<1x!tpu.dma_semaphore, #tpu.memory_space<semaphore_mem>>
    %32 = tpu.memref_squeeze %31 : memref<1x!tpu.dma_semaphore, #tpu.memory_space<semaphore_mem>> -> memref<!tpu.dma_semaphore, #tpu.memory_space<semaphore_mem>>
    tpu.enqueue_dma source(%29 : memref<1x32xf32, #tpu.memory_space<any>>) target(%30 : memref<1x32xf32, #tpu.memory_space<vmem>>) target_semaphore(%32 : memref<!tpu.dma_semaphore, #tpu.memory_space<semaphore_mem>>)
    %c3_i32 = arith.constant 3 : i32
    %c23_i32_26 = arith.constant 23 : i32
    %33 = arith.minsi %c3_i32, %c23_i32_26 : i32
    %c0_27 = arith.constant 0 : index
    %34 = arith.index_cast %33 : i32 to index
    %35 = memref.load %arg1[%c0_27, %34] : memref<4x24xi32, #tpu.memory_space<smem>>
    %c-1_i32_28 = arith.constant -1 : i32
    %36 = arith.cmpi eq, %35, %c-1_i32_28 : i32
    %c0_i32_29 = arith.constant 0 : i32
    %37 = arith.select %36, %c0_i32_29, %35 : i32
    %c0_i32_30 = arith.constant 0 : i32
    %c255_i32_31 = arith.constant 255 : i32
    %38 = arith.maxsi %c0_i32_30, %37 : i32
    %39 = arith.minsi %c255_i32_31, %38 : i32
    %c3_i32_32 = arith.constant 3 : i32
    %c0_i32_33 = arith.constant 0 : i32
    %40 = tpu.memref_slice %arg3[%39, %c0_i32_33] : memref<256x32xf32, #tpu.memory_space<any>> -> memref<1x32xf32, #tpu.memory_space<any>>
    %c3_i32_34 = arith.constant 3 : i32
    %c0_i32_35 = arith.constant 0 : i32
    %41 = tpu.memref_slice %arg12[%c3_i32_34, %c0_i32_35] : memref<16x32xf32, #tpu.memory_space<vmem>> -> memref<1x32xf32, #tpu.memory_space<vmem>>
    %42 = tpu.memref_slice %arg13[%c3_i32_32] : memref<16x!tpu.dma_semaphore, #tpu.memory_space<semaphore_mem>> -> memref<1x!tpu.dma_semaphore, #tpu.memory_space<semaphore_mem>>
    %43 = tpu.memref_squeeze %42 : memref<1x!tpu.dma_semaphore, #tpu.memory_space<semaphore_mem>> -> memref<!tpu.dma_semaphore, #tpu.memory_space<semaphore_mem>>
    tpu.enqueue_dma source(%40 : memref<1x32xf32, #tpu.memory_space<any>>) target(%41 : memref<1x32xf32, #tpu.memory_space<vmem>>) target_semaphore(%43 : memref<!tpu.dma_semaphore, #tpu.memory_space<semaphore_mem>>)
    %c4_i32 = arith.constant 4 : i32
    %c23_i32_36 = arith.constant 23 : i32
    %44 = arith.minsi %c4_i32, %c23_i32_36 : i32
    %c0_37 = arith.constant 0 : index
    %45 = arith.index_cast %44 : i32 to index
    %46 = memref.load %arg1[%c0_37, %45] : memref<4x24xi32, #tpu.memory_space<smem>>
    %c-1_i32_38 = arith.constant -1 : i32
    %47 = arith.cmpi eq, %46, %c-1_i32_38 : i32
    %c0_i32_39 = arith.constant 0 : i32
    %48 = arith.select %47, %c0_i32_39, %46 : i32
    %c0_i32_40 = arith.constant 0 : i32
    %c255_i32_41 = arith.constant 255 : i32
    %49 = arith.maxsi %c0_i32_40, %48 : i32
    %50 = arith.minsi %c255_i32_41, %49 : i32
    %c4_i32_42 = arith.constant 4 : i32
    %c0_i32_43 = arith.constant 0 : i32
    %51 = tpu.memref_slice %arg3[%50, %c0_i32_43] : memref<256x32xf32, #tpu.memory_space<any>> -> memref<1x32xf32, #tpu.memory_space<any>>
    %c4_i32_44 = arith.constant 4 : i32
    %c0_i32_45 = arith.constant 0 : i32
    %52 = tpu.memref_slice %arg12[%c4_i32_44, %c0_i32_45] : memref<16x32xf32, #tpu.memory_space<vmem>> -> memref<1x32xf32, #tpu.memory_space<vmem>>
    %53 = tpu.memref_slice %arg13[%c4_i32_42] : memref<16x!tpu.dma_semaphore, #tpu.memory_space<semaphore_mem>> -> memref<1x!tpu.dma_semaphore, #tpu.memory_space<semaphore_mem>>
    %54 = tpu.memref_squeeze %53 : memref<1x!tpu.dma_semaphore, #tpu.memory_space<semaphore_mem>> -> memref<!tpu.dma_semaphore, #tpu.memory_space<semaphore_mem>>
    tpu.enqueue_dma source(%51 : memref<1x32xf32, #tpu.memory_space<any>>) target(%52 : memref<1x32xf32, #tpu.memory_space<vmem>>) target_semaphore(%54 : memref<!tpu.dma_semaphore, #tpu.memory_space<semaphore_mem>>)
    %c5_i32 = arith.constant 5 : i32
    %c23_i32_46 = arith.constant 23 : i32
    %55 = arith.minsi %c5_i32, %c23_i32_46 : i32
    %c0_47 = arith.constant 0 : index
    %56 = arith.index_cast %55 : i32 to index
    %57 = memref.load %arg1[%c0_47, %56] : memref<4x24xi32, #tpu.memory_space<smem>>
    %c-1_i32_48 = arith.constant -1 : i32
    %58 = arith.cmpi eq, %57, %c-1_i32_48 : i32
    %c0_i32_49 = arith.constant 0 : i32
    %59 = arith.select %58, %c0_i32_49, %57 : i32
    %c0_i32_50 = arith.constant 0 : i32
    %c255_i32_51 = arith.constant 255 : i32
    %60 = arith.maxsi %c0_i32_50, %59 : i32
    %61 = arith.minsi %c255_i32_51, %60 : i32
    %c5_i32_52 = arith.constant 5 : i32
    %c0_i32_53 = arith.constant 0 : i32
    %62 = tpu.memref_slice %arg3[%61, %c0_i32_53] : memref<256x32xf32, #tpu.memory_space<any>> -> memref<1x32xf32, #tpu.memory_space<any>>
    %c5_i32_54 = arith.constant 5 : i32
    %c0_i32_55 = arith.constant 0 : i32
    %63 = tpu.memref_slice %arg12[%c5_i32_54, %c0_i32_55] : memref<16x32xf32, #tpu.memory_space<vmem>> -> memref<1x32xf32, #tpu.memory_space<vmem>>
    %64 = tpu.memref_slice %arg13[%c5_i32_52] : memref<16x!tpu.dma_semaphore, #tpu.memory_space<semaphore_mem>> -> memref<1x!tpu.dma_semaphore, #tpu.memory_space<semaphore_mem>>
    %65 = tpu.memref_squeeze %64 : memref<1x!tpu.dma_semaphore, #tpu.memory_space<semaphore_mem>> -> memref<!tpu.dma_semaphore, #tpu.memory_space<semaphore_mem>>
    tpu.enqueue_dma source(%62 : memref<1x32xf32, #tpu.memory_space<any>>) target(%63 : memref<1x32xf32, #tpu.memory_space<vmem>>) target_semaphore(%65 : memref<!tpu.dma_semaphore, #tpu.memory_space<semaphore_mem>>)
    %c6_i32 = arith.constant 6 : i32
    %c23_i32_56 = arith.constant 23 : i32
    %66 = arith.minsi %c6_i32, %c23_i32_56 : i32
    %c0_57 = arith.constant 0 : index
    %67 = arith.index_cast %66 : i32 to index
    %68 = memref.load %arg1[%c0_57, %67] : memref<4x24xi32, #tpu.memory_space<smem>>
    %c-1_i32_58 = arith.constant -1 : i32
    %69 = arith.cmpi eq, %68, %c-1_i32_58 : i32
    %c0_i32_59 = arith.constant 0 : i32
    %70 = arith.select %69, %c0_i32_59, %68 : i32
    %c0_i32_60 = arith.constant 0 : i32
    %c255_i32_61 = arith.constant 255 : i32
    %71 = arith.maxsi %c0_i32_60, %70 : i32
    %72 = arith.minsi %c255_i32_61, %71 : i32
    %c6_i32_62 = arith.constant 6 : i32
    %c0_i32_63 = arith.constant 0 : i32
    %73 = tpu.memref_slice %arg3[%72, %c0_i32_63] : memref<256x32xf32, #tpu.memory_space<any>> -> memref<1x32xf32, #tpu.memory_space<any>>
    %c6_i32_64 = arith.constant 6 : i32
    %c0_i32_65 = arith.constant 0 : i32
    %74 = tpu.memref_slice %arg12[%c6_i32_64, %c0_i32_65] : memref<16x32xf32, #tpu.memory_space<vmem>> -> memref<1x32xf32, #tpu.memory_space<vmem>>
    %75 = tpu.memref_slice %arg13[%c6_i32_62] : memref<16x!tpu.dma_semaphore, #tpu.memory_space<semaphore_mem>> -> memref<1x!tpu.dma_semaphore, #tpu.memory_space<semaphore_mem>>
    %76 = tpu.memref_squeeze %75 : memref<1x!tpu.dma_semaphore, #tpu.memory_space<semaphore_mem>> -> memref<!tpu.dma_semaphore, #tpu.memory_space<semaphore_mem>>
    tpu.enqueue_dma source(%73 : memref<1x32xf32, #tpu.memory_space<any>>) target(%74 : memref<1x32xf32, #tpu.memory_space<vmem>>) target_semaphore(%76 : memref<!tpu.dma_semaphore, #tpu.memory_space<semaphore_mem>>)
    %c7_i32 = arith.constant 7 : i32
    %c23_i32_66 = arith.constant 23 : i32
    %77 = arith.minsi %c7_i32, %c23_i32_66 : i32
    %c0_67 = arith.constant 0 : index
    %78 = arith.index_cast %77 : i32 to index
    %79 = memref.load %arg1[%c0_67, %78] : memref<4x24xi32, #tpu.memory_space<smem>>
    %c-1_i32_68 = arith.constant -1 : i32
    %80 = arith.cmpi eq, %79, %c-1_i32_68 : i32
    %c0_i32_69 = arith.constant 0 : i32
    %81 = arith.select %80, %c0_i32_69, %79 : i32
    %c0_i32_70 = arith.constant 0 : i32
    %c255_i32_71 = arith.constant 255 : i32
    %82 = arith.maxsi %c0_i32_70, %81 : i32
    %83 = arith.minsi %c255_i32_71, %82 : i32
    %c7_i32_72 = arith.constant 7 : i32
    %c0_i32_73 = arith.constant 0 : i32
    %84 = tpu.memref_slice %arg3[%83, %c0_i32_73] : memref<256x32xf32, #tpu.memory_space<any>> -> memref<1x32xf32, #tpu.memory_space<any>>
    %c7_i32_74 = arith.constant 7 : i32
    %c0_i32_75 = arith.constant 0 : i32
    %85 = tpu.memref_slice %arg12[%c7_i32_74, %c0_i32_75] : memref<16x32xf32, #tpu.memory_space<vmem>> -> memref<1x32xf32, #tpu.memory_space<vmem>>
    %86 = tpu.memref_slice %arg13[%c7_i32_72] : memref<16x!tpu.dma_semaphore, #tpu.memory_space<semaphore_mem>> -> memref<1x!tpu.dma_semaphore, #tpu.memory_space<semaphore_mem>>
    %87 = tpu.memref_squeeze %86 : memref<1x!tpu.dma_semaphore, #tpu.memory_space<semaphore_mem>> -> memref<!tpu.dma_semaphore, #tpu.memory_space<semaphore_mem>>
    tpu.enqueue_dma source(%84 : memref<1x32xf32, #tpu.memory_space<any>>) target(%85 : memref<1x32xf32, #tpu.memory_space<vmem>>) target_semaphore(%87 : memref<!tpu.dma_semaphore, #tpu.memory_space<semaphore_mem>>)
    %cst = arith.constant 0.000000e+00 : f32
    %88 = vector.broadcast %cst : f32 to vector<1x32xf32>
    %c0_i32_76 = arith.constant 0 : i32
    %c3_i32_77 = arith.constant 3 : i32
    %89 = arith.addi %c0_i32_76, %c3_i32_77 : i32
    %c1_i32_78 = arith.constant 1 : i32
    %90 = scf.for %arg15 = %c0_i32_76 to %89 step %c1_i32_78 iter_args(%arg16 = %88) -> (vector<1x32xf32>)  : i32 {
      %c2_i32_411 = arith.constant 2 : i32
      %c0_i32_412 = arith.constant 0 : i32
      %465 = arith.cmpi eq, %c2_i32_411, %c0_i32_412 : i32
      %c1_i32_413 = arith.constant 1 : i32
      %466 = arith.select %465, %c1_i32_413, %c2_i32_411 : i32
      %467 = arith.remsi %arg15, %466 : i32
      %c0_i32_414 = arith.constant 0 : i32
      %468 = arith.cmpi ne, %467, %c0_i32_414 : i32
      %c0_i32_415 = arith.constant 0 : i32
      %469 = arith.cmpi slt, %467, %c0_i32_415 : i32
      %c0_i32_416 = arith.constant 0 : i32
      %470 = arith.cmpi slt, %466, %c0_i32_416 : i32
      %471 = arith.xori %469, %470 : i1
      %472 = arith.andi %471, %468 : i1
      %473 = arith.addi %467, %466 : i32
      %474 = arith.select %472, %473, %467 : i32
      %c8_i32 = arith.constant 8 : i32
      %475 = arith.muli %474, %c8_i32 : i32
      %c0_i32_417 = arith.constant 0 : i32
      %476 = arith.addi %475, %c0_i32_417 : i32
      %c8_i32_418 = arith.constant 8 : i32
      %477 = arith.muli %474, %c8_i32_418 : i32
      %c0_i32_419 = arith.constant 0 : i32
      %478 = arith.addi %477, %c0_i32_419 : i32
      %c0_i32_420 = arith.constant 0 : i32
      %c0_i32_421 = arith.constant 0 : i32
      %479 = tpu.memref_slice %arg3[%c0_i32_420, %c0_i32_421] : memref<256x32xf32, #tpu.memory_space<any>> -> memref<1x32xf32, #tpu.memory_space<any>>
      %c0_i32_422 = arith.constant 0 : i32
      %480 = tpu.memref_slice %arg12[%476, %c0_i32_422] : memref<16x32xf32, #tpu.memory_space<vmem>> -> memref<1x32xf32, #tpu.memory_space<vmem>>
      %481 = tpu.memref_slice %arg13[%478] : memref<16x!tpu.dma_semaphore, #tpu.memory_space<semaphore_mem>> -> memref<1x!tpu.dma_semaphore, #tpu.memory_space<semaphore_mem>>
      %482 = tpu.memref_squeeze %481 : memref<1x!tpu.dma_semaphore, #tpu.memory_space<semaphore_mem>> -> memref<!tpu.dma_semaphore, #tpu.memory_space<semaphore_mem>>
      tpu.wait_dma2 semaphore(%482 : memref<!tpu.dma_semaphore, #tpu.memory_space<semaphore_mem>>) src(%479 : memref<1x32xf32, #tpu.memory_space<any>>) dst(%480 : memref<1x32xf32, #tpu.memory_space<vmem>>)
      %c8_i32_423 = arith.constant 8 : i32
      %483 = arith.muli %474, %c8_i32_423 : i32
      %c1_i32_424 = arith.constant 1 : i32
      %484 = arith.addi %483, %c1_i32_424 : i32
      %c8_i32_425 = arith.constant 8 : i32
      %485 = arith.muli %474, %c8_i32_425 : i32
      %c1_i32_426 = arith.constant 1 : i32
      %486 = arith.addi %485, %c1_i32_426 : i32
      %c0_i32_427 = arith.constant 0 : i32
      %c0_i32_428 = arith.constant 0 : i32
      %487 = tpu.memref_slice %arg3[%c0_i32_427, %c0_i32_428] : memref<256x32xf32, #tpu.memory_space<any>> -> memref<1x32xf32, #tpu.memory_space<any>>
      %c0_i32_429 = arith.constant 0 : i32
      %488 = tpu.memref_slice %arg12[%484, %c0_i32_429] : memref<16x32xf32, #tpu.memory_space<vmem>> -> memref<1x32xf32, #tpu.memory_space<vmem>>
      %489 = tpu.memref_slice %arg13[%486] : memref<16x!tpu.dma_semaphore, #tpu.memory_space<semaphore_mem>> -> memref<1x!tpu.dma_semaphore, #tpu.memory_space<semaphore_mem>>
      %490 = tpu.memref_squeeze %489 : memref<1x!tpu.dma_semaphore, #tpu.memory_space<semaphore_mem>> -> memref<!tpu.dma_semaphore, #tpu.memory_space<semaphore_mem>>
      tpu.wait_dma2 semaphore(%490 : memref<!tpu.dma_semaphore, #tpu.memory_space<semaphore_mem>>) src(%487 : memref<1x32xf32, #tpu.memory_space<any>>) dst(%488 : memref<1x32xf32, #tpu.memory_space<vmem>>)
      %c8_i32_430 = arith.constant 8 : i32
      %491 = arith.muli %474, %c8_i32_430 : i32
      %c2_i32_431 = arith.constant 2 : i32
      %492 = arith.addi %491, %c2_i32_431 : i32
      %c8_i32_432 = arith.constant 8 : i32
      %493 = arith.muli %474, %c8_i32_432 : i32
      %c2_i32_433 = arith.constant 2 : i32
      %494 = arith.addi %493, %c2_i32_433 : i32
      %c0_i32_434 = arith.constant 0 : i32
      %c0_i32_435 = arith.constant 0 : i32
      %495 = tpu.memref_slice %arg3[%c0_i32_434, %c0_i32_435] : memref<256x32xf32, #tpu.memory_space<any>> -> memref<1x32xf32, #tpu.memory_space<any>>
      %c0_i32_436 = arith.constant 0 : i32
      %496 = tpu.memref_slice %arg12[%492, %c0_i32_436] : memref<16x32xf32, #tpu.memory_space<vmem>> -> memref<1x32xf32, #tpu.memory_space<vmem>>
      %497 = tpu.memref_slice %arg13[%494] : memref<16x!tpu.dma_semaphore, #tpu.memory_space<semaphore_mem>> -> memref<1x!tpu.dma_semaphore, #tpu.memory_space<semaphore_mem>>
      %498 = tpu.memref_squeeze %497 : memref<1x!tpu.dma_semaphore, #tpu.memory_space<semaphore_mem>> -> memref<!tpu.dma_semaphore, #tpu.memory_space<semaphore_mem>>
      tpu.wait_dma2 semaphore(%498 : memref<!tpu.dma_semaphore, #tpu.memory_space<semaphore_mem>>) src(%495 : memref<1x32xf32, #tpu.memory_space<any>>) dst(%496 : memref<1x32xf32, #tpu.memory_space<vmem>>)
      %c8_i32_437 = arith.constant 8 : i32
      %499 = arith.muli %474, %c8_i32_437 : i32
      %c3_i32_438 = arith.constant 3 : i32
      %500 = arith.addi %499, %c3_i32_438 : i32
      %c8_i32_439 = arith.constant 8 : i32
      %501 = arith.muli %474, %c8_i32_439 : i32
      %c3_i32_440 = arith.constant 3 : i32
      %502 = arith.addi %501, %c3_i32_440 : i32
      %c0_i32_441 = arith.constant 0 : i32
      %c0_i32_442 = arith.constant 0 : i32
      %503 = tpu.memref_slice %arg3[%c0_i32_441, %c0_i32_442] : memref<256x32xf32, #tpu.memory_space<any>> -> memref<1x32xf32, #tpu.memory_space<any>>
      %c0_i32_443 = arith.constant 0 : i32
      %504 = tpu.memref_slice %arg12[%500, %c0_i32_443] : memref<16x32xf32, #tpu.memory_space<vmem>> -> memref<1x32xf32, #tpu.memory_space<vmem>>
      %505 = tpu.memref_slice %arg13[%502] : memref<16x!tpu.dma_semaphore, #tpu.memory_space<semaphore_mem>> -> memref<1x!tpu.dma_semaphore, #tpu.memory_space<semaphore_mem>>
      %506 = tpu.memref_squeeze %505 : memref<1x!tpu.dma_semaphore, #tpu.memory_space<semaphore_mem>> -> memref<!tpu.dma_semaphore, #tpu.memory_space<semaphore_mem>>
      tpu.wait_dma2 semaphore(%506 : memref<!tpu.dma_semaphore, #tpu.memory_space<semaphore_mem>>) src(%503 : memref<1x32xf32, #tpu.memory_space<any>>) dst(%504 : memref<1x32xf32, #tpu.memory_space<vmem>>)
      %c8_i32_444 = arith.constant 8 : i32
      %507 = arith.muli %474, %c8_i32_444 : i32
      %c4_i32_445 = arith.constant 4 : i32
      %508 = arith.addi %507, %c4_i32_445 : i32
      %c8_i32_446 = arith.constant 8 : i32
      %509 = arith.muli %474, %c8_i32_446 : i32
      %c4_i32_447 = arith.constant 4 : i32
      %510 = arith.addi %509, %c4_i32_447 : i32
      %c0_i32_448 = arith.constant 0 : i32
      %c0_i32_449 = arith.constant 0 : i32
      %511 = tpu.memref_slice %arg3[%c0_i32_448, %c0_i32_449] : memref<256x32xf32, #tpu.memory_space<any>> -> memref<1x32xf32, #tpu.memory_space<any>>
      %c0_i32_450 = arith.constant 0 : i32
      %512 = tpu.memref_slice %arg12[%508, %c0_i32_450] : memref<16x32xf32, #tpu.memory_space<vmem>> -> memref<1x32xf32, #tpu.memory_space<vmem>>
      %513 = tpu.memref_slice %arg13[%510] : memref<16x!tpu.dma_semaphore, #tpu.memory_space<semaphore_mem>> -> memref<1x!tpu.dma_semaphore, #tpu.memory_space<semaphore_mem>>
      %514 = tpu.memref_squeeze %513 : memref<1x!tpu.dma_semaphore, #tpu.memory_space<semaphore_mem>> -> memref<!tpu.dma_semaphore, #tpu.memory_space<semaphore_mem>>
      tpu.wait_dma2 semaphore(%514 : memref<!tpu.dma_semaphore, #tpu.memory_space<semaphore_mem>>) src(%511 : memref<1x32xf32, #tpu.memory_space<any>>) dst(%512 : memref<1x32xf32, #tpu.memory_space<vmem>>)
      %c8_i32_451 = arith.constant 8 : i32
      %515 = arith.muli %474, %c8_i32_451 : i32
      %c5_i32_452 = arith.constant 5 : i32
      %516 = arith.addi %515, %c5_i32_452 : i32
      %c8_i32_453 = arith.constant 8 : i32
      %517 = arith.muli %474, %c8_i32_453 : i32
      %c5_i32_454 = arith.constant 5 : i32
      %518 = arith.addi %517, %c5_i32_454 : i32
      %c0_i32_455 = arith.constant 0 : i32
      %c0_i32_456 = arith.constant 0 : i32
      %519 = tpu.memref_slice %arg3[%c0_i32_455, %c0_i32_456] : memref<256x32xf32, #tpu.memory_space<any>> -> memref<1x32xf32, #tpu.memory_space<any>>
      %c0_i32_457 = arith.constant 0 : i32
      %520 = tpu.memref_slice %arg12[%516, %c0_i32_457] : memref<16x32xf32, #tpu.memory_space<vmem>> -> memref<1x32xf32, #tpu.memory_space<vmem>>
      %521 = tpu.memref_slice %arg13[%518] : memref<16x!tpu.dma_semaphore, #tpu.memory_space<semaphore_mem>> -> memref<1x!tpu.dma_semaphore, #tpu.memory_space<semaphore_mem>>
      %522 = tpu.memref_squeeze %521 : memref<1x!tpu.dma_semaphore, #tpu.memory_space<semaphore_mem>> -> memref<!tpu.dma_semaphore, #tpu.memory_space<semaphore_mem>>
      tpu.wait_dma2 semaphore(%522 : memref<!tpu.dma_semaphore, #tpu.memory_space<semaphore_mem>>) src(%519 : memref<1x32xf32, #tpu.memory_space<any>>) dst(%520 : memref<1x32xf32, #tpu.memory_space<vmem>>)
      %c8_i32_458 = arith.constant 8 : i32
      %523 = arith.muli %474, %c8_i32_458 : i32
      %c6_i32_459 = arith.constant 6 : i32
      %524 = arith.addi %523, %c6_i32_459 : i32
      %c8_i32_460 = arith.constant 8 : i32
      %525 = arith.muli %474, %c8_i32_460 : i32
      %c6_i32_461 = arith.constant 6 : i32
      %526 = arith.addi %525, %c6_i32_461 : i32
      %c0_i32_462 = arith.constant 0 : i32
      %c0_i32_463 = arith.constant 0 : i32
      %527 = tpu.memref_slice %arg3[%c0_i32_462, %c0_i32_463] : memref<256x32xf32, #tpu.memory_space<any>> -> memref<1x32xf32, #tpu.memory_space<any>>
      %c0_i32_464 = arith.constant 0 : i32
      %528 = tpu.memref_slice %arg12[%524, %c0_i32_464] : memref<16x32xf32, #tpu.memory_space<vmem>> -> memref<1x32xf32, #tpu.memory_space<vmem>>
      %529 = tpu.memref_slice %arg13[%526] : memref<16x!tpu.dma_semaphore, #tpu.memory_space<semaphore_mem>> -> memref<1x!tpu.dma_semaphore, #tpu.memory_space<semaphore_mem>>
      %530 = tpu.memref_squeeze %529 : memref<1x!tpu.dma_semaphore, #tpu.memory_space<semaphore_mem>> -> memref<!tpu.dma_semaphore, #tpu.memory_space<semaphore_mem>>
      tpu.wait_dma2 semaphore(%530 : memref<!tpu.dma_semaphore, #tpu.memory_space<semaphore_mem>>) src(%527 : memref<1x32xf32, #tpu.memory_space<any>>) dst(%528 : memref<1x32xf32, #tpu.memory_space<vmem>>)
      %c8_i32_465 = arith.constant 8 : i32
      %531 = arith.muli %474, %c8_i32_465 : i32
      %c7_i32_466 = arith.constant 7 : i32
      %532 = arith.addi %531, %c7_i32_466 : i32
      %c8_i32_467 = arith.constant 8 : i32
      %533 = arith.muli %474, %c8_i32_467 : i32
      %c7_i32_468 = arith.constant 7 : i32
      %534 = arith.addi %533, %c7_i32_468 : i32
      %c0_i32_469 = arith.constant 0 : i32
      %c0_i32_470 = arith.constant 0 : i32
      %535 = tpu.memref_slice %arg3[%c0_i32_469, %c0_i32_470] : memref<256x32xf32, #tpu.memory_space<any>> -> memref<1x32xf32, #tpu.memory_space<any>>
      %c0_i32_471 = arith.constant 0 : i32
      %536 = tpu.memref_slice %arg12[%532, %c0_i32_471] : memref<16x32xf32, #tpu.memory_space<vmem>> -> memref<1x32xf32, #tpu.memory_space<vmem>>
      %537 = tpu.memref_slice %arg13[%534] : memref<16x!tpu.dma_semaphore, #tpu.memory_space<semaphore_mem>> -> memref<1x!tpu.dma_semaphore, #tpu.memory_space<semaphore_mem>>
      %538 = tpu.memref_squeeze %537 : memref<1x!tpu.dma_semaphore, #tpu.memory_space<semaphore_mem>> -> memref<!tpu.dma_semaphore, #tpu.memory_space<semaphore_mem>>
      tpu.wait_dma2 semaphore(%538 : memref<!tpu.dma_semaphore, #tpu.memory_space<semaphore_mem>>) src(%535 : memref<1x32xf32, #tpu.memory_space<any>>) dst(%536 : memref<1x32xf32, #tpu.memory_space<vmem>>)
      %c1_i32_472 = arith.constant 1 : i32
      %539 = arith.addi %arg15, %c1_i32_472 : i32
      %c3_i32_473 = arith.constant 3 : i32
      %540 = arith.cmpi slt, %539, %c3_i32_473 : i32
      %541 = arith.extui %540 : i1 to i32
      %c0_i32_474 = arith.constant 0 : i32
      %542 = arith.cmpi ne, %541, %c0_i32_474 : i32
      scf.if %542 {
        %c1_i32_480 = arith.constant 1 : i32
        %560 = arith.addi %arg15, %c1_i32_480 : i32
        %c1_i32_481 = arith.constant 1 : i32
        %561 = arith.subi %c1_i32_481, %474 : i32
        %c8_i32_482 = arith.constant 8 : i32
        %562 = arith.muli %560, %c8_i32_482 : i32
        %c0_i32_483 = arith.constant 0 : i32
        %563 = arith.addi %562, %c0_i32_483 : i32
        %c23_i32_484 = arith.constant 23 : i32
        %564 = arith.minsi %563, %c23_i32_484 : i32
        %c0_485 = arith.constant 0 : index
        %565 = arith.index_cast %564 : i32 to index
        %566 = memref.load %arg1[%c0_485, %565] : memref<4x24xi32, #tpu.memory_space<smem>>
        %c-1_i32_486 = arith.constant -1 : i32
        %567 = arith.cmpi eq, %566, %c-1_i32_486 : i32
        %c0_i32_487 = arith.constant 0 : i32
        %568 = arith.select %567, %c0_i32_487, %566 : i32
        %c0_i32_488 = arith.constant 0 : i32
        %c255_i32_489 = arith.constant 255 : i32
        %569 = arith.maxsi %c0_i32_488, %568 : i32
        %570 = arith.minsi %c255_i32_489, %569 : i32
        %c8_i32_490 = arith.constant 8 : i32
        %571 = arith.muli %561, %c8_i32_490 : i32
        %c0_i32_491 = arith.constant 0 : i32
        %572 = arith.addi %571, %c0_i32_491 : i32
        %c8_i32_492 = arith.constant 8 : i32
        %573 = arith.muli %561, %c8_i32_492 : i32
        %c0_i32_493 = arith.constant 0 : i32
        %574 = arith.addi %573, %c0_i32_493 : i32
        %c0_i32_494 = arith.constant 0 : i32
        %575 = tpu.memref_slice %arg3[%570, %c0_i32_494] : memref<256x32xf32, #tpu.memory_space<any>> -> memref<1x32xf32, #tpu.memory_space<any>>
        %c0_i32_495 = arith.constant 0 : i32
        %576 = tpu.memref_slice %arg12[%572, %c0_i32_495] : memref<16x32xf32, #tpu.memory_space<vmem>> -> memref<1x32xf32, #tpu.memory_space<vmem>>
        %577 = tpu.memref_slice %arg13[%574] : memref<16x!tpu.dma_semaphore, #tpu.memory_space<semaphore_mem>> -> memref<1x!tpu.dma_semaphore, #tpu.memory_space<semaphore_mem>>
        %578 = tpu.memref_squeeze %577 : memref<1x!tpu.dma_semaphore, #tpu.memory_space<semaphore_mem>> -> memref<!tpu.dma_semaphore, #tpu.memory_space<semaphore_mem>>
        tpu.enqueue_dma source(%575 : memref<1x32xf32, #tpu.memory_space<any>>) target(%576 : memref<1x32xf32, #tpu.memory_space<vmem>>) target_semaphore(%578 : memref<!tpu.dma_semaphore, #tpu.memory_space<semaphore_mem>>)
        %c8_i32_496 = arith.constant 8 : i32
        %579 = arith.muli %560, %c8_i32_496 : i32
        %c1_i32_497 = arith.constant 1 : i32
        %580 = arith.addi %579, %c1_i32_497 : i32
        %c23_i32_498 = arith.constant 23 : i32
        %581 = arith.minsi %580, %c23_i32_498 : i32
        %c0_499 = arith.constant 0 : index
        %582 = arith.index_cast %581 : i32 to index
        %583 = memref.load %arg1[%c0_499, %582] : memref<4x24xi32, #tpu.memory_space<smem>>
        %c-1_i32_500 = arith.constant -1 : i32
        %584 = arith.cmpi eq, %583, %c-1_i32_500 : i32
        %c0_i32_501 = arith.constant 0 : i32
        %585 = arith.select %584, %c0_i32_501, %583 : i32
        %c0_i32_502 = arith.constant 0 : i32
        %c255_i32_503 = arith.constant 255 : i32
        %586 = arith.maxsi %c0_i32_502, %585 : i32
        %587 = arith.minsi %c255_i32_503, %586 : i32
        %c8_i32_504 = arith.constant 8 : i32
        %588 = arith.muli %561, %c8_i32_504 : i32
        %c1_i32_505 = arith.constant 1 : i32
        %589 = arith.addi %588, %c1_i32_505 : i32
        %c8_i32_506 = arith.constant 8 : i32
        %590 = arith.muli %561, %c8_i32_506 : i32
        %c1_i32_507 = arith.constant 1 : i32
        %591 = arith.addi %590, %c1_i32_507 : i32
        %c0_i32_508 = arith.constant 0 : i32
        %592 = tpu.memref_slice %arg3[%587, %c0_i32_508] : memref<256x32xf32, #tpu.memory_space<any>> -> memref<1x32xf32, #tpu.memory_space<any>>
        %c0_i32_509 = arith.constant 0 : i32
        %593 = tpu.memref_slice %arg12[%589, %c0_i32_509] : memref<16x32xf32, #tpu.memory_space<vmem>> -> memref<1x32xf32, #tpu.memory_space<vmem>>
        %594 = tpu.memref_slice %arg13[%591] : memref<16x!tpu.dma_semaphore, #tpu.memory_space<semaphore_mem>> -> memref<1x!tpu.dma_semaphore, #tpu.memory_space<semaphore_mem>>
        %595 = tpu.memref_squeeze %594 : memref<1x!tpu.dma_semaphore, #tpu.memory_space<semaphore_mem>> -> memref<!tpu.dma_semaphore, #tpu.memory_space<semaphore_mem>>
        tpu.enqueue_dma source(%592 : memref<1x32xf32, #tpu.memory_space<any>>) target(%593 : memref<1x32xf32, #tpu.memory_space<vmem>>) target_semaphore(%595 : memref<!tpu.dma_semaphore, #tpu.memory_space<semaphore_mem>>)
        %c8_i32_510 = arith.constant 8 : i32
        %596 = arith.muli %560, %c8_i32_510 : i32
        %c2_i32_511 = arith.constant 2 : i32
        %597 = arith.addi %596, %c2_i32_511 : i32
        %c23_i32_512 = arith.constant 23 : i32
        %598 = arith.minsi %597, %c23_i32_512 : i32
        %c0_513 = arith.constant 0 : index
        %599 = arith.index_cast %598 : i32 to index
        %600 = memref.load %arg1[%c0_513, %599] : memref<4x24xi32, #tpu.memory_space<smem>>
        %c-1_i32_514 = arith.constant -1 : i32
        %601 = arith.cmpi eq, %600, %c-1_i32_514 : i32
        %c0_i32_515 = arith.constant 0 : i32
        %602 = arith.select %601, %c0_i32_515, %600 : i32
        %c0_i32_516 = arith.constant 0 : i32
        %c255_i32_517 = arith.constant 255 : i32
        %603 = arith.maxsi %c0_i32_516, %602 : i32
        %604 = arith.minsi %c255_i32_517, %603 : i32
        %c8_i32_518 = arith.constant 8 : i32
        %605 = arith.muli %561, %c8_i32_518 : i32
        %c2_i32_519 = arith.constant 2 : i32
        %606 = arith.addi %605, %c2_i32_519 : i32
        %c8_i32_520 = arith.constant 8 : i32
        %607 = arith.muli %561, %c8_i32_520 : i32
        %c2_i32_521 = arith.constant 2 : i32
        %608 = arith.addi %607, %c2_i32_521 : i32
        %c0_i32_522 = arith.constant 0 : i32
        %609 = tpu.memref_slice %arg3[%604, %c0_i32_522] : memref<256x32xf32, #tpu.memory_space<any>> -> memref<1x32xf32, #tpu.memory_space<any>>
        %c0_i32_523 = arith.constant 0 : i32
        %610 = tpu.memref_slice %arg12[%606, %c0_i32_523] : memref<16x32xf32, #tpu.memory_space<vmem>> -> memref<1x32xf32, #tpu.memory_space<vmem>>
        %611 = tpu.memref_slice %arg13[%608] : memref<16x!tpu.dma_semaphore, #tpu.memory_space<semaphore_mem>> -> memref<1x!tpu.dma_semaphore, #tpu.memory_space<semaphore_mem>>
        %612 = tpu.memref_squeeze %611 : memref<1x!tpu.dma_semaphore, #tpu.memory_space<semaphore_mem>> -> memref<!tpu.dma_semaphore, #tpu.memory_space<semaphore_mem>>
        tpu.enqueue_dma source(%609 : memref<1x32xf32, #tpu.memory_space<any>>) target(%610 : memref<1x32xf32, #tpu.memory_space<vmem>>) target_semaphore(%612 : memref<!tpu.dma_semaphore, #tpu.memory_space<semaphore_mem>>)
        %c8_i32_524 = arith.constant 8 : i32
        %613 = arith.muli %560, %c8_i32_524 : i32
        %c3_i32_525 = arith.constant 3 : i32
        %614 = arith.addi %613, %c3_i32_525 : i32
        %c23_i32_526 = arith.constant 23 : i32
        %615 = arith.minsi %614, %c23_i32_526 : i32
        %c0_527 = arith.constant 0 : index
        %616 = arith.index_cast %615 : i32 to index
        %617 = memref.load %arg1[%c0_527, %616] : memref<4x24xi32, #tpu.memory_space<smem>>
        %c-1_i32_528 = arith.constant -1 : i32
        %618 = arith.cmpi eq, %617, %c-1_i32_528 : i32
        %c0_i32_529 = arith.constant 0 : i32
        %619 = arith.select %618, %c0_i32_529, %617 : i32
        %c0_i32_530 = arith.constant 0 : i32
        %c255_i32_531 = arith.constant 255 : i32
        %620 = arith.maxsi %c0_i32_530, %619 : i32
        %621 = arith.minsi %c255_i32_531, %620 : i32
        %c8_i32_532 = arith.constant 8 : i32
        %622 = arith.muli %561, %c8_i32_532 : i32
        %c3_i32_533 = arith.constant 3 : i32
        %623 = arith.addi %622, %c3_i32_533 : i32
        %c8_i32_534 = arith.constant 8 : i32
        %624 = arith.muli %561, %c8_i32_534 : i32
        %c3_i32_535 = arith.constant 3 : i32
        %625 = arith.addi %624, %c3_i32_535 : i32
        %c0_i32_536 = arith.constant 0 : i32
        %626 = tpu.memref_slice %arg3[%621, %c0_i32_536] : memref<256x32xf32, #tpu.memory_space<any>> -> memref<1x32xf32, #tpu.memory_space<any>>
        %c0_i32_537 = arith.constant 0 : i32
        %627 = tpu.memref_slice %arg12[%623, %c0_i32_537] : memref<16x32xf32, #tpu.memory_space<vmem>> -> memref<1x32xf32, #tpu.memory_space<vmem>>
        %628 = tpu.memref_slice %arg13[%625] : memref<16x!tpu.dma_semaphore, #tpu.memory_space<semaphore_mem>> -> memref<1x!tpu.dma_semaphore, #tpu.memory_space<semaphore_mem>>
        %629 = tpu.memref_squeeze %628 : memref<1x!tpu.dma_semaphore, #tpu.memory_space<semaphore_mem>> -> memref<!tpu.dma_semaphore, #tpu.memory_space<semaphore_mem>>
        tpu.enqueue_dma source(%626 : memref<1x32xf32, #tpu.memory_space<any>>) target(%627 : memref<1x32xf32, #tpu.memory_space<vmem>>) target_semaphore(%629 : memref<!tpu.dma_semaphore, #tpu.memory_space<semaphore_mem>>)
        %c8_i32_538 = arith.constant 8 : i32
        %630 = arith.muli %560, %c8_i32_538 : i32
        %c4_i32_539 = arith.constant 4 : i32
        %631 = arith.addi %630, %c4_i32_539 : i32
        %c23_i32_540 = arith.constant 23 : i32
        %632 = arith.minsi %631, %c23_i32_540 : i32
        %c0_541 = arith.constant 0 : index
        %633 = arith.index_cast %632 : i32 to index
        %634 = memref.load %arg1[%c0_541, %633] : memref<4x24xi32, #tpu.memory_space<smem>>
        %c-1_i32_542 = arith.constant -1 : i32
        %635 = arith.cmpi eq, %634, %c-1_i32_542 : i32
        %c0_i32_543 = arith.constant 0 : i32
        %636 = arith.select %635, %c0_i32_543, %634 : i32
        %c0_i32_544 = arith.constant 0 : i32
        %c255_i32_545 = arith.constant 255 : i32
        %637 = arith.maxsi %c0_i32_544, %636 : i32
        %638 = arith.minsi %c255_i32_545, %637 : i32
        %c8_i32_546 = arith.constant 8 : i32
        %639 = arith.muli %561, %c8_i32_546 : i32
        %c4_i32_547 = arith.constant 4 : i32
        %640 = arith.addi %639, %c4_i32_547 : i32
        %c8_i32_548 = arith.constant 8 : i32
        %641 = arith.muli %561, %c8_i32_548 : i32
        %c4_i32_549 = arith.constant 4 : i32
        %642 = arith.addi %641, %c4_i32_549 : i32
        %c0_i32_550 = arith.constant 0 : i32
        %643 = tpu.memref_slice %arg3[%638, %c0_i32_550] : memref<256x32xf32, #tpu.memory_space<any>> -> memref<1x32xf32, #tpu.memory_space<any>>
        %c0_i32_551 = arith.constant 0 : i32
        %644 = tpu.memref_slice %arg12[%640, %c0_i32_551] : memref<16x32xf32, #tpu.memory_space<vmem>> -> memref<1x32xf32, #tpu.memory_space<vmem>>
        %645 = tpu.memref_slice %arg13[%642] : memref<16x!tpu.dma_semaphore, #tpu.memory_space<semaphore_mem>> -> memref<1x!tpu.dma_semaphore, #tpu.memory_space<semaphore_mem>>
        %646 = tpu.memref_squeeze %645 : memref<1x!tpu.dma_semaphore, #tpu.memory_space<semaphore_mem>> -> memref<!tpu.dma_semaphore, #tpu.memory_space<semaphore_mem>>
        tpu.enqueue_dma source(%643 : memref<1x32xf32, #tpu.memory_space<any>>) target(%644 : memref<1x32xf32, #tpu.memory_space<vmem>>) target_semaphore(%646 : memref<!tpu.dma_semaphore, #tpu.memory_space<semaphore_mem>>)
        %c8_i32_552 = arith.constant 8 : i32
        %647 = arith.muli %560, %c8_i32_552 : i32
        %c5_i32_553 = arith.constant 5 : i32
        %648 = arith.addi %647, %c5_i32_553 : i32
        %c23_i32_554 = arith.constant 23 : i32
        %649 = arith.minsi %648, %c23_i32_554 : i32
        %c0_555 = arith.constant 0 : index
        %650 = arith.index_cast %649 : i32 to index
        %651 = memref.load %arg1[%c0_555, %650] : memref<4x24xi32, #tpu.memory_space<smem>>
        %c-1_i32_556 = arith.constant -1 : i32
        %652 = arith.cmpi eq, %651, %c-1_i32_556 : i32
        %c0_i32_557 = arith.constant 0 : i32
        %653 = arith.select %652, %c0_i32_557, %651 : i32
        %c0_i32_558 = arith.constant 0 : i32
        %c255_i32_559 = arith.constant 255 : i32
        %654 = arith.maxsi %c0_i32_558, %653 : i32
        %655 = arith.minsi %c255_i32_559, %654 : i32
        %c8_i32_560 = arith.constant 8 : i32
        %656 = arith.muli %561, %c8_i32_560 : i32
        %c5_i32_561 = arith.constant 5 : i32
        %657 = arith.addi %656, %c5_i32_561 : i32
        %c8_i32_562 = arith.constant 8 : i32
        %658 = arith.muli %561, %c8_i32_562 : i32
        %c5_i32_563 = arith.constant 5 : i32
        %659 = arith.addi %658, %c5_i32_563 : i32
        %c0_i32_564 = arith.constant 0 : i32
        %660 = tpu.memref_slice %arg3[%655, %c0_i32_564] : memref<256x32xf32, #tpu.memory_space<any>> -> memref<1x32xf32, #tpu.memory_space<any>>
        %c0_i32_565 = arith.constant 0 : i32
        %661 = tpu.memref_slice %arg12[%657, %c0_i32_565] : memref<16x32xf32, #tpu.memory_space<vmem>> -> memref<1x32xf32, #tpu.memory_space<vmem>>
        %662 = tpu.memref_slice %arg13[%659] : memref<16x!tpu.dma_semaphore, #tpu.memory_space<semaphore_mem>> -> memref<1x!tpu.dma_semaphore, #tpu.memory_space<semaphore_mem>>
        %663 = tpu.memref_squeeze %662 : memref<1x!tpu.dma_semaphore, #tpu.memory_space<semaphore_mem>> -> memref<!tpu.dma_semaphore, #tpu.memory_space<semaphore_mem>>
        tpu.enqueue_dma source(%660 : memref<1x32xf32, #tpu.memory_space<any>>) target(%661 : memref<1x32xf32, #tpu.memory_space<vmem>>) target_semaphore(%663 : memref<!tpu.dma_semaphore, #tpu.memory_space<semaphore_mem>>)
        %c8_i32_566 = arith.constant 8 : i32
        %664 = arith.muli %560, %c8_i32_566 : i32
        %c6_i32_567 = arith.constant 6 : i32
        %665 = arith.addi %664, %c6_i32_567 : i32
        %c23_i32_568 = arith.constant 23 : i32
        %666 = arith.minsi %665, %c23_i32_568 : i32
        %c0_569 = arith.constant 0 : index
        %667 = arith.index_cast %666 : i32 to index
        %668 = memref.load %arg1[%c0_569, %667] : memref<4x24xi32, #tpu.memory_space<smem>>
        %c-1_i32_570 = arith.constant -1 : i32
        %669 = arith.cmpi eq, %668, %c-1_i32_570 : i32
        %c0_i32_571 = arith.constant 0 : i32
        %670 = arith.select %669, %c0_i32_571, %668 : i32
        %c0_i32_572 = arith.constant 0 : i32
        %c255_i32_573 = arith.constant 255 : i32
        %671 = arith.maxsi %c0_i32_572, %670 : i32
        %672 = arith.minsi %c255_i32_573, %671 : i32
        %c8_i32_574 = arith.constant 8 : i32
        %673 = arith.muli %561, %c8_i32_574 : i32
        %c6_i32_575 = arith.constant 6 : i32
        %674 = arith.addi %673, %c6_i32_575 : i32
        %c8_i32_576 = arith.constant 8 : i32
        %675 = arith.muli %561, %c8_i32_576 : i32
        %c6_i32_577 = arith.constant 6 : i32
        %676 = arith.addi %675, %c6_i32_577 : i32
        %c0_i32_578 = arith.constant 0 : i32
        %677 = tpu.memref_slice %arg3[%672, %c0_i32_578] : memref<256x32xf32, #tpu.memory_space<any>> -> memref<1x32xf32, #tpu.memory_space<any>>
        %c0_i32_579 = arith.constant 0 : i32
        %678 = tpu.memref_slice %arg12[%674, %c0_i32_579] : memref<16x32xf32, #tpu.memory_space<vmem>> -> memref<1x32xf32, #tpu.memory_space<vmem>>
        %679 = tpu.memref_slice %arg13[%676] : memref<16x!tpu.dma_semaphore, #tpu.memory_space<semaphore_mem>> -> memref<1x!tpu.dma_semaphore, #tpu.memory_space<semaphore_mem>>
        %680 = tpu.memref_squeeze %679 : memref<1x!tpu.dma_semaphore, #tpu.memory_space<semaphore_mem>> -> memref<!tpu.dma_semaphore, #tpu.memory_space<semaphore_mem>>
        tpu.enqueue_dma source(%677 : memref<1x32xf32, #tpu.memory_space<any>>) target(%678 : memref<1x32xf32, #tpu.memory_space<vmem>>) target_semaphore(%680 : memref<!tpu.dma_semaphore, #tpu.memory_space<semaphore_mem>>)
        %c8_i32_580 = arith.constant 8 : i32
        %681 = arith.muli %560, %c8_i32_580 : i32
        %c7_i32_581 = arith.constant 7 : i32
        %682 = arith.addi %681, %c7_i32_581 : i32
        %c23_i32_582 = arith.constant 23 : i32
        %683 = arith.minsi %682, %c23_i32_582 : i32
        %c0_583 = arith.constant 0 : index
        %684 = arith.index_cast %683 : i32 to index
        %685 = memref.load %arg1[%c0_583, %684] : memref<4x24xi32, #tpu.memory_space<smem>>
        %c-1_i32_584 = arith.constant -1 : i32
        %686 = arith.cmpi eq, %685, %c-1_i32_584 : i32
        %c0_i32_585 = arith.constant 0 : i32
        %687 = arith.select %686, %c0_i32_585, %685 : i32
        %c0_i32_586 = arith.constant 0 : i32
        %c255_i32_587 = arith.constant 255 : i32
        %688 = arith.maxsi %c0_i32_586, %687 : i32
        %689 = arith.minsi %c255_i32_587, %688 : i32
        %c8_i32_588 = arith.constant 8 : i32
        %690 = arith.muli %561, %c8_i32_588 : i32
        %c7_i32_589 = arith.constant 7 : i32
        %691 = arith.addi %690, %c7_i32_589 : i32
        %c8_i32_590 = arith.constant 8 : i32
        %692 = arith.muli %561, %c8_i32_590 : i32
        %c7_i32_591 = arith.constant 7 : i32
        %693 = arith.addi %692, %c7_i32_591 : i32
        %c0_i32_592 = arith.constant 0 : i32
        %694 = tpu.memref_slice %arg3[%689, %c0_i32_592] : memref<256x32xf32, #tpu.memory_space<any>> -> memref<1x32xf32, #tpu.memory_space<any>>
        %c0_i32_593 = arith.constant 0 : i32
        %695 = tpu.memref_slice %arg12[%691, %c0_i32_593] : memref<16x32xf32, #tpu.memory_space<vmem>> -> memref<1x32xf32, #tpu.memory_space<vmem>>
        %696 = tpu.memref_slice %arg13[%693] : memref<16x!tpu.dma_semaphore, #tpu.memory_space<semaphore_mem>> -> memref<1x!tpu.dma_semaphore, #tpu.memory_space<semaphore_mem>>
        %697 = tpu.memref_squeeze %696 : memref<1x!tpu.dma_semaphore, #tpu.memory_space<semaphore_mem>> -> memref<!tpu.dma_semaphore, #tpu.memory_space<semaphore_mem>>
        tpu.enqueue_dma source(%694 : memref<1x32xf32, #tpu.memory_space<any>>) target(%695 : memref<1x32xf32, #tpu.memory_space<vmem>>) target_semaphore(%697 : memref<!tpu.dma_semaphore, #tpu.memory_space<semaphore_mem>>)
      } else {
      }
      %c8_i32_475 = arith.constant 8 : i32
      %543 = arith.muli %474, %c8_i32_475 : i32
      %544 = tpu.assume_multiple %543, 8 : i32
      %545 = arith.index_cast %544 : i32 to index
      %c0_476 = arith.constant 0 : index
      %546 = vector.load %arg12[%545, %c0_476] : memref<16x32xf32, #tpu.memory_space<vmem>>, vector<8x32xf32>
      %c8_i32_477 = arith.constant 8 : i32
      %547 = arith.muli %arg15, %c8_i32_477 : i32
      %548 = tpu.iota {dimensions = array<i32: 0>} : vector<8x1xi32>
      %549 = vector.broadcast %547 : i32 to vector<8x1xi32>
      %550 = arith.addi %549, %548 : vector<8x1xi32>
      %c24_i32 = arith.constant 24 : i32
      %551 = vector.broadcast %c24_i32 : i32 to vector<8x1xi32>
      %552 = arith.cmpi slt, %550, %551 : vector<8x1xi32>
      %cst_478 = arith.constant 0.000000e+00 : f32
      %553 = vector.shape_cast %552 : vector<8x1xi1> to vector<8x1xi1>
      %554 = vector.broadcast %553 : vector<8x1xi1> to vector<8x32xi1>
      %555 = vector.broadcast %cst_478 : f32 to vector<8x32xf32>
      %556 = arith.select %554, %546, %555 : vector<8x32xi1>, vector<8x32xf32>
      %cst_479 = arith.constant dense<0.000000e+00> : vector<32xf32>
      %557 = vector.multi_reduction <add>, %556, %cst_479 [0] : vector<8x32xf32> to vector<32xf32>
      %558 = vector.shape_cast %557 : vector<32xf32> to vector<1x32xf32>
      %559 = arith.addf %arg16, %558 : vector<1x32xf32>
      scf.yield %559 : vector<1x32xf32>
    }
    %c3_i32_79 = arith.constant 3 : i32
    %cst_80 = arith.constant 0.0416666679 : f32
    %91 = vector.broadcast %cst_80 : f32 to vector<1x32xf32>
    %92 = arith.mulf %90, %91 : vector<1x32xf32>
    %c0_81 = arith.constant 0 : index
    %c0_82 = arith.constant 0 : index
    %93 = vector.load %arg14[%c0_81, %c0_82] : memref<4x32xf32, #tpu.memory_space<vmem>>, vector<1x32xf32>
    tpu.vector_store %arg14[%c0_81, %c0_82], %92 {strides = array<i32>} : memref<4x32xf32, #tpu.memory_space<vmem>>, vector<1x32xf32>,
    %c0_i32_83 = arith.constant 0 : i32
    %c23_i32_84 = arith.constant 23 : i32
    %94 = arith.minsi %c0_i32_83, %c23_i32_84 : i32
    %c1 = arith.constant 1 : index
    %95 = arith.index_cast %94 : i32 to index
    %96 = memref.load %arg1[%c1, %95] : memref<4x24xi32, #tpu.memory_space<smem>>
    %c-1_i32_85 = arith.constant -1 : i32
    %97 = arith.cmpi eq, %96, %c-1_i32_85 : i32
    %c0_i32_86 = arith.constant 0 : i32
    %98 = arith.select %97, %c0_i32_86, %96 : i32
    %c0_i32_87 = arith.constant 0 : i32
    %c255_i32_88 = arith.constant 255 : i32
    %99 = arith.maxsi %c0_i32_87, %98 : i32
    %100 = arith.minsi %c255_i32_88, %99 : i32
    %c0_i32_89 = arith.constant 0 : i32
    %c0_i32_90 = arith.constant 0 : i32
    %101 = tpu.memref_slice %arg3[%100, %c0_i32_90] : memref<256x32xf32, #tpu.memory_space<any>> -> memref<1x32xf32, #tpu.memory_space<any>>
    %c0_i32_91 = arith.constant 0 : i32
    %c0_i32_92 = arith.constant 0 : i32
    %102 = tpu.memref_slice %arg12[%c0_i32_91, %c0_i32_92] : memref<16x32xf32, #tpu.memory_space<vmem>> -> memref<1x32xf32, #tpu.memory_space<vmem>>
    %103 = tpu.memref_slice %arg13[%c0_i32_89] : memref<16x!tpu.dma_semaphore, #tpu.memory_space<semaphore_mem>> -> memref<1x!tpu.dma_semaphore, #tpu.memory_space<semaphore_mem>>
    %104 = tpu.memref_squeeze %103 : memref<1x!tpu.dma_semaphore, #tpu.memory_space<semaphore_mem>> -> memref<!tpu.dma_semaphore, #tpu.memory_space<semaphore_mem>>
    tpu.enqueue_dma source(%101 : memref<1x32xf32, #tpu.memory_space<any>>) target(%102 : memref<1x32xf32, #tpu.memory_space<vmem>>) target_semaphore(%104 : memref<!tpu.dma_semaphore, #tpu.memory_space<semaphore_mem>>)
    %c1_i32_93 = arith.constant 1 : i32
    %c23_i32_94 = arith.constant 23 : i32
    %105 = arith.minsi %c1_i32_93, %c23_i32_94 : i32
    %c1_95 = arith.constant 1 : index
    %106 = arith.index_cast %105 : i32 to index
    %107 = memref.load %arg1[%c1_95, %106] : memref<4x24xi32, #tpu.memory_space<smem>>
    %c-1_i32_96 = arith.constant -1 : i32
    %108 = arith.cmpi eq, %107, %c-1_i32_96 : i32
    %c0_i32_97 = arith.constant 0 : i32
    %109 = arith.select %108, %c0_i32_97, %107 : i32
    %c0_i32_98 = arith.constant 0 : i32
    %c255_i32_99 = arith.constant 255 : i32
    %110 = arith.maxsi %c0_i32_98, %109 : i32
    %111 = arith.minsi %c255_i32_99, %110 : i32
    %c1_i32_100 = arith.constant 1 : i32
    %c0_i32_101 = arith.constant 0 : i32
    %112 = tpu.memref_slice %arg3[%111, %c0_i32_101] : memref<256x32xf32, #tpu.memory_space<any>> -> memref<1x32xf32, #tpu.memory_space<any>>
    %c1_i32_102 = arith.constant 1 : i32
    %c0_i32_103 = arith.constant 0 : i32
    %113 = tpu.memref_slice %arg12[%c1_i32_102, %c0_i32_103] : memref<16x32xf32, #tpu.memory_space<vmem>> -> memref<1x32xf32, #tpu.memory_space<vmem>>
    %114 = tpu.memref_slice %arg13[%c1_i32_100] : memref<16x!tpu.dma_semaphore, #tpu.memory_space<semaphore_mem>> -> memref<1x!tpu.dma_semaphore, #tpu.memory_space<semaphore_mem>>
    %115 = tpu.memref_squeeze %114 : memref<1x!tpu.dma_semaphore, #tpu.memory_space<semaphore_mem>> -> memref<!tpu.dma_semaphore, #tpu.memory_space<semaphore_mem>>
    tpu.enqueue_dma source(%112 : memref<1x32xf32, #tpu.memory_space<any>>) target(%113 : memref<1x32xf32, #tpu.memory_space<vmem>>) target_semaphore(%115 : memref<!tpu.dma_semaphore, #tpu.memory_space<semaphore_mem>>)
    %c2_i32_104 = arith.constant 2 : i32
    %c23_i32_105 = arith.constant 23 : i32
    %116 = arith.minsi %c2_i32_104, %c23_i32_105 : i32
    %c1_106 = arith.constant 1 : index
    %117 = arith.index_cast %116 : i32 to index
    %118 = memref.load %arg1[%c1_106, %117] : memref<4x24xi32, #tpu.memory_space<smem>>
    %c-1_i32_107 = arith.constant -1 : i32
    %119 = arith.cmpi eq, %118, %c-1_i32_107 : i32
    %c0_i32_108 = arith.constant 0 : i32
    %120 = arith.select %119, %c0_i32_108, %118 : i32
    %c0_i32_109 = arith.constant 0 : i32
    %c255_i32_110 = arith.constant 255 : i32
    %121 = arith.maxsi %c0_i32_109, %120 : i32
    %122 = arith.minsi %c255_i32_110, %121 : i32
    %c2_i32_111 = arith.constant 2 : i32
    %c0_i32_112 = arith.constant 0 : i32
    %123 = tpu.memref_slice %arg3[%122, %c0_i32_112] : memref<256x32xf32, #tpu.memory_space<any>> -> memref<1x32xf32, #tpu.memory_space<any>>
    %c2_i32_113 = arith.constant 2 : i32
    %c0_i32_114 = arith.constant 0 : i32
    %124 = tpu.memref_slice %arg12[%c2_i32_113, %c0_i32_114] : memref<16x32xf32, #tpu.memory_space<vmem>> -> memref<1x32xf32, #tpu.memory_space<vmem>>
    %125 = tpu.memref_slice %arg13[%c2_i32_111] : memref<16x!tpu.dma_semaphore, #tpu.memory_space<semaphore_mem>> -> memref<1x!tpu.dma_semaphore, #tpu.memory_space<semaphore_mem>>
    %126 = tpu.memref_squeeze %125 : memref<1x!tpu.dma_semaphore, #tpu.memory_space<semaphore_mem>> -> memref<!tpu.dma_semaphore, #tpu.memory_space<semaphore_mem>>
    tpu.enqueue_dma source(%123 : memref<1x32xf32, #tpu.memory_space<any>>) target(%124 : memref<1x32xf32, #tpu.memory_space<vmem>>) target_semaphore(%126 : memref<!tpu.dma_semaphore, #tpu.memory_space<semaphore_mem>>)
    %c3_i32_115 = arith.constant 3 : i32
    %c23_i32_116 = arith.constant 23 : i32
    %127 = arith.minsi %c3_i32_115, %c23_i32_116 : i32
    %c1_117 = arith.constant 1 : index
    %128 = arith.index_cast %127 : i32 to index
    %129 = memref.load %arg1[%c1_117, %128] : memref<4x24xi32, #tpu.memory_space<smem>>
    %c-1_i32_118 = arith.constant -1 : i32
    %130 = arith.cmpi eq, %129, %c-1_i32_118 : i32
    %c0_i32_119 = arith.constant 0 : i32
    %131 = arith.select %130, %c0_i32_119, %129 : i32
    %c0_i32_120 = arith.constant 0 : i32
    %c255_i32_121 = arith.constant 255 : i32
    %132 = arith.maxsi %c0_i32_120, %131 : i32
    %133 = arith.minsi %c255_i32_121, %132 : i32
    %c3_i32_122 = arith.constant 3 : i32
    %c0_i32_123 = arith.constant 0 : i32
    %134 = tpu.memref_slice %arg3[%133, %c0_i32_123] : memref<256x32xf32, #tpu.memory_space<any>> -> memref<1x32xf32, #tpu.memory_space<any>>
    %c3_i32_124 = arith.constant 3 : i32
    %c0_i32_125 = arith.constant 0 : i32
    %135 = tpu.memref_slice %arg12[%c3_i32_124, %c0_i32_125] : memref<16x32xf32, #tpu.memory_space<vmem>> -> memref<1x32xf32, #tpu.memory_space<vmem>>
    %136 = tpu.memref_slice %arg13[%c3_i32_122] : memref<16x!tpu.dma_semaphore, #tpu.memory_space<semaphore_mem>> -> memref<1x!tpu.dma_semaphore, #tpu.memory_space<semaphore_mem>>
    %137 = tpu.memref_squeeze %136 : memref<1x!tpu.dma_semaphore, #tpu.memory_space<semaphore_mem>> -> memref<!tpu.dma_semaphore, #tpu.memory_space<semaphore_mem>>
    tpu.enqueue_dma source(%134 : memref<1x32xf32, #tpu.memory_space<any>>) target(%135 : memref<1x32xf32, #tpu.memory_space<vmem>>) target_semaphore(%137 : memref<!tpu.dma_semaphore, #tpu.memory_space<semaphore_mem>>)
    %c4_i32_126 = arith.constant 4 : i32
    %c23_i32_127 = arith.constant 23 : i32
    %138 = arith.minsi %c4_i32_126, %c23_i32_127 : i32
    %c1_128 = arith.constant 1 : index
    %139 = arith.index_cast %138 : i32 to index
    %140 = memref.load %arg1[%c1_128, %139] : memref<4x24xi32, #tpu.memory_space<smem>>
    %c-1_i32_129 = arith.constant -1 : i32
    %141 = arith.cmpi eq, %140, %c-1_i32_129 : i32
    %c0_i32_130 = arith.constant 0 : i32
    %142 = arith.select %141, %c0_i32_130, %140 : i32
    %c0_i32_131 = arith.constant 0 : i32
    %c255_i32_132 = arith.constant 255 : i32
    %143 = arith.maxsi %c0_i32_131, %142 : i32
    %144 = arith.minsi %c255_i32_132, %143 : i32
    %c4_i32_133 = arith.constant 4 : i32
    %c0_i32_134 = arith.constant 0 : i32
    %145 = tpu.memref_slice %arg3[%144, %c0_i32_134] : memref<256x32xf32, #tpu.memory_space<any>> -> memref<1x32xf32, #tpu.memory_space<any>>
    %c4_i32_135 = arith.constant 4 : i32
    %c0_i32_136 = arith.constant 0 : i32
    %146 = tpu.memref_slice %arg12[%c4_i32_135, %c0_i32_136] : memref<16x32xf32, #tpu.memory_space<vmem>> -> memref<1x32xf32, #tpu.memory_space<vmem>>
    %147 = tpu.memref_slice %arg13[%c4_i32_133] : memref<16x!tpu.dma_semaphore, #tpu.memory_space<semaphore_mem>> -> memref<1x!tpu.dma_semaphore, #tpu.memory_space<semaphore_mem>>
    %148 = tpu.memref_squeeze %147 : memref<1x!tpu.dma_semaphore, #tpu.memory_space<semaphore_mem>> -> memref<!tpu.dma_semaphore, #tpu.memory_space<semaphore_mem>>
    tpu.enqueue_dma source(%145 : memref<1x32xf32, #tpu.memory_space<any>>) target(%146 : memref<1x32xf32, #tpu.memory_space<vmem>>) target_semaphore(%148 : memref<!tpu.dma_semaphore, #tpu.memory_space<semaphore_mem>>)
    %c5_i32_137 = arith.constant 5 : i32
    %c23_i32_138 = arith.constant 23 : i32
    %149 = arith.minsi %c5_i32_137, %c23_i32_138 : i32
    %c1_139 = arith.constant 1 : index
    %150 = arith.index_cast %149 : i32 to index
    %151 = memref.load %arg1[%c1_139, %150] : memref<4x24xi32, #tpu.memory_space<smem>>
    %c-1_i32_140 = arith.constant -1 : i32
    %152 = arith.cmpi eq, %151, %c-1_i32_140 : i32
    %c0_i32_141 = arith.constant 0 : i32
    %153 = arith.select %152, %c0_i32_141, %151 : i32
    %c0_i32_142 = arith.constant 0 : i32
    %c255_i32_143 = arith.constant 255 : i32
    %154 = arith.maxsi %c0_i32_142, %153 : i32
    %155 = arith.minsi %c255_i32_143, %154 : i32
    %c5_i32_144 = arith.constant 5 : i32
    %c0_i32_145 = arith.constant 0 : i32
    %156 = tpu.memref_slice %arg3[%155, %c0_i32_145] : memref<256x32xf32, #tpu.memory_space<any>> -> memref<1x32xf32, #tpu.memory_space<any>>
    %c5_i32_146 = arith.constant 5 : i32
    %c0_i32_147 = arith.constant 0 : i32
    %157 = tpu.memref_slice %arg12[%c5_i32_146, %c0_i32_147] : memref<16x32xf32, #tpu.memory_space<vmem>> -> memref<1x32xf32, #tpu.memory_space<vmem>>
    %158 = tpu.memref_slice %arg13[%c5_i32_144] : memref<16x!tpu.dma_semaphore, #tpu.memory_space<semaphore_mem>> -> memref<1x!tpu.dma_semaphore, #tpu.memory_space<semaphore_mem>>
    %159 = tpu.memref_squeeze %158 : memref<1x!tpu.dma_semaphore, #tpu.memory_space<semaphore_mem>> -> memref<!tpu.dma_semaphore, #tpu.memory_space<semaphore_mem>>
    tpu.enqueue_dma source(%156 : memref<1x32xf32, #tpu.memory_space<any>>) target(%157 : memref<1x32xf32, #tpu.memory_space<vmem>>) target_semaphore(%159 : memref<!tpu.dma_semaphore, #tpu.memory_space<semaphore_mem>>)
    %c6_i32_148 = arith.constant 6 : i32
    %c23_i32_149 = arith.constant 23 : i32
    %160 = arith.minsi %c6_i32_148, %c23_i32_149 : i32
    %c1_150 = arith.constant 1 : index
    %161 = arith.index_cast %160 : i32 to index
    %162 = memref.load %arg1[%c1_150, %161] : memref<4x24xi32, #tpu.memory_space<smem>>
    %c-1_i32_151 = arith.constant -1 : i32
    %163 = arith.cmpi eq, %162, %c-1_i32_151 : i32
    %c0_i32_152 = arith.constant 0 : i32
    %164 = arith.select %163, %c0_i32_152, %162 : i32
    %c0_i32_153 = arith.constant 0 : i32
    %c255_i32_154 = arith.constant 255 : i32
    %165 = arith.maxsi %c0_i32_153, %164 : i32
    %166 = arith.minsi %c255_i32_154, %165 : i32
    %c6_i32_155 = arith.constant 6 : i32
    %c0_i32_156 = arith.constant 0 : i32
    %167 = tpu.memref_slice %arg3[%166, %c0_i32_156] : memref<256x32xf32, #tpu.memory_space<any>> -> memref<1x32xf32, #tpu.memory_space<any>>
    %c6_i32_157 = arith.constant 6 : i32
    %c0_i32_158 = arith.constant 0 : i32
    %168 = tpu.memref_slice %arg12[%c6_i32_157, %c0_i32_158] : memref<16x32xf32, #tpu.memory_space<vmem>> -> memref<1x32xf32, #tpu.memory_space<vmem>>
    %169 = tpu.memref_slice %arg13[%c6_i32_155] : memref<16x!tpu.dma_semaphore, #tpu.memory_space<semaphore_mem>> -> memref<1x!tpu.dma_semaphore, #tpu.memory_space<semaphore_mem>>
    %170 = tpu.memref_squeeze %169 : memref<1x!tpu.dma_semaphore, #tpu.memory_space<semaphore_mem>> -> memref<!tpu.dma_semaphore, #tpu.memory_space<semaphore_mem>>
    tpu.enqueue_dma source(%167 : memref<1x32xf32, #tpu.memory_space<any>>) target(%168 : memref<1x32xf32, #tpu.memory_space<vmem>>) target_semaphore(%170 : memref<!tpu.dma_semaphore, #tpu.memory_space<semaphore_mem>>)
    %c7_i32_159 = arith.constant 7 : i32
    %c23_i32_160 = arith.constant 23 : i32
    %171 = arith.minsi %c7_i32_159, %c23_i32_160 : i32
    %c1_161 = arith.constant 1 : index
    %172 = arith.index_cast %171 : i32 to index
    %173 = memref.load %arg1[%c1_161, %172] : memref<4x24xi32, #tpu.memory_space<smem>>
    %c-1_i32_162 = arith.constant -1 : i32
    %174 = arith.cmpi eq, %173, %c-1_i32_162 : i32
    %c0_i32_163 = arith.constant 0 : i32
    %175 = arith.select %174, %c0_i32_163, %173 : i32
    %c0_i32_164 = arith.constant 0 : i32
    %c255_i32_165 = arith.constant 255 : i32
    %176 = arith.maxsi %c0_i32_164, %175 : i32
    %177 = arith.minsi %c255_i32_165, %176 : i32
    %c7_i32_166 = arith.constant 7 : i32
    %c0_i32_167 = arith.constant 0 : i32
    %178 = tpu.memref_slice %arg3[%177, %c0_i32_167] : memref<256x32xf32, #tpu.memory_space<any>> -> memref<1x32xf32, #tpu.memory_space<any>>
    %c7_i32_168 = arith.constant 7 : i32
    %c0_i32_169 = arith.constant 0 : i32
    %179 = tpu.memref_slice %arg12[%c7_i32_168, %c0_i32_169] : memref<16x32xf32, #tpu.memory_space<vmem>> -> memref<1x32xf32, #tpu.memory_space<vmem>>
    %180 = tpu.memref_slice %arg13[%c7_i32_166] : memref<16x!tpu.dma_semaphore, #tpu.memory_space<semaphore_mem>> -> memref<1x!tpu.dma_semaphore, #tpu.memory_space<semaphore_mem>>
    %181 = tpu.memref_squeeze %180 : memref<1x!tpu.dma_semaphore, #tpu.memory_space<semaphore_mem>> -> memref<!tpu.dma_semaphore, #tpu.memory_space<semaphore_mem>>
    tpu.enqueue_dma source(%178 : memref<1x32xf32, #tpu.memory_space<any>>) target(%179 : memref<1x32xf32, #tpu.memory_space<vmem>>) target_semaphore(%181 : memref<!tpu.dma_semaphore, #tpu.memory_space<semaphore_mem>>)
    %cst_170 = arith.constant 0.000000e+00 : f32
    %182 = vector.broadcast %cst_170 : f32 to vector<1x32xf32>
    %c0_i32_171 = arith.constant 0 : i32
    %c3_i32_172 = arith.constant 3 : i32
    %183 = arith.addi %c0_i32_171, %c3_i32_172 : i32
    %c1_i32_173 = arith.constant 1 : i32
    %184 = scf.for %arg15 = %c0_i32_171 to %183 step %c1_i32_173 iter_args(%arg16 = %182) -> (vector<1x32xf32>)  : i32 {
      %c2_i32_411 = arith.constant 2 : i32
      %c0_i32_412 = arith.constant 0 : i32
      %465 = arith.cmpi eq, %c2_i32_411, %c0_i32_412 : i32
      %c1_i32_413 = arith.constant 1 : i32
      %466 = arith.select %465, %c1_i32_413, %c2_i32_411 : i32
      %467 = arith.remsi %arg15, %466 : i32
      %c0_i32_414 = arith.constant 0 : i32
      %468 = arith.cmpi ne, %467, %c0_i32_414 : i32
      %c0_i32_415 = arith.constant 0 : i32
      %469 = arith.cmpi slt, %467, %c0_i32_415 : i32
      %c0_i32_416 = arith.constant 0 : i32
      %470 = arith.cmpi slt, %466, %c0_i32_416 : i32
      %471 = arith.xori %469, %470 : i1
      %472 = arith.andi %471, %468 : i1
      %473 = arith.addi %467, %466 : i32
      %474 = arith.select %472, %473, %467 : i32
      %c8_i32 = arith.constant 8 : i32
      %475 = arith.muli %474, %c8_i32 : i32
      %c0_i32_417 = arith.constant 0 : i32
      %476 = arith.addi %475, %c0_i32_417 : i32
      %c8_i32_418 = arith.constant 8 : i32
      %477 = arith.muli %474, %c8_i32_418 : i32
      %c0_i32_419 = arith.constant 0 : i32
      %478 = arith.addi %477, %c0_i32_419 : i32
      %c0_i32_420 = arith.constant 0 : i32
      %c0_i32_421 = arith.constant 0 : i32
      %479 = tpu.memref_slice %arg3[%c0_i32_420, %c0_i32_421] : memref<256x32xf32, #tpu.memory_space<any>> -> memref<1x32xf32, #tpu.memory_space<any>>
      %c0_i32_422 = arith.constant 0 : i32
      %480 = tpu.memref_slice %arg12[%476, %c0_i32_422] : memref<16x32xf32, #tpu.memory_space<vmem>> -> memref<1x32xf32, #tpu.memory_space<vmem>>
      %481 = tpu.memref_slice %arg13[%478] : memref<16x!tpu.dma_semaphore, #tpu.memory_space<semaphore_mem>> -> memref<1x!tpu.dma_semaphore, #tpu.memory_space<semaphore_mem>>
      %482 = tpu.memref_squeeze %481 : memref<1x!tpu.dma_semaphore, #tpu.memory_space<semaphore_mem>> -> memref<!tpu.dma_semaphore, #tpu.memory_space<semaphore_mem>>
      tpu.wait_dma2 semaphore(%482 : memref<!tpu.dma_semaphore, #tpu.memory_space<semaphore_mem>>) src(%479 : memref<1x32xf32, #tpu.memory_space<any>>) dst(%480 : memref<1x32xf32, #tpu.memory_space<vmem>>)
      %c8_i32_423 = arith.constant 8 : i32
      %483 = arith.muli %474, %c8_i32_423 : i32
      %c1_i32_424 = arith.constant 1 : i32
      %484 = arith.addi %483, %c1_i32_424 : i32
      %c8_i32_425 = arith.constant 8 : i32
      %485 = arith.muli %474, %c8_i32_425 : i32
      %c1_i32_426 = arith.constant 1 : i32
      %486 = arith.addi %485, %c1_i32_426 : i32
      %c0_i32_427 = arith.constant 0 : i32
      %c0_i32_428 = arith.constant 0 : i32
      %487 = tpu.memref_slice %arg3[%c0_i32_427, %c0_i32_428] : memref<256x32xf32, #tpu.memory_space<any>> -> memref<1x32xf32, #tpu.memory_space<any>>
      %c0_i32_429 = arith.constant 0 : i32
      %488 = tpu.memref_slice %arg12[%484, %c0_i32_429] : memref<16x32xf32, #tpu.memory_space<vmem>> -> memref<1x32xf32, #tpu.memory_space<vmem>>
      %489 = tpu.memref_slice %arg13[%486] : memref<16x!tpu.dma_semaphore, #tpu.memory_space<semaphore_mem>> -> memref<1x!tpu.dma_semaphore, #tpu.memory_space<semaphore_mem>>
      %490 = tpu.memref_squeeze %489 : memref<1x!tpu.dma_semaphore, #tpu.memory_space<semaphore_mem>> -> memref<!tpu.dma_semaphore, #tpu.memory_space<semaphore_mem>>
      tpu.wait_dma2 semaphore(%490 : memref<!tpu.dma_semaphore, #tpu.memory_space<semaphore_mem>>) src(%487 : memref<1x32xf32, #tpu.memory_space<any>>) dst(%488 : memref<1x32xf32, #tpu.memory_space<vmem>>)
      %c8_i32_430 = arith.constant 8 : i32
      %491 = arith.muli %474, %c8_i32_430 : i32
      %c2_i32_431 = arith.constant 2 : i32
      %492 = arith.addi %491, %c2_i32_431 : i32
      %c8_i32_432 = arith.constant 8 : i32
      %493 = arith.muli %474, %c8_i32_432 : i32
      %c2_i32_433 = arith.constant 2 : i32
      %494 = arith.addi %493, %c2_i32_433 : i32
      %c0_i32_434 = arith.constant 0 : i32
      %c0_i32_435 = arith.constant 0 : i32
      %495 = tpu.memref_slice %arg3[%c0_i32_434, %c0_i32_435] : memref<256x32xf32, #tpu.memory_space<any>> -> memref<1x32xf32, #tpu.memory_space<any>>
      %c0_i32_436 = arith.constant 0 : i32
      %496 = tpu.memref_slice %arg12[%492, %c0_i32_436] : memref<16x32xf32, #tpu.memory_space<vmem>> -> memref<1x32xf32, #tpu.memory_space<vmem>>
      %497 = tpu.memref_slice %arg13[%494] : memref<16x!tpu.dma_semaphore, #tpu.memory_space<semaphore_mem>> -> memref<1x!tpu.dma_semaphore, #tpu.memory_space<semaphore_mem>>
      %498 = tpu.memref_squeeze %497 : memref<1x!tpu.dma_semaphore, #tpu.memory_space<semaphore_mem>> -> memref<!tpu.dma_semaphore, #tpu.memory_space<semaphore_mem>>
      tpu.wait_dma2 semaphore(%498 : memref<!tpu.dma_semaphore, #tpu.memory_space<semaphore_mem>>) src(%495 : memref<1x32xf32, #tpu.memory_space<any>>) dst(%496 : memref<1x32xf32, #tpu.memory_space<vmem>>)
      %c8_i32_437 = arith.constant 8 : i32
      %499 = arith.muli %474, %c8_i32_437 : i32
      %c3_i32_438 = arith.constant 3 : i32
      %500 = arith.addi %499, %c3_i32_438 : i32
      %c8_i32_439 = arith.constant 8 : i32
      %501 = arith.muli %474, %c8_i32_439 : i32
      %c3_i32_440 = arith.constant 3 : i32
      %502 = arith.addi %501, %c3_i32_440 : i32
      %c0_i32_441 = arith.constant 0 : i32
      %c0_i32_442 = arith.constant 0 : i32
      %503 = tpu.memref_slice %arg3[%c0_i32_441, %c0_i32_442] : memref<256x32xf32, #tpu.memory_space<any>> -> memref<1x32xf32, #tpu.memory_space<any>>
      %c0_i32_443 = arith.constant 0 : i32
      %504 = tpu.memref_slice %arg12[%500, %c0_i32_443] : memref<16x32xf32, #tpu.memory_space<vmem>> -> memref<1x32xf32, #tpu.memory_space<vmem>>
      %505 = tpu.memref_slice %arg13[%502] : memref<16x!tpu.dma_semaphore, #tpu.memory_space<semaphore_mem>> -> memref<1x!tpu.dma_semaphore, #tpu.memory_space<semaphore_mem>>
      %506 = tpu.memref_squeeze %505 : memref<1x!tpu.dma_semaphore, #tpu.memory_space<semaphore_mem>> -> memref<!tpu.dma_semaphore, #tpu.memory_space<semaphore_mem>>
      tpu.wait_dma2 semaphore(%506 : memref<!tpu.dma_semaphore, #tpu.memory_space<semaphore_mem>>) src(%503 : memref<1x32xf32, #tpu.memory_space<any>>) dst(%504 : memref<1x32xf32, #tpu.memory_space<vmem>>)
      %c8_i32_444 = arith.constant 8 : i32
      %507 = arith.muli %474, %c8_i32_444 : i32
      %c4_i32_445 = arith.constant 4 : i32
      %508 = arith.addi %507, %c4_i32_445 : i32
      %c8_i32_446 = arith.constant 8 : i32
      %509 = arith.muli %474, %c8_i32_446 : i32
      %c4_i32_447 = arith.constant 4 : i32
      %510 = arith.addi %509, %c4_i32_447 : i32
      %c0_i32_448 = arith.constant 0 : i32
      %c0_i32_449 = arith.constant 0 : i32
      %511 = tpu.memref_slice %arg3[%c0_i32_448, %c0_i32_449] : memref<256x32xf32, #tpu.memory_space<any>> -> memref<1x32xf32, #tpu.memory_space<any>>
      %c0_i32_450 = arith.constant 0 : i32
      %512 = tpu.memref_slice %arg12[%508, %c0_i32_450] : memref<16x32xf32, #tpu.memory_space<vmem>> -> memref<1x32xf32, #tpu.memory_space<vmem>>
      %513 = tpu.memref_slice %arg13[%510] : memref<16x!tpu.dma_semaphore, #tpu.memory_space<semaphore_mem>> -> memref<1x!tpu.dma_semaphore, #tpu.memory_space<semaphore_mem>>
      %514 = tpu.memref_squeeze %513 : memref<1x!tpu.dma_semaphore, #tpu.memory_space<semaphore_mem>> -> memref<!tpu.dma_semaphore, #tpu.memory_space<semaphore_mem>>
      tpu.wait_dma2 semaphore(%514 : memref<!tpu.dma_semaphore, #tpu.memory_space<semaphore_mem>>) src(%511 : memref<1x32xf32, #tpu.memory_space<any>>) dst(%512 : memref<1x32xf32, #tpu.memory_space<vmem>>)
      %c8_i32_451 = arith.constant 8 : i32
      %515 = arith.muli %474, %c8_i32_451 : i32
      %c5_i32_452 = arith.constant 5 : i32
      %516 = arith.addi %515, %c5_i32_452 : i32
      %c8_i32_453 = arith.constant 8 : i32
      %517 = arith.muli %474, %c8_i32_453 : i32
      %c5_i32_454 = arith.constant 5 : i32
      %518 = arith.addi %517, %c5_i32_454 : i32
      %c0_i32_455 = arith.constant 0 : i32
      %c0_i32_456 = arith.constant 0 : i32
      %519 = tpu.memref_slice %arg3[%c0_i32_455, %c0_i32_456] : memref<256x32xf32, #tpu.memory_space<any>> -> memref<1x32xf32, #tpu.memory_space<any>>
      %c0_i32_457 = arith.constant 0 : i32
      %520 = tpu.memref_slice %arg12[%516, %c0_i32_457] : memref<16x32xf32, #tpu.memory_space<vmem>> -> memref<1x32xf32, #tpu.memory_space<vmem>>
      %521 = tpu.memref_slice %arg13[%518] : memref<16x!tpu.dma_semaphore, #tpu.memory_space<semaphore_mem>> -> memref<1x!tpu.dma_semaphore, #tpu.memory_space<semaphore_mem>>
      %522 = tpu.memref_squeeze %521 : memref<1x!tpu.dma_semaphore, #tpu.memory_space<semaphore_mem>> -> memref<!tpu.dma_semaphore, #tpu.memory_space<semaphore_mem>>
      tpu.wait_dma2 semaphore(%522 : memref<!tpu.dma_semaphore, #tpu.memory_space<semaphore_mem>>) src(%519 : memref<1x32xf32, #tpu.memory_space<any>>) dst(%520 : memref<1x32xf32, #tpu.memory_space<vmem>>)
      %c8_i32_458 = arith.constant 8 : i32
      %523 = arith.muli %474, %c8_i32_458 : i32
      %c6_i32_459 = arith.constant 6 : i32
      %524 = arith.addi %523, %c6_i32_459 : i32
      %c8_i32_460 = arith.constant 8 : i32
      %525 = arith.muli %474, %c8_i32_460 : i32
      %c6_i32_461 = arith.constant 6 : i32
      %526 = arith.addi %525, %c6_i32_461 : i32
      %c0_i32_462 = arith.constant 0 : i32
      %c0_i32_463 = arith.constant 0 : i32
      %527 = tpu.memref_slice %arg3[%c0_i32_462, %c0_i32_463] : memref<256x32xf32, #tpu.memory_space<any>> -> memref<1x32xf32, #tpu.memory_space<any>>
      %c0_i32_464 = arith.constant 0 : i32
      %528 = tpu.memref_slice %arg12[%524, %c0_i32_464] : memref<16x32xf32, #tpu.memory_space<vmem>> -> memref<1x32xf32, #tpu.memory_space<vmem>>
      %529 = tpu.memref_slice %arg13[%526] : memref<16x!tpu.dma_semaphore, #tpu.memory_space<semaphore_mem>> -> memref<1x!tpu.dma_semaphore, #tpu.memory_space<semaphore_mem>>
      %530 = tpu.memref_squeeze %529 : memref<1x!tpu.dma_semaphore, #tpu.memory_space<semaphore_mem>> -> memref<!tpu.dma_semaphore, #tpu.memory_space<semaphore_mem>>
      tpu.wait_dma2 semaphore(%530 : memref<!tpu.dma_semaphore, #tpu.memory_space<semaphore_mem>>) src(%527 : memref<1x32xf32, #tpu.memory_space<any>>) dst(%528 : memref<1x32xf32, #tpu.memory_space<vmem>>)
      %c8_i32_465 = arith.constant 8 : i32
      %531 = arith.muli %474, %c8_i32_465 : i32
      %c7_i32_466 = arith.constant 7 : i32
      %532 = arith.addi %531, %c7_i32_466 : i32
      %c8_i32_467 = arith.constant 8 : i32
      %533 = arith.muli %474, %c8_i32_467 : i32
      %c7_i32_468 = arith.constant 7 : i32
      %534 = arith.addi %533, %c7_i32_468 : i32
      %c0_i32_469 = arith.constant 0 : i32
      %c0_i32_470 = arith.constant 0 : i32
      %535 = tpu.memref_slice %arg3[%c0_i32_469, %c0_i32_470] : memref<256x32xf32, #tpu.memory_space<any>> -> memref<1x32xf32, #tpu.memory_space<any>>
      %c0_i32_471 = arith.constant 0 : i32
      %536 = tpu.memref_slice %arg12[%532, %c0_i32_471] : memref<16x32xf32, #tpu.memory_space<vmem>> -> memref<1x32xf32, #tpu.memory_space<vmem>>
      %537 = tpu.memref_slice %arg13[%534] : memref<16x!tpu.dma_semaphore, #tpu.memory_space<semaphore_mem>> -> memref<1x!tpu.dma_semaphore, #tpu.memory_space<semaphore_mem>>
      %538 = tpu.memref_squeeze %537 : memref<1x!tpu.dma_semaphore, #tpu.memory_space<semaphore_mem>> -> memref<!tpu.dma_semaphore, #tpu.memory_space<semaphore_mem>>
      tpu.wait_dma2 semaphore(%538 : memref<!tpu.dma_semaphore, #tpu.memory_space<semaphore_mem>>) src(%535 : memref<1x32xf32, #tpu.memory_space<any>>) dst(%536 : memref<1x32xf32, #tpu.memory_space<vmem>>)
      %c1_i32_472 = arith.constant 1 : i32
      %539 = arith.addi %arg15, %c1_i32_472 : i32
      %c3_i32_473 = arith.constant 3 : i32
      %540 = arith.cmpi slt, %539, %c3_i32_473 : i32
      %541 = arith.extui %540 : i1 to i32
      %c0_i32_474 = arith.constant 0 : i32
      %542 = arith.cmpi ne, %541, %c0_i32_474 : i32
      scf.if %542 {
        %c1_i32_480 = arith.constant 1 : i32
        %560 = arith.addi %arg15, %c1_i32_480 : i32
        %c1_i32_481 = arith.constant 1 : i32
        %561 = arith.subi %c1_i32_481, %474 : i32
        %c8_i32_482 = arith.constant 8 : i32
        %562 = arith.muli %560, %c8_i32_482 : i32
        %c0_i32_483 = arith.constant 0 : i32
        %563 = arith.addi %562, %c0_i32_483 : i32
        %c23_i32_484 = arith.constant 23 : i32
        %564 = arith.minsi %563, %c23_i32_484 : i32
        %c1_485 = arith.constant 1 : index
        %565 = arith.index_cast %564 : i32 to index
        %566 = memref.load %arg1[%c1_485, %565] : memref<4x24xi32, #tpu.memory_space<smem>>
        %c-1_i32_486 = arith.constant -1 : i32
        %567 = arith.cmpi eq, %566, %c-1_i32_486 : i32
        %c0_i32_487 = arith.constant 0 : i32
        %568 = arith.select %567, %c0_i32_487, %566 : i32
        %c0_i32_488 = arith.constant 0 : i32
        %c255_i32_489 = arith.constant 255 : i32
        %569 = arith.maxsi %c0_i32_488, %568 : i32
        %570 = arith.minsi %c255_i32_489, %569 : i32
        %c8_i32_490 = arith.constant 8 : i32
        %571 = arith.muli %561, %c8_i32_490 : i32
        %c0_i32_491 = arith.constant 0 : i32
        %572 = arith.addi %571, %c0_i32_491 : i32
        %c8_i32_492 = arith.constant 8 : i32
        %573 = arith.muli %561, %c8_i32_492 : i32
        %c0_i32_493 = arith.constant 0 : i32
        %574 = arith.addi %573, %c0_i32_493 : i32
        %c0_i32_494 = arith.constant 0 : i32
        %575 = tpu.memref_slice %arg3[%570, %c0_i32_494] : memref<256x32xf32, #tpu.memory_space<any>> -> memref<1x32xf32, #tpu.memory_space<any>>
        %c0_i32_495 = arith.constant 0 : i32
        %576 = tpu.memref_slice %arg12[%572, %c0_i32_495] : memref<16x32xf32, #tpu.memory_space<vmem>> -> memref<1x32xf32, #tpu.memory_space<vmem>>
        %577 = tpu.memref_slice %arg13[%574] : memref<16x!tpu.dma_semaphore, #tpu.memory_space<semaphore_mem>> -> memref<1x!tpu.dma_semaphore, #tpu.memory_space<semaphore_mem>>
        %578 = tpu.memref_squeeze %577 : memref<1x!tpu.dma_semaphore, #tpu.memory_space<semaphore_mem>> -> memref<!tpu.dma_semaphore, #tpu.memory_space<semaphore_mem>>
        tpu.enqueue_dma source(%575 : memref<1x32xf32, #tpu.memory_space<any>>) target(%576 : memref<1x32xf32, #tpu.memory_space<vmem>>) target_semaphore(%578 : memref<!tpu.dma_semaphore, #tpu.memory_space<semaphore_mem>>)
        %c8_i32_496 = arith.constant 8 : i32
        %579 = arith.muli %560, %c8_i32_496 : i32
        %c1_i32_497 = arith.constant 1 : i32
        %580 = arith.addi %579, %c1_i32_497 : i32
        %c23_i32_498 = arith.constant 23 : i32
        %581 = arith.minsi %580, %c23_i32_498 : i32
        %c1_499 = arith.constant 1 : index
        %582 = arith.index_cast %581 : i32 to index
        %583 = memref.load %arg1[%c1_499, %582] : memref<4x24xi32, #tpu.memory_space<smem>>
        %c-1_i32_500 = arith.constant -1 : i32
        %584 = arith.cmpi eq, %583, %c-1_i32_500 : i32
        %c0_i32_501 = arith.constant 0 : i32
        %585 = arith.select %584, %c0_i32_501, %583 : i32
        %c0_i32_502 = arith.constant 0 : i32
        %c255_i32_503 = arith.constant 255 : i32
        %586 = arith.maxsi %c0_i32_502, %585 : i32
        %587 = arith.minsi %c255_i32_503, %586 : i32
        %c8_i32_504 = arith.constant 8 : i32
        %588 = arith.muli %561, %c8_i32_504 : i32
        %c1_i32_505 = arith.constant 1 : i32
        %589 = arith.addi %588, %c1_i32_505 : i32
        %c8_i32_506 = arith.constant 8 : i32
        %590 = arith.muli %561, %c8_i32_506 : i32
        %c1_i32_507 = arith.constant 1 : i32
        %591 = arith.addi %590, %c1_i32_507 : i32
        %c0_i32_508 = arith.constant 0 : i32
        %592 = tpu.memref_slice %arg3[%587, %c0_i32_508] : memref<256x32xf32, #tpu.memory_space<any>> -> memref<1x32xf32, #tpu.memory_space<any>>
        %c0_i32_509 = arith.constant 0 : i32
        %593 = tpu.memref_slice %arg12[%589, %c0_i32_509] : memref<16x32xf32, #tpu.memory_space<vmem>> -> memref<1x32xf32, #tpu.memory_space<vmem>>
        %594 = tpu.memref_slice %arg13[%591] : memref<16x!tpu.dma_semaphore, #tpu.memory_space<semaphore_mem>> -> memref<1x!tpu.dma_semaphore, #tpu.memory_space<semaphore_mem>>
        %595 = tpu.memref_squeeze %594 : memref<1x!tpu.dma_semaphore, #tpu.memory_space<semaphore_mem>> -> memref<!tpu.dma_semaphore, #tpu.memory_space<semaphore_mem>>
        tpu.enqueue_dma source(%592 : memref<1x32xf32, #tpu.memory_space<any>>) target(%593 : memref<1x32xf32, #tpu.memory_space<vmem>>) target_semaphore(%595 : memref<!tpu.dma_semaphore, #tpu.memory_space<semaphore_mem>>)
        %c8_i32_510 = arith.constant 8 : i32
        %596 = arith.muli %560, %c8_i32_510 : i32
        %c2_i32_511 = arith.constant 2 : i32
        %597 = arith.addi %596, %c2_i32_511 : i32
        %c23_i32_512 = arith.constant 23 : i32
        %598 = arith.minsi %597, %c23_i32_512 : i32
        %c1_513 = arith.constant 1 : index
        %599 = arith.index_cast %598 : i32 to index
        %600 = memref.load %arg1[%c1_513, %599] : memref<4x24xi32, #tpu.memory_space<smem>>
        %c-1_i32_514 = arith.constant -1 : i32
        %601 = arith.cmpi eq, %600, %c-1_i32_514 : i32
        %c0_i32_515 = arith.constant 0 : i32
        %602 = arith.select %601, %c0_i32_515, %600 : i32
        %c0_i32_516 = arith.constant 0 : i32
        %c255_i32_517 = arith.constant 255 : i32
        %603 = arith.maxsi %c0_i32_516, %602 : i32
        %604 = arith.minsi %c255_i32_517, %603 : i32
        %c8_i32_518 = arith.constant 8 : i32
        %605 = arith.muli %561, %c8_i32_518 : i32
        %c2_i32_519 = arith.constant 2 : i32
        %606 = arith.addi %605, %c2_i32_519 : i32
        %c8_i32_520 = arith.constant 8 : i32
        %607 = arith.muli %561, %c8_i32_520 : i32
        %c2_i32_521 = arith.constant 2 : i32
        %608 = arith.addi %607, %c2_i32_521 : i32
        %c0_i32_522 = arith.constant 0 : i32
        %609 = tpu.memref_slice %arg3[%604, %c0_i32_522] : memref<256x32xf32, #tpu.memory_space<any>> -> memref<1x32xf32, #tpu.memory_space<any>>
        %c0_i32_523 = arith.constant 0 : i32
        %610 = tpu.memref_slice %arg12[%606, %c0_i32_523] : memref<16x32xf32, #tpu.memory_space<vmem>> -> memref<1x32xf32, #tpu.memory_space<vmem>>
        %611 = tpu.memref_slice %arg13[%608] : memref<16x!tpu.dma_semaphore, #tpu.memory_space<semaphore_mem>> -> memref<1x!tpu.dma_semaphore, #tpu.memory_space<semaphore_mem>>
        %612 = tpu.memref_squeeze %611 : memref<1x!tpu.dma_semaphore, #tpu.memory_space<semaphore_mem>> -> memref<!tpu.dma_semaphore, #tpu.memory_space<semaphore_mem>>
        tpu.enqueue_dma source(%609 : memref<1x32xf32, #tpu.memory_space<any>>) target(%610 : memref<1x32xf32, #tpu.memory_space<vmem>>) target_semaphore(%612 : memref<!tpu.dma_semaphore, #tpu.memory_space<semaphore_mem>>)
        %c8_i32_524 = arith.constant 8 : i32
        %613 = arith.muli %560, %c8_i32_524 : i32
        %c3_i32_525 = arith.constant 3 : i32
        %614 = arith.addi %613, %c3_i32_525 : i32
        %c23_i32_526 = arith.constant 23 : i32
        %615 = arith.minsi %614, %c23_i32_526 : i32
        %c1_527 = arith.constant 1 : index
        %616 = arith.index_cast %615 : i32 to index
        %617 = memref.load %arg1[%c1_527, %616] : memref<4x24xi32, #tpu.memory_space<smem>>
        %c-1_i32_528 = arith.constant -1 : i32
        %618 = arith.cmpi eq, %617, %c-1_i32_528 : i32
        %c0_i32_529 = arith.constant 0 : i32
        %619 = arith.select %618, %c0_i32_529, %617 : i32
        %c0_i32_530 = arith.constant 0 : i32
        %c255_i32_531 = arith.constant 255 : i32
        %620 = arith.maxsi %c0_i32_530, %619 : i32
        %621 = arith.minsi %c255_i32_531, %620 : i32
        %c8_i32_532 = arith.constant 8 : i32
        %622 = arith.muli %561, %c8_i32_532 : i32
        %c3_i32_533 = arith.constant 3 : i32
        %623 = arith.addi %622, %c3_i32_533 : i32
        %c8_i32_534 = arith.constant 8 : i32
        %624 = arith.muli %561, %c8_i32_534 : i32
        %c3_i32_535 = arith.constant 3 : i32
        %625 = arith.addi %624, %c3_i32_535 : i32
        %c0_i32_536 = arith.constant 0 : i32
        %626 = tpu.memref_slice %arg3[%621, %c0_i32_536] : memref<256x32xf32, #tpu.memory_space<any>> -> memref<1x32xf32, #tpu.memory_space<any>>
        %c0_i32_537 = arith.constant 0 : i32
        %627 = tpu.memref_slice %arg12[%623, %c0_i32_537] : memref<16x32xf32, #tpu.memory_space<vmem>> -> memref<1x32xf32, #tpu.memory_space<vmem>>
        %628 = tpu.memref_slice %arg13[%625] : memref<16x!tpu.dma_semaphore, #tpu.memory_space<semaphore_mem>> -> memref<1x!tpu.dma_semaphore, #tpu.memory_space<semaphore_mem>>
        %629 = tpu.memref_squeeze %628 : memref<1x!tpu.dma_semaphore, #tpu.memory_space<semaphore_mem>> -> memref<!tpu.dma_semaphore, #tpu.memory_space<semaphore_mem>>
        tpu.enqueue_dma source(%626 : memref<1x32xf32, #tpu.memory_space<any>>) target(%627 : memref<1x32xf32, #tpu.memory_space<vmem>>) target_semaphore(%629 : memref<!tpu.dma_semaphore, #tpu.memory_space<semaphore_mem>>)
        %c8_i32_538 = arith.constant 8 : i32
        %630 = arith.muli %560, %c8_i32_538 : i32
        %c4_i32_539 = arith.constant 4 : i32
        %631 = arith.addi %630, %c4_i32_539 : i32
        %c23_i32_540 = arith.constant 23 : i32
        %632 = arith.minsi %631, %c23_i32_540 : i32
        %c1_541 = arith.constant 1 : index
        %633 = arith.index_cast %632 : i32 to index
        %634 = memref.load %arg1[%c1_541, %633] : memref<4x24xi32, #tpu.memory_space<smem>>
        %c-1_i32_542 = arith.constant -1 : i32
        %635 = arith.cmpi eq, %634, %c-1_i32_542 : i32
        %c0_i32_543 = arith.constant 0 : i32
        %636 = arith.select %635, %c0_i32_543, %634 : i32
        %c0_i32_544 = arith.constant 0 : i32
        %c255_i32_545 = arith.constant 255 : i32
        %637 = arith.maxsi %c0_i32_544, %636 : i32
        %638 = arith.minsi %c255_i32_545, %637 : i32
        %c8_i32_546 = arith.constant 8 : i32
        %639 = arith.muli %561, %c8_i32_546 : i32
        %c4_i32_547 = arith.constant 4 : i32
        %640 = arith.addi %639, %c4_i32_547 : i32
        %c8_i32_548 = arith.constant 8 : i32
        %641 = arith.muli %561, %c8_i32_548 : i32
        %c4_i32_549 = arith.constant 4 : i32
        %642 = arith.addi %641, %c4_i32_549 : i32
        %c0_i32_550 = arith.constant 0 : i32
        %643 = tpu.memref_slice %arg3[%638, %c0_i32_550] : memref<256x32xf32, #tpu.memory_space<any>> -> memref<1x32xf32, #tpu.memory_space<any>>
        %c0_i32_551 = arith.constant 0 : i32
        %644 = tpu.memref_slice %arg12[%640, %c0_i32_551] : memref<16x32xf32, #tpu.memory_space<vmem>> -> memref<1x32xf32, #tpu.memory_space<vmem>>
        %645 = tpu.memref_slice %arg13[%642] : memref<16x!tpu.dma_semaphore, #tpu.memory_space<semaphore_mem>> -> memref<1x!tpu.dma_semaphore, #tpu.memory_space<semaphore_mem>>
        %646 = tpu.memref_squeeze %645 : memref<1x!tpu.dma_semaphore, #tpu.memory_space<semaphore_mem>> -> memref<!tpu.dma_semaphore, #tpu.memory_space<semaphore_mem>>
        tpu.enqueue_dma source(%643 : memref<1x32xf32, #tpu.memory_space<any>>) target(%644 : memref<1x32xf32, #tpu.memory_space<vmem>>) target_semaphore(%646 : memref<!tpu.dma_semaphore, #tpu.memory_space<semaphore_mem>>)
        %c8_i32_552 = arith.constant 8 : i32
        %647 = arith.muli %560, %c8_i32_552 : i32
        %c5_i32_553 = arith.constant 5 : i32
        %648 = arith.addi %647, %c5_i32_553 : i32
        %c23_i32_554 = arith.constant 23 : i32
        %649 = arith.minsi %648, %c23_i32_554 : i32
        %c1_555 = arith.constant 1 : index
        %650 = arith.index_cast %649 : i32 to index
        %651 = memref.load %arg1[%c1_555, %650] : memref<4x24xi32, #tpu.memory_space<smem>>
        %c-1_i32_556 = arith.constant -1 : i32
        %652 = arith.cmpi eq, %651, %c-1_i32_556 : i32
        %c0_i32_557 = arith.constant 0 : i32
        %653 = arith.select %652, %c0_i32_557, %651 : i32
        %c0_i32_558 = arith.constant 0 : i32
        %c255_i32_559 = arith.constant 255 : i32
        %654 = arith.maxsi %c0_i32_558, %653 : i32
        %655 = arith.minsi %c255_i32_559, %654 : i32
        %c8_i32_560 = arith.constant 8 : i32
        %656 = arith.muli %561, %c8_i32_560 : i32
        %c5_i32_561 = arith.constant 5 : i32
        %657 = arith.addi %656, %c5_i32_561 : i32
        %c8_i32_562 = arith.constant 8 : i32
        %658 = arith.muli %561, %c8_i32_562 : i32
        %c5_i32_563 = arith.constant 5 : i32
        %659 = arith.addi %658, %c5_i32_563 : i32
        %c0_i32_564 = arith.constant 0 : i32
        %660 = tpu.memref_slice %arg3[%655, %c0_i32_564] : memref<256x32xf32, #tpu.memory_space<any>> -> memref<1x32xf32, #tpu.memory_space<any>>
        %c0_i32_565 = arith.constant 0 : i32
        %661 = tpu.memref_slice %arg12[%657, %c0_i32_565] : memref<16x32xf32, #tpu.memory_space<vmem>> -> memref<1x32xf32, #tpu.memory_space<vmem>>
        %662 = tpu.memref_slice %arg13[%659] : memref<16x!tpu.dma_semaphore, #tpu.memory_space<semaphore_mem>> -> memref<1x!tpu.dma_semaphore, #tpu.memory_space<semaphore_mem>>
        %663 = tpu.memref_squeeze %662 : memref<1x!tpu.dma_semaphore, #tpu.memory_space<semaphore_mem>> -> memref<!tpu.dma_semaphore, #tpu.memory_space<semaphore_mem>>
        tpu.enqueue_dma source(%660 : memref<1x32xf32, #tpu.memory_space<any>>) target(%661 : memref<1x32xf32, #tpu.memory_space<vmem>>) target_semaphore(%663 : memref<!tpu.dma_semaphore, #tpu.memory_space<semaphore_mem>>)
        %c8_i32_566 = arith.constant 8 : i32
        %664 = arith.muli %560, %c8_i32_566 : i32
        %c6_i32_567 = arith.constant 6 : i32
        %665 = arith.addi %664, %c6_i32_567 : i32
        %c23_i32_568 = arith.constant 23 : i32
        %666 = arith.minsi %665, %c23_i32_568 : i32
        %c1_569 = arith.constant 1 : index
        %667 = arith.index_cast %666 : i32 to index
        %668 = memref.load %arg1[%c1_569, %667] : memref<4x24xi32, #tpu.memory_space<smem>>
        %c-1_i32_570 = arith.constant -1 : i32
        %669 = arith.cmpi eq, %668, %c-1_i32_570 : i32
        %c0_i32_571 = arith.constant 0 : i32
        %670 = arith.select %669, %c0_i32_571, %668 : i32
        %c0_i32_572 = arith.constant 0 : i32
        %c255_i32_573 = arith.constant 255 : i32
        %671 = arith.maxsi %c0_i32_572, %670 : i32
        %672 = arith.minsi %c255_i32_573, %671 : i32
        %c8_i32_574 = arith.constant 8 : i32
        %673 = arith.muli %561, %c8_i32_574 : i32
        %c6_i32_575 = arith.constant 6 : i32
        %674 = arith.addi %673, %c6_i32_575 : i32
        %c8_i32_576 = arith.constant 8 : i32
        %675 = arith.muli %561, %c8_i32_576 : i32
        %c6_i32_577 = arith.constant 6 : i32
        %676 = arith.addi %675, %c6_i32_577 : i32
        %c0_i32_578 = arith.constant 0 : i32
        %677 = tpu.memref_slice %arg3[%672, %c0_i32_578] : memref<256x32xf32, #tpu.memory_space<any>> -> memref<1x32xf32, #tpu.memory_space<any>>
        %c0_i32_579 = arith.constant 0 : i32
        %678 = tpu.memref_slice %arg12[%674, %c0_i32_579] : memref<16x32xf32, #tpu.memory_space<vmem>> -> memref<1x32xf32, #tpu.memory_space<vmem>>
        %679 = tpu.memref_slice %arg13[%676] : memref<16x!tpu.dma_semaphore, #tpu.memory_space<semaphore_mem>> -> memref<1x!tpu.dma_semaphore, #tpu.memory_space<semaphore_mem>>
        %680 = tpu.memref_squeeze %679 : memref<1x!tpu.dma_semaphore, #tpu.memory_space<semaphore_mem>> -> memref<!tpu.dma_semaphore, #tpu.memory_space<semaphore_mem>>
        tpu.enqueue_dma source(%677 : memref<1x32xf32, #tpu.memory_space<any>>) target(%678 : memref<1x32xf32, #tpu.memory_space<vmem>>) target_semaphore(%680 : memref<!tpu.dma_semaphore, #tpu.memory_space<semaphore_mem>>)
        %c8_i32_580 = arith.constant 8 : i32
        %681 = arith.muli %560, %c8_i32_580 : i32
        %c7_i32_581 = arith.constant 7 : i32
        %682 = arith.addi %681, %c7_i32_581 : i32
        %c23_i32_582 = arith.constant 23 : i32
        %683 = arith.minsi %682, %c23_i32_582 : i32
        %c1_583 = arith.constant 1 : index
        %684 = arith.index_cast %683 : i32 to index
        %685 = memref.load %arg1[%c1_583, %684] : memref<4x24xi32, #tpu.memory_space<smem>>
        %c-1_i32_584 = arith.constant -1 : i32
        %686 = arith.cmpi eq, %685, %c-1_i32_584 : i32
        %c0_i32_585 = arith.constant 0 : i32
        %687 = arith.select %686, %c0_i32_585, %685 : i32
        %c0_i32_586 = arith.constant 0 : i32
        %c255_i32_587 = arith.constant 255 : i32
        %688 = arith.maxsi %c0_i32_586, %687 : i32
        %689 = arith.minsi %c255_i32_587, %688 : i32
        %c8_i32_588 = arith.constant 8 : i32
        %690 = arith.muli %561, %c8_i32_588 : i32
        %c7_i32_589 = arith.constant 7 : i32
        %691 = arith.addi %690, %c7_i32_589 : i32
        %c8_i32_590 = arith.constant 8 : i32
        %692 = arith.muli %561, %c8_i32_590 : i32
        %c7_i32_591 = arith.constant 7 : i32
        %693 = arith.addi %692, %c7_i32_591 : i32
        %c0_i32_592 = arith.constant 0 : i32
        %694 = tpu.memref_slice %arg3[%689, %c0_i32_592] : memref<256x32xf32, #tpu.memory_space<any>> -> memref<1x32xf32, #tpu.memory_space<any>>
        %c0_i32_593 = arith.constant 0 : i32
        %695 = tpu.memref_slice %arg12[%691, %c0_i32_593] : memref<16x32xf32, #tpu.memory_space<vmem>> -> memref<1x32xf32, #tpu.memory_space<vmem>>
        %696 = tpu.memref_slice %arg13[%693] : memref<16x!tpu.dma_semaphore, #tpu.memory_space<semaphore_mem>> -> memref<1x!tpu.dma_semaphore, #tpu.memory_space<semaphore_mem>>
        %697 = tpu.memref_squeeze %696 : memref<1x!tpu.dma_semaphore, #tpu.memory_space<semaphore_mem>> -> memref<!tpu.dma_semaphore, #tpu.memory_space<semaphore_mem>>
        tpu.enqueue_dma source(%694 : memref<1x32xf32, #tpu.memory_space<any>>) target(%695 : memref<1x32xf32, #tpu.memory_space<vmem>>) target_semaphore(%697 : memref<!tpu.dma_semaphore, #tpu.memory_space<semaphore_mem>>)
      } else {
      }
      %c8_i32_475 = arith.constant 8 : i32
      %543 = arith.muli %474, %c8_i32_475 : i32
      %544 = tpu.assume_multiple %543, 8 : i32
      %545 = arith.index_cast %544 : i32 to index
      %c0_476 = arith.constant 0 : index
      %546 = vector.load %arg12[%545, %c0_476] : memref<16x32xf32, #tpu.memory_space<vmem>>, vector<8x32xf32>
      %c8_i32_477 = arith.constant 8 : i32
      %547 = arith.muli %arg15, %c8_i32_477 : i32
      %548 = tpu.iota {dimensions = array<i32: 0>} : vector<8x1xi32>
      %549 = vector.broadcast %547 : i32 to vector<8x1xi32>
      %550 = arith.addi %549, %548 : vector<8x1xi32>
      %c24_i32 = arith.constant 24 : i32
      %551 = vector.broadcast %c24_i32 : i32 to vector<8x1xi32>
      %552 = arith.cmpi slt, %550, %551 : vector<8x1xi32>
      %cst_478 = arith.constant 0.000000e+00 : f32
      %553 = vector.shape_cast %552 : vector<8x1xi1> to vector<8x1xi1>
      %554 = vector.broadcast %553 : vector<8x1xi1> to vector<8x32xi1>
      %555 = vector.broadcast %cst_478 : f32 to vector<8x32xf32>
      %556 = arith.select %554, %546, %555 : vector<8x32xi1>, vector<8x32xf32>
      %cst_479 = arith.constant dense<0.000000e+00> : vector<32xf32>
      %557 = vector.multi_reduction <add>, %556, %cst_479 [0] : vector<8x32xf32> to vector<32xf32>
      %558 = vector.shape_cast %557 : vector<32xf32> to vector<1x32xf32>
      %559 = arith.addf %arg16, %558 : vector<1x32xf32>
      scf.yield %559 : vector<1x32xf32>
    }
    %c3_i32_174 = arith.constant 3 : i32
    %cst_175 = arith.constant 0.0416666679 : f32
    %185 = vector.broadcast %cst_175 : f32 to vector<1x32xf32>
    %186 = arith.mulf %184, %185 : vector<1x32xf32>
    %c1_176 = arith.constant 1 : index
    %c0_177 = arith.constant 0 : index
    %187 = vector.load %arg14[%c1_176, %c0_177] : memref<4x32xf32, #tpu.memory_space<vmem>>, vector<1x32xf32>
    tpu.vector_store %arg14[%c1_176, %c0_177], %186 {strides = array<i32>} : memref<4x32xf32, #tpu.memory_space<vmem>>, vector<1x32xf32>,
    %c0_i32_178 = arith.constant 0 : i32
    %c23_i32_179 = arith.constant 23 : i32
    %188 = arith.minsi %c0_i32_178, %c23_i32_179 : i32
    %c2 = arith.constant 2 : index
    %189 = arith.index_cast %188 : i32 to index
    %190 = memref.load %arg1[%c2, %189] : memref<4x24xi32, #tpu.memory_space<smem>>
    %c-1_i32_180 = arith.constant -1 : i32
    %191 = arith.cmpi eq, %190, %c-1_i32_180 : i32
    %c0_i32_181 = arith.constant 0 : i32
    %192 = arith.select %191, %c0_i32_181, %190 : i32
    %c0_i32_182 = arith.constant 0 : i32
    %c255_i32_183 = arith.constant 255 : i32
    %193 = arith.maxsi %c0_i32_182, %192 : i32
    %194 = arith.minsi %c255_i32_183, %193 : i32
    %c0_i32_184 = arith.constant 0 : i32
    %c0_i32_185 = arith.constant 0 : i32
    %195 = tpu.memref_slice %arg3[%194, %c0_i32_185] : memref<256x32xf32, #tpu.memory_space<any>> -> memref<1x32xf32, #tpu.memory_space<any>>
    %c0_i32_186 = arith.constant 0 : i32
    %c0_i32_187 = arith.constant 0 : i32
    %196 = tpu.memref_slice %arg12[%c0_i32_186, %c0_i32_187] : memref<16x32xf32, #tpu.memory_space<vmem>> -> memref<1x32xf32, #tpu.memory_space<vmem>>
    %197 = tpu.memref_slice %arg13[%c0_i32_184] : memref<16x!tpu.dma_semaphore, #tpu.memory_space<semaphore_mem>> -> memref<1x!tpu.dma_semaphore, #tpu.memory_space<semaphore_mem>>
    %198 = tpu.memref_squeeze %197 : memref<1x!tpu.dma_semaphore, #tpu.memory_space<semaphore_mem>> -> memref<!tpu.dma_semaphore, #tpu.memory_space<semaphore_mem>>
    tpu.enqueue_dma source(%195 : memref<1x32xf32, #tpu.memory_space<any>>) target(%196 : memref<1x32xf32, #tpu.memory_space<vmem>>) target_semaphore(%198 : memref<!tpu.dma_semaphore, #tpu.memory_space<semaphore_mem>>)
    %c1_i32_188 = arith.constant 1 : i32
    %c23_i32_189 = arith.constant 23 : i32
    %199 = arith.minsi %c1_i32_188, %c23_i32_189 : i32
    %c2_190 = arith.constant 2 : index
    %200 = arith.index_cast %199 : i32 to index
    %201 = memref.load %arg1[%c2_190, %200] : memref<4x24xi32, #tpu.memory_space<smem>>
    %c-1_i32_191 = arith.constant -1 : i32
    %202 = arith.cmpi eq, %201, %c-1_i32_191 : i32
    %c0_i32_192 = arith.constant 0 : i32
    %203 = arith.select %202, %c0_i32_192, %201 : i32
    %c0_i32_193 = arith.constant 0 : i32
    %c255_i32_194 = arith.constant 255 : i32
    %204 = arith.maxsi %c0_i32_193, %203 : i32
    %205 = arith.minsi %c255_i32_194, %204 : i32
    %c1_i32_195 = arith.constant 1 : i32
    %c0_i32_196 = arith.constant 0 : i32
    %206 = tpu.memref_slice %arg3[%205, %c0_i32_196] : memref<256x32xf32, #tpu.memory_space<any>> -> memref<1x32xf32, #tpu.memory_space<any>>
    %c1_i32_197 = arith.constant 1 : i32
    %c0_i32_198 = arith.constant 0 : i32
    %207 = tpu.memref_slice %arg12[%c1_i32_197, %c0_i32_198] : memref<16x32xf32, #tpu.memory_space<vmem>> -> memref<1x32xf32, #tpu.memory_space<vmem>>
    %208 = tpu.memref_slice %arg13[%c1_i32_195] : memref<16x!tpu.dma_semaphore, #tpu.memory_space<semaphore_mem>> -> memref<1x!tpu.dma_semaphore, #tpu.memory_space<semaphore_mem>>
    %209 = tpu.memref_squeeze %208 : memref<1x!tpu.dma_semaphore, #tpu.memory_space<semaphore_mem>> -> memref<!tpu.dma_semaphore, #tpu.memory_space<semaphore_mem>>
    tpu.enqueue_dma source(%206 : memref<1x32xf32, #tpu.memory_space<any>>) target(%207 : memref<1x32xf32, #tpu.memory_space<vmem>>) target_semaphore(%209 : memref<!tpu.dma_semaphore, #tpu.memory_space<semaphore_mem>>)
    %c2_i32_199 = arith.constant 2 : i32
    %c23_i32_200 = arith.constant 23 : i32
    %210 = arith.minsi %c2_i32_199, %c23_i32_200 : i32
    %c2_201 = arith.constant 2 : index
    %211 = arith.index_cast %210 : i32 to index
    %212 = memref.load %arg1[%c2_201, %211] : memref<4x24xi32, #tpu.memory_space<smem>>
    %c-1_i32_202 = arith.constant -1 : i32
    %213 = arith.cmpi eq, %212, %c-1_i32_202 : i32
    %c0_i32_203 = arith.constant 0 : i32
    %214 = arith.select %213, %c0_i32_203, %212 : i32
    %c0_i32_204 = arith.constant 0 : i32
    %c255_i32_205 = arith.constant 255 : i32
    %215 = arith.maxsi %c0_i32_204, %214 : i32
    %216 = arith.minsi %c255_i32_205, %215 : i32
    %c2_i32_206 = arith.constant 2 : i32
    %c0_i32_207 = arith.constant 0 : i32
    %217 = tpu.memref_slice %arg3[%216, %c0_i32_207] : memref<256x32xf32, #tpu.memory_space<any>> -> memref<1x32xf32, #tpu.memory_space<any>>
    %c2_i32_208 = arith.constant 2 : i32
    %c0_i32_209 = arith.constant 0 : i32
    %218 = tpu.memref_slice %arg12[%c2_i32_208, %c0_i32_209] : memref<16x32xf32, #tpu.memory_space<vmem>> -> memref<1x32xf32, #tpu.memory_space<vmem>>
    %219 = tpu.memref_slice %arg13[%c2_i32_206] : memref<16x!tpu.dma_semaphore, #tpu.memory_space<semaphore_mem>> -> memref<1x!tpu.dma_semaphore, #tpu.memory_space<semaphore_mem>>
    %220 = tpu.memref_squeeze %219 : memref<1x!tpu.dma_semaphore, #tpu.memory_space<semaphore_mem>> -> memref<!tpu.dma_semaphore, #tpu.memory_space<semaphore_mem>>
    tpu.enqueue_dma source(%217 : memref<1x32xf32, #tpu.memory_space<any>>) target(%218 : memref<1x32xf32, #tpu.memory_space<vmem>>) target_semaphore(%220 : memref<!tpu.dma_semaphore, #tpu.memory_space<semaphore_mem>>)
    %c3_i32_210 = arith.constant 3 : i32
    %c23_i32_211 = arith.constant 23 : i32
    %221 = arith.minsi %c3_i32_210, %c23_i32_211 : i32
    %c2_212 = arith.constant 2 : index
    %222 = arith.index_cast %221 : i32 to index
    %223 = memref.load %arg1[%c2_212, %222] : memref<4x24xi32, #tpu.memory_space<smem>>
    %c-1_i32_213 = arith.constant -1 : i32
    %224 = arith.cmpi eq, %223, %c-1_i32_213 : i32
    %c0_i32_214 = arith.constant 0 : i32
    %225 = arith.select %224, %c0_i32_214, %223 : i32
    %c0_i32_215 = arith.constant 0 : i32
    %c255_i32_216 = arith.constant 255 : i32
    %226 = arith.maxsi %c0_i32_215, %225 : i32
    %227 = arith.minsi %c255_i32_216, %226 : i32
    %c3_i32_217 = arith.constant 3 : i32
    %c0_i32_218 = arith.constant 0 : i32
    %228 = tpu.memref_slice %arg3[%227, %c0_i32_218] : memref<256x32xf32, #tpu.memory_space<any>> -> memref<1x32xf32, #tpu.memory_space<any>>
    %c3_i32_219 = arith.constant 3 : i32
    %c0_i32_220 = arith.constant 0 : i32
    %229 = tpu.memref_slice %arg12[%c3_i32_219, %c0_i32_220] : memref<16x32xf32, #tpu.memory_space<vmem>> -> memref<1x32xf32, #tpu.memory_space<vmem>>
    %230 = tpu.memref_slice %arg13[%c3_i32_217] : memref<16x!tpu.dma_semaphore, #tpu.memory_space<semaphore_mem>> -> memref<1x!tpu.dma_semaphore, #tpu.memory_space<semaphore_mem>>
    %231 = tpu.memref_squeeze %230 : memref<1x!tpu.dma_semaphore, #tpu.memory_space<semaphore_mem>> -> memref<!tpu.dma_semaphore, #tpu.memory_space<semaphore_mem>>
    tpu.enqueue_dma source(%228 : memref<1x32xf32, #tpu.memory_space<any>>) target(%229 : memref<1x32xf32, #tpu.memory_space<vmem>>) target_semaphore(%231 : memref<!tpu.dma_semaphore, #tpu.memory_space<semaphore_mem>>)
    %c4_i32_221 = arith.constant 4 : i32
    %c23_i32_222 = arith.constant 23 : i32
    %232 = arith.minsi %c4_i32_221, %c23_i32_222 : i32
    %c2_223 = arith.constant 2 : index
    %233 = arith.index_cast %232 : i32 to index
    %234 = memref.load %arg1[%c2_223, %233] : memref<4x24xi32, #tpu.memory_space<smem>>
    %c-1_i32_224 = arith.constant -1 : i32
    %235 = arith.cmpi eq, %234, %c-1_i32_224 : i32
    %c0_i32_225 = arith.constant 0 : i32
    %236 = arith.select %235, %c0_i32_225, %234 : i32
    %c0_i32_226 = arith.constant 0 : i32
    %c255_i32_227 = arith.constant 255 : i32
    %237 = arith.maxsi %c0_i32_226, %236 : i32
    %238 = arith.minsi %c255_i32_227, %237 : i32
    %c4_i32_228 = arith.constant 4 : i32
    %c0_i32_229 = arith.constant 0 : i32
    %239 = tpu.memref_slice %arg3[%238, %c0_i32_229] : memref<256x32xf32, #tpu.memory_space<any>> -> memref<1x32xf32, #tpu.memory_space<any>>
    %c4_i32_230 = arith.constant 4 : i32
    %c0_i32_231 = arith.constant 0 : i32
    %240 = tpu.memref_slice %arg12[%c4_i32_230, %c0_i32_231] : memref<16x32xf32, #tpu.memory_space<vmem>> -> memref<1x32xf32, #tpu.memory_space<vmem>>
    %241 = tpu.memref_slice %arg13[%c4_i32_228] : memref<16x!tpu.dma_semaphore, #tpu.memory_space<semaphore_mem>> -> memref<1x!tpu.dma_semaphore, #tpu.memory_space<semaphore_mem>>
    %242 = tpu.memref_squeeze %241 : memref<1x!tpu.dma_semaphore, #tpu.memory_space<semaphore_mem>> -> memref<!tpu.dma_semaphore, #tpu.memory_space<semaphore_mem>>
    tpu.enqueue_dma source(%239 : memref<1x32xf32, #tpu.memory_space<any>>) target(%240 : memref<1x32xf32, #tpu.memory_space<vmem>>) target_semaphore(%242 : memref<!tpu.dma_semaphore, #tpu.memory_space<semaphore_mem>>)
    %c5_i32_232 = arith.constant 5 : i32
    %c23_i32_233 = arith.constant 23 : i32
    %243 = arith.minsi %c5_i32_232, %c23_i32_233 : i32
    %c2_234 = arith.constant 2 : index
    %244 = arith.index_cast %243 : i32 to index
    %245 = memref.load %arg1[%c2_234, %244] : memref<4x24xi32, #tpu.memory_space<smem>>
    %c-1_i32_235 = arith.constant -1 : i32
    %246 = arith.cmpi eq, %245, %c-1_i32_235 : i32
    %c0_i32_236 = arith.constant 0 : i32
    %247 = arith.select %246, %c0_i32_236, %245 : i32
    %c0_i32_237 = arith.constant 0 : i32
    %c255_i32_238 = arith.constant 255 : i32
    %248 = arith.maxsi %c0_i32_237, %247 : i32
    %249 = arith.minsi %c255_i32_238, %248 : i32
    %c5_i32_239 = arith.constant 5 : i32
    %c0_i32_240 = arith.constant 0 : i32
    %250 = tpu.memref_slice %arg3[%249, %c0_i32_240] : memref<256x32xf32, #tpu.memory_space<any>> -> memref<1x32xf32, #tpu.memory_space<any>>
    %c5_i32_241 = arith.constant 5 : i32
    %c0_i32_242 = arith.constant 0 : i32
    %251 = tpu.memref_slice %arg12[%c5_i32_241, %c0_i32_242] : memref<16x32xf32, #tpu.memory_space<vmem>> -> memref<1x32xf32, #tpu.memory_space<vmem>>
    %252 = tpu.memref_slice %arg13[%c5_i32_239] : memref<16x!tpu.dma_semaphore, #tpu.memory_space<semaphore_mem>> -> memref<1x!tpu.dma_semaphore, #tpu.memory_space<semaphore_mem>>
    %253 = tpu.memref_squeeze %252 : memref<1x!tpu.dma_semaphore, #tpu.memory_space<semaphore_mem>> -> memref<!tpu.dma_semaphore, #tpu.memory_space<semaphore_mem>>
    tpu.enqueue_dma source(%250 : memref<1x32xf32, #tpu.memory_space<any>>) target(%251 : memref<1x32xf32, #tpu.memory_space<vmem>>) target_semaphore(%253 : memref<!tpu.dma_semaphore, #tpu.memory_space<semaphore_mem>>)
    %c6_i32_243 = arith.constant 6 : i32
    %c23_i32_244 = arith.constant 23 : i32
    %254 = arith.minsi %c6_i32_243, %c23_i32_244 : i32
    %c2_245 = arith.constant 2 : index
    %255 = arith.index_cast %254 : i32 to index
    %256 = memref.load %arg1[%c2_245, %255] : memref<4x24xi32, #tpu.memory_space<smem>>
    %c-1_i32_246 = arith.constant -1 : i32
    %257 = arith.cmpi eq, %256, %c-1_i32_246 : i32
    %c0_i32_247 = arith.constant 0 : i32
    %258 = arith.select %257, %c0_i32_247, %256 : i32
    %c0_i32_248 = arith.constant 0 : i32
    %c255_i32_249 = arith.constant 255 : i32
    %259 = arith.maxsi %c0_i32_248, %258 : i32
    %260 = arith.minsi %c255_i32_249, %259 : i32
    %c6_i32_250 = arith.constant 6 : i32
    %c0_i32_251 = arith.constant 0 : i32
    %261 = tpu.memref_slice %arg3[%260, %c0_i32_251] : memref<256x32xf32, #tpu.memory_space<any>> -> memref<1x32xf32, #tpu.memory_space<any>>
    %c6_i32_252 = arith.constant 6 : i32
    %c0_i32_253 = arith.constant 0 : i32
    %262 = tpu.memref_slice %arg12[%c6_i32_252, %c0_i32_253] : memref<16x32xf32, #tpu.memory_space<vmem>> -> memref<1x32xf32, #tpu.memory_space<vmem>>
    %263 = tpu.memref_slice %arg13[%c6_i32_250] : memref<16x!tpu.dma_semaphore, #tpu.memory_space<semaphore_mem>> -> memref<1x!tpu.dma_semaphore, #tpu.memory_space<semaphore_mem>>
    %264 = tpu.memref_squeeze %263 : memref<1x!tpu.dma_semaphore, #tpu.memory_space<semaphore_mem>> -> memref<!tpu.dma_semaphore, #tpu.memory_space<semaphore_mem>>
    tpu.enqueue_dma source(%261 : memref<1x32xf32, #tpu.memory_space<any>>) target(%262 : memref<1x32xf32, #tpu.memory_space<vmem>>) target_semaphore(%264 : memref<!tpu.dma_semaphore, #tpu.memory_space<semaphore_mem>>)
    %c7_i32_254 = arith.constant 7 : i32
    %c23_i32_255 = arith.constant 23 : i32
    %265 = arith.minsi %c7_i32_254, %c23_i32_255 : i32
    %c2_256 = arith.constant 2 : index
    %266 = arith.index_cast %265 : i32 to index
    %267 = memref.load %arg1[%c2_256, %266] : memref<4x24xi32, #tpu.memory_space<smem>>
    %c-1_i32_257 = arith.constant -1 : i32
    %268 = arith.cmpi eq, %267, %c-1_i32_257 : i32
    %c0_i32_258 = arith.constant 0 : i32
    %269 = arith.select %268, %c0_i32_258, %267 : i32
    %c0_i32_259 = arith.constant 0 : i32
    %c255_i32_260 = arith.constant 255 : i32
    %270 = arith.maxsi %c0_i32_259, %269 : i32
    %271 = arith.minsi %c255_i32_260, %270 : i32
    %c7_i32_261 = arith.constant 7 : i32
    %c0_i32_262 = arith.constant 0 : i32
    %272 = tpu.memref_slice %arg3[%271, %c0_i32_262] : memref<256x32xf32, #tpu.memory_space<any>> -> memref<1x32xf32, #tpu.memory_space<any>>
    %c7_i32_263 = arith.constant 7 : i32
    %c0_i32_264 = arith.constant 0 : i32
    %273 = tpu.memref_slice %arg12[%c7_i32_263, %c0_i32_264] : memref<16x32xf32, #tpu.memory_space<vmem>> -> memref<1x32xf32, #tpu.memory_space<vmem>>
    %274 = tpu.memref_slice %arg13[%c7_i32_261] : memref<16x!tpu.dma_semaphore, #tpu.memory_space<semaphore_mem>> -> memref<1x!tpu.dma_semaphore, #tpu.memory_space<semaphore_mem>>
    %275 = tpu.memref_squeeze %274 : memref<1x!tpu.dma_semaphore, #tpu.memory_space<semaphore_mem>> -> memref<!tpu.dma_semaphore, #tpu.memory_space<semaphore_mem>>
    tpu.enqueue_dma source(%272 : memref<1x32xf32, #tpu.memory_space<any>>) target(%273 : memref<1x32xf32, #tpu.memory_space<vmem>>) target_semaphore(%275 : memref<!tpu.dma_semaphore, #tpu.memory_space<semaphore_mem>>)
    %cst_265 = arith.constant 0.000000e+00 : f32
    %276 = vector.broadcast %cst_265 : f32 to vector<1x32xf32>
    %c0_i32_266 = arith.constant 0 : i32
    %c3_i32_267 = arith.constant 3 : i32
    %277 = arith.addi %c0_i32_266, %c3_i32_267 : i32
    %c1_i32_268 = arith.constant 1 : i32
    %278 = scf.for %arg15 = %c0_i32_266 to %277 step %c1_i32_268 iter_args(%arg16 = %276) -> (vector<1x32xf32>)  : i32 {
      %c2_i32_411 = arith.constant 2 : i32
      %c0_i32_412 = arith.constant 0 : i32
      %465 = arith.cmpi eq, %c2_i32_411, %c0_i32_412 : i32
      %c1_i32_413 = arith.constant 1 : i32
      %466 = arith.select %465, %c1_i32_413, %c2_i32_411 : i32
      %467 = arith.remsi %arg15, %466 : i32
      %c0_i32_414 = arith.constant 0 : i32
      %468 = arith.cmpi ne, %467, %c0_i32_414 : i32
      %c0_i32_415 = arith.constant 0 : i32
      %469 = arith.cmpi slt, %467, %c0_i32_415 : i32
      %c0_i32_416 = arith.constant 0 : i32
      %470 = arith.cmpi slt, %466, %c0_i32_416 : i32
      %471 = arith.xori %469, %470 : i1
      %472 = arith.andi %471, %468 : i1
      %473 = arith.addi %467, %466 : i32
      %474 = arith.select %472, %473, %467 : i32
      %c8_i32 = arith.constant 8 : i32
      %475 = arith.muli %474, %c8_i32 : i32
      %c0_i32_417 = arith.constant 0 : i32
      %476 = arith.addi %475, %c0_i32_417 : i32
      %c8_i32_418 = arith.constant 8 : i32
      %477 = arith.muli %474, %c8_i32_418 : i32
      %c0_i32_419 = arith.constant 0 : i32
      %478 = arith.addi %477, %c0_i32_419 : i32
      %c0_i32_420 = arith.constant 0 : i32
      %c0_i32_421 = arith.constant 0 : i32
      %479 = tpu.memref_slice %arg3[%c0_i32_420, %c0_i32_421] : memref<256x32xf32, #tpu.memory_space<any>> -> memref<1x32xf32, #tpu.memory_space<any>>
      %c0_i32_422 = arith.constant 0 : i32
      %480 = tpu.memref_slice %arg12[%476, %c0_i32_422] : memref<16x32xf32, #tpu.memory_space<vmem>> -> memref<1x32xf32, #tpu.memory_space<vmem>>
      %481 = tpu.memref_slice %arg13[%478] : memref<16x!tpu.dma_semaphore, #tpu.memory_space<semaphore_mem>> -> memref<1x!tpu.dma_semaphore, #tpu.memory_space<semaphore_mem>>
      %482 = tpu.memref_squeeze %481 : memref<1x!tpu.dma_semaphore, #tpu.memory_space<semaphore_mem>> -> memref<!tpu.dma_semaphore, #tpu.memory_space<semaphore_mem>>
      tpu.wait_dma2 semaphore(%482 : memref<!tpu.dma_semaphore, #tpu.memory_space<semaphore_mem>>) src(%479 : memref<1x32xf32, #tpu.memory_space<any>>) dst(%480 : memref<1x32xf32, #tpu.memory_space<vmem>>)
      %c8_i32_423 = arith.constant 8 : i32
      %483 = arith.muli %474, %c8_i32_423 : i32
      %c1_i32_424 = arith.constant 1 : i32
      %484 = arith.addi %483, %c1_i32_424 : i32
      %c8_i32_425 = arith.constant 8 : i32
      %485 = arith.muli %474, %c8_i32_425 : i32
      %c1_i32_426 = arith.constant 1 : i32
      %486 = arith.addi %485, %c1_i32_426 : i32
      %c0_i32_427 = arith.constant 0 : i32
      %c0_i32_428 = arith.constant 0 : i32
      %487 = tpu.memref_slice %arg3[%c0_i32_427, %c0_i32_428] : memref<256x32xf32, #tpu.memory_space<any>> -> memref<1x32xf32, #tpu.memory_space<any>>
      %c0_i32_429 = arith.constant 0 : i32
      %488 = tpu.memref_slice %arg12[%484, %c0_i32_429] : memref<16x32xf32, #tpu.memory_space<vmem>> -> memref<1x32xf32, #tpu.memory_space<vmem>>
      %489 = tpu.memref_slice %arg13[%486] : memref<16x!tpu.dma_semaphore, #tpu.memory_space<semaphore_mem>> -> memref<1x!tpu.dma_semaphore, #tpu.memory_space<semaphore_mem>>
      %490 = tpu.memref_squeeze %489 : memref<1x!tpu.dma_semaphore, #tpu.memory_space<semaphore_mem>> -> memref<!tpu.dma_semaphore, #tpu.memory_space<semaphore_mem>>
      tpu.wait_dma2 semaphore(%490 : memref<!tpu.dma_semaphore, #tpu.memory_space<semaphore_mem>>) src(%487 : memref<1x32xf32, #tpu.memory_space<any>>) dst(%488 : memref<1x32xf32, #tpu.memory_space<vmem>>)
      %c8_i32_430 = arith.constant 8 : i32
      %491 = arith.muli %474, %c8_i32_430 : i32
      %c2_i32_431 = arith.constant 2 : i32
      %492 = arith.addi %491, %c2_i32_431 : i32
      %c8_i32_432 = arith.constant 8 : i32
      %493 = arith.muli %474, %c8_i32_432 : i32
      %c2_i32_433 = arith.constant 2 : i32
      %494 = arith.addi %493, %c2_i32_433 : i32
      %c0_i32_434 = arith.constant 0 : i32
      %c0_i32_435 = arith.constant 0 : i32
      %495 = tpu.memref_slice %arg3[%c0_i32_434, %c0_i32_435] : memref<256x32xf32, #tpu.memory_space<any>> -> memref<1x32xf32, #tpu.memory_space<any>>
      %c0_i32_436 = arith.constant 0 : i32
      %496 = tpu.memref_slice %arg12[%492, %c0_i32_436] : memref<16x32xf32, #tpu.memory_space<vmem>> -> memref<1x32xf32, #tpu.memory_space<vmem>>
      %497 = tpu.memref_slice %arg13[%494] : memref<16x!tpu.dma_semaphore, #tpu.memory_space<semaphore_mem>> -> memref<1x!tpu.dma_semaphore, #tpu.memory_space<semaphore_mem>>
      %498 = tpu.memref_squeeze %497 : memref<1x!tpu.dma_semaphore, #tpu.memory_space<semaphore_mem>> -> memref<!tpu.dma_semaphore, #tpu.memory_space<semaphore_mem>>
      tpu.wait_dma2 semaphore(%498 : memref<!tpu.dma_semaphore, #tpu.memory_space<semaphore_mem>>) src(%495 : memref<1x32xf32, #tpu.memory_space<any>>) dst(%496 : memref<1x32xf32, #tpu.memory_space<vmem>>)
      %c8_i32_437 = arith.constant 8 : i32
      %499 = arith.muli %474, %c8_i32_437 : i32
      %c3_i32_438 = arith.constant 3 : i32
      %500 = arith.addi %499, %c3_i32_438 : i32
      %c8_i32_439 = arith.constant 8 : i32
      %501 = arith.muli %474, %c8_i32_439 : i32
      %c3_i32_440 = arith.constant 3 : i32
      %502 = arith.addi %501, %c3_i32_440 : i32
      %c0_i32_441 = arith.constant 0 : i32
      %c0_i32_442 = arith.constant 0 : i32
      %503 = tpu.memref_slice %arg3[%c0_i32_441, %c0_i32_442] : memref<256x32xf32, #tpu.memory_space<any>> -> memref<1x32xf32, #tpu.memory_space<any>>
      %c0_i32_443 = arith.constant 0 : i32
      %504 = tpu.memref_slice %arg12[%500, %c0_i32_443] : memref<16x32xf32, #tpu.memory_space<vmem>> -> memref<1x32xf32, #tpu.memory_space<vmem>>
      %505 = tpu.memref_slice %arg13[%502] : memref<16x!tpu.dma_semaphore, #tpu.memory_space<semaphore_mem>> -> memref<1x!tpu.dma_semaphore, #tpu.memory_space<semaphore_mem>>
      %506 = tpu.memref_squeeze %505 : memref<1x!tpu.dma_semaphore, #tpu.memory_space<semaphore_mem>> -> memref<!tpu.dma_semaphore, #tpu.memory_space<semaphore_mem>>
      tpu.wait_dma2 semaphore(%506 : memref<!tpu.dma_semaphore, #tpu.memory_space<semaphore_mem>>) src(%503 : memref<1x32xf32, #tpu.memory_space<any>>) dst(%504 : memref<1x32xf32, #tpu.memory_space<vmem>>)
      %c8_i32_444 = arith.constant 8 : i32
      %507 = arith.muli %474, %c8_i32_444 : i32
      %c4_i32_445 = arith.constant 4 : i32
      %508 = arith.addi %507, %c4_i32_445 : i32
      %c8_i32_446 = arith.constant 8 : i32
      %509 = arith.muli %474, %c8_i32_446 : i32
      %c4_i32_447 = arith.constant 4 : i32
      %510 = arith.addi %509, %c4_i32_447 : i32
      %c0_i32_448 = arith.constant 0 : i32
      %c0_i32_449 = arith.constant 0 : i32
      %511 = tpu.memref_slice %arg3[%c0_i32_448, %c0_i32_449] : memref<256x32xf32, #tpu.memory_space<any>> -> memref<1x32xf32, #tpu.memory_space<any>>
      %c0_i32_450 = arith.constant 0 : i32
      %512 = tpu.memref_slice %arg12[%508, %c0_i32_450] : memref<16x32xf32, #tpu.memory_space<vmem>> -> memref<1x32xf32, #tpu.memory_space<vmem>>
      %513 = tpu.memref_slice %arg13[%510] : memref<16x!tpu.dma_semaphore, #tpu.memory_space<semaphore_mem>> -> memref<1x!tpu.dma_semaphore, #tpu.memory_space<semaphore_mem>>
      %514 = tpu.memref_squeeze %513 : memref<1x!tpu.dma_semaphore, #tpu.memory_space<semaphore_mem>> -> memref<!tpu.dma_semaphore, #tpu.memory_space<semaphore_mem>>
      tpu.wait_dma2 semaphore(%514 : memref<!tpu.dma_semaphore, #tpu.memory_space<semaphore_mem>>) src(%511 : memref<1x32xf32, #tpu.memory_space<any>>) dst(%512 : memref<1x32xf32, #tpu.memory_space<vmem>>)
      %c8_i32_451 = arith.constant 8 : i32
      %515 = arith.muli %474, %c8_i32_451 : i32
      %c5_i32_452 = arith.constant 5 : i32
      %516 = arith.addi %515, %c5_i32_452 : i32
      %c8_i32_453 = arith.constant 8 : i32
      %517 = arith.muli %474, %c8_i32_453 : i32
      %c5_i32_454 = arith.constant 5 : i32
      %518 = arith.addi %517, %c5_i32_454 : i32
      %c0_i32_455 = arith.constant 0 : i32
      %c0_i32_456 = arith.constant 0 : i32
      %519 = tpu.memref_slice %arg3[%c0_i32_455, %c0_i32_456] : memref<256x32xf32, #tpu.memory_space<any>> -> memref<1x32xf32, #tpu.memory_space<any>>
      %c0_i32_457 = arith.constant 0 : i32
      %520 = tpu.memref_slice %arg12[%516, %c0_i32_457] : memref<16x32xf32, #tpu.memory_space<vmem>> -> memref<1x32xf32, #tpu.memory_space<vmem>>
      %521 = tpu.memref_slice %arg13[%518] : memref<16x!tpu.dma_semaphore, #tpu.memory_space<semaphore_mem>> -> memref<1x!tpu.dma_semaphore, #tpu.memory_space<semaphore_mem>>
      %522 = tpu.memref_squeeze %521 : memref<1x!tpu.dma_semaphore, #tpu.memory_space<semaphore_mem>> -> memref<!tpu.dma_semaphore, #tpu.memory_space<semaphore_mem>>
      tpu.wait_dma2 semaphore(%522 : memref<!tpu.dma_semaphore, #tpu.memory_space<semaphore_mem>>) src(%519 : memref<1x32xf32, #tpu.memory_space<any>>) dst(%520 : memref<1x32xf32, #tpu.memory_space<vmem>>)
      %c8_i32_458 = arith.constant 8 : i32
      %523 = arith.muli %474, %c8_i32_458 : i32
      %c6_i32_459 = arith.constant 6 : i32
      %524 = arith.addi %523, %c6_i32_459 : i32
      %c8_i32_460 = arith.constant 8 : i32
      %525 = arith.muli %474, %c8_i32_460 : i32
      %c6_i32_461 = arith.constant 6 : i32
      %526 = arith.addi %525, %c6_i32_461 : i32
      %c0_i32_462 = arith.constant 0 : i32
      %c0_i32_463 = arith.constant 0 : i32
      %527 = tpu.memref_slice %arg3[%c0_i32_462, %c0_i32_463] : memref<256x32xf32, #tpu.memory_space<any>> -> memref<1x32xf32, #tpu.memory_space<any>>
      %c0_i32_464 = arith.constant 0 : i32
      %528 = tpu.memref_slice %arg12[%524, %c0_i32_464] : memref<16x32xf32, #tpu.memory_space<vmem>> -> memref<1x32xf32, #tpu.memory_space<vmem>>
      %529 = tpu.memref_slice %arg13[%526] : memref<16x!tpu.dma_semaphore, #tpu.memory_space<semaphore_mem>> -> memref<1x!tpu.dma_semaphore, #tpu.memory_space<semaphore_mem>>
      %530 = tpu.memref_squeeze %529 : memref<1x!tpu.dma_semaphore, #tpu.memory_space<semaphore_mem>> -> memref<!tpu.dma_semaphore, #tpu.memory_space<semaphore_mem>>
      tpu.wait_dma2 semaphore(%530 : memref<!tpu.dma_semaphore, #tpu.memory_space<semaphore_mem>>) src(%527 : memref<1x32xf32, #tpu.memory_space<any>>) dst(%528 : memref<1x32xf32, #tpu.memory_space<vmem>>)
      %c8_i32_465 = arith.constant 8 : i32
      %531 = arith.muli %474, %c8_i32_465 : i32
      %c7_i32_466 = arith.constant 7 : i32
      %532 = arith.addi %531, %c7_i32_466 : i32
      %c8_i32_467 = arith.constant 8 : i32
      %533 = arith.muli %474, %c8_i32_467 : i32
      %c7_i32_468 = arith.constant 7 : i32
      %534 = arith.addi %533, %c7_i32_468 : i32
      %c0_i32_469 = arith.constant 0 : i32
      %c0_i32_470 = arith.constant 0 : i32
      %535 = tpu.memref_slice %arg3[%c0_i32_469, %c0_i32_470] : memref<256x32xf32, #tpu.memory_space<any>> -> memref<1x32xf32, #tpu.memory_space<any>>
      %c0_i32_471 = arith.constant 0 : i32
      %536 = tpu.memref_slice %arg12[%532, %c0_i32_471] : memref<16x32xf32, #tpu.memory_space<vmem>> -> memref<1x32xf32, #tpu.memory_space<vmem>>
      %537 = tpu.memref_slice %arg13[%534] : memref<16x!tpu.dma_semaphore, #tpu.memory_space<semaphore_mem>> -> memref<1x!tpu.dma_semaphore, #tpu.memory_space<semaphore_mem>>
      %538 = tpu.memref_squeeze %537 : memref<1x!tpu.dma_semaphore, #tpu.memory_space<semaphore_mem>> -> memref<!tpu.dma_semaphore, #tpu.memory_space<semaphore_mem>>
      tpu.wait_dma2 semaphore(%538 : memref<!tpu.dma_semaphore, #tpu.memory_space<semaphore_mem>>) src(%535 : memref<1x32xf32, #tpu.memory_space<any>>) dst(%536 : memref<1x32xf32, #tpu.memory_space<vmem>>)
      %c1_i32_472 = arith.constant 1 : i32
      %539 = arith.addi %arg15, %c1_i32_472 : i32
      %c3_i32_473 = arith.constant 3 : i32
      %540 = arith.cmpi slt, %539, %c3_i32_473 : i32
      %541 = arith.extui %540 : i1 to i32
      %c0_i32_474 = arith.constant 0 : i32
      %542 = arith.cmpi ne, %541, %c0_i32_474 : i32
      scf.if %542 {
        %c1_i32_480 = arith.constant 1 : i32
        %560 = arith.addi %arg15, %c1_i32_480 : i32
        %c1_i32_481 = arith.constant 1 : i32
        %561 = arith.subi %c1_i32_481, %474 : i32
        %c8_i32_482 = arith.constant 8 : i32
        %562 = arith.muli %560, %c8_i32_482 : i32
        %c0_i32_483 = arith.constant 0 : i32
        %563 = arith.addi %562, %c0_i32_483 : i32
        %c23_i32_484 = arith.constant 23 : i32
        %564 = arith.minsi %563, %c23_i32_484 : i32
        %c2_485 = arith.constant 2 : index
        %565 = arith.index_cast %564 : i32 to index
        %566 = memref.load %arg1[%c2_485, %565] : memref<4x24xi32, #tpu.memory_space<smem>>
        %c-1_i32_486 = arith.constant -1 : i32
        %567 = arith.cmpi eq, %566, %c-1_i32_486 : i32
        %c0_i32_487 = arith.constant 0 : i32
        %568 = arith.select %567, %c0_i32_487, %566 : i32
        %c0_i32_488 = arith.constant 0 : i32
        %c255_i32_489 = arith.constant 255 : i32
        %569 = arith.maxsi %c0_i32_488, %568 : i32
        %570 = arith.minsi %c255_i32_489, %569 : i32
        %c8_i32_490 = arith.constant 8 : i32
        %571 = arith.muli %561, %c8_i32_490 : i32
        %c0_i32_491 = arith.constant 0 : i32
        %572 = arith.addi %571, %c0_i32_491 : i32
        %c8_i32_492 = arith.constant 8 : i32
        %573 = arith.muli %561, %c8_i32_492 : i32
        %c0_i32_493 = arith.constant 0 : i32
        %574 = arith.addi %573, %c0_i32_493 : i32
        %c0_i32_494 = arith.constant 0 : i32
        %575 = tpu.memref_slice %arg3[%570, %c0_i32_494] : memref<256x32xf32, #tpu.memory_space<any>> -> memref<1x32xf32, #tpu.memory_space<any>>
        %c0_i32_495 = arith.constant 0 : i32
        %576 = tpu.memref_slice %arg12[%572, %c0_i32_495] : memref<16x32xf32, #tpu.memory_space<vmem>> -> memref<1x32xf32, #tpu.memory_space<vmem>>
        %577 = tpu.memref_slice %arg13[%574] : memref<16x!tpu.dma_semaphore, #tpu.memory_space<semaphore_mem>> -> memref<1x!tpu.dma_semaphore, #tpu.memory_space<semaphore_mem>>
        %578 = tpu.memref_squeeze %577 : memref<1x!tpu.dma_semaphore, #tpu.memory_space<semaphore_mem>> -> memref<!tpu.dma_semaphore, #tpu.memory_space<semaphore_mem>>
        tpu.enqueue_dma source(%575 : memref<1x32xf32, #tpu.memory_space<any>>) target(%576 : memref<1x32xf32, #tpu.memory_space<vmem>>) target_semaphore(%578 : memref<!tpu.dma_semaphore, #tpu.memory_space<semaphore_mem>>)
        %c8_i32_496 = arith.constant 8 : i32
        %579 = arith.muli %560, %c8_i32_496 : i32
        %c1_i32_497 = arith.constant 1 : i32
        %580 = arith.addi %579, %c1_i32_497 : i32
        %c23_i32_498 = arith.constant 23 : i32
        %581 = arith.minsi %580, %c23_i32_498 : i32
        %c2_499 = arith.constant 2 : index
        %582 = arith.index_cast %581 : i32 to index
        %583 = memref.load %arg1[%c2_499, %582] : memref<4x24xi32, #tpu.memory_space<smem>>
        %c-1_i32_500 = arith.constant -1 : i32
        %584 = arith.cmpi eq, %583, %c-1_i32_500 : i32
        %c0_i32_501 = arith.constant 0 : i32
        %585 = arith.select %584, %c0_i32_501, %583 : i32
        %c0_i32_502 = arith.constant 0 : i32
        %c255_i32_503 = arith.constant 255 : i32
        %586 = arith.maxsi %c0_i32_502, %585 : i32
        %587 = arith.minsi %c255_i32_503, %586 : i32
        %c8_i32_504 = arith.constant 8 : i32
        %588 = arith.muli %561, %c8_i32_504 : i32
        %c1_i32_505 = arith.constant 1 : i32
        %589 = arith.addi %588, %c1_i32_505 : i32
        %c8_i32_506 = arith.constant 8 : i32
        %590 = arith.muli %561, %c8_i32_506 : i32
        %c1_i32_507 = arith.constant 1 : i32
        %591 = arith.addi %590, %c1_i32_507 : i32
        %c0_i32_508 = arith.constant 0 : i32
        %592 = tpu.memref_slice %arg3[%587, %c0_i32_508] : memref<256x32xf32, #tpu.memory_space<any>> -> memref<1x32xf32, #tpu.memory_space<any>>
        %c0_i32_509 = arith.constant 0 : i32
        %593 = tpu.memref_slice %arg12[%589, %c0_i32_509] : memref<16x32xf32, #tpu.memory_space<vmem>> -> memref<1x32xf32, #tpu.memory_space<vmem>>
        %594 = tpu.memref_slice %arg13[%591] : memref<16x!tpu.dma_semaphore, #tpu.memory_space<semaphore_mem>> -> memref<1x!tpu.dma_semaphore, #tpu.memory_space<semaphore_mem>>
        %595 = tpu.memref_squeeze %594 : memref<1x!tpu.dma_semaphore, #tpu.memory_space<semaphore_mem>> -> memref<!tpu.dma_semaphore, #tpu.memory_space<semaphore_mem>>
        tpu.enqueue_dma source(%592 : memref<1x32xf32, #tpu.memory_space<any>>) target(%593 : memref<1x32xf32, #tpu.memory_space<vmem>>) target_semaphore(%595 : memref<!tpu.dma_semaphore, #tpu.memory_space<semaphore_mem>>)
        %c8_i32_510 = arith.constant 8 : i32
        %596 = arith.muli %560, %c8_i32_510 : i32
        %c2_i32_511 = arith.constant 2 : i32
        %597 = arith.addi %596, %c2_i32_511 : i32
        %c23_i32_512 = arith.constant 23 : i32
        %598 = arith.minsi %597, %c23_i32_512 : i32
        %c2_513 = arith.constant 2 : index
        %599 = arith.index_cast %598 : i32 to index
        %600 = memref.load %arg1[%c2_513, %599] : memref<4x24xi32, #tpu.memory_space<smem>>
        %c-1_i32_514 = arith.constant -1 : i32
        %601 = arith.cmpi eq, %600, %c-1_i32_514 : i32
        %c0_i32_515 = arith.constant 0 : i32
        %602 = arith.select %601, %c0_i32_515, %600 : i32
        %c0_i32_516 = arith.constant 0 : i32
        %c255_i32_517 = arith.constant 255 : i32
        %603 = arith.maxsi %c0_i32_516, %602 : i32
        %604 = arith.minsi %c255_i32_517, %603 : i32
        %c8_i32_518 = arith.constant 8 : i32
        %605 = arith.muli %561, %c8_i32_518 : i32
        %c2_i32_519 = arith.constant 2 : i32
        %606 = arith.addi %605, %c2_i32_519 : i32
        %c8_i32_520 = arith.constant 8 : i32
        %607 = arith.muli %561, %c8_i32_520 : i32
        %c2_i32_521 = arith.constant 2 : i32
        %608 = arith.addi %607, %c2_i32_521 : i32
        %c0_i32_522 = arith.constant 0 : i32
        %609 = tpu.memref_slice %arg3[%604, %c0_i32_522] : memref<256x32xf32, #tpu.memory_space<any>> -> memref<1x32xf32, #tpu.memory_space<any>>
        %c0_i32_523 = arith.constant 0 : i32
        %610 = tpu.memref_slice %arg12[%606, %c0_i32_523] : memref<16x32xf32, #tpu.memory_space<vmem>> -> memref<1x32xf32, #tpu.memory_space<vmem>>
        %611 = tpu.memref_slice %arg13[%608] : memref<16x!tpu.dma_semaphore, #tpu.memory_space<semaphore_mem>> -> memref<1x!tpu.dma_semaphore, #tpu.memory_space<semaphore_mem>>
        %612 = tpu.memref_squeeze %611 : memref<1x!tpu.dma_semaphore, #tpu.memory_space<semaphore_mem>> -> memref<!tpu.dma_semaphore, #tpu.memory_space<semaphore_mem>>
        tpu.enqueue_dma source(%609 : memref<1x32xf32, #tpu.memory_space<any>>) target(%610 : memref<1x32xf32, #tpu.memory_space<vmem>>) target_semaphore(%612 : memref<!tpu.dma_semaphore, #tpu.memory_space<semaphore_mem>>)
        %c8_i32_524 = arith.constant 8 : i32
        %613 = arith.muli %560, %c8_i32_524 : i32
        %c3_i32_525 = arith.constant 3 : i32
        %614 = arith.addi %613, %c3_i32_525 : i32
        %c23_i32_526 = arith.constant 23 : i32
        %615 = arith.minsi %614, %c23_i32_526 : i32
        %c2_527 = arith.constant 2 : index
        %616 = arith.index_cast %615 : i32 to index
        %617 = memref.load %arg1[%c2_527, %616] : memref<4x24xi32, #tpu.memory_space<smem>>
        %c-1_i32_528 = arith.constant -1 : i32
        %618 = arith.cmpi eq, %617, %c-1_i32_528 : i32
        %c0_i32_529 = arith.constant 0 : i32
        %619 = arith.select %618, %c0_i32_529, %617 : i32
        %c0_i32_530 = arith.constant 0 : i32
        %c255_i32_531 = arith.constant 255 : i32
        %620 = arith.maxsi %c0_i32_530, %619 : i32
        %621 = arith.minsi %c255_i32_531, %620 : i32
        %c8_i32_532 = arith.constant 8 : i32
        %622 = arith.muli %561, %c8_i32_532 : i32
        %c3_i32_533 = arith.constant 3 : i32
        %623 = arith.addi %622, %c3_i32_533 : i32
        %c8_i32_534 = arith.constant 8 : i32
        %624 = arith.muli %561, %c8_i32_534 : i32
        %c3_i32_535 = arith.constant 3 : i32
        %625 = arith.addi %624, %c3_i32_535 : i32
        %c0_i32_536 = arith.constant 0 : i32
        %626 = tpu.memref_slice %arg3[%621, %c0_i32_536] : memref<256x32xf32, #tpu.memory_space<any>> -> memref<1x32xf32, #tpu.memory_space<any>>
        %c0_i32_537 = arith.constant 0 : i32
        %627 = tpu.memref_slice %arg12[%623, %c0_i32_537] : memref<16x32xf32, #tpu.memory_space<vmem>> -> memref<1x32xf32, #tpu.memory_space<vmem>>
        %628 = tpu.memref_slice %arg13[%625] : memref<16x!tpu.dma_semaphore, #tpu.memory_space<semaphore_mem>> -> memref<1x!tpu.dma_semaphore, #tpu.memory_space<semaphore_mem>>
        %629 = tpu.memref_squeeze %628 : memref<1x!tpu.dma_semaphore, #tpu.memory_space<semaphore_mem>> -> memref<!tpu.dma_semaphore, #tpu.memory_space<semaphore_mem>>
        tpu.enqueue_dma source(%626 : memref<1x32xf32, #tpu.memory_space<any>>) target(%627 : memref<1x32xf32, #tpu.memory_space<vmem>>) target_semaphore(%629 : memref<!tpu.dma_semaphore, #tpu.memory_space<semaphore_mem>>)
        %c8_i32_538 = arith.constant 8 : i32
        %630 = arith.muli %560, %c8_i32_538 : i32
        %c4_i32_539 = arith.constant 4 : i32
        %631 = arith.addi %630, %c4_i32_539 : i32
        %c23_i32_540 = arith.constant 23 : i32
        %632 = arith.minsi %631, %c23_i32_540 : i32
        %c2_541 = arith.constant 2 : index
        %633 = arith.index_cast %632 : i32 to index
        %634 = memref.load %arg1[%c2_541, %633] : memref<4x24xi32, #tpu.memory_space<smem>>
        %c-1_i32_542 = arith.constant -1 : i32
        %635 = arith.cmpi eq, %634, %c-1_i32_542 : i32
        %c0_i32_543 = arith.constant 0 : i32
        %636 = arith.select %635, %c0_i32_543, %634 : i32
        %c0_i32_544 = arith.constant 0 : i32
        %c255_i32_545 = arith.constant 255 : i32
        %637 = arith.maxsi %c0_i32_544, %636 : i32
        %638 = arith.minsi %c255_i32_545, %637 : i32
        %c8_i32_546 = arith.constant 8 : i32
        %639 = arith.muli %561, %c8_i32_546 : i32
        %c4_i32_547 = arith.constant 4 : i32
        %640 = arith.addi %639, %c4_i32_547 : i32
        %c8_i32_548 = arith.constant 8 : i32
        %641 = arith.muli %561, %c8_i32_548 : i32
        %c4_i32_549 = arith.constant 4 : i32
        %642 = arith.addi %641, %c4_i32_549 : i32
        %c0_i32_550 = arith.constant 0 : i32
        %643 = tpu.memref_slice %arg3[%638, %c0_i32_550] : memref<256x32xf32, #tpu.memory_space<any>> -> memref<1x32xf32, #tpu.memory_space<any>>
        %c0_i32_551 = arith.constant 0 : i32
        %644 = tpu.memref_slice %arg12[%640, %c0_i32_551] : memref<16x32xf32, #tpu.memory_space<vmem>> -> memref<1x32xf32, #tpu.memory_space<vmem>>
        %645 = tpu.memref_slice %arg13[%642] : memref<16x!tpu.dma_semaphore, #tpu.memory_space<semaphore_mem>> -> memref<1x!tpu.dma_semaphore, #tpu.memory_space<semaphore_mem>>
        %646 = tpu.memref_squeeze %645 : memref<1x!tpu.dma_semaphore, #tpu.memory_space<semaphore_mem>> -> memref<!tpu.dma_semaphore, #tpu.memory_space<semaphore_mem>>
        tpu.enqueue_dma source(%643 : memref<1x32xf32, #tpu.memory_space<any>>) target(%644 : memref<1x32xf32, #tpu.memory_space<vmem>>) target_semaphore(%646 : memref<!tpu.dma_semaphore, #tpu.memory_space<semaphore_mem>>)
        %c8_i32_552 = arith.constant 8 : i32
        %647 = arith.muli %560, %c8_i32_552 : i32
        %c5_i32_553 = arith.constant 5 : i32
        %648 = arith.addi %647, %c5_i32_553 : i32
        %c23_i32_554 = arith.constant 23 : i32
        %649 = arith.minsi %648, %c23_i32_554 : i32
        %c2_555 = arith.constant 2 : index
        %650 = arith.index_cast %649 : i32 to index
        %651 = memref.load %arg1[%c2_555, %650] : memref<4x24xi32, #tpu.memory_space<smem>>
        %c-1_i32_556 = arith.constant -1 : i32
        %652 = arith.cmpi eq, %651, %c-1_i32_556 : i32
        %c0_i32_557 = arith.constant 0 : i32
        %653 = arith.select %652, %c0_i32_557, %651 : i32
        %c0_i32_558 = arith.constant 0 : i32
        %c255_i32_559 = arith.constant 255 : i32
        %654 = arith.maxsi %c0_i32_558, %653 : i32
        %655 = arith.minsi %c255_i32_559, %654 : i32
        %c8_i32_560 = arith.constant 8 : i32
        %656 = arith.muli %561, %c8_i32_560 : i32
        %c5_i32_561 = arith.constant 5 : i32
        %657 = arith.addi %656, %c5_i32_561 : i32
        %c8_i32_562 = arith.constant 8 : i32
        %658 = arith.muli %561, %c8_i32_562 : i32
        %c5_i32_563 = arith.constant 5 : i32
        %659 = arith.addi %658, %c5_i32_563 : i32
        %c0_i32_564 = arith.constant 0 : i32
        %660 = tpu.memref_slice %arg3[%655, %c0_i32_564] : memref<256x32xf32, #tpu.memory_space<any>> -> memref<1x32xf32, #tpu.memory_space<any>>
        %c0_i32_565 = arith.constant 0 : i32
        %661 = tpu.memref_slice %arg12[%657, %c0_i32_565] : memref<16x32xf32, #tpu.memory_space<vmem>> -> memref<1x32xf32, #tpu.memory_space<vmem>>
        %662 = tpu.memref_slice %arg13[%659] : memref<16x!tpu.dma_semaphore, #tpu.memory_space<semaphore_mem>> -> memref<1x!tpu.dma_semaphore, #tpu.memory_space<semaphore_mem>>
        %663 = tpu.memref_squeeze %662 : memref<1x!tpu.dma_semaphore, #tpu.memory_space<semaphore_mem>> -> memref<!tpu.dma_semaphore, #tpu.memory_space<semaphore_mem>>
        tpu.enqueue_dma source(%660 : memref<1x32xf32, #tpu.memory_space<any>>) target(%661 : memref<1x32xf32, #tpu.memory_space<vmem>>) target_semaphore(%663 : memref<!tpu.dma_semaphore, #tpu.memory_space<semaphore_mem>>)
        %c8_i32_566 = arith.constant 8 : i32
        %664 = arith.muli %560, %c8_i32_566 : i32
        %c6_i32_567 = arith.constant 6 : i32
        %665 = arith.addi %664, %c6_i32_567 : i32
        %c23_i32_568 = arith.constant 23 : i32
        %666 = arith.minsi %665, %c23_i32_568 : i32
        %c2_569 = arith.constant 2 : index
        %667 = arith.index_cast %666 : i32 to index
        %668 = memref.load %arg1[%c2_569, %667] : memref<4x24xi32, #tpu.memory_space<smem>>
        %c-1_i32_570 = arith.constant -1 : i32
        %669 = arith.cmpi eq, %668, %c-1_i32_570 : i32
        %c0_i32_571 = arith.constant 0 : i32
        %670 = arith.select %669, %c0_i32_571, %668 : i32
        %c0_i32_572 = arith.constant 0 : i32
        %c255_i32_573 = arith.constant 255 : i32
        %671 = arith.maxsi %c0_i32_572, %670 : i32
        %672 = arith.minsi %c255_i32_573, %671 : i32
        %c8_i32_574 = arith.constant 8 : i32
        %673 = arith.muli %561, %c8_i32_574 : i32
        %c6_i32_575 = arith.constant 6 : i32
        %674 = arith.addi %673, %c6_i32_575 : i32
        %c8_i32_576 = arith.constant 8 : i32
        %675 = arith.muli %561, %c8_i32_576 : i32
        %c6_i32_577 = arith.constant 6 : i32
        %676 = arith.addi %675, %c6_i32_577 : i32
        %c0_i32_578 = arith.constant 0 : i32
        %677 = tpu.memref_slice %arg3[%672, %c0_i32_578] : memref<256x32xf32, #tpu.memory_space<any>> -> memref<1x32xf32, #tpu.memory_space<any>>
        %c0_i32_579 = arith.constant 0 : i32
        %678 = tpu.memref_slice %arg12[%674, %c0_i32_579] : memref<16x32xf32, #tpu.memory_space<vmem>> -> memref<1x32xf32, #tpu.memory_space<vmem>>
        %679 = tpu.memref_slice %arg13[%676] : memref<16x!tpu.dma_semaphore, #tpu.memory_space<semaphore_mem>> -> memref<1x!tpu.dma_semaphore, #tpu.memory_space<semaphore_mem>>
        %680 = tpu.memref_squeeze %679 : memref<1x!tpu.dma_semaphore, #tpu.memory_space<semaphore_mem>> -> memref<!tpu.dma_semaphore, #tpu.memory_space<semaphore_mem>>
        tpu.enqueue_dma source(%677 : memref<1x32xf32, #tpu.memory_space<any>>) target(%678 : memref<1x32xf32, #tpu.memory_space<vmem>>) target_semaphore(%680 : memref<!tpu.dma_semaphore, #tpu.memory_space<semaphore_mem>>)
        %c8_i32_580 = arith.constant 8 : i32
        %681 = arith.muli %560, %c8_i32_580 : i32
        %c7_i32_581 = arith.constant 7 : i32
        %682 = arith.addi %681, %c7_i32_581 : i32
        %c23_i32_582 = arith.constant 23 : i32
        %683 = arith.minsi %682, %c23_i32_582 : i32
        %c2_583 = arith.constant 2 : index
        %684 = arith.index_cast %683 : i32 to index
        %685 = memref.load %arg1[%c2_583, %684] : memref<4x24xi32, #tpu.memory_space<smem>>
        %c-1_i32_584 = arith.constant -1 : i32
        %686 = arith.cmpi eq, %685, %c-1_i32_584 : i32
        %c0_i32_585 = arith.constant 0 : i32
        %687 = arith.select %686, %c0_i32_585, %685 : i32
        %c0_i32_586 = arith.constant 0 : i32
        %c255_i32_587 = arith.constant 255 : i32
        %688 = arith.maxsi %c0_i32_586, %687 : i32
        %689 = arith.minsi %c255_i32_587, %688 : i32
        %c8_i32_588 = arith.constant 8 : i32
        %690 = arith.muli %561, %c8_i32_588 : i32
        %c7_i32_589 = arith.constant 7 : i32
        %691 = arith.addi %690, %c7_i32_589 : i32
        %c8_i32_590 = arith.constant 8 : i32
        %692 = arith.muli %561, %c8_i32_590 : i32
        %c7_i32_591 = arith.constant 7 : i32
        %693 = arith.addi %692, %c7_i32_591 : i32
        %c0_i32_592 = arith.constant 0 : i32
        %694 = tpu.memref_slice %arg3[%689, %c0_i32_592] : memref<256x32xf32, #tpu.memory_space<any>> -> memref<1x32xf32, #tpu.memory_space<any>>
        %c0_i32_593 = arith.constant 0 : i32
        %695 = tpu.memref_slice %arg12[%691, %c0_i32_593] : memref<16x32xf32, #tpu.memory_space<vmem>> -> memref<1x32xf32, #tpu.memory_space<vmem>>
        %696 = tpu.memref_slice %arg13[%693] : memref<16x!tpu.dma_semaphore, #tpu.memory_space<semaphore_mem>> -> memref<1x!tpu.dma_semaphore, #tpu.memory_space<semaphore_mem>>
        %697 = tpu.memref_squeeze %696 : memref<1x!tpu.dma_semaphore, #tpu.memory_space<semaphore_mem>> -> memref<!tpu.dma_semaphore, #tpu.memory_space<semaphore_mem>>
        tpu.enqueue_dma source(%694 : memref<1x32xf32, #tpu.memory_space<any>>) target(%695 : memref<1x32xf32, #tpu.memory_space<vmem>>) target_semaphore(%697 : memref<!tpu.dma_semaphore, #tpu.memory_space<semaphore_mem>>)
      } else {
      }
      %c8_i32_475 = arith.constant 8 : i32
      %543 = arith.muli %474, %c8_i32_475 : i32
      %544 = tpu.assume_multiple %543, 8 : i32
      %545 = arith.index_cast %544 : i32 to index
      %c0_476 = arith.constant 0 : index
      %546 = vector.load %arg12[%545, %c0_476] : memref<16x32xf32, #tpu.memory_space<vmem>>, vector<8x32xf32>
      %c8_i32_477 = arith.constant 8 : i32
      %547 = arith.muli %arg15, %c8_i32_477 : i32
      %548 = tpu.iota {dimensions = array<i32: 0>} : vector<8x1xi32>
      %549 = vector.broadcast %547 : i32 to vector<8x1xi32>
      %550 = arith.addi %549, %548 : vector<8x1xi32>
      %c24_i32 = arith.constant 24 : i32
      %551 = vector.broadcast %c24_i32 : i32 to vector<8x1xi32>
      %552 = arith.cmpi slt, %550, %551 : vector<8x1xi32>
      %cst_478 = arith.constant 0.000000e+00 : f32
      %553 = vector.shape_cast %552 : vector<8x1xi1> to vector<8x1xi1>
      %554 = vector.broadcast %553 : vector<8x1xi1> to vector<8x32xi1>
      %555 = vector.broadcast %cst_478 : f32 to vector<8x32xf32>
      %556 = arith.select %554, %546, %555 : vector<8x32xi1>, vector<8x32xf32>
      %cst_479 = arith.constant dense<0.000000e+00> : vector<32xf32>
      %557 = vector.multi_reduction <add>, %556, %cst_479 [0] : vector<8x32xf32> to vector<32xf32>
      %558 = vector.shape_cast %557 : vector<32xf32> to vector<1x32xf32>
      %559 = arith.addf %arg16, %558 : vector<1x32xf32>
      scf.yield %559 : vector<1x32xf32>
    }
    %c3_i32_269 = arith.constant 3 : i32
    %cst_270 = arith.constant 0.0416666679 : f32
    %279 = vector.broadcast %cst_270 : f32 to vector<1x32xf32>
    %280 = arith.mulf %278, %279 : vector<1x32xf32>
    %c2_271 = arith.constant 2 : index
    %c0_272 = arith.constant 0 : index
    %281 = vector.load %arg14[%c2_271, %c0_272] : memref<4x32xf32, #tpu.memory_space<vmem>>, vector<1x32xf32>
    tpu.vector_store %arg14[%c2_271, %c0_272], %280 {strides = array<i32>} : memref<4x32xf32, #tpu.memory_space<vmem>>, vector<1x32xf32>,
    %c0_i32_273 = arith.constant 0 : i32
    %c23_i32_274 = arith.constant 23 : i32
    %282 = arith.minsi %c0_i32_273, %c23_i32_274 : i32
    %c3 = arith.constant 3 : index
    %283 = arith.index_cast %282 : i32 to index
    %284 = memref.load %arg1[%c3, %283] : memref<4x24xi32, #tpu.memory_space<smem>>
    %c-1_i32_275 = arith.constant -1 : i32
    %285 = arith.cmpi eq, %284, %c-1_i32_275 : i32
    %c0_i32_276 = arith.constant 0 : i32
    %286 = arith.select %285, %c0_i32_276, %284 : i32
    %c0_i32_277 = arith.constant 0 : i32
    %c255_i32_278 = arith.constant 255 : i32
    %287 = arith.maxsi %c0_i32_277, %286 : i32
    %288 = arith.minsi %c255_i32_278, %287 : i32
    %c0_i32_279 = arith.constant 0 : i32
    %c0_i32_280 = arith.constant 0 : i32
    %289 = tpu.memref_slice %arg3[%288, %c0_i32_280] : memref<256x32xf32, #tpu.memory_space<any>> -> memref<1x32xf32, #tpu.memory_space<any>>
    %c0_i32_281 = arith.constant 0 : i32
    %c0_i32_282 = arith.constant 0 : i32
    %290 = tpu.memref_slice %arg12[%c0_i32_281, %c0_i32_282] : memref<16x32xf32, #tpu.memory_space<vmem>> -> memref<1x32xf32, #tpu.memory_space<vmem>>
    %291 = tpu.memref_slice %arg13[%c0_i32_279] : memref<16x!tpu.dma_semaphore, #tpu.memory_space<semaphore_mem>> -> memref<1x!tpu.dma_semaphore, #tpu.memory_space<semaphore_mem>>
    %292 = tpu.memref_squeeze %291 : memref<1x!tpu.dma_semaphore, #tpu.memory_space<semaphore_mem>> -> memref<!tpu.dma_semaphore, #tpu.memory_space<semaphore_mem>>
    tpu.enqueue_dma source(%289 : memref<1x32xf32, #tpu.memory_space<any>>) target(%290 : memref<1x32xf32, #tpu.memory_space<vmem>>) target_semaphore(%292 : memref<!tpu.dma_semaphore, #tpu.memory_space<semaphore_mem>>)
    %c1_i32_283 = arith.constant 1 : i32
    %c23_i32_284 = arith.constant 23 : i32
    %293 = arith.minsi %c1_i32_283, %c23_i32_284 : i32
    %c3_285 = arith.constant 3 : index
    %294 = arith.index_cast %293 : i32 to index
    %295 = memref.load %arg1[%c3_285, %294] : memref<4x24xi32, #tpu.memory_space<smem>>
    %c-1_i32_286 = arith.constant -1 : i32
    %296 = arith.cmpi eq, %295, %c-1_i32_286 : i32
    %c0_i32_287 = arith.constant 0 : i32
    %297 = arith.select %296, %c0_i32_287, %295 : i32
    %c0_i32_288 = arith.constant 0 : i32
    %c255_i32_289 = arith.constant 255 : i32
    %298 = arith.maxsi %c0_i32_288, %297 : i32
    %299 = arith.minsi %c255_i32_289, %298 : i32
    %c1_i32_290 = arith.constant 1 : i32
    %c0_i32_291 = arith.constant 0 : i32
    %300 = tpu.memref_slice %arg3[%299, %c0_i32_291] : memref<256x32xf32, #tpu.memory_space<any>> -> memref<1x32xf32, #tpu.memory_space<any>>
    %c1_i32_292 = arith.constant 1 : i32
    %c0_i32_293 = arith.constant 0 : i32
    %301 = tpu.memref_slice %arg12[%c1_i32_292, %c0_i32_293] : memref<16x32xf32, #tpu.memory_space<vmem>> -> memref<1x32xf32, #tpu.memory_space<vmem>>
    %302 = tpu.memref_slice %arg13[%c1_i32_290] : memref<16x!tpu.dma_semaphore, #tpu.memory_space<semaphore_mem>> -> memref<1x!tpu.dma_semaphore, #tpu.memory_space<semaphore_mem>>
    %303 = tpu.memref_squeeze %302 : memref<1x!tpu.dma_semaphore, #tpu.memory_space<semaphore_mem>> -> memref<!tpu.dma_semaphore, #tpu.memory_space<semaphore_mem>>
    tpu.enqueue_dma source(%300 : memref<1x32xf32, #tpu.memory_space<any>>) target(%301 : memref<1x32xf32, #tpu.memory_space<vmem>>) target_semaphore(%303 : memref<!tpu.dma_semaphore, #tpu.memory_space<semaphore_mem>>)
    %c2_i32_294 = arith.constant 2 : i32
    %c23_i32_295 = arith.constant 23 : i32
    %304 = arith.minsi %c2_i32_294, %c23_i32_295 : i32
    %c3_296 = arith.constant 3 : index
    %305 = arith.index_cast %304 : i32 to index
    %306 = memref.load %arg1[%c3_296, %305] : memref<4x24xi32, #tpu.memory_space<smem>>
    %c-1_i32_297 = arith.constant -1 : i32
    %307 = arith.cmpi eq, %306, %c-1_i32_297 : i32
    %c0_i32_298 = arith.constant 0 : i32
    %308 = arith.select %307, %c0_i32_298, %306 : i32
    %c0_i32_299 = arith.constant 0 : i32
    %c255_i32_300 = arith.constant 255 : i32
    %309 = arith.maxsi %c0_i32_299, %308 : i32
    %310 = arith.minsi %c255_i32_300, %309 : i32
    %c2_i32_301 = arith.constant 2 : i32
    %c0_i32_302 = arith.constant 0 : i32
    %311 = tpu.memref_slice %arg3[%310, %c0_i32_302] : memref<256x32xf32, #tpu.memory_space<any>> -> memref<1x32xf32, #tpu.memory_space<any>>
    %c2_i32_303 = arith.constant 2 : i32
    %c0_i32_304 = arith.constant 0 : i32
    %312 = tpu.memref_slice %arg12[%c2_i32_303, %c0_i32_304] : memref<16x32xf32, #tpu.memory_space<vmem>> -> memref<1x32xf32, #tpu.memory_space<vmem>>
    %313 = tpu.memref_slice %arg13[%c2_i32_301] : memref<16x!tpu.dma_semaphore, #tpu.memory_space<semaphore_mem>> -> memref<1x!tpu.dma_semaphore, #tpu.memory_space<semaphore_mem>>
    %314 = tpu.memref_squeeze %313 : memref<1x!tpu.dma_semaphore, #tpu.memory_space<semaphore_mem>> -> memref<!tpu.dma_semaphore, #tpu.memory_space<semaphore_mem>>
    tpu.enqueue_dma source(%311 : memref<1x32xf32, #tpu.memory_space<any>>) target(%312 : memref<1x32xf32, #tpu.memory_space<vmem>>) target_semaphore(%314 : memref<!tpu.dma_semaphore, #tpu.memory_space<semaphore_mem>>)
    %c3_i32_305 = arith.constant 3 : i32
    %c23_i32_306 = arith.constant 23 : i32
    %315 = arith.minsi %c3_i32_305, %c23_i32_306 : i32
    %c3_307 = arith.constant 3 : index
    %316 = arith.index_cast %315 : i32 to index
    %317 = memref.load %arg1[%c3_307, %316] : memref<4x24xi32, #tpu.memory_space<smem>>
    %c-1_i32_308 = arith.constant -1 : i32
    %318 = arith.cmpi eq, %317, %c-1_i32_308 : i32
    %c0_i32_309 = arith.constant 0 : i32
    %319 = arith.select %318, %c0_i32_309, %317 : i32
    %c0_i32_310 = arith.constant 0 : i32
    %c255_i32_311 = arith.constant 255 : i32
    %320 = arith.maxsi %c0_i32_310, %319 : i32
    %321 = arith.minsi %c255_i32_311, %320 : i32
    %c3_i32_312 = arith.constant 3 : i32
    %c0_i32_313 = arith.constant 0 : i32
    %322 = tpu.memref_slice %arg3[%321, %c0_i32_313] : memref<256x32xf32, #tpu.memory_space<any>> -> memref<1x32xf32, #tpu.memory_space<any>>
    %c3_i32_314 = arith.constant 3 : i32
    %c0_i32_315 = arith.constant 0 : i32
    %323 = tpu.memref_slice %arg12[%c3_i32_314, %c0_i32_315] : memref<16x32xf32, #tpu.memory_space<vmem>> -> memref<1x32xf32, #tpu.memory_space<vmem>>
    %324 = tpu.memref_slice %arg13[%c3_i32_312] : memref<16x!tpu.dma_semaphore, #tpu.memory_space<semaphore_mem>> -> memref<1x!tpu.dma_semaphore, #tpu.memory_space<semaphore_mem>>
    %325 = tpu.memref_squeeze %324 : memref<1x!tpu.dma_semaphore, #tpu.memory_space<semaphore_mem>> -> memref<!tpu.dma_semaphore, #tpu.memory_space<semaphore_mem>>
    tpu.enqueue_dma source(%322 : memref<1x32xf32, #tpu.memory_space<any>>) target(%323 : memref<1x32xf32, #tpu.memory_space<vmem>>) target_semaphore(%325 : memref<!tpu.dma_semaphore, #tpu.memory_space<semaphore_mem>>)
    %c4_i32_316 = arith.constant 4 : i32
    %c23_i32_317 = arith.constant 23 : i32
    %326 = arith.minsi %c4_i32_316, %c23_i32_317 : i32
    %c3_318 = arith.constant 3 : index
    %327 = arith.index_cast %326 : i32 to index
    %328 = memref.load %arg1[%c3_318, %327] : memref<4x24xi32, #tpu.memory_space<smem>>
    %c-1_i32_319 = arith.constant -1 : i32
    %329 = arith.cmpi eq, %328, %c-1_i32_319 : i32
    %c0_i32_320 = arith.constant 0 : i32
    %330 = arith.select %329, %c0_i32_320, %328 : i32
    %c0_i32_321 = arith.constant 0 : i32
    %c255_i32_322 = arith.constant 255 : i32
    %331 = arith.maxsi %c0_i32_321, %330 : i32
    %332 = arith.minsi %c255_i32_322, %331 : i32
    %c4_i32_323 = arith.constant 4 : i32
    %c0_i32_324 = arith.constant 0 : i32
    %333 = tpu.memref_slice %arg3[%332, %c0_i32_324] : memref<256x32xf32, #tpu.memory_space<any>> -> memref<1x32xf32, #tpu.memory_space<any>>
    %c4_i32_325 = arith.constant 4 : i32
    %c0_i32_326 = arith.constant 0 : i32
    %334 = tpu.memref_slice %arg12[%c4_i32_325, %c0_i32_326] : memref<16x32xf32, #tpu.memory_space<vmem>> -> memref<1x32xf32, #tpu.memory_space<vmem>>
    %335 = tpu.memref_slice %arg13[%c4_i32_323] : memref<16x!tpu.dma_semaphore, #tpu.memory_space<semaphore_mem>> -> memref<1x!tpu.dma_semaphore, #tpu.memory_space<semaphore_mem>>
    %336 = tpu.memref_squeeze %335 : memref<1x!tpu.dma_semaphore, #tpu.memory_space<semaphore_mem>> -> memref<!tpu.dma_semaphore, #tpu.memory_space<semaphore_mem>>
    tpu.enqueue_dma source(%333 : memref<1x32xf32, #tpu.memory_space<any>>) target(%334 : memref<1x32xf32, #tpu.memory_space<vmem>>) target_semaphore(%336 : memref<!tpu.dma_semaphore, #tpu.memory_space<semaphore_mem>>)
    %c5_i32_327 = arith.constant 5 : i32
    %c23_i32_328 = arith.constant 23 : i32
    %337 = arith.minsi %c5_i32_327, %c23_i32_328 : i32
    %c3_329 = arith.constant 3 : index
    %338 = arith.index_cast %337 : i32 to index
    %339 = memref.load %arg1[%c3_329, %338] : memref<4x24xi32, #tpu.memory_space<smem>>
    %c-1_i32_330 = arith.constant -1 : i32
    %340 = arith.cmpi eq, %339, %c-1_i32_330 : i32
    %c0_i32_331 = arith.constant 0 : i32
    %341 = arith.select %340, %c0_i32_331, %339 : i32
    %c0_i32_332 = arith.constant 0 : i32
    %c255_i32_333 = arith.constant 255 : i32
    %342 = arith.maxsi %c0_i32_332, %341 : i32
    %343 = arith.minsi %c255_i32_333, %342 : i32
    %c5_i32_334 = arith.constant 5 : i32
    %c0_i32_335 = arith.constant 0 : i32
    %344 = tpu.memref_slice %arg3[%343, %c0_i32_335] : memref<256x32xf32, #tpu.memory_space<any>> -> memref<1x32xf32, #tpu.memory_space<any>>
    %c5_i32_336 = arith.constant 5 : i32
    %c0_i32_337 = arith.constant 0 : i32
    %345 = tpu.memref_slice %arg12[%c5_i32_336, %c0_i32_337] : memref<16x32xf32, #tpu.memory_space<vmem>> -> memref<1x32xf32, #tpu.memory_space<vmem>>
    %346 = tpu.memref_slice %arg13[%c5_i32_334] : memref<16x!tpu.dma_semaphore, #tpu.memory_space<semaphore_mem>> -> memref<1x!tpu.dma_semaphore, #tpu.memory_space<semaphore_mem>>
    %347 = tpu.memref_squeeze %346 : memref<1x!tpu.dma_semaphore, #tpu.memory_space<semaphore_mem>> -> memref<!tpu.dma_semaphore, #tpu.memory_space<semaphore_mem>>
    tpu.enqueue_dma source(%344 : memref<1x32xf32, #tpu.memory_space<any>>) target(%345 : memref<1x32xf32, #tpu.memory_space<vmem>>) target_semaphore(%347 : memref<!tpu.dma_semaphore, #tpu.memory_space<semaphore_mem>>)
    %c6_i32_338 = arith.constant 6 : i32
    %c23_i32_339 = arith.constant 23 : i32
    %348 = arith.minsi %c6_i32_338, %c23_i32_339 : i32
    %c3_340 = arith.constant 3 : index
    %349 = arith.index_cast %348 : i32 to index
    %350 = memref.load %arg1[%c3_340, %349] : memref<4x24xi32, #tpu.memory_space<smem>>
    %c-1_i32_341 = arith.constant -1 : i32
    %351 = arith.cmpi eq, %350, %c-1_i32_341 : i32
    %c0_i32_342 = arith.constant 0 : i32
    %352 = arith.select %351, %c0_i32_342, %350 : i32
    %c0_i32_343 = arith.constant 0 : i32
    %c255_i32_344 = arith.constant 255 : i32
    %353 = arith.maxsi %c0_i32_343, %352 : i32
    %354 = arith.minsi %c255_i32_344, %353 : i32
    %c6_i32_345 = arith.constant 6 : i32
    %c0_i32_346 = arith.constant 0 : i32
    %355 = tpu.memref_slice %arg3[%354, %c0_i32_346] : memref<256x32xf32, #tpu.memory_space<any>> -> memref<1x32xf32, #tpu.memory_space<any>>
    %c6_i32_347 = arith.constant 6 : i32
    %c0_i32_348 = arith.constant 0 : i32
    %356 = tpu.memref_slice %arg12[%c6_i32_347, %c0_i32_348] : memref<16x32xf32, #tpu.memory_space<vmem>> -> memref<1x32xf32, #tpu.memory_space<vmem>>
    %357 = tpu.memref_slice %arg13[%c6_i32_345] : memref<16x!tpu.dma_semaphore, #tpu.memory_space<semaphore_mem>> -> memref<1x!tpu.dma_semaphore, #tpu.memory_space<semaphore_mem>>
    %358 = tpu.memref_squeeze %357 : memref<1x!tpu.dma_semaphore, #tpu.memory_space<semaphore_mem>> -> memref<!tpu.dma_semaphore, #tpu.memory_space<semaphore_mem>>
    tpu.enqueue_dma source(%355 : memref<1x32xf32, #tpu.memory_space<any>>) target(%356 : memref<1x32xf32, #tpu.memory_space<vmem>>) target_semaphore(%358 : memref<!tpu.dma_semaphore, #tpu.memory_space<semaphore_mem>>)
    %c7_i32_349 = arith.constant 7 : i32
    %c23_i32_350 = arith.constant 23 : i32
    %359 = arith.minsi %c7_i32_349, %c23_i32_350 : i32
    %c3_351 = arith.constant 3 : index
    %360 = arith.index_cast %359 : i32 to index
    %361 = memref.load %arg1[%c3_351, %360] : memref<4x24xi32, #tpu.memory_space<smem>>
    %c-1_i32_352 = arith.constant -1 : i32
    %362 = arith.cmpi eq, %361, %c-1_i32_352 : i32
    %c0_i32_353 = arith.constant 0 : i32
    %363 = arith.select %362, %c0_i32_353, %361 : i32
    %c0_i32_354 = arith.constant 0 : i32
    %c255_i32_355 = arith.constant 255 : i32
    %364 = arith.maxsi %c0_i32_354, %363 : i32
    %365 = arith.minsi %c255_i32_355, %364 : i32
    %c7_i32_356 = arith.constant 7 : i32
    %c0_i32_357 = arith.constant 0 : i32
    %366 = tpu.memref_slice %arg3[%365, %c0_i32_357] : memref<256x32xf32, #tpu.memory_space<any>> -> memref<1x32xf32, #tpu.memory_space<any>>
    %c7_i32_358 = arith.constant 7 : i32
    %c0_i32_359 = arith.constant 0 : i32
    %367 = tpu.memref_slice %arg12[%c7_i32_358, %c0_i32_359] : memref<16x32xf32, #tpu.memory_space<vmem>> -> memref<1x32xf32, #tpu.memory_space<vmem>>
    %368 = tpu.memref_slice %arg13[%c7_i32_356] : memref<16x!tpu.dma_semaphore, #tpu.memory_space<semaphore_mem>> -> memref<1x!tpu.dma_semaphore, #tpu.memory_space<semaphore_mem>>
    %369 = tpu.memref_squeeze %368 : memref<1x!tpu.dma_semaphore, #tpu.memory_space<semaphore_mem>> -> memref<!tpu.dma_semaphore, #tpu.memory_space<semaphore_mem>>
    tpu.enqueue_dma source(%366 : memref<1x32xf32, #tpu.memory_space<any>>) target(%367 : memref<1x32xf32, #tpu.memory_space<vmem>>) target_semaphore(%369 : memref<!tpu.dma_semaphore, #tpu.memory_space<semaphore_mem>>)
    %cst_360 = arith.constant 0.000000e+00 : f32
    %370 = vector.broadcast %cst_360 : f32 to vector<1x32xf32>
    %c0_i32_361 = arith.constant 0 : i32
    %c3_i32_362 = arith.constant 3 : i32
    %371 = arith.addi %c0_i32_361, %c3_i32_362 : i32
    %c1_i32_363 = arith.constant 1 : i32
    %372 = scf.for %arg15 = %c0_i32_361 to %371 step %c1_i32_363 iter_args(%arg16 = %370) -> (vector<1x32xf32>)  : i32 {
      %c2_i32_411 = arith.constant 2 : i32
      %c0_i32_412 = arith.constant 0 : i32
      %465 = arith.cmpi eq, %c2_i32_411, %c0_i32_412 : i32
      %c1_i32_413 = arith.constant 1 : i32
      %466 = arith.select %465, %c1_i32_413, %c2_i32_411 : i32
      %467 = arith.remsi %arg15, %466 : i32
      %c0_i32_414 = arith.constant 0 : i32
      %468 = arith.cmpi ne, %467, %c0_i32_414 : i32
      %c0_i32_415 = arith.constant 0 : i32
      %469 = arith.cmpi slt, %467, %c0_i32_415 : i32
      %c0_i32_416 = arith.constant 0 : i32
      %470 = arith.cmpi slt, %466, %c0_i32_416 : i32
      %471 = arith.xori %469, %470 : i1
      %472 = arith.andi %471, %468 : i1
      %473 = arith.addi %467, %466 : i32
      %474 = arith.select %472, %473, %467 : i32
      %c8_i32 = arith.constant 8 : i32
      %475 = arith.muli %474, %c8_i32 : i32
      %c0_i32_417 = arith.constant 0 : i32
      %476 = arith.addi %475, %c0_i32_417 : i32
      %c8_i32_418 = arith.constant 8 : i32
      %477 = arith.muli %474, %c8_i32_418 : i32
      %c0_i32_419 = arith.constant 0 : i32
      %478 = arith.addi %477, %c0_i32_419 : i32
      %c0_i32_420 = arith.constant 0 : i32
      %c0_i32_421 = arith.constant 0 : i32
      %479 = tpu.memref_slice %arg3[%c0_i32_420, %c0_i32_421] : memref<256x32xf32, #tpu.memory_space<any>> -> memref<1x32xf32, #tpu.memory_space<any>>
      %c0_i32_422 = arith.constant 0 : i32
      %480 = tpu.memref_slice %arg12[%476, %c0_i32_422] : memref<16x32xf32, #tpu.memory_space<vmem>> -> memref<1x32xf32, #tpu.memory_space<vmem>>
      %481 = tpu.memref_slice %arg13[%478] : memref<16x!tpu.dma_semaphore, #tpu.memory_space<semaphore_mem>> -> memref<1x!tpu.dma_semaphore, #tpu.memory_space<semaphore_mem>>
      %482 = tpu.memref_squeeze %481 : memref<1x!tpu.dma_semaphore, #tpu.memory_space<semaphore_mem>> -> memref<!tpu.dma_semaphore, #tpu.memory_space<semaphore_mem>>
      tpu.wait_dma2 semaphore(%482 : memref<!tpu.dma_semaphore, #tpu.memory_space<semaphore_mem>>) src(%479 : memref<1x32xf32, #tpu.memory_space<any>>) dst(%480 : memref<1x32xf32, #tpu.memory_space<vmem>>)
      %c8_i32_423 = arith.constant 8 : i32
      %483 = arith.muli %474, %c8_i32_423 : i32
      %c1_i32_424 = arith.constant 1 : i32
      %484 = arith.addi %483, %c1_i32_424 : i32
      %c8_i32_425 = arith.constant 8 : i32
      %485 = arith.muli %474, %c8_i32_425 : i32
      %c1_i32_426 = arith.constant 1 : i32
      %486 = arith.addi %485, %c1_i32_426 : i32
      %c0_i32_427 = arith.constant 0 : i32
      %c0_i32_428 = arith.constant 0 : i32
      %487 = tpu.memref_slice %arg3[%c0_i32_427, %c0_i32_428] : memref<256x32xf32, #tpu.memory_space<any>> -> memref<1x32xf32, #tpu.memory_space<any>>
      %c0_i32_429 = arith.constant 0 : i32
      %488 = tpu.memref_slice %arg12[%484, %c0_i32_429] : memref<16x32xf32, #tpu.memory_space<vmem>> -> memref<1x32xf32, #tpu.memory_space<vmem>>
      %489 = tpu.memref_slice %arg13[%486] : memref<16x!tpu.dma_semaphore, #tpu.memory_space<semaphore_mem>> -> memref<1x!tpu.dma_semaphore, #tpu.memory_space<semaphore_mem>>
      %490 = tpu.memref_squeeze %489 : memref<1x!tpu.dma_semaphore, #tpu.memory_space<semaphore_mem>> -> memref<!tpu.dma_semaphore, #tpu.memory_space<semaphore_mem>>
      tpu.wait_dma2 semaphore(%490 : memref<!tpu.dma_semaphore, #tpu.memory_space<semaphore_mem>>) src(%487 : memref<1x32xf32, #tpu.memory_space<any>>) dst(%488 : memref<1x32xf32, #tpu.memory_space<vmem>>)
      %c8_i32_430 = arith.constant 8 : i32
      %491 = arith.muli %474, %c8_i32_430 : i32
      %c2_i32_431 = arith.constant 2 : i32
      %492 = arith.addi %491, %c2_i32_431 : i32
      %c8_i32_432 = arith.constant 8 : i32
      %493 = arith.muli %474, %c8_i32_432 : i32
      %c2_i32_433 = arith.constant 2 : i32
      %494 = arith.addi %493, %c2_i32_433 : i32
      %c0_i32_434 = arith.constant 0 : i32
      %c0_i32_435 = arith.constant 0 : i32
      %495 = tpu.memref_slice %arg3[%c0_i32_434, %c0_i32_435] : memref<256x32xf32, #tpu.memory_space<any>> -> memref<1x32xf32, #tpu.memory_space<any>>
      %c0_i32_436 = arith.constant 0 : i32
      %496 = tpu.memref_slice %arg12[%492, %c0_i32_436] : memref<16x32xf32, #tpu.memory_space<vmem>> -> memref<1x32xf32, #tpu.memory_space<vmem>>
      %497 = tpu.memref_slice %arg13[%494] : memref<16x!tpu.dma_semaphore, #tpu.memory_space<semaphore_mem>> -> memref<1x!tpu.dma_semaphore, #tpu.memory_space<semaphore_mem>>
      %498 = tpu.memref_squeeze %497 : memref<1x!tpu.dma_semaphore, #tpu.memory_space<semaphore_mem>> -> memref<!tpu.dma_semaphore, #tpu.memory_space<semaphore_mem>>
      tpu.wait_dma2 semaphore(%498 : memref<!tpu.dma_semaphore, #tpu.memory_space<semaphore_mem>>) src(%495 : memref<1x32xf32, #tpu.memory_space<any>>) dst(%496 : memref<1x32xf32, #tpu.memory_space<vmem>>)
      %c8_i32_437 = arith.constant 8 : i32
      %499 = arith.muli %474, %c8_i32_437 : i32
      %c3_i32_438 = arith.constant 3 : i32
      %500 = arith.addi %499, %c3_i32_438 : i32
      %c8_i32_439 = arith.constant 8 : i32
      %501 = arith.muli %474, %c8_i32_439 : i32
      %c3_i32_440 = arith.constant 3 : i32
      %502 = arith.addi %501, %c3_i32_440 : i32
      %c0_i32_441 = arith.constant 0 : i32
      %c0_i32_442 = arith.constant 0 : i32
      %503 = tpu.memref_slice %arg3[%c0_i32_441, %c0_i32_442] : memref<256x32xf32, #tpu.memory_space<any>> -> memref<1x32xf32, #tpu.memory_space<any>>
      %c0_i32_443 = arith.constant 0 : i32
      %504 = tpu.memref_slice %arg12[%500, %c0_i32_443] : memref<16x32xf32, #tpu.memory_space<vmem>> -> memref<1x32xf32, #tpu.memory_space<vmem>>
      %505 = tpu.memref_slice %arg13[%502] : memref<16x!tpu.dma_semaphore, #tpu.memory_space<semaphore_mem>> -> memref<1x!tpu.dma_semaphore, #tpu.memory_space<semaphore_mem>>
      %506 = tpu.memref_squeeze %505 : memref<1x!tpu.dma_semaphore, #tpu.memory_space<semaphore_mem>> -> memref<!tpu.dma_semaphore, #tpu.memory_space<semaphore_mem>>
      tpu.wait_dma2 semaphore(%506 : memref<!tpu.dma_semaphore, #tpu.memory_space<semaphore_mem>>) src(%503 : memref<1x32xf32, #tpu.memory_space<any>>) dst(%504 : memref<1x32xf32, #tpu.memory_space<vmem>>)
      %c8_i32_444 = arith.constant 8 : i32
      %507 = arith.muli %474, %c8_i32_444 : i32
      %c4_i32_445 = arith.constant 4 : i32
      %508 = arith.addi %507, %c4_i32_445 : i32
      %c8_i32_446 = arith.constant 8 : i32
      %509 = arith.muli %474, %c8_i32_446 : i32
      %c4_i32_447 = arith.constant 4 : i32
      %510 = arith.addi %509, %c4_i32_447 : i32
      %c0_i32_448 = arith.constant 0 : i32
      %c0_i32_449 = arith.constant 0 : i32
      %511 = tpu.memref_slice %arg3[%c0_i32_448, %c0_i32_449] : memref<256x32xf32, #tpu.memory_space<any>> -> memref<1x32xf32, #tpu.memory_space<any>>
      %c0_i32_450 = arith.constant 0 : i32
      %512 = tpu.memref_slice %arg12[%508, %c0_i32_450] : memref<16x32xf32, #tpu.memory_space<vmem>> -> memref<1x32xf32, #tpu.memory_space<vmem>>
      %513 = tpu.memref_slice %arg13[%510] : memref<16x!tpu.dma_semaphore, #tpu.memory_space<semaphore_mem>> -> memref<1x!tpu.dma_semaphore, #tpu.memory_space<semaphore_mem>>
      %514 = tpu.memref_squeeze %513 : memref<1x!tpu.dma_semaphore, #tpu.memory_space<semaphore_mem>> -> memref<!tpu.dma_semaphore, #tpu.memory_space<semaphore_mem>>
      tpu.wait_dma2 semaphore(%514 : memref<!tpu.dma_semaphore, #tpu.memory_space<semaphore_mem>>) src(%511 : memref<1x32xf32, #tpu.memory_space<any>>) dst(%512 : memref<1x32xf32, #tpu.memory_space<vmem>>)
      %c8_i32_451 = arith.constant 8 : i32
      %515 = arith.muli %474, %c8_i32_451 : i32
      %c5_i32_452 = arith.constant 5 : i32
      %516 = arith.addi %515, %c5_i32_452 : i32
      %c8_i32_453 = arith.constant 8 : i32
      %517 = arith.muli %474, %c8_i32_453 : i32
      %c5_i32_454 = arith.constant 5 : i32
      %518 = arith.addi %517, %c5_i32_454 : i32
      %c0_i32_455 = arith.constant 0 : i32
      %c0_i32_456 = arith.constant 0 : i32
      %519 = tpu.memref_slice %arg3[%c0_i32_455, %c0_i32_456] : memref<256x32xf32, #tpu.memory_space<any>> -> memref<1x32xf32, #tpu.memory_space<any>>
      %c0_i32_457 = arith.constant 0 : i32
      %520 = tpu.memref_slice %arg12[%516, %c0_i32_457] : memref<16x32xf32, #tpu.memory_space<vmem>> -> memref<1x32xf32, #tpu.memory_space<vmem>>
      %521 = tpu.memref_slice %arg13[%518] : memref<16x!tpu.dma_semaphore, #tpu.memory_space<semaphore_mem>> -> memref<1x!tpu.dma_semaphore, #tpu.memory_space<semaphore_mem>>
      %522 = tpu.memref_squeeze %521 : memref<1x!tpu.dma_semaphore, #tpu.memory_space<semaphore_mem>> -> memref<!tpu.dma_semaphore, #tpu.memory_space<semaphore_mem>>
      tpu.wait_dma2 semaphore(%522 : memref<!tpu.dma_semaphore, #tpu.memory_space<semaphore_mem>>) src(%519 : memref<1x32xf32, #tpu.memory_space<any>>) dst(%520 : memref<1x32xf32, #tpu.memory_space<vmem>>)
      %c8_i32_458 = arith.constant 8 : i32
      %523 = arith.muli %474, %c8_i32_458 : i32
      %c6_i32_459 = arith.constant 6 : i32
      %524 = arith.addi %523, %c6_i32_459 : i32
      %c8_i32_460 = arith.constant 8 : i32
      %525 = arith.muli %474, %c8_i32_460 : i32
      %c6_i32_461 = arith.constant 6 : i32
      %526 = arith.addi %525, %c6_i32_461 : i32
      %c0_i32_462 = arith.constant 0 : i32
      %c0_i32_463 = arith.constant 0 : i32
      %527 = tpu.memref_slice %arg3[%c0_i32_462, %c0_i32_463] : memref<256x32xf32, #tpu.memory_space<any>> -> memref<1x32xf32, #tpu.memory_space<any>>
      %c0_i32_464 = arith.constant 0 : i32
      %528 = tpu.memref_slice %arg12[%524, %c0_i32_464] : memref<16x32xf32, #tpu.memory_space<vmem>> -> memref<1x32xf32, #tpu.memory_space<vmem>>
      %529 = tpu.memref_slice %arg13[%526] : memref<16x!tpu.dma_semaphore, #tpu.memory_space<semaphore_mem>> -> memref<1x!tpu.dma_semaphore, #tpu.memory_space<semaphore_mem>>
      %530 = tpu.memref_squeeze %529 : memref<1x!tpu.dma_semaphore, #tpu.memory_space<semaphore_mem>> -> memref<!tpu.dma_semaphore, #tpu.memory_space<semaphore_mem>>
      tpu.wait_dma2 semaphore(%530 : memref<!tpu.dma_semaphore, #tpu.memory_space<semaphore_mem>>) src(%527 : memref<1x32xf32, #tpu.memory_space<any>>) dst(%528 : memref<1x32xf32, #tpu.memory_space<vmem>>)
      %c8_i32_465 = arith.constant 8 : i32
      %531 = arith.muli %474, %c8_i32_465 : i32
      %c7_i32_466 = arith.constant 7 : i32
      %532 = arith.addi %531, %c7_i32_466 : i32
      %c8_i32_467 = arith.constant 8 : i32
      %533 = arith.muli %474, %c8_i32_467 : i32
      %c7_i32_468 = arith.constant 7 : i32
      %534 = arith.addi %533, %c7_i32_468 : i32
      %c0_i32_469 = arith.constant 0 : i32
      %c0_i32_470 = arith.constant 0 : i32
      %535 = tpu.memref_slice %arg3[%c0_i32_469, %c0_i32_470] : memref<256x32xf32, #tpu.memory_space<any>> -> memref<1x32xf32, #tpu.memory_space<any>>
      %c0_i32_471 = arith.constant 0 : i32
      %536 = tpu.memref_slice %arg12[%532, %c0_i32_471] : memref<16x32xf32, #tpu.memory_space<vmem>> -> memref<1x32xf32, #tpu.memory_space<vmem>>
      %537 = tpu.memref_slice %arg13[%534] : memref<16x!tpu.dma_semaphore, #tpu.memory_space<semaphore_mem>> -> memref<1x!tpu.dma_semaphore, #tpu.memory_space<semaphore_mem>>
      %538 = tpu.memref_squeeze %537 : memref<1x!tpu.dma_semaphore, #tpu.memory_space<semaphore_mem>> -> memref<!tpu.dma_semaphore, #tpu.memory_space<semaphore_mem>>
      tpu.wait_dma2 semaphore(%538 : memref<!tpu.dma_semaphore, #tpu.memory_space<semaphore_mem>>) src(%535 : memref<1x32xf32, #tpu.memory_space<any>>) dst(%536 : memref<1x32xf32, #tpu.memory_space<vmem>>)
      %c1_i32_472 = arith.constant 1 : i32
      %539 = arith.addi %arg15, %c1_i32_472 : i32
      %c3_i32_473 = arith.constant 3 : i32
      %540 = arith.cmpi slt, %539, %c3_i32_473 : i32
      %541 = arith.extui %540 : i1 to i32
      %c0_i32_474 = arith.constant 0 : i32
      %542 = arith.cmpi ne, %541, %c0_i32_474 : i32
      scf.if %542 {
        %c1_i32_480 = arith.constant 1 : i32
        %560 = arith.addi %arg15, %c1_i32_480 : i32
        %c1_i32_481 = arith.constant 1 : i32
        %561 = arith.subi %c1_i32_481, %474 : i32
        %c8_i32_482 = arith.constant 8 : i32
        %562 = arith.muli %560, %c8_i32_482 : i32
        %c0_i32_483 = arith.constant 0 : i32
        %563 = arith.addi %562, %c0_i32_483 : i32
        %c23_i32_484 = arith.constant 23 : i32
        %564 = arith.minsi %563, %c23_i32_484 : i32
        %c3_485 = arith.constant 3 : index
        %565 = arith.index_cast %564 : i32 to index
        %566 = memref.load %arg1[%c3_485, %565] : memref<4x24xi32, #tpu.memory_space<smem>>
        %c-1_i32_486 = arith.constant -1 : i32
        %567 = arith.cmpi eq, %566, %c-1_i32_486 : i32
        %c0_i32_487 = arith.constant 0 : i32
        %568 = arith.select %567, %c0_i32_487, %566 : i32
        %c0_i32_488 = arith.constant 0 : i32
        %c255_i32_489 = arith.constant 255 : i32
        %569 = arith.maxsi %c0_i32_488, %568 : i32
        %570 = arith.minsi %c255_i32_489, %569 : i32
        %c8_i32_490 = arith.constant 8 : i32
        %571 = arith.muli %561, %c8_i32_490 : i32
        %c0_i32_491 = arith.constant 0 : i32
        %572 = arith.addi %571, %c0_i32_491 : i32
        %c8_i32_492 = arith.constant 8 : i32
        %573 = arith.muli %561, %c8_i32_492 : i32
        %c0_i32_493 = arith.constant 0 : i32
        %574 = arith.addi %573, %c0_i32_493 : i32
        %c0_i32_494 = arith.constant 0 : i32
        %575 = tpu.memref_slice %arg3[%570, %c0_i32_494] : memref<256x32xf32, #tpu.memory_space<any>> -> memref<1x32xf32, #tpu.memory_space<any>>
        %c0_i32_495 = arith.constant 0 : i32
        %576 = tpu.memref_slice %arg12[%572, %c0_i32_495] : memref<16x32xf32, #tpu.memory_space<vmem>> -> memref<1x32xf32, #tpu.memory_space<vmem>>
        %577 = tpu.memref_slice %arg13[%574] : memref<16x!tpu.dma_semaphore, #tpu.memory_space<semaphore_mem>> -> memref<1x!tpu.dma_semaphore, #tpu.memory_space<semaphore_mem>>
        %578 = tpu.memref_squeeze %577 : memref<1x!tpu.dma_semaphore, #tpu.memory_space<semaphore_mem>> -> memref<!tpu.dma_semaphore, #tpu.memory_space<semaphore_mem>>
        tpu.enqueue_dma source(%575 : memref<1x32xf32, #tpu.memory_space<any>>) target(%576 : memref<1x32xf32, #tpu.memory_space<vmem>>) target_semaphore(%578 : memref<!tpu.dma_semaphore, #tpu.memory_space<semaphore_mem>>)
        %c8_i32_496 = arith.constant 8 : i32
        %579 = arith.muli %560, %c8_i32_496 : i32
        %c1_i32_497 = arith.constant 1 : i32
        %580 = arith.addi %579, %c1_i32_497 : i32
        %c23_i32_498 = arith.constant 23 : i32
        %581 = arith.minsi %580, %c23_i32_498 : i32
        %c3_499 = arith.constant 3 : index
        %582 = arith.index_cast %581 : i32 to index
        %583 = memref.load %arg1[%c3_499, %582] : memref<4x24xi32, #tpu.memory_space<smem>>
        %c-1_i32_500 = arith.constant -1 : i32
        %584 = arith.cmpi eq, %583, %c-1_i32_500 : i32
        %c0_i32_501 = arith.constant 0 : i32
        %585 = arith.select %584, %c0_i32_501, %583 : i32
        %c0_i32_502 = arith.constant 0 : i32
        %c255_i32_503 = arith.constant 255 : i32
        %586 = arith.maxsi %c0_i32_502, %585 : i32
        %587 = arith.minsi %c255_i32_503, %586 : i32
        %c8_i32_504 = arith.constant 8 : i32
        %588 = arith.muli %561, %c8_i32_504 : i32
        %c1_i32_505 = arith.constant 1 : i32
        %589 = arith.addi %588, %c1_i32_505 : i32
        %c8_i32_506 = arith.constant 8 : i32
        %590 = arith.muli %561, %c8_i32_506 : i32
        %c1_i32_507 = arith.constant 1 : i32
        %591 = arith.addi %590, %c1_i32_507 : i32
        %c0_i32_508 = arith.constant 0 : i32
        %592 = tpu.memref_slice %arg3[%587, %c0_i32_508] : memref<256x32xf32, #tpu.memory_space<any>> -> memref<1x32xf32, #tpu.memory_space<any>>
        %c0_i32_509 = arith.constant 0 : i32
        %593 = tpu.memref_slice %arg12[%589, %c0_i32_509] : memref<16x32xf32, #tpu.memory_space<vmem>> -> memref<1x32xf32, #tpu.memory_space<vmem>>
        %594 = tpu.memref_slice %arg13[%591] : memref<16x!tpu.dma_semaphore, #tpu.memory_space<semaphore_mem>> -> memref<1x!tpu.dma_semaphore, #tpu.memory_space<semaphore_mem>>
        %595 = tpu.memref_squeeze %594 : memref<1x!tpu.dma_semaphore, #tpu.memory_space<semaphore_mem>> -> memref<!tpu.dma_semaphore, #tpu.memory_space<semaphore_mem>>
        tpu.enqueue_dma source(%592 : memref<1x32xf32, #tpu.memory_space<any>>) target(%593 : memref<1x32xf32, #tpu.memory_space<vmem>>) target_semaphore(%595 : memref<!tpu.dma_semaphore, #tpu.memory_space<semaphore_mem>>)
        %c8_i32_510 = arith.constant 8 : i32
        %596 = arith.muli %560, %c8_i32_510 : i32
        %c2_i32_511 = arith.constant 2 : i32
        %597 = arith.addi %596, %c2_i32_511 : i32
        %c23_i32_512 = arith.constant 23 : i32
        %598 = arith.minsi %597, %c23_i32_512 : i32
        %c3_513 = arith.constant 3 : index
        %599 = arith.index_cast %598 : i32 to index
        %600 = memref.load %arg1[%c3_513, %599] : memref<4x24xi32, #tpu.memory_space<smem>>
        %c-1_i32_514 = arith.constant -1 : i32
        %601 = arith.cmpi eq, %600, %c-1_i32_514 : i32
        %c0_i32_515 = arith.constant 0 : i32
        %602 = arith.select %601, %c0_i32_515, %600 : i32
        %c0_i32_516 = arith.constant 0 : i32
        %c255_i32_517 = arith.constant 255 : i32
        %603 = arith.maxsi %c0_i32_516, %602 : i32
        %604 = arith.minsi %c255_i32_517, %603 : i32
        %c8_i32_518 = arith.constant 8 : i32
        %605 = arith.muli %561, %c8_i32_518 : i32
        %c2_i32_519 = arith.constant 2 : i32
        %606 = arith.addi %605, %c2_i32_519 : i32
        %c8_i32_520 = arith.constant 8 : i32
        %607 = arith.muli %561, %c8_i32_520 : i32
        %c2_i32_521 = arith.constant 2 : i32
        %608 = arith.addi %607, %c2_i32_521 : i32
        %c0_i32_522 = arith.constant 0 : i32
        %609 = tpu.memref_slice %arg3[%604, %c0_i32_522] : memref<256x32xf32, #tpu.memory_space<any>> -> memref<1x32xf32, #tpu.memory_space<any>>
        %c0_i32_523 = arith.constant 0 : i32
        %610 = tpu.memref_slice %arg12[%606, %c0_i32_523] : memref<16x32xf32, #tpu.memory_space<vmem>> -> memref<1x32xf32, #tpu.memory_space<vmem>>
        %611 = tpu.memref_slice %arg13[%608] : memref<16x!tpu.dma_semaphore, #tpu.memory_space<semaphore_mem>> -> memref<1x!tpu.dma_semaphore, #tpu.memory_space<semaphore_mem>>
        %612 = tpu.memref_squeeze %611 : memref<1x!tpu.dma_semaphore, #tpu.memory_space<semaphore_mem>> -> memref<!tpu.dma_semaphore, #tpu.memory_space<semaphore_mem>>
        tpu.enqueue_dma source(%609 : memref<1x32xf32, #tpu.memory_space<any>>) target(%610 : memref<1x32xf32, #tpu.memory_space<vmem>>) target_semaphore(%612 : memref<!tpu.dma_semaphore, #tpu.memory_space<semaphore_mem>>)
        %c8_i32_524 = arith.constant 8 : i32
        %613 = arith.muli %560, %c8_i32_524 : i32
        %c3_i32_525 = arith.constant 3 : i32
        %614 = arith.addi %613, %c3_i32_525 : i32
        %c23_i32_526 = arith.constant 23 : i32
        %615 = arith.minsi %614, %c23_i32_526 : i32
        %c3_527 = arith.constant 3 : index
        %616 = arith.index_cast %615 : i32 to index
        %617 = memref.load %arg1[%c3_527, %616] : memref<4x24xi32, #tpu.memory_space<smem>>
        %c-1_i32_528 = arith.constant -1 : i32
        %618 = arith.cmpi eq, %617, %c-1_i32_528 : i32
        %c0_i32_529 = arith.constant 0 : i32
        %619 = arith.select %618, %c0_i32_529, %617 : i32
        %c0_i32_530 = arith.constant 0 : i32
        %c255_i32_531 = arith.constant 255 : i32
        %620 = arith.maxsi %c0_i32_530, %619 : i32
        %621 = arith.minsi %c255_i32_531, %620 : i32
        %c8_i32_532 = arith.constant 8 : i32
        %622 = arith.muli %561, %c8_i32_532 : i32
        %c3_i32_533 = arith.constant 3 : i32
        %623 = arith.addi %622, %c3_i32_533 : i32
        %c8_i32_534 = arith.constant 8 : i32
        %624 = arith.muli %561, %c8_i32_534 : i32
        %c3_i32_535 = arith.constant 3 : i32
        %625 = arith.addi %624, %c3_i32_535 : i32
        %c0_i32_536 = arith.constant 0 : i32
        %626 = tpu.memref_slice %arg3[%621, %c0_i32_536] : memref<256x32xf32, #tpu.memory_space<any>> -> memref<1x32xf32, #tpu.memory_space<any>>
        %c0_i32_537 = arith.constant 0 : i32
        %627 = tpu.memref_slice %arg12[%623, %c0_i32_537] : memref<16x32xf32, #tpu.memory_space<vmem>> -> memref<1x32xf32, #tpu.memory_space<vmem>>
        %628 = tpu.memref_slice %arg13[%625] : memref<16x!tpu.dma_semaphore, #tpu.memory_space<semaphore_mem>> -> memref<1x!tpu.dma_semaphore, #tpu.memory_space<semaphore_mem>>
        %629 = tpu.memref_squeeze %628 : memref<1x!tpu.dma_semaphore, #tpu.memory_space<semaphore_mem>> -> memref<!tpu.dma_semaphore, #tpu.memory_space<semaphore_mem>>
        tpu.enqueue_dma source(%626 : memref<1x32xf32, #tpu.memory_space<any>>) target(%627 : memref<1x32xf32, #tpu.memory_space<vmem>>) target_semaphore(%629 : memref<!tpu.dma_semaphore, #tpu.memory_space<semaphore_mem>>)
        %c8_i32_538 = arith.constant 8 : i32
        %630 = arith.muli %560, %c8_i32_538 : i32
        %c4_i32_539 = arith.constant 4 : i32
        %631 = arith.addi %630, %c4_i32_539 : i32
        %c23_i32_540 = arith.constant 23 : i32
        %632 = arith.minsi %631, %c23_i32_540 : i32
        %c3_541 = arith.constant 3 : index
        %633 = arith.index_cast %632 : i32 to index
        %634 = memref.load %arg1[%c3_541, %633] : memref<4x24xi32, #tpu.memory_space<smem>>
        %c-1_i32_542 = arith.constant -1 : i32
        %635 = arith.cmpi eq, %634, %c-1_i32_542 : i32
        %c0_i32_543 = arith.constant 0 : i32
        %636 = arith.select %635, %c0_i32_543, %634 : i32
        %c0_i32_544 = arith.constant 0 : i32
        %c255_i32_545 = arith.constant 255 : i32
        %637 = arith.maxsi %c0_i32_544, %636 : i32
        %638 = arith.minsi %c255_i32_545, %637 : i32
        %c8_i32_546 = arith.constant 8 : i32
        %639 = arith.muli %561, %c8_i32_546 : i32
        %c4_i32_547 = arith.constant 4 : i32
        %640 = arith.addi %639, %c4_i32_547 : i32
        %c8_i32_548 = arith.constant 8 : i32
        %641 = arith.muli %561, %c8_i32_548 : i32
        %c4_i32_549 = arith.constant 4 : i32
        %642 = arith.addi %641, %c4_i32_549 : i32
        %c0_i32_550 = arith.constant 0 : i32
        %643 = tpu.memref_slice %arg3[%638, %c0_i32_550] : memref<256x32xf32, #tpu.memory_space<any>> -> memref<1x32xf32, #tpu.memory_space<any>>
        %c0_i32_551 = arith.constant 0 : i32
        %644 = tpu.memref_slice %arg12[%640, %c0_i32_551] : memref<16x32xf32, #tpu.memory_space<vmem>> -> memref<1x32xf32, #tpu.memory_space<vmem>>
        %645 = tpu.memref_slice %arg13[%642] : memref<16x!tpu.dma_semaphore, #tpu.memory_space<semaphore_mem>> -> memref<1x!tpu.dma_semaphore, #tpu.memory_space<semaphore_mem>>
        %646 = tpu.memref_squeeze %645 : memref<1x!tpu.dma_semaphore, #tpu.memory_space<semaphore_mem>> -> memref<!tpu.dma_semaphore, #tpu.memory_space<semaphore_mem>>
        tpu.enqueue_dma source(%643 : memref<1x32xf32, #tpu.memory_space<any>>) target(%644 : memref<1x32xf32, #tpu.memory_space<vmem>>) target_semaphore(%646 : memref<!tpu.dma_semaphore, #tpu.memory_space<semaphore_mem>>)
        %c8_i32_552 = arith.constant 8 : i32
        %647 = arith.muli %560, %c8_i32_552 : i32
        %c5_i32_553 = arith.constant 5 : i32
        %648 = arith.addi %647, %c5_i32_553 : i32
        %c23_i32_554 = arith.constant 23 : i32
        %649 = arith.minsi %648, %c23_i32_554 : i32
        %c3_555 = arith.constant 3 : index
        %650 = arith.index_cast %649 : i32 to index
        %651 = memref.load %arg1[%c3_555, %650] : memref<4x24xi32, #tpu.memory_space<smem>>
        %c-1_i32_556 = arith.constant -1 : i32
        %652 = arith.cmpi eq, %651, %c-1_i32_556 : i32
        %c0_i32_557 = arith.constant 0 : i32
        %653 = arith.select %652, %c0_i32_557, %651 : i32
        %c0_i32_558 = arith.constant 0 : i32
        %c255_i32_559 = arith.constant 255 : i32
        %654 = arith.maxsi %c0_i32_558, %653 : i32
        %655 = arith.minsi %c255_i32_559, %654 : i32
        %c8_i32_560 = arith.constant 8 : i32
        %656 = arith.muli %561, %c8_i32_560 : i32
        %c5_i32_561 = arith.constant 5 : i32
        %657 = arith.addi %656, %c5_i32_561 : i32
        %c8_i32_562 = arith.constant 8 : i32
        %658 = arith.muli %561, %c8_i32_562 : i32
        %c5_i32_563 = arith.constant 5 : i32
        %659 = arith.addi %658, %c5_i32_563 : i32
        %c0_i32_564 = arith.constant 0 : i32
        %660 = tpu.memref_slice %arg3[%655, %c0_i32_564] : memref<256x32xf32, #tpu.memory_space<any>> -> memref<1x32xf32, #tpu.memory_space<any>>
        %c0_i32_565 = arith.constant 0 : i32
        %661 = tpu.memref_slice %arg12[%657, %c0_i32_565] : memref<16x32xf32, #tpu.memory_space<vmem>> -> memref<1x32xf32, #tpu.memory_space<vmem>>
        %662 = tpu.memref_slice %arg13[%659] : memref<16x!tpu.dma_semaphore, #tpu.memory_space<semaphore_mem>> -> memref<1x!tpu.dma_semaphore, #tpu.memory_space<semaphore_mem>>
        %663 = tpu.memref_squeeze %662 : memref<1x!tpu.dma_semaphore, #tpu.memory_space<semaphore_mem>> -> memref<!tpu.dma_semaphore, #tpu.memory_space<semaphore_mem>>
        tpu.enqueue_dma source(%660 : memref<1x32xf32, #tpu.memory_space<any>>) target(%661 : memref<1x32xf32, #tpu.memory_space<vmem>>) target_semaphore(%663 : memref<!tpu.dma_semaphore, #tpu.memory_space<semaphore_mem>>)
        %c8_i32_566 = arith.constant 8 : i32
        %664 = arith.muli %560, %c8_i32_566 : i32
        %c6_i32_567 = arith.constant 6 : i32
        %665 = arith.addi %664, %c6_i32_567 : i32
        %c23_i32_568 = arith.constant 23 : i32
        %666 = arith.minsi %665, %c23_i32_568 : i32
        %c3_569 = arith.constant 3 : index
        %667 = arith.index_cast %666 : i32 to index
        %668 = memref.load %arg1[%c3_569, %667] : memref<4x24xi32, #tpu.memory_space<smem>>
        %c-1_i32_570 = arith.constant -1 : i32
        %669 = arith.cmpi eq, %668, %c-1_i32_570 : i32
        %c0_i32_571 = arith.constant 0 : i32
        %670 = arith.select %669, %c0_i32_571, %668 : i32
        %c0_i32_572 = arith.constant 0 : i32
        %c255_i32_573 = arith.constant 255 : i32
        %671 = arith.maxsi %c0_i32_572, %670 : i32
        %672 = arith.minsi %c255_i32_573, %671 : i32
        %c8_i32_574 = arith.constant 8 : i32
        %673 = arith.muli %561, %c8_i32_574 : i32
        %c6_i32_575 = arith.constant 6 : i32
        %674 = arith.addi %673, %c6_i32_575 : i32
        %c8_i32_576 = arith.constant 8 : i32
        %675 = arith.muli %561, %c8_i32_576 : i32
        %c6_i32_577 = arith.constant 6 : i32
        %676 = arith.addi %675, %c6_i32_577 : i32
        %c0_i32_578 = arith.constant 0 : i32
        %677 = tpu.memref_slice %arg3[%672, %c0_i32_578] : memref<256x32xf32, #tpu.memory_space<any>> -> memref<1x32xf32, #tpu.memory_space<any>>
        %c0_i32_579 = arith.constant 0 : i32
        %678 = tpu.memref_slice %arg12[%674, %c0_i32_579] : memref<16x32xf32, #tpu.memory_space<vmem>> -> memref<1x32xf32, #tpu.memory_space<vmem>>
        %679 = tpu.memref_slice %arg13[%676] : memref<16x!tpu.dma_semaphore, #tpu.memory_space<semaphore_mem>> -> memref<1x!tpu.dma_semaphore, #tpu.memory_space<semaphore_mem>>
        %680 = tpu.memref_squeeze %679 : memref<1x!tpu.dma_semaphore, #tpu.memory_space<semaphore_mem>> -> memref<!tpu.dma_semaphore, #tpu.memory_space<semaphore_mem>>
        tpu.enqueue_dma source(%677 : memref<1x32xf32, #tpu.memory_space<any>>) target(%678 : memref<1x32xf32, #tpu.memory_space<vmem>>) target_semaphore(%680 : memref<!tpu.dma_semaphore, #tpu.memory_space<semaphore_mem>>)
        %c8_i32_580 = arith.constant 8 : i32
        %681 = arith.muli %560, %c8_i32_580 : i32
        %c7_i32_581 = arith.constant 7 : i32
        %682 = arith.addi %681, %c7_i32_581 : i32
        %c23_i32_582 = arith.constant 23 : i32
        %683 = arith.minsi %682, %c23_i32_582 : i32
        %c3_583 = arith.constant 3 : index
        %684 = arith.index_cast %683 : i32 to index
        %685 = memref.load %arg1[%c3_583, %684] : memref<4x24xi32, #tpu.memory_space<smem>>
        %c-1_i32_584 = arith.constant -1 : i32
        %686 = arith.cmpi eq, %685, %c-1_i32_584 : i32
        %c0_i32_585 = arith.constant 0 : i32
        %687 = arith.select %686, %c0_i32_585, %685 : i32
        %c0_i32_586 = arith.constant 0 : i32
        %c255_i32_587 = arith.constant 255 : i32
        %688 = arith.maxsi %c0_i32_586, %687 : i32
        %689 = arith.minsi %c255_i32_587, %688 : i32
        %c8_i32_588 = arith.constant 8 : i32
        %690 = arith.muli %561, %c8_i32_588 : i32
        %c7_i32_589 = arith.constant 7 : i32
        %691 = arith.addi %690, %c7_i32_589 : i32
        %c8_i32_590 = arith.constant 8 : i32
        %692 = arith.muli %561, %c8_i32_590 : i32
        %c7_i32_591 = arith.constant 7 : i32
        %693 = arith.addi %692, %c7_i32_591 : i32
        %c0_i32_592 = arith.constant 0 : i32
        %694 = tpu.memref_slice %arg3[%689, %c0_i32_592] : memref<256x32xf32, #tpu.memory_space<any>> -> memref<1x32xf32, #tpu.memory_space<any>>
        %c0_i32_593 = arith.constant 0 : i32
        %695 = tpu.memref_slice %arg12[%691, %c0_i32_593] : memref<16x32xf32, #tpu.memory_space<vmem>> -> memref<1x32xf32, #tpu.memory_space<vmem>>
        %696 = tpu.memref_slice %arg13[%693] : memref<16x!tpu.dma_semaphore, #tpu.memory_space<semaphore_mem>> -> memref<1x!tpu.dma_semaphore, #tpu.memory_space<semaphore_mem>>
        %697 = tpu.memref_squeeze %696 : memref<1x!tpu.dma_semaphore, #tpu.memory_space<semaphore_mem>> -> memref<!tpu.dma_semaphore, #tpu.memory_space<semaphore_mem>>
        tpu.enqueue_dma source(%694 : memref<1x32xf32, #tpu.memory_space<any>>) target(%695 : memref<1x32xf32, #tpu.memory_space<vmem>>) target_semaphore(%697 : memref<!tpu.dma_semaphore, #tpu.memory_space<semaphore_mem>>)
      } else {
      }
      %c8_i32_475 = arith.constant 8 : i32
      %543 = arith.muli %474, %c8_i32_475 : i32
      %544 = tpu.assume_multiple %543, 8 : i32
      %545 = arith.index_cast %544 : i32 to index
      %c0_476 = arith.constant 0 : index
      %546 = vector.load %arg12[%545, %c0_476] : memref<16x32xf32, #tpu.memory_space<vmem>>, vector<8x32xf32>
      %c8_i32_477 = arith.constant 8 : i32
      %547 = arith.muli %arg15, %c8_i32_477 : i32
      %548 = tpu.iota {dimensions = array<i32: 0>} : vector<8x1xi32>
      %549 = vector.broadcast %547 : i32 to vector<8x1xi32>
      %550 = arith.addi %549, %548 : vector<8x1xi32>
      %c24_i32 = arith.constant 24 : i32
      %551 = vector.broadcast %c24_i32 : i32 to vector<8x1xi32>
      %552 = arith.cmpi slt, %550, %551 : vector<8x1xi32>
      %cst_478 = arith.constant 0.000000e+00 : f32
      %553 = vector.shape_cast %552 : vector<8x1xi1> to vector<8x1xi1>
      %554 = vector.broadcast %553 : vector<8x1xi1> to vector<8x32xi1>
      %555 = vector.broadcast %cst_478 : f32 to vector<8x32xf32>
      %556 = arith.select %554, %546, %555 : vector<8x32xi1>, vector<8x32xf32>
      %cst_479 = arith.constant dense<0.000000e+00> : vector<32xf32>
      %557 = vector.multi_reduction <add>, %556, %cst_479 [0] : vector<8x32xf32> to vector<32xf32>
      %558 = vector.shape_cast %557 : vector<32xf32> to vector<1x32xf32>
      %559 = arith.addf %arg16, %558 : vector<1x32xf32>
      scf.yield %559 : vector<1x32xf32>
    }
    %c3_i32_364 = arith.constant 3 : i32
    %cst_365 = arith.constant 0.0416666679 : f32
    %373 = vector.broadcast %cst_365 : f32 to vector<1x32xf32>
    %374 = arith.mulf %372, %373 : vector<1x32xf32>
    %c3_366 = arith.constant 3 : index
    %c0_367 = arith.constant 0 : index
    %375 = vector.load %arg14[%c3_366, %c0_367] : memref<4x32xf32, #tpu.memory_space<vmem>>, vector<1x32xf32>
    tpu.vector_store %arg14[%c3_366, %c0_367], %374 {strides = array<i32>} : memref<4x32xf32, #tpu.memory_space<vmem>>, vector<1x32xf32>,
    %c0_368 = arith.constant 0 : index
    %c0_369 = arith.constant 0 : index
    %376 = vector.load %arg14[%c0_368, %c0_369] : memref<4x32xf32, #tpu.memory_space<vmem>>, vector<4x32xf32>
    %c0_370 = arith.constant 0 : index
    %c0_371 = arith.constant 0 : index
    %377 = vector.load %arg4[%c0_370, %c0_371] : memref<32x32xf32, #tpu.memory_space<vmem>>, vector<32x32xf32>
    %cst_372 = arith.constant dense<0.000000e+00> : vector<4x32xf32>
    %378 = tpu.matmul %376, %377, %cst_372 {dimension_numbers = #tpu.dot_dimension_numbers<[1], [0], [0], [1], [0, 0, 1, 1], [], []>} : vector<4x32xf32>, vector<32x32xf32>, vector<4x32xf32> -> vector<4x32xf32>
    %c0_373 = arith.constant 0 : index
    %c0_374 = arith.constant 0 : index
    %379 = vector.load %arg5[%c0_373, %c0_374] : memref<1x32xf32, #tpu.memory_space<vmem>>, vector<1x32xf32>
    %380 = vector.broadcast %379 : vector<1x32xf32> to vector<4x32xf32>
    %381 = arith.addf %378, %380 : vector<4x32xf32>
    %382 = math.tanh %381 : vector<4x32xf32>
    %c0_375 = arith.constant 0 : index
    %c0_376 = arith.constant 0 : index
    %383 = vector.load %arg6[%c0_375, %c0_376] : memref<1x32xf32, #tpu.memory_space<vmem>>, vector<1x32xf32>
    %384 = vector.broadcast %383 : vector<1x32xf32> to vector<4x32xf32>
    %385 = arith.mulf %382, %384 : vector<4x32xf32>
    %cst_377 = arith.constant dense<0.000000e+00> : vector<4xf32>
    %386 = vector.multi_reduction <add>, %385, %cst_377 [1] : vector<4x32xf32> to vector<4xf32>
    %387 = vector.shape_cast %386 : vector<4xf32> to vector<4x1xf32>
    %c0_378 = arith.constant 0 : index
    %c0_379 = arith.constant 0 : index
    %388 = memref.load %arg7[%c0_378, %c0_379] : memref<1x1xf32, #tpu.memory_space<smem>>
    %389 = vector.broadcast %388 : f32 to vector<4x1xf32>
    %390 = arith.addf %387, %389 : vector<4x1xf32>
    %c0_380 = arith.constant 0 : index
    %c0_381 = arith.constant 0 : index
    %391 = vector.load %arg8[%c0_380, %c0_381] : memref<4x1xf32, #tpu.memory_space<vmem>>, vector<4x1xf32>
    tpu.vector_store %arg8[%c0_380, %c0_381], %390 {strides = array<i32>} : memref<4x1xf32, #tpu.memory_space<vmem>>, vector<4x1xf32>,
    %392 = arith.cmpf one, %390, %390 : vector<4x1xf32>
    %cst_382 = arith.constant -1.000000e+06 : f32
    %393 = vector.broadcast %cst_382 : f32 to vector<4x1xf32>
    %394 = arith.select %392, %393, %390 : vector<4x1xi1>, vector<4x1xf32>
    %cst_383 = arith.constant 1.000000e+06 : f32
    %395 = vector.broadcast %cst_383 : f32 to vector<4x1xf32>
    %396 = arith.select %392, %395, %390 : vector<4x1xi1>, vector<4x1xf32>
    %397 = tpu.iota {dimensions = array<i32: 0>} : vector<4x1xi32>
    %398 = vector.shape_cast %394 : vector<4x1xf32> to vector<1x4x1xf32>
    %cst_384 = arith.constant dense<0xFF800000> : vector<1xf32>
    %399 = vector.multi_reduction <maximumf>, %398, %cst_384 [1, 2] : vector<1x4x1xf32> to vector<1xf32>
    %400 = vector.shape_cast %399 : vector<1xf32> to vector<1x1x1xf32>
    %401 = vector.extract %400[0, 0, 0] : f32 from vector<1x1x1xf32>
    %402 = vector.broadcast %401 : f32 to vector<4x1xf32>
    %403 = arith.cmpf oeq, %394, %402 : vector<4x1xf32>
    %c4_i32_385 = arith.constant 4 : i32
    %404 = vector.broadcast %c4_i32_385 : i32 to vector<4x1xi32>
    %405 = arith.select %403, %397, %404 : vector<4x1xi1>, vector<4x1xi32>
    %406 = vector.shape_cast %405 : vector<4x1xi32> to vector<1x4x1xi32>
    %cst_386 = arith.constant dense<2147483647> : vector<1xi32>
    %407 = vector.multi_reduction <minsi>, %406, %cst_386 [1, 2] : vector<1x4x1xi32> to vector<1xi32>
    %408 = vector.shape_cast %407 : vector<1xi32> to vector<1x1x1xi32>
    %409 = vector.extract %408[0, 0, 0] : i32 from vector<1x1x1xi32>
    %410 = vector.shape_cast %396 : vector<4x1xf32> to vector<1x4x1xf32>
    %cst_387 = arith.constant dense<0x7F800000> : vector<1xf32>
    %411 = vector.multi_reduction <minimumf>, %410, %cst_387 [1, 2] : vector<1x4x1xf32> to vector<1xf32>
    %412 = vector.shape_cast %411 : vector<1xf32> to vector<1x1x1xf32>
    %413 = vector.extract %412[0, 0, 0] : f32 from vector<1x1x1xf32>
    %414 = vector.broadcast %413 : f32 to vector<4x1xf32>
    %415 = arith.cmpf oeq, %396, %414 : vector<4x1xf32>
    %c4_i32_388 = arith.constant 4 : i32
    %416 = vector.broadcast %c4_i32_388 : i32 to vector<4x1xi32>
    %417 = arith.select %415, %397, %416 : vector<4x1xi1>, vector<4x1xi32>
    %418 = vector.shape_cast %417 : vector<4x1xi32> to vector<1x4x1xi32>
    %cst_389 = arith.constant dense<2147483647> : vector<1xi32>
    %419 = vector.multi_reduction <minsi>, %418, %cst_389 [1, 2] : vector<1x4x1xi32> to vector<1xi32>
    %420 = vector.shape_cast %419 : vector<1xi32> to vector<1x1x1xi32>
    %421 = vector.extract %420[0, 0, 0] : i32 from vector<1x1x1xi32>
    %c0_390 = arith.constant 0 : index
    %422 = memref.load %arg9[%c0_390] : memref<2xi32, #tpu.memory_space<smem>>
    memref.store %409, %arg9[%c0_390] : memref<2xi32, #tpu.memory_space<smem>>
    %c1_391 = arith.constant 1 : index
    %423 = memref.load %arg9[%c1_391] : memref<2xi32, #tpu.memory_space<smem>>
    memref.store %421, %arg9[%c1_391] : memref<2xi32, #tpu.memory_space<smem>>
    %424 = vector.broadcast %409 : i32 to vector<4x1xi32>
    %425 = arith.cmpi eq, %397, %424 : vector<4x1xi32>
    %cst_392 = arith.constant 0.000000e+00 : f32
    %426 = vector.broadcast %cst_392 : f32 to vector<4x1xf32>
    %427 = arith.select %425, %390, %426 : vector<4x1xi1>, vector<4x1xf32>
    %428 = vector.shape_cast %427 : vector<4x1xf32> to vector<1x4x1xf32>
    %cst_393 = arith.constant dense<0.000000e+00> : vector<1xf32>
    %429 = vector.multi_reduction <add>, %428, %cst_393 [1, 2] : vector<1x4x1xf32> to vector<1xf32>
    %430 = vector.shape_cast %429 : vector<1xf32> to vector<1x1x1xf32>
    %431 = vector.extract %430[0, 0, 0] : f32 from vector<1x1x1xf32>
    %c0_394 = arith.constant 0 : index
    %432 = memref.load %arg10[%c0_394] : memref<2xf32, #tpu.memory_space<smem>>
    memref.store %431, %arg10[%c0_394] : memref<2xf32, #tpu.memory_space<smem>>
    %433 = vector.broadcast %421 : i32 to vector<4x1xi32>
    %434 = arith.cmpi eq, %397, %433 : vector<4x1xi32>
    %cst_395 = arith.constant 0.000000e+00 : f32
    %435 = vector.broadcast %cst_395 : f32 to vector<4x1xf32>
    %436 = arith.select %434, %390, %435 : vector<4x1xi1>, vector<4x1xf32>
    %437 = vector.shape_cast %436 : vector<4x1xf32> to vector<1x4x1xf32>
    %cst_396 = arith.constant dense<0.000000e+00> : vector<1xf32>
    %438 = vector.multi_reduction <add>, %437, %cst_396 [1, 2] : vector<1x4x1xf32> to vector<1xf32>
    %439 = vector.shape_cast %438 : vector<1xf32> to vector<1x1x1xf32>
    %440 = vector.extract %439[0, 0, 0] : f32 from vector<1x1x1xf32>
    %c1_397 = arith.constant 1 : index
    %441 = memref.load %arg10[%c1_397] : memref<2xf32, #tpu.memory_space<smem>>
    memref.store %440, %arg10[%c1_397] : memref<2xf32, #tpu.memory_space<smem>>
    %c-1_i32_398 = arith.constant -1 : i32
    %442 = vector.broadcast %c-1_i32_398 : i32 to vector<2x128xi32>
    %c0_399 = arith.constant 0 : index
    %c0_400 = arith.constant 0 : index
    %443 = vector.load %arg11[%c0_399, %c0_400] : memref<2x128xi32, #tpu.memory_space<vmem>>, vector<2x128xi32>
    tpu.vector_store %arg11[%c0_399, %c0_400], %442 {strides = array<i32>} : memref<2x128xi32, #tpu.memory_space<vmem>>, vector<2x128xi32>,
    %c0_401 = arith.constant 0 : index
    %c0_402 = arith.constant 0 : index
    %444 = vector.load %arg2[%c0_401, %c0_402] : memref<4x24xi32, #tpu.memory_space<vmem>>, vector<4x24xi32>
    %445 = vector.broadcast %409 : i32 to vector<4x1xi32>
    %446 = arith.cmpi eq, %397, %445 : vector<4x1xi32>
    %c0_i32_403 = arith.constant 0 : i32
    %447 = vector.shape_cast %446 : vector<4x1xi1> to vector<4x1xi1>
    %448 = vector.broadcast %447 : vector<4x1xi1> to vector<4x24xi1>
    %449 = vector.broadcast %c0_i32_403 : i32 to vector<4x24xi32>
    %450 = arith.select %448, %444, %449 : vector<4x24xi1>, vector<4x24xi32>
    %cst_404 = arith.constant dense<0> : vector<24xi32>
    %451 = vector.multi_reduction <add>, %450, %cst_404 [0] : vector<4x24xi32> to vector<24xi32>
    %452 = vector.broadcast %421 : i32 to vector<4x1xi32>
    %453 = arith.cmpi eq, %397, %452 : vector<4x1xi32>
    %c0_i32_405 = arith.constant 0 : i32
    %454 = vector.shape_cast %453 : vector<4x1xi1> to vector<4x1xi1>
    %455 = vector.broadcast %454 : vector<4x1xi1> to vector<4x24xi1>
    %456 = vector.broadcast %c0_i32_405 : i32 to vector<4x24xi32>
    %457 = arith.select %455, %444, %456 : vector<4x24xi1>, vector<4x24xi32>
    %cst_406 = arith.constant dense<0> : vector<24xi32>
    %458 = vector.multi_reduction <add>, %457, %cst_406 [0] : vector<4x24xi32> to vector<24xi32>
    %c0_407 = arith.constant 0 : index
    %c0_408 = arith.constant 0 : index
    %459 = vector.load %arg11[%c0_407, %c0_408] : memref<2x128xi32, #tpu.memory_space<vmem>>, vector<1x24xi32>
    %460 = vector.shape_cast %459 : vector<1x24xi32> to vector<24xi32>
    %461 = vector.shape_cast %451 : vector<24xi32> to vector<1x24xi32>
    tpu.vector_store %arg11[%c0_407, %c0_408], %461 {strides = array<i32>} : memref<2x128xi32, #tpu.memory_space<vmem>>, vector<1x24xi32>,
    %c1_409 = arith.constant 1 : index
    %c0_410 = arith.constant 0 : index
    %462 = vector.load %arg11[%c1_409, %c0_410] : memref<2x128xi32, #tpu.memory_space<vmem>>, vector<1x24xi32>
    %463 = vector.shape_cast %462 : vector<1x24xi32> to vector<24xi32>
    %464 = vector.shape_cast %458 : vector<24xi32> to vector<1x24xi32>
    tpu.vector_store %arg11[%c1_409, %c0_410], %464 {strides = array<i32>} : memref<2x128xi32, #tpu.memory_space<vmem>>, vector<1x24xi32>,
    return
  }
  func.func @transform_0(%arg0: i32, %arg1: memref<4x24xi32, #tpu.memory_space<smem>>) -> (i32, i32) {
    %c0_i32 = arith.constant 0 : i32
    %c0_i32_0 = arith.constant 0 : i32
    %c0_i32_1 = arith.constant 0 : i32
    return %c0_i32, %c0_i32_0 : i32, i32
  }
  func.func @transform_2(%arg0: i32, %arg1: memref<4x24xi32, #tpu.memory_space<smem>>) -> (i32, i32) {
    %c0_i32 = arith.constant 0 : i32
    %c0_i32_0 = arith.constant 0 : i32
    %c0_i32_1 = arith.constant 0 : i32
    return %c0_i32, %c0_i32_0 : i32, i32
  }
  func.func @transform_3(%arg0: i32, %arg1: memref<4x24xi32, #tpu.memory_space<smem>>) -> (i32, i32) {
    %c0_i32 = arith.constant 0 : i32
    %c0_i32_0 = arith.constant 0 : i32
    %c0_i32_1 = arith.constant 0 : i32
    return %c0_i32, %c0_i32_0 : i32, i32
  }
  func.func @transform_4(%arg0: i32, %arg1: memref<4x24xi32, #tpu.memory_space<smem>>) -> (i32, i32) {
    %c0_i32 = arith.constant 0 : i32
    %c0_i32_0 = arith.constant 0 : i32
    %c0_i32_1 = arith.constant 0 : i32
    return %c0_i32, %c0_i32_0 : i32, i32
  }
  func.func @transform_5(%arg0: i32, %arg1: memref<4x24xi32, #tpu.memory_space<smem>>) -> (i32, i32) {
    %c0_i32 = arith.constant 0 : i32
    %c0_i32_0 = arith.constant 0 : i32
    %c0_i32_1 = arith.constant 0 : i32
    return %c0_i32, %c0_i32_0 : i32, i32
  }
  func.func @transform_6(%arg0: i32, %arg1: memref<4x24xi32, #tpu.memory_space<smem>>) -> (i32, i32) {
    %c0_i32 = arith.constant 0 : i32
    %c0_i32_0 = arith.constant 0 : i32
    %c0_i32_1 = arith.constant 0 : i32
    return %c0_i32, %c0_i32_0 : i32, i32
  }
  func.func @transform_7(%arg0: i32, %arg1: memref<4x24xi32, #tpu.memory_space<smem>>) -> i32 {
    %c0_i32 = arith.constant 0 : i32
    %c0_i32_0 = arith.constant 0 : i32
    return %c0_i32 : i32
  }
  func.func @transform_8(%arg0: i32, %arg1: memref<4x24xi32, #tpu.memory_space<smem>>) -> i32 {
    %c0_i32 = arith.constant 0 : i32
    %c0_i32_0 = arith.constant 0 : i32
    return %c0_i32 : i32
  }
  func.func @transform_9(%arg0: i32, %arg1: memref<4x24xi32, #tpu.memory_space<smem>>) -> (i32, i32) {
    %c0_i32 = arith.constant 0 : i32
    %c0_i32_0 = arith.constant 0 : i32
    %c0_i32_1 = arith.constant 0 : i32
    return %c0_i32, %c0_i32_0 : i32, i32
  }
}

</mosaic_0001>

<bundles_post_ra>
// kernel: dpo_generate_pair.1
= control target key start
LH: loop header
LB: loop body
LE: loop exit
PB: predicated region body
PF: predicated region fallthrough
CT: control target
= control target key end

     0   :  { %s7286_s0 = inlined_call_operand.vmem [shape: s32[4,24], index: 0, kind: input, shape index: {}, may-alias: {0,1}]   ;;  %s7287_s1 = inlined_call_operand.vmem [shape: s32[4,24], index: 1, kind: input, shape index: {}, may-alias: {0,1}]   ;;  %s7288_s2 = inlined_call_operand.vmem [shape: f32[256,32], index: 2, kind: input, shape index: {}]   ;;  %s7289_s3 = inlined_call_operand.vmem [shape: f32[32,32], index: 3, kind: input, shape index: {}]   ;;  %s7290_s4 = inlined_call_operand.vmem [shape: f32[1,32], index: 4, kind: input, shape index: {}]   ;;  %s7291_s5 = inlined_call_operand.vmem [shape: f32[1,32], index: 5, kind: input, shape index: {}]   ;;  %s7292_s6 = inlined_call_operand.<no memory space> [shape: f32[1,1], index: 6, kind: input, shape index: {}]   ;;  %s7293_s7 = inlined_call_operand.vmem [shape: f32[4,1], index: 7, kind: output, shape index: {0}]   ;;  %s7294_s8 = inlined_call_operand.hbm [shape: s32[2], index: 8, kind: output, shape index: {1}]   ;;  %s7295_s9 = inlined_call_operand.hbm [shape: f32[2], index: 9, kind: output, shape index: {2}]   ;;  %s7296_s10 = inlined_call_operand.hbm [shape: s32[2,128], index: 10, kind: output, shape index: {3}]  }
   0x1   :  { %s16_s15 = sshll.u32 %s7286_s0, 4  ;;  %20 = sst [smem:[#allocation7]] %s7292_s6  ;;  %s17_s15 = int_to_ptr.vmem [resolvable:$true] %s16_s15 }
   0x2   :  { %s6482_s18 = scalar_lea.vmem %s17_s15, 64  ;;  %p6487_p1 = scmp.lt.s32.totalorder %s17_s15, %s17_s15 }
   0x3   :  { %p6483_p0 = scmp.ne.s32.totalorder %s17_s15, %s6482_s18  ;;  %p6488_p2 = scmp.lt.s32.totalorder %s6482_s18, %s6482_s18 }
   0x5   :  { %p6489_p3 = por %p6488_p2, %p6487_p1 }
   0x7   :  { %p6490_p4 = pnand %p6489_p3, %p6483_p0 }
   0x9   :  { %6493 = shalt.err (!%p6490_p4)  }
   0xa   :  { %s6666_s19 = smov [#allocation6]  }
   0xb   :  { %19 = dma.vmem_to_smem %s17_s15, 64, %s6666_s19, [#allocation5] }
   0xc   :  { %6562 = dma.done.wait [#allocation5], 64 }
   0xd   :  { %6563 = vsyncadd [#allocation5], 4294967232 }
   0xe   :  { %22 = sfence }
   0xf   :  { %23 = vsyncpa [#allocation10], 0 }
  0x10   :  { %24 = vsyncpa [#allocation12], 0 }
  0x11   :  { %25 = vsyncpa [#allocation9], 0  ;;  %s36_s0 = sld [smem:[#allocation6]] }
  0x17   :  { %p37_p5 = scmp.eq.s32.totalorder %s36_s0, 4294967295 }
  0x19   :  { %s7310_s0 = smov (%p37_p5, %s36_s0), 0 }
  0x1a   :  { %p39_p6 = scmp.gt.s32.totalorder %s7310_s0, 0  ;;  %p5631_p7 = scmp.lt.s32.totalorder %s7310_s0, 255 }
  0x1c   :  { %s7312_s0 = smov (!%p39_p6, %s7310_s0), 0 }
  0x1d   :  { %s7314_s0 = smov (!%p5631_p7, %s7312_s0), 255 }
  0x1e   :  { %s43_s21 = scalar_lea.vmem %s7288_s2, %s7314_s0 }
  0x1f   :  { %v62_v0 = vld [vmem:[%s43_s21] sm:$0x1] }
  0x20   :  { %63 = vst [vmem:[#allocation2] sm:$0x1] %v62_v0 }
  0x21   :  { %89 = vsyncadd [#allocation3], 16  ;;  %s5636_s22 = sld [smem:[#allocation6 + $0x1]] }
  0x27   :  { %p91_p8 = scmp.eq.s32.totalorder %s5636_s22, 4294967295 }
  0x29   :  { %s7316_s22 = smov (%p91_p8, %s5636_s22), 0 }
  0x2a   :  { %p93_p9 = scmp.gt.s32.totalorder %s7316_s22, 0  ;;  %p5637_p10 = scmp.lt.s32.totalorder %s7316_s22, 255 }
  0x2c   :  { %s7318_s22 = smov (!%p93_p9, %s7316_s22), 0 }
  0x2d   :  { %s7320_s22 = smov (!%p5637_p10, %s7318_s22), 255 }
  0x2e   :  { %s97_s25 = scalar_lea.vmem %s7288_s2, %s7320_s22 }
  0x2f   :  { %v118_v1 = vld [vmem:[%s97_s25] sm:$0x1] }
  0x30   :  { %119 = vst [vmem:[#allocation2 + $0x1] sm:$0x1] %v118_v1 }
  0x31   :  { %145 = vsyncadd [#allocation3 + $0x1], 16  ;;  %s5642_s26 = sld [smem:[#allocation6 + $0x2]] }
  0x37   :  { %p147_p11 = scmp.eq.s32.totalorder %s5642_s26, 4294967295 }
  0x39   :  { %s7322_s26 = smov (%p147_p11, %s5642_s26), 0 }
  0x3a   :  { %p149_p12 = scmp.gt.s32.totalorder %s7322_s26, 0  ;;  %p5643_p13 = scmp.lt.s32.totalorder %s7322_s26, 255 }
  0x3c   :  { %s7324_s26 = smov (!%p149_p12, %s7322_s26), 0 }
  0x3d   :  { %s7326_s26 = smov (!%p5643_p13, %s7324_s26), 255 }
  0x3e   :  { %s153_s29 = scalar_lea.vmem %s7288_s2, %s7326_s26 }
  0x3f   :  { %v174_v2 = vld [vmem:[%s153_s29] sm:$0x1] }
  0x40   :  { %175 = vst [vmem:[#allocation2 + $0x2] sm:$0x1] %v174_v2 }
  0x41   :  { %201 = vsyncadd [#allocation3 + $0x2], 16  ;;  %s5648_s30 = sld [smem:[#allocation6 + $0x3]] }
  0x47   :  { %p203_p0 = scmp.eq.s32.totalorder %s5648_s30, 4294967295 }
  0x49   :  { %s7328_s30 = smov (%p203_p0, %s5648_s30), 0 }
  0x4a   :  { %p205_p1 = scmp.gt.s32.totalorder %s7328_s30, 0  ;;  %p5649_p2 = scmp.lt.s32.totalorder %s7328_s30, 255 }
  0x4c   :  { %s7330_s30 = smov (!%p205_p1, %s7328_s30), 0 }
  0x4d   :  { %s7332_s30 = smov (!%p5649_p2, %s7330_s30), 255 }
  0x4e   :  { %s209_s13 = scalar_lea.vmem %s7288_s2, %s7332_s30 }
  0x4f   :  { %v230_v3 = vld [vmem:[%s209_s13] sm:$0x1] }
  0x50   :  { %231 = vst [vmem:[#allocation2 + $0x3] sm:$0x1] %v230_v3 }
  0x51   :  { %257 = vsyncadd [#allocation3 + $0x3], 16  ;;  %s5654_s14 = sld [smem:[#allocation6 + $0x4]] }
  0x57   :  { %p259_p3 = scmp.eq.s32.totalorder %s5654_s14, 4294967295 }
  0x59   :  { %s7334_s14 = smov (%p259_p3, %s5654_s14), 0 }
  0x5a   :  { %p261_p4 = scmp.gt.s32.totalorder %s7334_s14, 0  ;;  %p5655_p5 = scmp.lt.s32.totalorder %s7334_s14, 255 }
  0x5c   :  { %s7336_s14 = smov (!%p261_p4, %s7334_s14), 0 }
  0x5d   :  { %s7338_s14 = smov (!%p5655_p5, %s7336_s14), 255 }
  0x5e   :  { %s265_s17 = scalar_lea.vmem %s7288_s2, %s7338_s14 }
  0x5f   :  { %v286_v4 = vld [vmem:[%s265_s17] sm:$0x1] }
  0x60   :  { %287 = vst [vmem:[#allocation2 + $0x4] sm:$0x1] %v286_v4 }
  0x61   :  { %313 = vsyncadd [#allocation3 + $0x4], 16  ;;  %s5660_s18 = sld [smem:[#allocation6 + $0x5]] }
  0x67   :  { %p315_p6 = scmp.eq.s32.totalorder %s5660_s18, 4294967295 }
  0x69   :  { %s7340_s18 = smov (%p315_p6, %s5660_s18), 0 }
  0x6a   :  { %p317_p7 = scmp.gt.s32.totalorder %s7340_s18, 0  ;;  %p5661_p8 = scmp.lt.s32.totalorder %s7340_s18, 255 }
  0x6c   :  { %s7342_s18 = smov (!%p317_p7, %s7340_s18), 0 }
  0x6d   :  { %s7344_s18 = smov (!%p5661_p8, %s7342_s18), 255 }
  0x6e   :  { %s321_s6 = scalar_lea.vmem %s7288_s2, %s7344_s18 }
  0x6f   :  { %v342_v5 = vld [vmem:[%s321_s6] sm:$0x1] }
  0x70   :  { %343 = vst [vmem:[#allocation2 + $0x5] sm:$0x1] %v342_v5 }
  0x71   :  { %369 = vsyncadd [#allocation3 + $0x5], 16  ;;  %s5666_s20 = sld [smem:[#allocation6 + $0x6]] }
  0x77   :  { %p371_p9 = scmp.eq.s32.totalorder %s5666_s20, 4294967295 }
  0x79   :  { %s7346_s20 = smov (%p371_p9, %s5666_s20), 0 }
  0x7a   :  { %p373_p10 = scmp.gt.s32.totalorder %s7346_s20, 0  ;;  %p5667_p11 = scmp.lt.s32.totalorder %s7346_s20, 255 }
  0x7c   :  { %s7348_s20 = smov (!%p373_p10, %s7346_s20), 0 }
  0x7d   :  { %s7350_s20 = smov (!%p5667_p11, %s7348_s20), 255 }
  0x7e   :  { %s377_s23 = scalar_lea.vmem %s7288_s2, %s7350_s20 }
  0x7f   :  { %v398_v6 = vld [vmem:[%s377_s23] sm:$0x1] }
  0x80   :  { %399 = vst [vmem:[#allocation2 + $0x6] sm:$0x1] %v398_v6 }
  0x81   :  { %425 = vsyncadd [#allocation3 + $0x6], 16  ;;  %s5672_s24 = sld [smem:[#allocation6 + $0x7]] }
  0x87   :  { %p427_p12 = scmp.eq.s32.totalorder %s5672_s24, 4294967295 }
  0x89   :  { %s7352_s24 = smov (%p427_p12, %s5672_s24), 0 }
  0x8a   :  { %p429_p13 = scmp.gt.s32.totalorder %s7352_s24, 0  ;;  %p5673_p0 = scmp.lt.s32.totalorder %s7352_s24, 255 }
  0x8c   :  { %s7354_s24 = smov (!%p429_p13, %s7352_s24), 0 }
  0x8d   :  { %s7356_s24 = smov (!%p5673_p0, %s7354_s24), 255 }
  0x8e   :  { %s433_s27 = scalar_lea.vmem %s7288_s2, %s7356_s24 }
  0x8f   :  { %v454_v7 = vld [vmem:[%s433_s27] sm:$0x1] }
  0x90   :  { %455 = vst [vmem:[#allocation2 + $0x7] sm:$0x1] %v454_v7 }
  0x91   :  { %481 = vsyncadd [#allocation3 + $0x7], 16  ;;  %v6758_v8 = vmov 0.0   ;;  %s6760_s28 = smov 0  }
  0x92 LB: > { %p489_p1 = scmp.lt.s32.totalorder %s6640_s28, 0  ;;  %s490_s29 = ssub.s32 0, %s6640_s28  ;;  %s6640_s28 = sphi %s6760_s28, %s7299_s28   ;;  %v6636_v8 = vphi %v6758_v8, %v7298_v8  }
  0x93   : > { %s5678_s30 = smin.u32 %s6640_s28, %s490_s29 }
  0x94   : > { %s492_s11 = sand.u32 1, %s5678_s30  }
  0x95   : > { %s493_s12 = ssub.s32 0, %s492_s11 }
  0x96   : > { %s7358_s12 = smov (!%p489_p1, %s493_s12), %s492_s11 }
  0x97   : > { %p5680_p2 = scmp.lt.s32.totalorder %s7358_s12, 0  ;;  %s499_s13 = sadd.s32 2, %s7358_s12 }
  0x99   : > { %s7360_s13 = smov (!%p5680_p2, %s499_s13), %s7358_s12 }
  0x9a   : > { %s5681_s14 = sshll.u32 %s7360_s13, 3 }
  0x9b   : > { %s502_s15 = scalar_lea.sflag [#allocation3], %s5681_s14 }
  0x9c   : > { %6564 = dma.done.wait %s502_s15, 16 }
  0x9d   : > { %6565 = vsyncadd %s502_s15, 4294967280  ;;  %s4590_s16 = scalar_lea.sflag %s502_s15, 1 [#allocation3] }
  0x9e   : > { %6566 = dma.done.wait %s4590_s16, 16 }
  0x9f   : > { %6567 = vsyncadd %s4590_s16, 4294967280  ;;  %s4593_s17 = scalar_lea.sflag %s502_s15, 2 [#allocation3] }
  0xa0   : > { %6568 = dma.done.wait %s4593_s17, 16 }
  0xa1   : > { %6569 = vsyncadd %s4593_s17, 4294967280  ;;  %s4596_s18 = scalar_lea.sflag %s502_s15, 3 [#allocation3] }
  0xa2   : > { %6570 = dma.done.wait %s4596_s18, 16 }
  0xa3   : > { %6571 = vsyncadd %s4596_s18, 4294967280  ;;  %s4599_s19 = scalar_lea.sflag %s502_s15, 4 [#allocation3] }
  0xa4   : > { %6572 = dma.done.wait %s4599_s19, 16 }
  0xa5   : > { %6573 = vsyncadd %s4599_s19, 4294967280  ;;  %s4602_s0 = scalar_lea.sflag %s502_s15, 5 [#allocation3] }
  0xa6   : > { %6574 = dma.done.wait %s4602_s0, 16 }
  0xa7   : > { %6575 = vsyncadd %s4602_s0, 4294967280  ;;  %s4605_s6 = scalar_lea.sflag %s502_s15, 6 [#allocation3] }
  0xa8   : > { %6576 = dma.done.wait %s4605_s6, 16 }
  0xa9   : > { %6577 = vsyncadd %s4605_s6, 4294967280  ;;  %s4608_s20 = scalar_lea.sflag %s502_s15, 7 [#allocation3] }
  0xaa   : > { %6578 = dma.done.wait %s4608_s20, 16 }
  0xab   : > { %6579 = vsyncadd %s4608_s20, 4294967280  ;;  %s534_s21 = sadd.s32 1, %s6640_s28  }
  0xac   : > { %p6779_p3 = scmp.ge.s32.totalorder %s534_s21, 3 }
  0xad   : > { %s539_s23 = ssub.s32 (!%p6779_p3), 1, %s7360_s13  ;;  %s6213_s24 = sshll.u32 (!%p6779_p3), %s6640_s28, 3 }
  0xae   : > { %538 = sbr.rel (%p6779_p3) target bundleno = 338 (0x152), region = 272  ;;  %s6787_s25 = sadd.s32 (!%p6779_p3), 8, %s6213_s24 }
  0xaf   : > { %s5696_s26 = sshll.u32 (!%p6779_p3), %s539_s23, 3  ;;  %p541_p4 = scmp.lt.s32.totalorder (!%p6779_p3), %s6787_s25, 23 }
  0xb0   : > { %s6794_s15 = scalar_lea.vmem (!%p6779_p3), [#allocation2], %s5696_s26  ;;  %s6797_s16 = scalar_lea.sflag (!%p6779_p3), [#allocation3], %s5696_s26 }
  0xb3   : > { %s542_s27 = scalar_select %p541_p4, %s6787_s25, 23 }
  0xb5   : > { %s543_s29 = sld [smem:[#allocation6 + %s542_s27]] }
  0xbb   : > { %p544_p5 = scmp.eq.s32.totalorder %s543_s29, 4294967295 }
  0xbd   : > { %s7362_s29 = smov (%p544_p5, %s543_s29), 0 }
  0xbe   : > { %p546_p6 = scmp.gt.s32.totalorder %s7362_s29, 0  ;;  %p5691_p7 = scmp.lt.s32.totalorder %s7362_s29, 255 }
  0xc0   : > { %s7364_s29 = smov (!%p546_p6, %s7362_s29), 0 }
  0xc1   : > { %s7366_s29 = smov (!%p5691_p7, %s7364_s29), 255 }
  0xc2   : > { %s551_s12 = scalar_lea.vmem %s7288_s2, %s7366_s29 }
  0xc3   : > { %v572_v9 = vld [vmem:[%s551_s12] sm:$0x1] }
  0xc4   : > { %573 = vst [vmem:[%s6794_s15] sm:$0x1] %v572_v9 }
  0xc5   : > { %599 = vsyncadd %s6797_s16, 16  ;;  %s600_s17 = sadd.s32 1, %s6787_s25  ;;  %s4622_s18 = scalar_lea.sflag %s6797_s16, 1 [#allocation3] }
  0xc6   : > { %p601_p8 = scmp.lt.s32.totalorder %s600_s17, 23 }
  0xc8   : > { %s7368_s17 = smov (!%p601_p8, %s600_s17), 23 }
  0xc9   : > { %s603_s19 = sld [smem:[#allocation6 + %s7368_s17]] }
  0xcf   : > { %p604_p9 = scmp.eq.s32.totalorder %s603_s19, 4294967295 }
  0xd1   : > { %s7370_s19 = smov (%p604_p9, %s603_s19), 0 }
  0xd2   : > { %p606_p10 = scmp.gt.s32.totalorder %s7370_s19, 0  ;;  %p5697_p11 = scmp.lt.s32.totalorder %s7370_s19, 255 }
  0xd4   : > { %s7372_s19 = smov (!%p606_p10, %s7370_s19), 0 }
  0xd5   : > { %s7374_s19 = smov (!%p5697_p11, %s7372_s19), 255 }
  0xd6   : > { %s611_s20 = scalar_lea.vmem %s7288_s2, %s7374_s19 }
  0xd7   : > { %v632_v10 = vld [vmem:[%s611_s20] sm:$0x1] }
  0xd8   : > { %5705 = vst [vmem:[%s6794_s15 + $0x1] sm:$0x1] %v632_v10 }
  0xd9   : > { %659 = vsyncadd %s4622_s18, 16  ;;  %s660_s23 = sadd.s32 2, %s6787_s25  ;;  %s4632_s24 = scalar_lea.sflag %s6797_s16, 2 [#allocation3] }
  0xda   : > { %p661_p12 = scmp.lt.s32.totalorder %s660_s23, 23 }
  0xdc   : > { %s7376_s23 = smov (!%p661_p12, %s660_s23), 23 }
  0xdd   : > { %s663_s26 = sld [smem:[#allocation6 + %s7376_s23]] }
  0xe3   : > { %p664_p13 = scmp.eq.s32.totalorder %s663_s26, 4294967295 }
  0xe5   : > { %s7378_s26 = smov (%p664_p13, %s663_s26), 0 }
  0xe6   : > { %p666_p0 = scmp.gt.s32.totalorder %s7378_s26, 0  ;;  %p5706_p1 = scmp.lt.s32.totalorder %s7378_s26, 255 }
  0xe8   : > { %s7380_s26 = smov (!%p666_p0, %s7378_s26), 0 }
  0xe9   : > { %s7382_s26 = smov (!%p5706_p1, %s7380_s26), 255 }
  0xea   : > { %s671_s30 = scalar_lea.vmem %s7288_s2, %s7382_s26 }
  0xeb   : > { %v692_v11 = vld [vmem:[%s671_s30] sm:$0x1] }
  0xec   : > { %5714 = vst [vmem:[%s6794_s15 + $0x2] sm:$0x1] %v692_v11 }
  0xed   : > { %719 = vsyncadd %s4632_s24, 16  ;;  %s720_s11 = sadd.s32 3, %s6787_s25  ;;  %s4642_s12 = scalar_lea.sflag %s6797_s16, 3 [#allocation3] }
  0xee   : > { %p721_p2 = scmp.lt.s32.totalorder %s720_s11, 23 }
  0xf0   : > { %s7384_s11 = smov (!%p721_p2, %s720_s11), 23 }
  0xf1   : > { %s723_s17 = sld [smem:[#allocation6 + %s7384_s11]] }
  0xf7   : > { %p724_p4 = scmp.eq.s32.totalorder %s723_s17, 4294967295 }
  0xf9   : > { %s7386_s17 = smov (%p724_p4, %s723_s17), 0 }
  0xfa   : > { %p726_p5 = scmp.gt.s32.totalorder %s7386_s17, 0  ;;  %p5715_p6 = scmp.lt.s32.totalorder %s7386_s17, 255 }
  0xfc   : > { %s7388_s17 = smov (!%p726_p5, %s7386_s17), 0 }
  0xfd   : > { %s7390_s17 = smov (!%p5715_p6, %s7388_s17), 255 }
  0xfe   : > { %s731_s0 = scalar_lea.vmem %s7288_s2, %s7390_s17 }
  0xff   : > { %v752_v12 = vld [vmem:[%s731_s0] sm:$0x1] }
 0x100   : > { %5723 = vst [vmem:[%s6794_s15 + $0x3] sm:$0x1] %v752_v12 }
 0x101   : > { %779 = vsyncadd %s4642_s12, 16  ;;  %s780_s6 = sadd.s32 4, %s6787_s25  ;;  %s4652_s20 = scalar_lea.sflag %s6797_s16, 4 [#allocation3] }
 0x102   : > { %p781_p7 = scmp.lt.s32.totalorder %s780_s6, 23 }
 0x104   : > { %s7392_s6 = smov (!%p781_p7, %s780_s6), 23 }
 0x105   : > { %s783_s23 = sld [smem:[#allocation6 + %s7392_s6]] }
 0x10b   : > { %p784_p8 = scmp.eq.s32.totalorder %s783_s23, 4294967295 }
 0x10d   : > { %s7394_s23 = smov (%p784_p8, %s783_s23), 0 }
 0x10e   : > { %p786_p9 = scmp.gt.s32.totalorder %s7394_s23, 0  ;;  %p5724_p10 = scmp.lt.s32.totalorder %s7394_s23, 255 }
 0x110   : > { %s7396_s23 = smov (!%p786_p9, %s7394_s23), 0 }
 0x111   : > { %s7398_s23 = smov (!%p5724_p10, %s7396_s23), 255 }
 0x112   : > { %s791_s27 = scalar_lea.vmem %s7288_s2, %s7398_s23 }
 0x113   : > { %v812_v13 = vld [vmem:[%s791_s27] sm:$0x1] }
 0x114   : > { %5732 = vst [vmem:[%s6794_s15 + $0x4] sm:$0x1] %v812_v13 }
 0x115   : > { %839 = vsyncadd %s4652_s20, 16  ;;  %s840_s29 = sadd.s32 5, %s6787_s25  ;;  %s4662_s30 = scalar_lea.sflag %s6797_s16, 5 [#allocation3] }
 0x116   : > { %p841_p11 = scmp.lt.s32.totalorder %s840_s29, 23 }
 0x118   : > { %s7400_s29 = smov (!%p841_p11, %s840_s29), 23 }
 0x119   : > { %s843_s11 = sld [smem:[#allocation6 + %s7400_s29]] }
 0x11f   : > { %p844_p12 = scmp.eq.s32.totalorder %s843_s11, 4294967295 }
 0x121   : > { %s7402_s11 = smov (%p844_p12, %s843_s11), 0 }
 0x122   : > { %p846_p13 = scmp.gt.s32.totalorder %s7402_s11, 0  ;;  %p5733_p0 = scmp.lt.s32.totalorder %s7402_s11, 255 }
 0x124   : > { %s7404_s11 = smov (!%p846_p13, %s7402_s11), 0 }
 0x125   : > { %s7406_s11 = smov (!%p5733_p0, %s7404_s11), 255 }
 0x126   : > { %s851_s18 = scalar_lea.vmem %s7288_s2, %s7406_s11 }
 0x127   : > { %v872_v14 = vld [vmem:[%s851_s18] sm:$0x1] }
 0x128   : > { %5741 = vst [vmem:[%s6794_s15 + $0x5] sm:$0x1] %v872_v14 }
 0x129   : > { %899 = vsyncadd %s4662_s30, 16  ;;  %s900_s19 = sadd.s32 6, %s6787_s25  ;;  %s4672_s0 = scalar_lea.sflag %s6797_s16, 6 [#allocation3] }
 0x12a   : > { %p901_p1 = scmp.lt.s32.totalorder %s900_s19, 23 }
 0x12c   : > { %s7408_s19 = smov (!%p901_p1, %s900_s19), 23 }
 0x12d   : > { %s903_s6 = sld [smem:[#allocation6 + %s7408_s19]] }
 0x133   : > { %p904_p2 = scmp.eq.s32.totalorder %s903_s6, 4294967295 }
 0x135   : > { %s7410_s6 = smov (%p904_p2, %s903_s6), 0 }
 0x136   : > { %p906_p4 = scmp.gt.s32.totalorder %s7410_s6, 0  ;;  %p5742_p5 = scmp.lt.s32.totalorder %s7410_s6, 255 }
 0x138   : > { %s7412_s6 = smov (!%p906_p4, %s7410_s6), 0 }
 0x139   : > { %s7414_s6 = smov (!%p5742_p5, %s7412_s6), 255 }
 0x13a   : > { %s911_s24 = scalar_lea.vmem %s7288_s2, %s7414_s6 }
 0x13b   : > { %v932_v15 = vld [vmem:[%s911_s24] sm:$0x1] }
 0x13c   : > { %5750 = vst [vmem:[%s6794_s15 + $0x6] sm:$0x1] %v932_v15 }
 0x13d   : > { %959 = vsyncadd %s4672_s0, 16  ;;  %s960_s26 = sadd.s32 7, %s6787_s25  ;;  %s4682_s27 = scalar_lea.sflag %s6797_s16, 7 [#allocation3] }
 0x13e   : > { %p961_p6 = scmp.lt.s32.totalorder %s960_s26, 23 }
 0x140   : > { %s7416_s26 = smov (!%p961_p6, %s960_s26), 23 }
 0x141   : > { %s963_s29 = sld [smem:[#allocation6 + %s7416_s26]] }
 0x147   : > { %p964_p7 = scmp.eq.s32.totalorder %s963_s29, 4294967295 }
 0x149   : > { %s7418_s29 = smov (%p964_p7, %s963_s29), 0 }
 0x14a   : > { %p966_p8 = scmp.gt.s32.totalorder %s7418_s29, 0  ;;  %p5751_p9 = scmp.lt.s32.totalorder %s7418_s29, 255 }
 0x14c   : > { %s7420_s29 = smov (!%p966_p8, %s7418_s29), 0 }
 0x14d   : > { %s7422_s29 = smov (!%p5751_p9, %s7420_s29), 255 }
 0x14e   : > { %s971_s12 = scalar_lea.vmem %s7288_s2, %s7422_s29 }
 0x14f   : > { %v992_v16 = vld [vmem:[%s971_s12] sm:$0x1] }
 0x150   : > { %5759 = vst [vmem:[%s6794_s15 + $0x7] sm:$0x1] %v992_v16 }
 0x151   : > { %1019 = vsyncadd %s4682_s27, 16 }
 0x152 PF: > { %s5760_s25 = sshll.u32 %s6640_s28, 3  ;;  %v1023_v17 = vlaneseq  ;;  %s1020_s16 = scalar_lea.vmem [#allocation2], %s5681_s14  ;;  %vm1031_vm0 = vcmask 261120   ;;  %vm1041_vm2 = vcmask (%p6779_p3), 253952  }
 0x153   : > { %v1025_v18 = vstv %s5760_s25  ;;  %s7299_s28 = smov %s534_s21  ;;  %s5761_s13 = sld [smem:[#allocation6 + $0x80]] (%p6779_p3) }
 0x154   : > { %v6843_v19 = vshrl.u32 %v1023_v17, 7 }
 0x156   : > { %v1026_v21 = vadd.s32 %v1025_v18, %v6843_v19 }
 0x157   : > { %v1021_v20 = vld [vmem:[%s1020_s16] sm:$0xff] }
 0x158   : > { %vm1027_vm1 = vcmp.lt.s32.totalorder %v1026_v21, 24 }
 0x159   : > { %v1030_v22 = vsel %vm1027_vm1, %v1021_v20, 0.0  ;;  %p1044_p10 = scmp.eq.s32.totalorder (%p6779_p3), %s5761_s13, 4294967295 }
 0x15a   : > { %v1032_v23 = vsel %vm1031_vm0, %v1030_v22, 0.0 }
 0x15b   : > { %v1033_v24 = vrot.slane %v1032_v23, 4 }
 0x15d   : > { %v1034_v25 = vadd.f32 %v1033_v24, %v1032_v23 }
 0x15f   : > { %v1035_v26 = vrot.slane %v1034_v25, 2 }
 0x161   : > { %v1036_v27 = vadd.f32 %v1035_v26, %v1034_v25 }
 0x163   : > { %v1037_v28 = vrot.slane %v1036_v27, 1 }
 0x165   : > { %v1038_v29 = vadd.f32 %v1037_v28, %v1036_v27  ;;  %486 = sbr.rel (!%p6779_p3) target bundleno = 146 (0x92), region = 2865 }
 0x167   : > { %v1039_v30 = vadd.f32 %v6636_v8, %v1038_v29  }
 0x169   : > { %v7298_v8 = vmov %v1039_v30  ;;  %v1040_v31 = vmul.f32 (%p6779_p3), 0.041666668, %v1039_v30 }
 0x16a   :  { %s7424_s13 = smov (%p1044_p10, %s5761_s13), 0 }
 0x16b   :  { %1042 = vst.msk [vmem:[#allocation4] sm:$0x1] %vm1041_vm2, %v1040_v31  ;;  %p1046_p11 = scmp.gt.s32.totalorder %s7424_s13, 0  ;;  %p5762_p12 = scmp.lt.s32.totalorder %s7424_s13, 255 }
 0x16d   :  { %s7426_s13 = smov (!%p1046_p11, %s7424_s13), 0 }
 0x16e   :  { %s7428_s13 = smov (!%p5762_p12, %s7426_s13), 255 }
 0x16f   :  { %s1050_s28 = scalar_lea.vmem %s7288_s2, %s7428_s13 }
 0x170   :  { %v1069_v32 = vld [vmem:[%s1050_s28] sm:$0x1] }
 0x171   :  { %1070 = vst [vmem:[#allocation2] sm:$0x1] %v1069_v32 }
 0x172   :  { %1096 = vsyncadd [#allocation3], 16  ;;  %s5767_s21 = sld [smem:[#allocation6 + $0x81]] }
 0x178   :  { %p1098_p3 = scmp.eq.s32.totalorder %s5767_s21, 4294967295 }
 0x17a   :  { %s7430_s21 = smov (%p1098_p3, %s5767_s21), 0 }
 0x17b   :  { %p1100_p13 = scmp.gt.s32.totalorder %s7430_s21, 0  ;;  %p5768_p0 = scmp.lt.s32.totalorder %s7430_s21, 255 }
 0x17d   :  { %s7432_s21 = smov (!%p1100_p13, %s7430_s21), 0 }
 0x17e   :  { %s7434_s21 = smov (!%p5768_p0, %s7432_s21), 255 }
 0x17f   :  { %s1104_s18 = scalar_lea.vmem %s7288_s2, %s7434_s21 }
 0x180   :  { %v1123_v33 = vld [vmem:[%s1104_s18] sm:$0x1] }
 0x181   :  { %1124 = vst [vmem:[#allocation2 + $0x1] sm:$0x1] %v1123_v33 }
 0x182   :  { %1150 = vsyncadd [#allocation3 + $0x1], 16  ;;  %s5773_s19 = sld [smem:[#allocation6 + $0x82]] }
 0x188   :  { %p1152_p1 = scmp.eq.s32.totalorder %s5773_s19, 4294967295 }
 0x18a   :  { %s7436_s19 = smov (%p1152_p1, %s5773_s19), 0 }
 0x18b   :  { %p1154_p2 = scmp.gt.s32.totalorder %s7436_s19, 0  ;;  %p5774_p4 = scmp.lt.s32.totalorder %s7436_s19, 255 }
 0x18d   :  { %s7438_s19 = smov (!%p1154_p2, %s7436_s19), 0 }
 0x18e   :  { %s7440_s19 = smov (!%p5774_p4, %s7438_s19), 255 }
 0x18f   :  { %s1158_s20 = scalar_lea.vmem %s7288_s2, %s7440_s19 }
 0x190   :  { %v1177_v34 = vld [vmem:[%s1158_s20] sm:$0x1] }
 0x191   :  { %1178 = vst [vmem:[#allocation2 + $0x2] sm:$0x1] %v1177_v34 }
 0x192   :  { %1204 = vsyncadd [#allocation3 + $0x2], 16  ;;  %s5779_s23 = sld [smem:[#allocation6 + $0x83]] }
 0x198   :  { %p1206_p5 = scmp.eq.s32.totalorder %s5779_s23, 4294967295 }
 0x19a   :  { %s7442_s23 = smov (%p1206_p5, %s5779_s23), 0 }
 0x19b   :  { %p1208_p6 = scmp.gt.s32.totalorder %s7442_s23, 0  ;;  %p5780_p7 = scmp.lt.s32.totalorder %s7442_s23, 255 }
 0x19d   :  { %s7444_s23 = smov (!%p1208_p6, %s7442_s23), 0 }
 0x19e   :  { %s7446_s23 = smov (!%p5780_p7, %s7444_s23), 255 }
 0x19f   :  { %s1212_s27 = scalar_lea.vmem %s7288_s2, %s7446_s23 }
 0x1a0   :  { %v1231_v35 = vld [vmem:[%s1212_s27] sm:$0x1] }
 0x1a1   :  { %1232 = vst [vmem:[#allocation2 + $0x3] sm:$0x1] %v1231_v35 }
 0x1a2   :  { %1258 = vsyncadd [#allocation3 + $0x3], 16  ;;  %s5785_s29 = sld [smem:[#allocation6 + $0x84]] }
 0x1a8   :  { %p1260_p8 = scmp.eq.s32.totalorder %s5785_s29, 4294967295 }
 0x1aa   :  { %s7448_s29 = smov (%p1260_p8, %s5785_s29), 0 }
 0x1ab   :  { %p1262_p9 = scmp.gt.s32.totalorder %s7448_s29, 0  ;;  %p5786_p10 = scmp.lt.s32.totalorder %s7448_s29, 255 }
 0x1ad   :  { %s7450_s29 = smov (!%p1262_p9, %s7448_s29), 0 }
 0x1ae   :  { %s7452_s29 = smov (!%p5786_p10, %s7450_s29), 255 }
 0x1af   :  { %s1266_s12 = scalar_lea.vmem %s7288_s2, %s7452_s29 }
 0x1b0   :  { %v1285_v36 = vld [vmem:[%s1266_s12] sm:$0x1] }
 0x1b1   :  { %1286 = vst [vmem:[#allocation2 + $0x4] sm:$0x1] %v1285_v36 }
 0x1b2   :  { %1312 = vsyncadd [#allocation3 + $0x4], 16  ;;  %s5791_s25 = sld [smem:[#allocation6 + $0x85]] }
 0x1b8   :  { %p1314_p11 = scmp.eq.s32.totalorder %s5791_s25, 4294967295 }
 0x1ba   :  { %s7454_s25 = smov (%p1314_p11, %s5791_s25), 0 }
 0x1bb   :  { %p1316_p12 = scmp.gt.s32.totalorder %s7454_s25, 0  ;;  %p5792_p3 = scmp.lt.s32.totalorder %s7454_s25, 255 }
 0x1bd   :  { %s7456_s25 = smov (!%p1316_p12, %s7454_s25), 0 }
 0x1be   :  { %s7458_s25 = smov (!%p5792_p3, %s7456_s25), 255 }
 0x1bf   :  { %s1320_s14 = scalar_lea.vmem %s7288_s2, %s7458_s25 }
 0x1c0   :  { %v1339_v37 = vld [vmem:[%s1320_s14] sm:$0x1] }
 0x1c1   :  { %1340 = vst [vmem:[#allocation2 + $0x5] sm:$0x1] %v1339_v37 }
 0x1c2   :  { %1366 = vsyncadd [#allocation3 + $0x5], 16  ;;  %s5797_s15 = sld [smem:[#allocation6 + $0x86]] }
 0x1c8   :  { %p1368_p13 = scmp.eq.s32.totalorder %s5797_s15, 4294967295 }
 0x1ca   :  { %s7460_s15 = smov (%p1368_p13, %s5797_s15), 0 }
 0x1cb   :  { %p1370_p0 = scmp.gt.s32.totalorder %s7460_s15, 0  ;;  %p5798_p1 = scmp.lt.s32.totalorder %s7460_s15, 255 }
 0x1cd   :  { %s7462_s15 = smov (!%p1370_p0, %s7460_s15), 0 }
 0x1ce   :  { %s7464_s15 = smov (!%p5798_p1, %s7462_s15), 255 }
 0x1cf   :  { %s1374_s22 = scalar_lea.vmem %s7288_s2, %s7464_s15 }
 0x1d0   :  { %v1393_v38 = vld [vmem:[%s1374_s22] sm:$0x1] }
 0x1d1   :  { %1394 = vst [vmem:[#allocation2 + $0x6] sm:$0x1] %v1393_v38 }
 0x1d2   :  { %1420 = vsyncadd [#allocation3 + $0x6], 16  ;;  %s5803_s17 = sld [smem:[#allocation6 + $0x87]] }
 0x1d8   :  { %p1422_p2 = scmp.eq.s32.totalorder %s5803_s17, 4294967295 }
 0x1da   :  { %s7466_s17 = smov (%p1422_p2, %s5803_s17), 0 }
 0x1db   :  { %p1424_p4 = scmp.gt.s32.totalorder %s7466_s17, 0  ;;  %p5804_p5 = scmp.lt.s32.totalorder %s7466_s17, 255 }
 0x1dd   :  { %s7468_s17 = smov (!%p1424_p4, %s7466_s17), 0 }
 0x1de   :  { %s7470_s17 = smov (!%p5804_p5, %s7468_s17), 255 }
 0x1df   :  { %s1428_s0 = scalar_lea.vmem %s7288_s2, %s7470_s17 }
 0x1e0   :  { %v1447_v39 = vld [vmem:[%s1428_s0] sm:$0x1] }
 0x1e1   :  { %1448 = vst [vmem:[#allocation2 + $0x7] sm:$0x1] %v1447_v39 }
 0x1e2   :  { %1474 = vsyncadd [#allocation3 + $0x7], 16  ;;  %v6883_v40 = vmov 0.0   ;;  %s6885_s6 = smov 0  }
 0x1e3 LB: > { %p1482_p6 = scmp.lt.s32.totalorder %s6648_s6, 0  ;;  %s1483_s20 = ssub.s32 0, %s6648_s6  ;;  %s6648_s6 = sphi %s6885_s6, %s7302_s6   ;;  %v6644_v40 = vphi %v6883_v40, %v7301_v40  }
 0x1e4   : > { %s5809_s23 = smin.u32 %s6648_s6, %s1483_s20 }
 0x1e5   : > { %s1485_s24 = sand.u32 1, %s5809_s23  }
 0x1e6   : > { %s1486_s26 = ssub.s32 0, %s1485_s24 }
 0x1e7   : > { %s7472_s26 = smov (!%p1482_p6, %s1486_s26), %s1485_s24 }
 0x1e8   : > { %p5811_p7 = scmp.lt.s32.totalorder %s7472_s26, 0  ;;  %s1492_s27 = sadd.s32 2, %s7472_s26 }
 0x1ea   : > { %s7474_s27 = smov (!%p5811_p7, %s1492_s27), %s7472_s26 }
 0x1eb   : > { %s5812_s29 = sshll.u32 %s7474_s27, 3 }
 0x1ec   : > { %s1495_s30 = scalar_lea.sflag [#allocation3], %s5812_s29 }
 0x1ed   : > { %6580 = dma.done.wait %s1495_s30, 16 }
 0x1ee   : > { %6581 = vsyncadd %s1495_s30, 4294967280  ;;  %s4723_s11 = scalar_lea.sflag %s1495_s30, 1 [#allocation3] }
 0x1ef   : > { %6582 = dma.done.wait %s4723_s11, 16 }
 0x1f0   : > { %6583 = vsyncadd %s4723_s11, 4294967280  ;;  %s4726_s12 = scalar_lea.sflag %s1495_s30, 2 [#allocation3] }
 0x1f1   : > { %6584 = dma.done.wait %s4726_s12, 16 }
 0x1f2   : > { %6585 = vsyncadd %s4726_s12, 4294967280  ;;  %s4729_s25 = scalar_lea.sflag %s1495_s30, 3 [#allocation3] }
 0x1f3   : > { %6586 = dma.done.wait %s4729_s25, 16 }
 0x1f4   : > { %6587 = vsyncadd %s4729_s25, 4294967280  ;;  %s4732_s16 = scalar_lea.sflag %s1495_s30, 4 [#allocation3] }
 0x1f5   : > { %6588 = dma.done.wait %s4732_s16, 16 }
 0x1f6   : > { %6589 = vsyncadd %s4732_s16, 4294967280  ;;  %s4735_s13 = scalar_lea.sflag %s1495_s30, 5 [#allocation3] }
 0x1f7   : > { %6590 = dma.done.wait %s4735_s13, 16 }
 0x1f8   : > { %6591 = vsyncadd %s4735_s13, 4294967280  ;;  %s4738_s14 = scalar_lea.sflag %s1495_s30, 6 [#allocation3] }
 0x1f9   : > { %6592 = dma.done.wait %s4738_s14, 16 }
 0x1fa   : > { %6593 = vsyncadd %s4738_s14, 4294967280  ;;  %s4741_s15 = scalar_lea.sflag %s1495_s30, 7 [#allocation3] }
 0x1fb   : > { %6594 = dma.done.wait %s4741_s15, 16 }
 0x1fc   : > { %6595 = vsyncadd %s4741_s15, 4294967280  ;;  %s1527_s28 = sadd.s32 1, %s6648_s6  }
 0x1fd   : > { %p6904_p8 = scmp.ge.s32.totalorder %s1527_s28, 3 }
 0x1fe   : > { %s1532_s22 = ssub.s32 (!%p6904_p8), 1, %s7474_s27  ;;  %s6247_s17 = sshll.u32 (!%p6904_p8), %s6648_s6, 3 }
 0x1ff   : > { %1531 = sbr.rel (%p6904_p8) target bundleno = 707 (0x2c3), region = 763  ;;  %s6912_s18 = sadd.s32 (!%p6904_p8), 8, %s6247_s17 }
 0x200   : > { %s5828_s19 = sshll.u32 (!%p6904_p8), %s1532_s22, 3  ;;  %p1534_p9 = scmp.lt.s32.totalorder (!%p6904_p8), %s6912_s18, 23 }
 0x201   : > { %s6919_s13 = scalar_lea.vmem (!%p6904_p8), [#allocation2], %s5828_s19  ;;  %s6922_s14 = scalar_lea.sflag (!%p6904_p8), [#allocation3], %s5828_s19 }
 0x204   : > { %s1535_s0 = scalar_select %p1534_p9, %s6912_s18, 23 }
 0x206   : > { %s1536_s20 = sshra.s32 %s1535_s0, 7  ;;  %s1541_s23 = sand.u32 127, %s1535_s0 }
 0x207   : > { %s6249_s24 = sshll.u32 %s1536_s20, 7 }
 0x208   : > { %s6250_s26 = sadd.s32 128, %s6249_s24 }
 0x209   : > { %s1542_s30 = sadd.s32 %s6250_s26, %s1541_s23 }
 0x20a   : > { %s1543_s11 = sld [smem:[#allocation6 + %s1542_s30]] }
 0x210   : > { %p1544_p10 = scmp.eq.s32.totalorder %s1543_s11, 4294967295 }
 0x212   : > { %s7476_s11 = smov (%p1544_p10, %s1543_s11), 0 }
 0x213   : > { %p1546_p11 = scmp.gt.s32.totalorder %s7476_s11, 0  ;;  %p5823_p12 = scmp.lt.s32.totalorder %s7476_s11, 255 }
 0x215   : > { %s7478_s11 = smov (!%p1546_p11, %s7476_s11), 0 }
 0x216   : > { %s7480_s11 = smov (!%p5823_p12, %s7478_s11), 255 }
 0x217   : > { %s1551_s16 = scalar_lea.vmem %s7288_s2, %s7480_s11 }
 0x218   : > { %v1572_v41 = vld [vmem:[%s1551_s16] sm:$0x1] }
 0x219   : > { %1573 = vst [vmem:[%s6919_s13] sm:$0x1] %v1572_v41 }
 0x21a   : > { %1599 = vsyncadd %s6922_s14, 16  ;;  %s1600_s15 = sadd.s32 1, %s6912_s18  ;;  %s4755_s22 = scalar_lea.sflag %s6922_s14, 1 [#allocation3] }
 0x21b   : > { %p1601_p3 = scmp.lt.s32.totalorder %s1600_s15, 23 }
 0x21d   : > { %s7482_s15 = smov (!%p1601_p3, %s1600_s15), 23 }
 0x21e   : > { %s1603_s17 = sshra.s32 %s7482_s15, 7  ;;  %s1608_s0 = sand.u32 127, %s7482_s15 }
 0x21f   : > { %s6253_s20 = sshll.u32 %s1603_s17, 7 }
 0x220   : > { %s6254_s23 = sadd.s32 128, %s6253_s20 }
 0x221   : > { %s1609_s24 = sadd.s32 %s6254_s23, %s1608_s0 }
 0x222   : > { %s1610_s26 = sld [smem:[#allocation6 + %s1609_s24]] }
 0x228   : > { %p1611_p13 = scmp.eq.s32.totalorder %s1610_s26, 4294967295 }
 0x22a   : > { %s7484_s26 = smov (%p1611_p13, %s1610_s26), 0 }
 0x22b   : > { %p1613_p0 = scmp.gt.s32.totalorder %s7484_s26, 0  ;;  %p5830_p1 = scmp.lt.s32.totalorder %s7484_s26, 255 }
 0x22d   : > { %s7486_s26 = smov (!%p1613_p0, %s7484_s26), 0 }
 0x22e   : > { %s7488_s26 = smov (!%p5830_p1, %s7486_s26), 255 }
 0x22f   : > { %s1618_s11 = scalar_lea.vmem %s7288_s2, %s7488_s26 }
 0x230   : > { %v1639_v42 = vld [vmem:[%s1618_s11] sm:$0x1] }
 0x231   : > { %5838 = vst [vmem:[%s6919_s13 + $0x1] sm:$0x1] %v1639_v42 }
 0x232   : > { %1666 = vsyncadd %s4755_s22, 16  ;;  %s1667_s12 = sadd.s32 2, %s6912_s18  ;;  %s4765_s25 = scalar_lea.sflag %s6922_s14, 2 [#allocation3] }
 0x233   : > { %p1668_p2 = scmp.lt.s32.totalorder %s1667_s12, 23 }
 0x235   : > { %s7490_s12 = smov (!%p1668_p2, %s1667_s12), 23 }
 0x236   : > { %s1670_s16 = sshra.s32 %s7490_s12, 7  ;;  %s1675_s15 = sand.u32 127, %s7490_s12 }
 0x237   : > { %s6257_s17 = sshll.u32 %s1670_s16, 7 }
 0x238   : > { %s6258_s0 = sadd.s32 128, %s6257_s17 }
 0x239   : > { %s1676_s20 = sadd.s32 %s6258_s0, %s1675_s15 }
 0x23a   : > { %s1677_s23 = sld [smem:[#allocation6 + %s1676_s20]] }
 0x240   : > { %p1678_p4 = scmp.eq.s32.totalorder %s1677_s23, 4294967295 }
 0x242   : > { %s7492_s23 = smov (%p1678_p4, %s1677_s23), 0 }
 0x243   : > { %p1680_p5 = scmp.gt.s32.totalorder %s7492_s23, 0  ;;  %p5840_p6 = scmp.lt.s32.totalorder %s7492_s23, 255 }
 0x245   : > { %s7494_s23 = smov (!%p1680_p5, %s7492_s23), 0 }
 0x246   : > { %s7496_s23 = smov (!%p5840_p6, %s7494_s23), 255 }
 0x247   : > { %s1685_s26 = scalar_lea.vmem %s7288_s2, %s7496_s23 }
 0x248   : > { %v1706_v43 = vld [vmem:[%s1685_s26] sm:$0x1] }
 0x249   : > { %5848 = vst [vmem:[%s6919_s13 + $0x2] sm:$0x1] %v1706_v43 }
 0x24a   : > { %1733 = vsyncadd %s4765_s25, 16  ;;  %s1734_s19 = sadd.s32 3, %s6912_s18  ;;  %s4775_s30 = scalar_lea.sflag %s6922_s14, 3 [#allocation3] }
 0x24b   : > { %p1735_p7 = scmp.lt.s32.totalorder %s1734_s19, 23 }
 0x24d   : > { %s7498_s19 = smov (!%p1735_p7, %s1734_s19), 23 }
 0x24e   : > { %s1737_s11 = sshra.s32 %s7498_s19, 7  ;;  %s1742_s12 = sand.u32 127, %s7498_s19 }
 0x24f   : > { %s6261_s16 = sshll.u32 %s1737_s11, 7 }
 0x250   : > { %s6262_s15 = sadd.s32 128, %s6261_s16 }
 0x251   : > { %s1743_s17 = sadd.s32 %s6262_s15, %s1742_s12 }
 0x252   : > { %s1744_s0 = sld [smem:[#allocation6 + %s1743_s17]] }
 0x258   : > { %p1745_p9 = scmp.eq.s32.totalorder %s1744_s0, 4294967295 }
 0x25a   : > { %s7500_s0 = smov (%p1745_p9, %s1744_s0), 0 }
 0x25b   : > { %p1747_p10 = scmp.gt.s32.totalorder %s7500_s0, 0  ;;  %p5850_p11 = scmp.lt.s32.totalorder %s7500_s0, 255 }
 0x25d   : > { %s7502_s0 = smov (!%p1747_p10, %s7500_s0), 0 }
 0x25e   : > { %s7504_s0 = smov (!%p5850_p11, %s7502_s0), 255 }
 0x25f   : > { %s1752_s23 = scalar_lea.vmem %s7288_s2, %s7504_s0 }
 0x260   : > { %v1773_v44 = vld [vmem:[%s1752_s23] sm:$0x1] }
 0x261   : > { %5858 = vst [vmem:[%s6919_s13 + $0x3] sm:$0x1] %v1773_v44 }
 0x262   : > { %1800 = vsyncadd %s4775_s30, 16  ;;  %s1801_s22 = sadd.s32 4, %s6912_s18  ;;  %s4785_s24 = scalar_lea.sflag %s6922_s14, 4 [#allocation3] }
 0x263   : > { %p1802_p12 = scmp.lt.s32.totalorder %s1801_s22, 23 }
 0x265   : > { %s7506_s22 = smov (!%p1802_p12, %s1801_s22), 23 }
 0x266   : > { %s1804_s26 = sshra.s32 %s7506_s22, 7  ;;  %s1809_s19 = sand.u32 127, %s7506_s22 }
 0x267   : > { %s6265_s11 = sshll.u32 %s1804_s26, 7 }
 0x268   : > { %s6266_s12 = sadd.s32 128, %s6265_s11 }
 0x269   : > { %s1810_s16 = sadd.s32 %s6266_s12, %s1809_s19 }
 0x26a   : > { %s1811_s15 = sld [smem:[#allocation6 + %s1810_s16]] }
 0x270   : > { %p1812_p3 = scmp.eq.s32.totalorder %s1811_s15, 4294967295 }
 0x272   : > { %s7508_s15 = smov (%p1812_p3, %s1811_s15), 0 }
 0x273   : > { %p1814_p13 = scmp.gt.s32.totalorder %s7508_s15, 0  ;;  %p5860_p0 = scmp.lt.s32.totalorder %s7508_s15, 255 }
 0x275   : > { %s7510_s15 = smov (!%p1814_p13, %s7508_s15), 0 }
 0x276   : > { %s7512_s15 = smov (!%p5860_p0, %s7510_s15), 255 }
 0x277   : > { %s1819_s0 = scalar_lea.vmem %s7288_s2, %s7512_s15 }
 0x278   : > { %v1840_v45 = vld [vmem:[%s1819_s0] sm:$0x1] }
 0x279   : > { %5868 = vst [vmem:[%s6919_s13 + $0x4] sm:$0x1] %v1840_v45 }
 0x27a   : > { %1867 = vsyncadd %s4785_s24, 16  ;;  %s1868_s25 = sadd.s32 5, %s6912_s18  ;;  %s4795_s20 = scalar_lea.sflag %s6922_s14, 5 [#allocation3] }
 0x27b   : > { %p1869_p1 = scmp.lt.s32.totalorder %s1868_s25, 23 }
 0x27d   : > { %s7514_s25 = smov (!%p1869_p1, %s1868_s25), 23 }
 0x27e   : > { %s1871_s23 = sshra.s32 %s7514_s25, 7  ;;  %s1876_s22 = sand.u32 127, %s7514_s25 }
 0x27f   : > { %s6269_s26 = sshll.u32 %s1871_s23, 7 }
 0x280   : > { %s6270_s19 = sadd.s32 128, %s6269_s26 }
 0x281   : > { %s1877_s11 = sadd.s32 %s6270_s19, %s1876_s22 }
 0x282   : > { %s1878_s12 = sld [smem:[#allocation6 + %s1877_s11]] }
 0x288   : > { %p1879_p2 = scmp.eq.s32.totalorder %s1878_s12, 4294967295 }
 0x28a   : > { %s7516_s12 = smov (%p1879_p2, %s1878_s12), 0 }
 0x28b   : > { %p1881_p4 = scmp.gt.s32.totalorder %s7516_s12, 0  ;;  %p5870_p5 = scmp.lt.s32.totalorder %s7516_s12, 255 }
 0x28d   : > { %s7518_s12 = smov (!%p1881_p4, %s7516_s12), 0 }
 0x28e   : > { %s7520_s12 = smov (!%p5870_p5, %s7518_s12), 255 }
 0x28f   : > { %s1886_s15 = scalar_lea.vmem %s7288_s2, %s7520_s12 }
 0x290   : > { %v1907_v46 = vld [vmem:[%s1886_s15] sm:$0x1] }
 0x291   : > { %5878 = vst [vmem:[%s6919_s13 + $0x5] sm:$0x1] %v1907_v46 }
 0x292   : > { %1934 = vsyncadd %s4795_s20, 16  ;;  %s1935_s30 = sadd.s32 6, %s6912_s18  ;;  %s4805_s17 = scalar_lea.sflag %s6922_s14, 6 [#allocation3] }
 0x293   : > { %p1936_p6 = scmp.lt.s32.totalorder %s1935_s30, 23 }
 0x295   : > { %s7522_s30 = smov (!%p1936_p6, %s1935_s30), 23 }
 0x296   : > { %s1938_s0 = sshra.s32 %s7522_s30, 7  ;;  %s1943_s25 = sand.u32 127, %s7522_s30 }
 0x297   : > { %s6273_s23 = sshll.u32 %s1938_s0, 7 }
 0x298   : > { %s6274_s22 = sadd.s32 128, %s6273_s23 }
 0x299   : > { %s1944_s26 = sadd.s32 %s6274_s22, %s1943_s25 }
 0x29a   : > { %s1945_s19 = sld [smem:[#allocation6 + %s1944_s26]] }
 0x2a0   : > { %p1946_p7 = scmp.eq.s32.totalorder %s1945_s19, 4294967295 }
 0x2a2   : > { %s7524_s19 = smov (%p1946_p7, %s1945_s19), 0 }
 0x2a3   : > { %p1948_p9 = scmp.gt.s32.totalorder %s7524_s19, 0  ;;  %p5880_p10 = scmp.lt.s32.totalorder %s7524_s19, 255 }
 0x2a5   : > { %s7526_s19 = smov (!%p1948_p9, %s7524_s19), 0 }
 0x2a6   : > { %s7528_s19 = smov (!%p5880_p10, %s7526_s19), 255 }
 0x2a7   : > { %s1953_s12 = scalar_lea.vmem %s7288_s2, %s7528_s19 }
 0x2a8   : > { %v1974_v47 = vld [vmem:[%s1953_s12] sm:$0x1] }
 0x2a9   : > { %5888 = vst [vmem:[%s6919_s13 + $0x6] sm:$0x1] %v1974_v47 }
 0x2aa   : > { %2001 = vsyncadd %s4805_s17, 16  ;;  %s2002_s24 = sadd.s32 7, %s6912_s18  ;;  %s4815_s16 = scalar_lea.sflag %s6922_s14, 7 [#allocation3] }
 0x2ab   : > { %p2003_p11 = scmp.lt.s32.totalorder %s2002_s24, 23 }
 0x2ad   : > { %s7530_s24 = smov (!%p2003_p11, %s2002_s24), 23 }
 0x2ae   : > { %s2005_s15 = sshra.s32 %s7530_s24, 7  ;;  %s2010_s30 = sand.u32 127, %s7530_s24 }
 0x2af   : > { %s6277_s0 = sshll.u32 %s2005_s15, 7 }
 0x2b0   : > { %s6278_s25 = sadd.s32 128, %s6277_s0 }
 0x2b1   : > { %s2011_s23 = sadd.s32 %s6278_s25, %s2010_s30 }
 0x2b2   : > { %s2012_s22 = sld [smem:[#allocation6 + %s2011_s23]] }
 0x2b8   : > { %p2013_p12 = scmp.eq.s32.totalorder %s2012_s22, 4294967295 }
 0x2ba   : > { %s7532_s22 = smov (%p2013_p12, %s2012_s22), 0 }
 0x2bb   : > { %p2015_p3 = scmp.gt.s32.totalorder %s7532_s22, 0  ;;  %p5890_p13 = scmp.lt.s32.totalorder %s7532_s22, 255 }
 0x2bd   : > { %s7534_s22 = smov (!%p2015_p3, %s7532_s22), 0 }
 0x2be   : > { %s7536_s22 = smov (!%p5890_p13, %s7534_s22), 255 }
 0x2bf   : > { %s2020_s18 = scalar_lea.vmem %s7288_s2, %s7536_s22 }
 0x2c0   : > { %v2041_v48 = vld [vmem:[%s2020_s18] sm:$0x1] }
 0x2c1   : > { %5898 = vst [vmem:[%s6919_s13 + $0x7] sm:$0x1] %v2041_v48 }
 0x2c2   : > { %2068 = vsyncadd %s4815_s16, 16 }
 0x2c3 PF: > { %s5899_s14 = sshll.u32 %s6648_s6, 3  ;;  %s2069_s19 = scalar_lea.vmem [#allocation2], %s5812_s29 }
 0x2c4   : > { %v2074_v49 = vstv %s5899_s14  ;;  %s7302_s6 = smov %s1527_s28  ;;  %s5900_s27 = sld [smem:[#allocation6 + $0x100]] (%p6904_p8) }
 0x2c5   : > { %v2075_v51 = vadd.s32 %v2074_v49, %v6843_v19 }
 0x2c7   : > { %vm2076_vm3 = vcmp.lt.s32.totalorder %v2075_v51, 24 }
 0x2c8   : > { %v2070_v50 = vld [vmem:[%s2069_s19] sm:$0xff] }
 0x2c9   : > { %v2079_v52 = vsel %vm2076_vm3, %v2070_v50, 0.0 }
 0x2ca   : > { %v2081_v53 = vsel %vm1031_vm0, %v2079_v52, 0.0  ;;  %p2092_p0 = scmp.eq.s32.totalorder (%p6904_p8), %s5900_s27, 4294967295 }
 0x2cb   : > { %v2082_v54 = vrot.slane %v2081_v53, 4 }
 0x2cd   : > { %v2083_v55 = vadd.f32 %v2082_v54, %v2081_v53 }
 0x2cf   : > { %v2084_v56 = vrot.slane %v2083_v55, 2 }
 0x2d1   : > { %v2085_v57 = vadd.f32 %v2084_v56, %v2083_v55 }
 0x2d3   : > { %v2086_v58 = vrot.slane %v2085_v57, 1 }
 0x2d5   : > { %v2087_v59 = vadd.f32 %v2086_v58, %v2085_v57  ;;  %1479 = sbr.rel (!%p6904_p8) target bundleno = 483 (0x1e3), region = 2876 }
 0x2d7   : > { %v2088_v60 = vadd.f32 %v6644_v40, %v2087_v59  }
 0x2d9   : > { %v7301_v40 = vmov %v2088_v60  ;;  %v2089_v61 = vmul.f32 (%p6904_p8), 0.041666668, %v2088_v60 }
 0x2da   :  { %s7538_s27 = smov (%p2092_p0, %s5900_s27), 0 }
 0x2db   :  { %2090 = vst.msk [vmem:[#allocation4 + $0x1] sm:$0x1] %vm1041_vm2, %v2089_v61  ;;  %p2094_p1 = scmp.gt.s32.totalorder %s7538_s27, 0  ;;  %p5901_p2 = scmp.lt.s32.totalorder %s7538_s27, 255 }
 0x2dd   :  { %s7540_s27 = smov (!%p2094_p1, %s7538_s27), 0 }
 0x2de   :  { %s7542_s27 = smov (!%p5901_p2, %s7540_s27), 255 }
 0x2df   :  { %s2098_s20 = scalar_lea.vmem %s7288_s2, %s7542_s27 }
 0x2e0   :  { %v2117_v62 = vld [vmem:[%s2098_s20] sm:$0x1] }
 0x2e1   :  { %2118 = vst [vmem:[#allocation2] sm:$0x1] %v2117_v62 }
 0x2e2   :  { %2144 = vsyncadd [#allocation3], 16  ;;  %s5906_s6 = sld [smem:[#allocation6 + $0x101]] }
 0x2e8   :  { %p2146_p4 = scmp.eq.s32.totalorder %s5906_s6, 4294967295 }
 0x2ea   :  { %s7544_s6 = smov (%p2146_p4, %s5906_s6), 0 }
 0x2eb   :  { %p2148_p8 = scmp.gt.s32.totalorder %s7544_s6, 0  ;;  %p5907_p5 = scmp.lt.s32.totalorder %s7544_s6, 255 }
 0x2ed   :  { %s7546_s6 = smov (!%p2148_p8, %s7544_s6), 0 }
 0x2ee   :  { %s7548_s6 = smov (!%p5907_p5, %s7546_s6), 255 }
 0x2ef   :  { %s2152_s11 = scalar_lea.vmem %s7288_s2, %s7548_s6 }
 0x2f0   :  { %v2171_v63 = vld [vmem:[%s2152_s11] sm:$0x1] }
 0x2f1   :  { %2172 = vst [vmem:[#allocation2 + $0x1] sm:$0x1] %v2171_v63 }
 0x2f2   :  { %2198 = vsyncadd [#allocation3 + $0x1], 16  ;;  %s5912_s12 = sld [smem:[#allocation6 + $0x102]] }
 0x2f8   :  { %p2200_p6 = scmp.eq.s32.totalorder %s5912_s12, 4294967295 }
 0x2fa   :  { %s7550_s12 = smov (%p2200_p6, %s5912_s12), 0 }
 0x2fb   :  { %p2202_p7 = scmp.gt.s32.totalorder %s7550_s12, 0  ;;  %p5913_p9 = scmp.lt.s32.totalorder %s7550_s12, 255 }
 0x2fd   :  { %s7552_s12 = smov (!%p2202_p7, %s7550_s12), 0 }
 0x2fe   :  { %s7554_s12 = smov (!%p5913_p9, %s7552_s12), 255 }
 0x2ff   :  { %s2206_s15 = scalar_lea.vmem %s7288_s2, %s7554_s12 }
 0x300   :  { %v2225_v0 = vld [vmem:[%s2206_s15] sm:$0x1] }
 0x301   :  { %2226 = vst [vmem:[#allocation2 + $0x2] sm:$0x1] %v2225_v0 }
 0x302   :  { %2252 = vsyncadd [#allocation3 + $0x2], 16  ;;  %s5918_s30 = sld [smem:[#allocation6 + $0x103]] }
 0x308   :  { %p2254_p10 = scmp.eq.s32.totalorder %s5918_s30, 4294967295 }
 0x30a   :  { %s7556_s30 = smov (%p2254_p10, %s5918_s30), 0 }
 0x30b   :  { %p2256_p11 = scmp.gt.s32.totalorder %s7556_s30, 0  ;;  %p5919_p12 = scmp.lt.s32.totalorder %s7556_s30, 255 }
 0x30d   :  { %s7558_s30 = smov (!%p2256_p11, %s7556_s30), 0 }
 0x30e   :  { %s7560_s30 = smov (!%p5919_p12, %s7558_s30), 255 }
 0x30f   :  { %s2260_s23 = scalar_lea.vmem %s7288_s2, %s7560_s30 }
 0x310   :  { %v2279_v1 = vld [vmem:[%s2260_s23] sm:$0x1] }
 0x311   :  { %2280 = vst [vmem:[#allocation2 + $0x3] sm:$0x1] %v2279_v1 }
 0x312   :  { %2306 = vsyncadd [#allocation3 + $0x3], 16  ;;  %s5924_s22 = sld [smem:[#allocation6 + $0x104]] }
 0x318   :  { %p2308_p3 = scmp.eq.s32.totalorder %s5924_s22, 4294967295 }
 0x31a   :  { %s7562_s22 = smov (%p2308_p3, %s5924_s22), 0 }
 0x31b   :  { %p2310_p13 = scmp.gt.s32.totalorder %s7562_s22, 0  ;;  %p5925_p0 = scmp.lt.s32.totalorder %s7562_s22, 255 }
 0x31d   :  { %s7564_s22 = smov (!%p2310_p13, %s7562_s22), 0 }
 0x31e   :  { %s7566_s22 = smov (!%p5925_p0, %s7564_s22), 255 }
 0x31f   :  { %s2314_s18 = scalar_lea.vmem %s7288_s2, %s7566_s22 }
 0x320   :  { %v2333_v2 = vld [vmem:[%s2314_s18] sm:$0x1] }
 0x321   :  { %2334 = vst [vmem:[#allocation2 + $0x4] sm:$0x1] %v2333_v2 }
 0x322   :  { %2360 = vsyncadd [#allocation3 + $0x4], 16  ;;  %s5930_s14 = sld [smem:[#allocation6 + $0x105]] }
 0x328   :  { %p2362_p1 = scmp.eq.s32.totalorder %s5930_s14, 4294967295 }
 0x32a   :  { %s7568_s14 = smov (%p2362_p1, %s5930_s14), 0 }
 0x32b   :  { %p2364_p2 = scmp.gt.s32.totalorder %s7568_s14, 0  ;;  %p5931_p4 = scmp.lt.s32.totalorder %s7568_s14, 255 }
 0x32d   :  { %s7570_s14 = smov (!%p2364_p2, %s7568_s14), 0 }
 0x32e   :  { %s7572_s14 = smov (!%p5931_p4, %s7570_s14), 255 }
 0x32f   :  { %s2368_s29 = scalar_lea.vmem %s7288_s2, %s7572_s14 }
 0x330   :  { %v2387_v3 = vld [vmem:[%s2368_s29] sm:$0x1] }
 0x331   :  { %2388 = vst [vmem:[#allocation2 + $0x5] sm:$0x1] %v2387_v3 }
 0x332   :  { %2414 = vsyncadd [#allocation3 + $0x5], 16  ;;  %s5936_s13 = sld [smem:[#allocation6 + $0x106]] }
 0x338   :  { %p2416_p8 = scmp.eq.s32.totalorder %s5936_s13, 4294967295 }
 0x33a   :  { %s7574_s13 = smov (%p2416_p8, %s5936_s13), 0 }
 0x33b   :  { %p2418_p5 = scmp.gt.s32.totalorder %s7574_s13, 0  ;;  %p5937_p6 = scmp.lt.s32.totalorder %s7574_s13, 255 }
 0x33d   :  { %s7576_s13 = smov (!%p2418_p5, %s7574_s13), 0 }
 0x33e   :  { %s7578_s13 = smov (!%p5937_p6, %s7576_s13), 255 }
 0x33f   :  { %s2422_s28 = scalar_lea.vmem %s7288_s2, %s7578_s13 }
 0x340   :  { %v2441_v4 = vld [vmem:[%s2422_s28] sm:$0x1] }
 0x341   :  { %2442 = vst [vmem:[#allocation2 + $0x6] sm:$0x1] %v2441_v4 }
 0x342   :  { %2468 = vsyncadd [#allocation3 + $0x6], 16  ;;  %s5942_s21 = sld [smem:[#allocation6 + $0x107]] }
 0x348   :  { %p2470_p7 = scmp.eq.s32.totalorder %s5942_s21, 4294967295 }
 0x34a   :  { %s7580_s21 = smov (%p2470_p7, %s5942_s21), 0 }
 0x34b   :  { %p2472_p9 = scmp.gt.s32.totalorder %s7580_s21, 0  ;;  %p5943_p10 = scmp.lt.s32.totalorder %s7580_s21, 255 }
 0x34d   :  { %s7582_s21 = smov (!%p2472_p9, %s7580_s21), 0 }
 0x34e   :  { %s7584_s21 = smov (!%p5943_p10, %s7582_s21), 255 }
 0x34f   :  { %s2476_s24 = scalar_lea.vmem %s7288_s2, %s7584_s21 }
 0x350   :  { %v2495_v5 = vld [vmem:[%s2476_s24] sm:$0x1] }
 0x351   :  { %2496 = vst [vmem:[#allocation2 + $0x7] sm:$0x1] %v2495_v5 }
 0x352   :  { %2522 = vsyncadd [#allocation3 + $0x7], 16  ;;  %v7006_v6 = vmov 0.0   ;;  %s7008_s16 = smov 0  }
 0x353 LB: > { %p2530_p11 = scmp.lt.s32.totalorder %s6656_s16, 0  ;;  %s2531_s15 = ssub.s32 0, %s6656_s16  ;;  %s6656_s16 = sphi %s7008_s16, %s7305_s16   ;;  %v6652_v6 = vphi %v7006_v6, %v7304_v6  }
 0x354   : > { %s5948_s30 = smin.u32 %s6656_s16, %s2531_s15 }
 0x355   : > { %s2533_s0 = sand.u32 1, %s5948_s30  }
 0x356   : > { %s2534_s25 = ssub.s32 0, %s2533_s0 }
 0x357   : > { %s7586_s25 = smov (!%p2530_p11, %s2534_s25), %s2533_s0 }
 0x358   : > { %p5950_p12 = scmp.lt.s32.totalorder %s7586_s25, 0  ;;  %s2540_s23 = sadd.s32 2, %s7586_s25 }
 0x35a   : > { %s7588_s23 = smov (!%p5950_p12, %s2540_s23), %s7586_s25 }
 0x35b   : > { %s5951_s22 = sshll.u32 %s7588_s23, 3 }
 0x35c   : > { %s2543_s17 = scalar_lea.sflag [#allocation3], %s5951_s22 }
 0x35d   : > { %6596 = dma.done.wait %s2543_s17, 16 }
 0x35e   : > { %6597 = vsyncadd %s2543_s17, 4294967280  ;;  %s4856_s26 = scalar_lea.sflag %s2543_s17, 1 [#allocation3] }
 0x35f   : > { %6598 = dma.done.wait %s4856_s26, 16 }
 0x360   : > { %6599 = vsyncadd %s4856_s26, 4294967280  ;;  %s4859_s18 = scalar_lea.sflag %s2543_s17, 2 [#allocation3] }
 0x361   : > { %6600 = dma.done.wait %s4859_s18, 16 }
 0x362   : > { %6601 = vsyncadd %s4859_s18, 4294967280  ;;  %s4862_s14 = scalar_lea.sflag %s2543_s17, 3 [#allocation3] }
 0x363   : > { %6602 = dma.done.wait %s4862_s14, 16 }
 0x364   : > { %6603 = vsyncadd %s4862_s14, 4294967280  ;;  %s4865_s19 = scalar_lea.sflag %s2543_s17, 4 [#allocation3] }
 0x365   : > { %6604 = dma.done.wait %s4865_s19, 16 }
 0x366   : > { %6605 = vsyncadd %s4865_s19, 4294967280  ;;  %s4868_s27 = scalar_lea.sflag %s2543_s17, 5 [#allocation3] }
 0x367   : > { %6606 = dma.done.wait %s4868_s27, 16 }
 0x368   : > { %6607 = vsyncadd %s4868_s27, 4294967280  ;;  %s4871_s29 = scalar_lea.sflag %s2543_s17, 6 [#allocation3] }
 0x369   : > { %6608 = dma.done.wait %s4871_s29, 16 }
 0x36a   : > { %6609 = vsyncadd %s4871_s29, 4294967280  ;;  %s4874_s13 = scalar_lea.sflag %s2543_s17, 7 [#allocation3] }
 0x36b   : > { %6610 = dma.done.wait %s4874_s13, 16 }
 0x36c   : > { %6611 = vsyncadd %s4874_s13, 4294967280  ;;  %s2575_s20 = sadd.s32 1, %s6656_s16  }
 0x36d   : > { %p7027_p3 = scmp.ge.s32.totalorder %s2575_s20, 3 }
 0x36e   : > { %s2580_s28 = ssub.s32 (!%p7027_p3), 1, %s7588_s23  ;;  %s6297_s21 = sshll.u32 (!%p7027_p3), %s6656_s16, 3 }
 0x36f   : > { %2579 = sbr.rel (%p7027_p3) target bundleno = 1075 (0x433), region = 1254  ;;  %s7035_s11 = sadd.s32 (!%p7027_p3), 8, %s6297_s21 }
 0x370   : > { %s5967_s12 = sshll.u32 (!%p7027_p3), %s2580_s28, 3  ;;  %p2582_p13 = scmp.lt.s32.totalorder (!%p7027_p3), %s7035_s11, 23 }
 0x371   : > { %s7042_s27 = scalar_lea.vmem (!%p7027_p3), [#allocation2], %s5967_s12  ;;  %s7045_s29 = scalar_lea.sflag (!%p7027_p3), [#allocation3], %s5967_s12 }
 0x374   : > { %s2583_s24 = scalar_select %p2582_p13, %s7035_s11, 23 }
 0x376   : > { %s2584_s15 = sshra.s32 %s2583_s24, 7  ;;  %s2589_s30 = sand.u32 127, %s2583_s24 }
 0x377   : > { %s6299_s0 = sshll.u32 %s2584_s15, 7 }
 0x378   : > { %s6300_s25 = sadd.s32 256, %s6299_s0 }
 0x379   : > { %s2590_s17 = sadd.s32 %s6300_s25, %s2589_s30 }
 0x37a   : > { %s2591_s26 = sld [smem:[#allocation6 + %s2590_s17]] }
 0x380   : > { %p2592_p0 = scmp.eq.s32.totalorder %s2591_s26, 4294967295 }
 0x382   : > { %s7590_s26 = smov (%p2592_p0, %s2591_s26), 0 }
 0x383   : > { %p2594_p1 = scmp.gt.s32.totalorder %s7590_s26, 0  ;;  %p5962_p2 = scmp.lt.s32.totalorder %s7590_s26, 255 }
 0x385   : > { %s7592_s26 = smov (!%p2594_p1, %s7590_s26), 0 }
 0x386   : > { %s7594_s26 = smov (!%p5962_p2, %s7592_s26), 255 }
 0x387   : > { %s2599_s19 = scalar_lea.vmem %s7288_s2, %s7594_s26 }
 0x388   : > { %v2620_v7 = vld [vmem:[%s2599_s19] sm:$0x1] }
 0x389   : > { %2621 = vst [vmem:[%s7042_s27] sm:$0x1] %v2620_v7 }
 0x38a   : > { %2647 = vsyncadd %s7045_s29, 16  ;;  %s2648_s13 = sadd.s32 1, %s7035_s11  ;;  %s4888_s28 = scalar_lea.sflag %s7045_s29, 1 [#allocation3] }
 0x38b   : > { %p2649_p4 = scmp.lt.s32.totalorder %s2648_s13, 23 }
 0x38d   : > { %s7596_s13 = smov (!%p2649_p4, %s2648_s13), 23 }
 0x38e   : > { %s2651_s21 = sshra.s32 %s7596_s13, 7  ;;  %s2656_s24 = sand.u32 127, %s7596_s13 }
 0x38f   : > { %s6303_s15 = sshll.u32 %s2651_s21, 7 }
 0x390   : > { %s6304_s30 = sadd.s32 256, %s6303_s15 }
 0x391   : > { %s2657_s0 = sadd.s32 %s6304_s30, %s2656_s24 }
 0x392   : > { %s2658_s25 = sld [smem:[#allocation6 + %s2657_s0]] }
 0x398   : > { %p2659_p8 = scmp.eq.s32.totalorder %s2658_s25, 4294967295 }
 0x39a   : > { %s7598_s25 = smov (%p2659_p8, %s2658_s25), 0 }
 0x39b   : > { %p2661_p5 = scmp.gt.s32.totalorder %s7598_s25, 0  ;;  %p5969_p6 = scmp.lt.s32.totalorder %s7598_s25, 255 }
 0x39d   : > { %s7600_s25 = smov (!%p2661_p5, %s7598_s25), 0 }
 0x39e   : > { %s7602_s25 = smov (!%p5969_p6, %s7600_s25), 255 }
 0x39f   : > { %s2666_s26 = scalar_lea.vmem %s7288_s2, %s7602_s25 }
 0x3a0   : > { %v2687_v8 = vld [vmem:[%s2666_s26] sm:$0x1] }
 0x3a1   : > { %5977 = vst [vmem:[%s7042_s27 + $0x1] sm:$0x1] %v2687_v8 }
 0x3a2   : > { %2714 = vsyncadd %s4888_s28, 16  ;;  %s2715_s18 = sadd.s32 2, %s7035_s11  ;;  %s4898_s14 = scalar_lea.sflag %s7045_s29, 2 [#allocation3] }
 0x3a3   : > { %p2716_p7 = scmp.lt.s32.totalorder %s2715_s18, 23 }
 0x3a5   : > { %s7604_s18 = smov (!%p2716_p7, %s2715_s18), 23 }
 0x3a6   : > { %s2718_s19 = sshra.s32 %s7604_s18, 7  ;;  %s2723_s13 = sand.u32 127, %s7604_s18 }
 0x3a7   : > { %s6307_s21 = sshll.u32 %s2718_s19, 7 }
 0x3a8   : > { %s6308_s24 = sadd.s32 256, %s6307_s21 }
 0x3a9   : > { %s2724_s15 = sadd.s32 %s6308_s24, %s2723_s13 }
 0x3aa   : > { %s2725_s30 = sld [smem:[#allocation6 + %s2724_s15]] }
 0x3b0   : > { %p2726_p9 = scmp.eq.s32.totalorder %s2725_s30, 4294967295 }
 0x3b2   : > { %s7606_s30 = smov (%p2726_p9, %s2725_s30), 0 }
 0x3b3   : > { %p2728_p10 = scmp.gt.s32.totalorder %s7606_s30, 0  ;;  %p5979_p11 = scmp.lt.s32.totalorder %s7606_s30, 255 }
 0x3b5   : > { %s7608_s30 = smov (!%p2728_p10, %s7606_s30), 0 }
 0x3b6   : > { %s7610_s30 = smov (!%p5979_p11, %s7608_s30), 255 }
 0x3b7   : > { %s2733_s25 = scalar_lea.vmem %s7288_s2, %s7610_s30 }
 0x3b8   : > { %v2754_v9 = vld [vmem:[%s2733_s25] sm:$0x1] }
 0x3b9   : > { %5987 = vst [vmem:[%s7042_s27 + $0x2] sm:$0x1] %v2754_v9 }
 0x3ba   : > { %2781 = vsyncadd %s4898_s14, 16  ;;  %s2782_s12 = sadd.s32 3, %s7035_s11  ;;  %s4908_s17 = scalar_lea.sflag %s7045_s29, 3 [#allocation3] }
 0x3bb   : > { %p2783_p12 = scmp.lt.s32.totalorder %s2782_s12, 23 }
 0x3bd   : > { %s7612_s12 = smov (!%p2783_p12, %s2782_s12), 23 }
 0x3be   : > { %s2785_s26 = sshra.s32 %s7612_s12, 7  ;;  %s2790_s18 = sand.u32 127, %s7612_s12 }
 0x3bf   : > { %s6311_s19 = sshll.u32 %s2785_s26, 7 }
 0x3c0   : > { %s6312_s13 = sadd.s32 256, %s6311_s19 }
 0x3c1   : > { %s2791_s21 = sadd.s32 %s6312_s13, %s2790_s18 }
 0x3c2   : > { %s2792_s24 = sld [smem:[#allocation6 + %s2791_s21]] }
 0x3c8   : > { %p2793_p13 = scmp.eq.s32.totalorder %s2792_s24, 4294967295 }
 0x3ca   : > { %s7614_s24 = smov (%p2793_p13, %s2792_s24), 0 }
 0x3cb   : > { %p2795_p0 = scmp.gt.s32.totalorder %s7614_s24, 0  ;;  %p5989_p1 = scmp.lt.s32.totalorder %s7614_s24, 255 }
 0x3cd   : > { %s7616_s24 = smov (!%p2795_p0, %s7614_s24), 0 }
 0x3ce   : > { %s7618_s24 = smov (!%p5989_p1, %s7616_s24), 255 }
 0x3cf   : > { %s2800_s30 = scalar_lea.vmem %s7288_s2, %s7618_s24 }
 0x3d0   : > { %v2821_v10 = vld [vmem:[%s2800_s30] sm:$0x1] }
 0x3d1   : > { %5997 = vst [vmem:[%s7042_s27 + $0x3] sm:$0x1] %v2821_v10 }
 0x3d2   : > { %2848 = vsyncadd %s4908_s17, 16  ;;  %s2849_s28 = sadd.s32 4, %s7035_s11  ;;  %s4918_s0 = scalar_lea.sflag %s7045_s29, 4 [#allocation3] }
 0x3d3   : > { %p2850_p2 = scmp.lt.s32.totalorder %s2849_s28, 23 }
 0x3d5   : > { %s7620_s28 = smov (!%p2850_p2, %s2849_s28), 23 }
 0x3d6   : > { %s2852_s25 = sshra.s32 %s7620_s28, 7  ;;  %s2857_s12 = sand.u32 127, %s7620_s28 }
 0x3d7   : > { %s6315_s26 = sshll.u32 %s2852_s25, 7 }
 0x3d8   : > { %s6316_s18 = sadd.s32 256, %s6315_s26 }
 0x3d9   : > { %s2858_s19 = sadd.s32 %s6316_s18, %s2857_s12 }
 0x3da   : > { %s2859_s13 = sld [smem:[#allocation6 + %s2858_s19]] }
 0x3e0   : > { %p2860_p4 = scmp.eq.s32.totalorder %s2859_s13, 4294967295 }
 0x3e2   : > { %s7622_s13 = smov (%p2860_p4, %s2859_s13), 0 }
 0x3e3   : > { %p2862_p8 = scmp.gt.s32.totalorder %s7622_s13, 0  ;;  %p5999_p5 = scmp.lt.s32.totalorder %s7622_s13, 255 }
 0x3e5   : > { %s7624_s13 = smov (!%p2862_p8, %s7622_s13), 0 }
 0x3e6   : > { %s7626_s13 = smov (!%p5999_p5, %s7624_s13), 255 }
 0x3e7   : > { %s2867_s24 = scalar_lea.vmem %s7288_s2, %s7626_s13 }
 0x3e8   : > { %v2888_v11 = vld [vmem:[%s2867_s24] sm:$0x1] }
 0x3e9   : > { %6007 = vst [vmem:[%s7042_s27 + $0x4] sm:$0x1] %v2888_v11 }
 0x3ea   : > { %2915 = vsyncadd %s4918_s0, 16  ;;  %s2916_s14 = sadd.s32 5, %s7035_s11  ;;  %s4928_s15 = scalar_lea.sflag %s7045_s29, 5 [#allocation3] }
 0x3eb   : > { %p2917_p6 = scmp.lt.s32.totalorder %s2916_s14, 23 }
 0x3ed   : > { %s7628_s14 = smov (!%p2917_p6, %s2916_s14), 23 }
 0x3ee   : > { %s2919_s30 = sshra.s32 %s7628_s14, 7  ;;  %s2924_s28 = sand.u32 127, %s7628_s14 }
 0x3ef   : > { %s6319_s25 = sshll.u32 %s2919_s30, 7 }
 0x3f0   : > { %s6320_s12 = sadd.s32 256, %s6319_s25 }
 0x3f1   : > { %s2925_s26 = sadd.s32 %s6320_s12, %s2924_s28 }
 0x3f2   : > { %s2926_s18 = sld [smem:[#allocation6 + %s2925_s26]] }
 0x3f8   : > { %p2927_p7 = scmp.eq.s32.totalorder %s2926_s18, 4294967295 }
 0x3fa   : > { %s7630_s18 = smov (%p2927_p7, %s2926_s18), 0 }
 0x3fb   : > { %p2929_p9 = scmp.gt.s32.totalorder %s7630_s18, 0  ;;  %p6009_p10 = scmp.lt.s32.totalorder %s7630_s18, 255 }
 0x3fd   : > { %s7632_s18 = smov (!%p2929_p9, %s7630_s18), 0 }
 0x3fe   : > { %s7634_s18 = smov (!%p6009_p10, %s7632_s18), 255 }
 0x3ff   : > { %s2934_s13 = scalar_lea.vmem %s7288_s2, %s7634_s18 }
 0x400   : > { %v2955_v12 = vld [vmem:[%s2934_s13] sm:$0x1] }
 0x401   : > { %6017 = vst [vmem:[%s7042_s27 + $0x5] sm:$0x1] %v2955_v12 }
 0x402   : > { %2982 = vsyncadd %s4928_s15, 16  ;;  %s2983_s17 = sadd.s32 6, %s7035_s11  ;;  %s4938_s21 = scalar_lea.sflag %s7045_s29, 6 [#allocation3] }
 0x403   : > { %p2984_p11 = scmp.lt.s32.totalorder %s2983_s17, 23 }
 0x405   : > { %s7636_s17 = smov (!%p2984_p11, %s2983_s17), 23 }
 0x406   : > { %s2986_s24 = sshra.s32 %s7636_s17, 7  ;;  %s2991_s14 = sand.u32 127, %s7636_s17 }
 0x407   : > { %s6323_s30 = sshll.u32 %s2986_s24, 7 }
 0x408   : > { %s6324_s28 = sadd.s32 256, %s6323_s30 }
 0x409   : > { %s2992_s25 = sadd.s32 %s6324_s28, %s2991_s14 }
 0x40a   : > { %s2993_s12 = sld [smem:[#allocation6 + %s2992_s25]] }
 0x410   : > { %p2994_p12 = scmp.eq.s32.totalorder %s2993_s12, 4294967295 }
 0x412   : > { %s7638_s12 = smov (%p2994_p12, %s2993_s12), 0 }
 0x413   : > { %p2996_p13 = scmp.gt.s32.totalorder %s7638_s12, 0  ;;  %p6019_p0 = scmp.lt.s32.totalorder %s7638_s12, 255 }
 0x415   : > { %s7640_s12 = smov (!%p2996_p13, %s7638_s12), 0 }
 0x416   : > { %s7642_s12 = smov (!%p6019_p0, %s7640_s12), 255 }
 0x417   : > { %s3001_s18 = scalar_lea.vmem %s7288_s2, %s7642_s12 }
 0x418   : > { %v3022_v13 = vld [vmem:[%s3001_s18] sm:$0x1] }
 0x419   : > { %6027 = vst [vmem:[%s7042_s27 + $0x6] sm:$0x1] %v3022_v13 }
 0x41a   : > { %3049 = vsyncadd %s4938_s21, 16  ;;  %s3050_s0 = sadd.s32 7, %s7035_s11  ;;  %s4948_s19 = scalar_lea.sflag %s7045_s29, 7 [#allocation3] }
 0x41b   : > { %p3051_p1 = scmp.lt.s32.totalorder %s3050_s0, 23 }
 0x41d   : > { %s7644_s0 = smov (!%p3051_p1, %s3050_s0), 23 }
 0x41e   : > { %s3053_s13 = sshra.s32 %s7644_s0, 7  ;;  %s3058_s17 = sand.u32 127, %s7644_s0 }
 0x41f   : > { %s6327_s24 = sshll.u32 %s3053_s13, 7 }
 0x420   : > { %s6328_s14 = sadd.s32 256, %s6327_s24 }
 0x421   : > { %s3059_s30 = sadd.s32 %s6328_s14, %s3058_s17 }
 0x422   : > { %s3060_s28 = sld [smem:[#allocation6 + %s3059_s30]] }
 0x428   : > { %p3061_p2 = scmp.eq.s32.totalorder %s3060_s28, 4294967295 }
 0x42a   : > { %s7646_s28 = smov (%p3061_p2, %s3060_s28), 0 }
 0x42b   : > { %p3063_p4 = scmp.gt.s32.totalorder %s7646_s28, 0  ;;  %p6029_p8 = scmp.lt.s32.totalorder %s7646_s28, 255 }
 0x42d   : > { %s7648_s28 = smov (!%p3063_p4, %s7646_s28), 0 }
 0x42e   : > { %s7650_s28 = smov (!%p6029_p8, %s7648_s28), 255 }
 0x42f   : > { %s3068_s11 = scalar_lea.vmem %s7288_s2, %s7650_s28 }
 0x430   : > { %v3089_v14 = vld [vmem:[%s3068_s11] sm:$0x1] }
 0x431   : > { %6037 = vst [vmem:[%s7042_s27 + $0x7] sm:$0x1] %v3089_v14 }
 0x432   : > { %3116 = vsyncadd %s4948_s19, 16 }
 0x433 PF: > { %s6038_s29 = sshll.u32 %s6656_s16, 3  ;;  %s3117_s12 = scalar_lea.vmem [#allocation2], %s5951_s22 }
 0x434   : > { %v3122_v15 = vstv %s6038_s29  ;;  %s7305_s16 = smov %s2575_s20  ;;  %s6039_s23 = sld [smem:[#allocation6 + $0x180]] (%p7027_p3) }
 0x435   : > { %v3123_v17 = vadd.s32 %v3122_v15, %v6843_v19 }
 0x437   : > { %vm3124_vm4 = vcmp.lt.s32.totalorder %v3123_v17, 24 }
 0x438   : > { %v3118_v16 = vld [vmem:[%s3117_s12] sm:$0xff] }
 0x439   : > { %v3127_v18 = vsel %vm3124_vm4, %v3118_v16, 0.0 }
 0x43a   : > { %v3129_v20 = vsel %vm1031_vm0, %v3127_v18, 0.0  ;;  %p3140_p5 = scmp.eq.s32.totalorder (%p7027_p3), %s6039_s23, 4294967295 }
 0x43b   : > { %v3130_v21 = vrot.slane %v3129_v20, 4 }
 0x43d   : > { %v3131_v22 = vadd.f32 %v3130_v21, %v3129_v20 }
 0x43f   : > { %v3132_v23 = vrot.slane %v3131_v22, 2 }
 0x441   : > { %v3133_v24 = vadd.f32 %v3132_v23, %v3131_v22 }
 0x443   : > { %v3134_v25 = vrot.slane %v3133_v24, 1 }
 0x445   : > { %v3135_v26 = vadd.f32 %v3134_v25, %v3133_v24  ;;  %2527 = sbr.rel (!%p7027_p3) target bundleno = 851 (0x353), region = 2887 }
 0x447   : > { %v3136_v27 = vadd.f32 %v6652_v6, %v3135_v26  }
 0x449   : > { %v7304_v6 = vmov %v3136_v27  ;;  %v3137_v28 = vmul.f32 (%p7027_p3), 0.041666668, %v3136_v27 }
 0x44a   :  { %s7652_s23 = smov (%p3140_p5, %s6039_s23), 0 }
 0x44b   :  { %3138 = vst.msk [vmem:[#allocation4 + $0x2] sm:$0x1] %vm1041_vm2, %v3137_v28  ;;  %p3142_p6 = scmp.gt.s32.totalorder %s7652_s23, 0  ;;  %p6040_p7 = scmp.lt.s32.totalorder %s7652_s23, 255 }
 0x44d   :  { %s7654_s23 = smov (!%p3142_p6, %s7652_s23), 0 }
 0x44e   :  { %s7656_s23 = smov (!%p6040_p7, %s7654_s23), 255 }
 0x44f   :  { %s3146_s15 = scalar_lea.vmem %s7288_s2, %s7656_s23 }
 0x450   :  { %v3165_v29 = vld [vmem:[%s3146_s15] sm:$0x1] }
 0x451   :  { %3166 = vst [vmem:[#allocation2] sm:$0x1] %v3165_v29 }
 0x452   :  { %3192 = vsyncadd [#allocation3], 16  ;;  %s6045_s16 = sld [smem:[#allocation6 + $0x181]] }
 0x458   :  { %p3194_p9 = scmp.eq.s32.totalorder %s6045_s16, 4294967295 }
 0x45a   :  { %s7658_s16 = smov (%p3194_p9, %s6045_s16), 0 }
 0x45b   :  { %p3196_p3 = scmp.gt.s32.totalorder %s7658_s16, 0  ;;  %p6046_p10 = scmp.lt.s32.totalorder %s7658_s16, 255 }
 0x45d   :  { %s7660_s16 = smov (!%p3196_p3, %s7658_s16), 0 }
 0x45e   :  { %s7662_s16 = smov (!%p6046_p10, %s7660_s16), 255 }
 0x45f   :  { %s3200_s26 = scalar_lea.vmem %s7288_s2, %s7662_s16 }
 0x460   :  { %v3219_v30 = vld [vmem:[%s3200_s26] sm:$0x1] }
 0x461   :  { %3220 = vst [vmem:[#allocation2 + $0x1] sm:$0x1] %v3219_v30 }
 0x462   :  { %3246 = vsyncadd [#allocation3 + $0x1], 16  ;;  %s6051_s18 = sld [smem:[#allocation6 + $0x182]] }
 0x468   :  { %p3248_p11 = scmp.eq.s32.totalorder %s6051_s18, 4294967295 }
 0x46a   :  { %s7664_s18 = smov (%p3248_p11, %s6051_s18), 0 }
 0x46b   :  { %p3250_p12 = scmp.gt.s32.totalorder %s7664_s18, 0  ;;  %p6052_p13 = scmp.lt.s32.totalorder %s7664_s18, 255 }
 0x46d   :  { %s7666_s18 = smov (!%p3250_p12, %s7664_s18), 0 }
 0x46e   :  { %s7668_s18 = smov (!%p6052_p13, %s7666_s18), 255 }
 0x46f   :  { %s3254_s13 = scalar_lea.vmem %s7288_s2, %s7668_s18 }
 0x470   :  { %v3273_v31 = vld [vmem:[%s3254_s13] sm:$0x1] }
 0x471   :  { %3274 = vst [vmem:[#allocation2 + $0x2] sm:$0x1] %v3273_v31 }
 0x472   :  { %3300 = vsyncadd [#allocation3 + $0x2], 16  ;;  %s6057_s17 = sld [smem:[#allocation6 + $0x183]] }
 0x478   :  { %p3302_p0 = scmp.eq.s32.totalorder %s6057_s17, 4294967295 }
 0x47a   :  { %s7670_s17 = smov (%p3302_p0, %s6057_s17), 0 }
 0x47b   :  { %p3304_p1 = scmp.gt.s32.totalorder %s7670_s17, 0  ;;  %p6058_p2 = scmp.lt.s32.totalorder %s7670_s17, 255 }
 0x47d   :  { %s7672_s17 = smov (!%p3304_p1, %s7670_s17), 0 }
 0x47e   :  { %s7674_s17 = smov (!%p6058_p2, %s7672_s17), 255 }
 0x47f   :  { %s3308_s30 = scalar_lea.vmem %s7288_s2, %s7674_s17 }
 0x480   :  { %v3327_v32 = vld [vmem:[%s3308_s30] sm:$0x1] }
 0x481   :  { %3328 = vst [vmem:[#allocation2 + $0x3] sm:$0x1] %v3327_v32 }
 0x482   :  { %3354 = vsyncadd [#allocation3 + $0x3], 16  ;;  %s6063_s28 = sld [smem:[#allocation6 + $0x184]] }
 0x488   :  { %p3356_p4 = scmp.eq.s32.totalorder %s6063_s28, 4294967295 }
 0x48a   :  { %s7676_s28 = smov (%p3356_p4, %s6063_s28), 0 }
 0x48b   :  { %p3358_p8 = scmp.gt.s32.totalorder %s7676_s28, 0  ;;  %p6064_p5 = scmp.lt.s32.totalorder %s7676_s28, 255 }
 0x48d   :  { %s7678_s28 = smov (!%p3358_p8, %s7676_s28), 0 }
 0x48e   :  { %s7680_s28 = smov (!%p6064_p5, %s7678_s28), 255 }
 0x48f   :  { %s3362_s11 = scalar_lea.vmem %s7288_s2, %s7680_s28 }
 0x490   :  { %v3381_v33 = vld [vmem:[%s3362_s11] sm:$0x1] }
 0x491   :  { %3382 = vst [vmem:[#allocation2 + $0x4] sm:$0x1] %v3381_v33 }
 0x492   :  { %3408 = vsyncadd [#allocation3 + $0x4], 16  ;;  %s6069_s29 = sld [smem:[#allocation6 + $0x185]] }
 0x498   :  { %p3410_p6 = scmp.eq.s32.totalorder %s6069_s29, 4294967295 }
 0x49a   :  { %s7682_s29 = smov (%p3410_p6, %s6069_s29), 0 }
 0x49b   :  { %p3412_p7 = scmp.gt.s32.totalorder %s7682_s29, 0  ;;  %p6070_p9 = scmp.lt.s32.totalorder %s7682_s29, 255 }
 0x49d   :  { %s7684_s29 = smov (!%p3412_p7, %s7682_s29), 0 }
 0x49e   :  { %s7686_s29 = smov (!%p6070_p9, %s7684_s29), 255 }
 0x49f   :  { %s3416_s22 = scalar_lea.vmem %s7288_s2, %s7686_s29 }
 0x4a0   :  { %v3435_v34 = vld [vmem:[%s3416_s22] sm:$0x1] }
 0x4a1   :  { %3436 = vst [vmem:[#allocation2 + $0x5] sm:$0x1] %v3435_v34 }
 0x4a2   :  { %3462 = vsyncadd [#allocation3 + $0x5], 16  ;;  %s6075_s27 = sld [smem:[#allocation6 + $0x186]] }
 0x4a8   :  { %p3464_p3 = scmp.eq.s32.totalorder %s6075_s27, 4294967295 }
 0x4aa   :  { %s7688_s27 = smov (%p3464_p3, %s6075_s27), 0 }
 0x4ab   :  { %p3466_p10 = scmp.gt.s32.totalorder %s7688_s27, 0  ;;  %p6076_p11 = scmp.lt.s32.totalorder %s7688_s27, 255 }
 0x4ad   :  { %s7690_s27 = smov (!%p3466_p10, %s7688_s27), 0 }
 0x4ae   :  { %s7692_s27 = smov (!%p6076_p11, %s7690_s27), 255 }
 0x4af   :  { %s3470_s20 = scalar_lea.vmem %s7288_s2, %s7692_s27 }
 0x4b0   :  { %v3489_v35 = vld [vmem:[%s3470_s20] sm:$0x1] }
 0x4b1   :  { %3490 = vst [vmem:[#allocation2 + $0x6] sm:$0x1] %v3489_v35 }
 0x4b2   :  { %3516 = vsyncadd [#allocation3 + $0x6], 16  ;;  %s6081_s6 = sld [smem:[#allocation6 + $0x187]] }
 0x4b8   :  { %p3518_p12 = scmp.eq.s32.totalorder %s6081_s6, 4294967295 }
 0x4ba   :  { %s7694_s6 = smov (%p3518_p12, %s6081_s6), 0 }
 0x4bb   :  { %p3520_p13 = scmp.gt.s32.totalorder %s7694_s6, 0  ;;  %p6082_p0 = scmp.lt.s32.totalorder %s7694_s6, 255 }
 0x4bd   :  { %s7696_s6 = smov (!%p3520_p13, %s7694_s6), 0 }
 0x4be   :  { %s7698_s6 = smov (!%p6082_p0, %s7696_s6), 255 }
 0x4bf   :  { %s3524_s0 = scalar_lea.vmem %s7288_s2, %s7698_s6 }
 0x4c0   :  { %v3543_v36 = vld [vmem:[%s3524_s0] sm:$0x1] }
 0x4c1   :  { %3544 = vst [vmem:[#allocation2 + $0x7] sm:$0x1] %v3543_v36 }
 0x4c2   :  { %3570 = vsyncadd [#allocation3 + $0x7], 16  ;;  %v7129_v37 = vmov 0.0   ;;  %s7131_s19 = smov 0  }
 0x4c3 LB: > { %p3578_p1 = scmp.lt.s32.totalorder %s6664_s19, 0  ;;  %s3579_s13 = ssub.s32 0, %s6664_s19  ;;  %s6664_s19 = sphi %s7131_s19, %s7308_s19   ;;  %v6660_v37 = vphi %v7129_v37, %v7307_v37  }
 0x4c4   : > { %s6087_s17 = smin.u32 %s6664_s19, %s3579_s13 }
 0x4c5   : > { %s3581_s24 = sand.u32 1, %s6087_s17  }
 0x4c6   : > { %s3582_s14 = ssub.s32 0, %s3581_s24 }
 0x4c7   : > { %s7700_s14 = smov (!%p3578_p1, %s3582_s14), %s3581_s24 }
 0x4c8   : > { %p6089_p2 = scmp.lt.s32.totalorder %s7700_s14, 0  ;;  %s3588_s30 = sadd.s32 2, %s7700_s14 }
 0x4ca   : > { %s7702_s30 = smov (!%p6089_p2, %s3588_s30), %s7700_s14 }
 0x4cb   : > { %s6090_s28 = sshll.u32 %s7702_s30, 3 }
 0x4cc   : > { %s3591_s21 = scalar_lea.sflag [#allocation3], %s6090_s28 }
 0x4cd   : > { %6612 = dma.done.wait %s3591_s21, 16 }
 0x4ce   : > { %6613 = vsyncadd %s3591_s21, 4294967280  ;;  %s4989_s25 = scalar_lea.sflag %s3591_s21, 1 [#allocation3] }
 0x4cf   : > { %6614 = dma.done.wait %s4989_s25, 16 }
 0x4d0   : > { %6615 = vsyncadd %s4989_s25, 4294967280  ;;  %s4992_s11 = scalar_lea.sflag %s3591_s21, 2 [#allocation3] }
 0x4d1   : > { %6616 = dma.done.wait %s4992_s11, 16 }
 0x4d2   : > { %6617 = vsyncadd %s4992_s11, 4294967280  ;;  %s4995_s29 = scalar_lea.sflag %s3591_s21, 3 [#allocation3] }
 0x4d3   : > { %6618 = dma.done.wait %s4995_s29, 16 }
 0x4d4   : > { %6619 = vsyncadd %s4995_s29, 4294967280  ;;  %s4998_s12 = scalar_lea.sflag %s3591_s21, 4 [#allocation3] }
 0x4d5   : > { %6620 = dma.done.wait %s4998_s12, 16 }
 0x4d6   : > { %6621 = vsyncadd %s4998_s12, 4294967280  ;;  %s5001_s23 = scalar_lea.sflag %s3591_s21, 5 [#allocation3] }
 0x4d7   : > { %6622 = dma.done.wait %s5001_s23, 16 }
 0x4d8   : > { %6623 = vsyncadd %s5001_s23, 4294967280  ;;  %s5004_s22 = scalar_lea.sflag %s3591_s21, 6 [#allocation3] }
 0x4d9   : > { %6624 = dma.done.wait %s5004_s22, 16 }
 0x4da   : > { %6625 = vsyncadd %s5004_s22, 4294967280  ;;  %s5007_s27 = scalar_lea.sflag %s3591_s21, 7 [#allocation3] }
 0x4db   : > { %6626 = dma.done.wait %s5007_s27, 16 }
 0x4dc   : > { %6627 = vsyncadd %s5007_s27, 4294967280  ;;  %s3623_s15 = sadd.s32 1, %s6664_s19  }
 0x4dd   : > { %p7150_p4 = scmp.ge.s32.totalorder %s3623_s15, 3 }
 0x4de   : > { %s3628_s20 = ssub.s32 (!%p7150_p4), 1, %s7702_s30  ;;  %s6347_s6 = sshll.u32 (!%p7150_p4), %s6664_s19, 3 }
 0x4df   : > { %3627 = sbr.rel (%p7150_p4) target bundleno = 1443 (0x5a3), region = 1745  ;;  %s7158_s26 = sadd.s32 (!%p7150_p4), 8, %s6347_s6 }
 0x4e0   : > { %s6106_s18 = sshll.u32 (!%p7150_p4), %s3628_s20, 3  ;;  %p3630_p8 = scmp.lt.s32.totalorder (!%p7150_p4), %s7158_s26, 23 }
 0x4e1   : > { %s7165_s23 = scalar_lea.vmem (!%p7150_p4), [#allocation2], %s6106_s18  ;;  %s7168_s22 = scalar_lea.sflag (!%p7150_p4), [#allocation3], %s6106_s18 }
 0x4e4   : > { %s3631_s0 = scalar_select %p3630_p8, %s7158_s26, 23 }
 0x4e6   : > { %s3632_s13 = sshra.s32 %s3631_s0, 7  ;;  %s3637_s17 = sand.u32 127, %s3631_s0 }
 0x4e7   : > { %s6349_s24 = sshll.u32 %s3632_s13, 7 }
 0x4e8   : > { %s6350_s14 = sadd.s32 384, %s6349_s24 }
 0x4e9   : > { %s3638_s21 = sadd.s32 %s6350_s14, %s3637_s17 }
 0x4ea   : > { %s3639_s25 = sld [smem:[#allocation6 + %s3638_s21]] }
 0x4f0   : > { %p3640_p5 = scmp.eq.s32.totalorder %s3639_s25, 4294967295 }
 0x4f2   : > { %s7704_s25 = smov (%p3640_p5, %s3639_s25), 0 }
 0x4f3   : > { %p3642_p6 = scmp.gt.s32.totalorder %s7704_s25, 0  ;;  %p6101_p7 = scmp.lt.s32.totalorder %s7704_s25, 255 }
 0x4f5   : > { %s7706_s25 = smov (!%p3642_p6, %s7704_s25), 0 }
 0x4f6   : > { %s7708_s25 = smov (!%p6101_p7, %s7706_s25), 255 }
 0x4f7   : > { %s3647_s12 = scalar_lea.vmem %s7288_s2, %s7708_s25 }
 0x4f8   : > { %v3668_v38 = vld [vmem:[%s3647_s12] sm:$0x1] }
 0x4f9   : > { %3669 = vst [vmem:[%s7165_s23] sm:$0x1] %v3668_v38 }
 0x4fa   : > { %3695 = vsyncadd %s7168_s22, 16  ;;  %s3696_s27 = sadd.s32 1, %s7158_s26  ;;  %s5021_s20 = scalar_lea.sflag %s7168_s22, 1 [#allocation3] }
 0x4fb   : > { %p3697_p9 = scmp.lt.s32.totalorder %s3696_s27, 23 }
 0x4fd   : > { %s7710_s27 = smov (!%p3697_p9, %s3696_s27), 23 }
 0x4fe   : > { %s3699_s6 = sshra.s32 %s7710_s27, 7  ;;  %s3704_s0 = sand.u32 127, %s7710_s27 }
 0x4ff   : > { %s6353_s13 = sshll.u32 %s3699_s6, 7 }
 0x500   : > { %s6354_s17 = sadd.s32 384, %s6353_s13 }
 0x501   : > { %s3705_s24 = sadd.s32 %s6354_s17, %s3704_s0 }
 0x502   : > { %s3706_s14 = sld [smem:[#allocation6 + %s3705_s24]] }
 0x508   : > { %p3707_p3 = scmp.eq.s32.totalorder %s3706_s14, 4294967295 }
 0x50a   : > { %s7712_s14 = smov (%p3707_p3, %s3706_s14), 0 }
 0x50b   : > { %p3709_p10 = scmp.gt.s32.totalorder %s7712_s14, 0  ;;  %p6108_p11 = scmp.lt.s32.totalorder %s7712_s14, 255 }
 0x50d   : > { %s7714_s14 = smov (!%p3709_p10, %s7712_s14), 0 }
 0x50e   : > { %s7716_s14 = smov (!%p6108_p11, %s7714_s14), 255 }
 0x50f   : > { %s3714_s25 = scalar_lea.vmem %s7288_s2, %s7716_s14 }
 0x510   : > { %v3735_v39 = vld [vmem:[%s3714_s25] sm:$0x1] }
 0x511   : > { %6116 = vst [vmem:[%s7165_s23 + $0x1] sm:$0x1] %v3735_v39 }
 0x512   : > { %3762 = vsyncadd %s5021_s20, 16  ;;  %s3763_s11 = sadd.s32 2, %s7158_s26  ;;  %s5031_s29 = scalar_lea.sflag %s7168_s22, 2 [#allocation3] }
 0x513   : > { %p3764_p12 = scmp.lt.s32.totalorder %s3763_s11, 23 }
 0x515   : > { %s7718_s11 = smov (!%p3764_p12, %s3763_s11), 23 }
 0x516   : > { %s3766_s12 = sshra.s32 %s7718_s11, 7  ;;  %s3771_s27 = sand.u32 127, %s7718_s11 }
 0x517   : > { %s6357_s6 = sshll.u32 %s3766_s12, 7 }
 0x518   : > { %s6358_s0 = sadd.s32 384, %s6357_s6 }
 0x519   : > { %s3772_s13 = sadd.s32 %s6358_s0, %s3771_s27 }
 0x51a   : > { %s3773_s17 = sld [smem:[#allocation6 + %s3772_s13]] }
 0x520   : > { %p3774_p13 = scmp.eq.s32.totalorder %s3773_s17, 4294967295 }
 0x522   : > { %s7720_s17 = smov (%p3774_p13, %s3773_s17), 0 }
 0x523   : > { %p3776_p0 = scmp.gt.s32.totalorder %s7720_s17, 0  ;;  %p6118_p1 = scmp.lt.s32.totalorder %s7720_s17, 255 }
 0x525   : > { %s7722_s17 = smov (!%p3776_p0, %s7720_s17), 0 }
 0x526   : > { %s7724_s17 = smov (!%p6118_p1, %s7722_s17), 255 }
 0x527   : > { %s3781_s14 = scalar_lea.vmem %s7288_s2, %s7724_s17 }
 0x528   : > { %v3802_v40 = vld [vmem:[%s3781_s14] sm:$0x1] }
 0x529   : > { %6126 = vst [vmem:[%s7165_s23 + $0x2] sm:$0x1] %v3802_v40 }
 0x52a   : > { %3829 = vsyncadd %s5031_s29, 16  ;;  %s3830_s18 = sadd.s32 3, %s7158_s26  ;;  %s5041_s21 = scalar_lea.sflag %s7168_s22, 3 [#allocation3] }
 0x52b   : > { %p3831_p2 = scmp.lt.s32.totalorder %s3830_s18, 23 }
 0x52d   : > { %s7726_s18 = smov (!%p3831_p2, %s3830_s18), 23 }
 0x52e   : > { %s3833_s25 = sshra.s32 %s7726_s18, 7  ;;  %s3838_s11 = sand.u32 127, %s7726_s18 }
 0x52f   : > { %s6361_s12 = sshll.u32 %s3833_s25, 7 }
 0x530   : > { %s6362_s27 = sadd.s32 384, %s6361_s12 }
 0x531   : > { %s3839_s6 = sadd.s32 %s6362_s27, %s3838_s11 }
 0x532   : > { %s3840_s0 = sld [smem:[#allocation6 + %s3839_s6]] }
 0x538   : > { %p3841_p8 = scmp.eq.s32.totalorder %s3840_s0, 4294967295 }
 0x53a   : > { %s7728_s0 = smov (%p3841_p8, %s3840_s0), 0 }
 0x53b   : > { %p3843_p5 = scmp.gt.s32.totalorder %s7728_s0, 0  ;;  %p6128_p6 = scmp.lt.s32.totalorder %s7728_s0, 255 }
 0x53d   : > { %s7730_s0 = smov (!%p3843_p5, %s7728_s0), 0 }
 0x53e   : > { %s7732_s0 = smov (!%p6128_p6, %s7730_s0), 255 }
 0x53f   : > { %s3848_s17 = scalar_lea.vmem %s7288_s2, %s7732_s0 }
 0x540   : > { %v3869_v41 = vld [vmem:[%s3848_s17] sm:$0x1] }
 0x541   : > { %6136 = vst [vmem:[%s7165_s23 + $0x3] sm:$0x1] %v3869_v41 }
 0x542   : > { %3896 = vsyncadd %s5041_s21, 16  ;;  %s3897_s20 = sadd.s32 4, %s7158_s26  ;;  %s5051_s24 = scalar_lea.sflag %s7168_s22, 4 [#allocation3] }
 0x543   : > { %p3898_p7 = scmp.lt.s32.totalorder %s3897_s20, 23 }
 0x545   : > { %s7734_s20 = smov (!%p3898_p7, %s3897_s20), 23 }
 0x546   : > { %s3900_s14 = sshra.s32 %s7734_s20, 7  ;;  %s3905_s18 = sand.u32 127, %s7734_s20 }
 0x547   : > { %s6365_s25 = sshll.u32 %s3900_s14, 7 }
 0x548   : > { %s6366_s11 = sadd.s32 384, %s6365_s25 }
 0x549   : > { %s3906_s12 = sadd.s32 %s6366_s11, %s3905_s18 }
 0x54a   : > { %s3907_s27 = sld [smem:[#allocation6 + %s3906_s12]] }
 0x550   : > { %p3908_p9 = scmp.eq.s32.totalorder %s3907_s27, 4294967295 }
 0x552   : > { %s7736_s27 = smov (%p3908_p9, %s3907_s27), 0 }
 0x553   : > { %p3910_p3 = scmp.gt.s32.totalorder %s7736_s27, 0  ;;  %p6138_p10 = scmp.lt.s32.totalorder %s7736_s27, 255 }
 0x555   : > { %s7738_s27 = smov (!%p3910_p3, %s7736_s27), 0 }
 0x556   : > { %s7740_s27 = smov (!%p6138_p10, %s7738_s27), 255 }
 0x557   : > { %s3915_s0 = scalar_lea.vmem %s7288_s2, %s7740_s27 }
 0x558   : > { %v3936_v42 = vld [vmem:[%s3915_s0] sm:$0x1] }
 0x559   : > { %6146 = vst [vmem:[%s7165_s23 + $0x4] sm:$0x1] %v3936_v42 }
 0x55a   : > { %3963 = vsyncadd %s5051_s24, 16  ;;  %s3964_s29 = sadd.s32 5, %s7158_s26  ;;  %s5061_s13 = scalar_lea.sflag %s7168_s22, 5 [#allocation3] }
 0x55b   : > { %p3965_p11 = scmp.lt.s32.totalorder %s3964_s29, 23 }
 0x55d   : > { %s7742_s29 = smov (!%p3965_p11, %s3964_s29), 23 }
 0x55e   : > { %s3967_s17 = sshra.s32 %s7742_s29, 7  ;;  %s3972_s20 = sand.u32 127, %s7742_s29 }
 0x55f   : > { %s6369_s14 = sshll.u32 %s3967_s17, 7 }
 0x560   : > { %s6370_s18 = sadd.s32 384, %s6369_s14 }
 0x561   : > { %s3973_s25 = sadd.s32 %s6370_s18, %s3972_s20 }
 0x562   : > { %s3974_s11 = sld [smem:[#allocation6 + %s3973_s25]] }
 0x568   : > { %p3975_p12 = scmp.eq.s32.totalorder %s3974_s11, 4294967295 }
 0x56a   : > { %s7744_s11 = smov (%p3975_p12, %s3974_s11), 0 }
 0x56b   : > { %p3977_p13 = scmp.gt.s32.totalorder %s7744_s11, 0  ;;  %p6148_p0 = scmp.lt.s32.totalorder %s7744_s11, 255 }
 0x56d   : > { %s7746_s11 = smov (!%p3977_p13, %s7744_s11), 0 }
 0x56e   : > { %s7748_s11 = smov (!%p6148_p0, %s7746_s11), 255 }
 0x56f   : > { %s3982_s27 = scalar_lea.vmem %s7288_s2, %s7748_s11 }
 0x570   : > { %v4003_v43 = vld [vmem:[%s3982_s27] sm:$0x1] }
 0x571   : > { %6156 = vst [vmem:[%s7165_s23 + $0x5] sm:$0x1] %v4003_v43 }
 0x572   : > { %4030 = vsyncadd %s5061_s13, 16  ;;  %s4031_s21 = sadd.s32 6, %s7158_s26  ;;  %s5071_s6 = scalar_lea.sflag %s7168_s22, 6 [#allocation3] }
 0x573   : > { %p4032_p1 = scmp.lt.s32.totalorder %s4031_s21, 23 }
 0x575   : > { %s7750_s21 = smov (!%p4032_p1, %s4031_s21), 23 }
 0x576   : > { %s4034_s0 = sshra.s32 %s7750_s21, 7  ;;  %s4039_s29 = sand.u32 127, %s7750_s21 }
 0x577   : > { %s6373_s17 = sshll.u32 %s4034_s0, 7 }
 0x578   : > { %s6374_s20 = sadd.s32 384, %s6373_s17 }
 0x579   : > { %s4040_s14 = sadd.s32 %s6374_s20, %s4039_s29 }
 0x57a   : > { %s4041_s18 = sld [smem:[#allocation6 + %s4040_s14]] }
 0x580   : > { %p4042_p2 = scmp.eq.s32.totalorder %s4041_s18, 4294967295 }
 0x582   : > { %s7752_s18 = smov (%p4042_p2, %s4041_s18), 0 }
 0x583   : > { %p4044_p8 = scmp.gt.s32.totalorder %s7752_s18, 0  ;;  %p6158_p5 = scmp.lt.s32.totalorder %s7752_s18, 255 }
 0x585   : > { %s7754_s18 = smov (!%p4044_p8, %s7752_s18), 0 }
 0x586   : > { %s7756_s18 = smov (!%p6158_p5, %s7754_s18), 255 }
 0x587   : > { %s4049_s11 = scalar_lea.vmem %s7288_s2, %s7756_s18 }
 0x588   : > { %v4070_v44 = vld [vmem:[%s4049_s11] sm:$0x1] }
 0x589   : > { %6166 = vst [vmem:[%s7165_s23 + $0x6] sm:$0x1] %v4070_v44 }
 0x58a   : > { %4097 = vsyncadd %s5071_s6, 16  ;;  %s4098_s24 = sadd.s32 7, %s7158_s26  ;;  %s5081_s12 = scalar_lea.sflag %s7168_s22, 7 [#allocation3] }
 0x58b   : > { %p4099_p6 = scmp.lt.s32.totalorder %s4098_s24, 23 }
 0x58d   : > { %s7758_s24 = smov (!%p4099_p6, %s4098_s24), 23 }
 0x58e   : > { %s4101_s27 = sshra.s32 %s7758_s24, 7  ;;  %s4106_s21 = sand.u32 127, %s7758_s24 }
 0x58f   : > { %s6377_s0 = sshll.u32 %s4101_s27, 7 }
 0x590   : > { %s6378_s29 = sadd.s32 384, %s6377_s0 }
 0x591   : > { %s4107_s17 = sadd.s32 %s6378_s29, %s4106_s21 }
 0x592   : > { %s4108_s20 = sld [smem:[#allocation6 + %s4107_s17]] }
 0x598   : > { %p4109_p7 = scmp.eq.s32.totalorder %s4108_s20, 4294967295 }
 0x59a   : > { %s7760_s20 = smov (%p4109_p7, %s4108_s20), 0 }
 0x59b   : > { %p4111_p9 = scmp.gt.s32.totalorder %s7760_s20, 0  ;;  %p6168_p3 = scmp.lt.s32.totalorder %s7760_s20, 255 }
 0x59d   : > { %s7762_s20 = smov (!%p4111_p9, %s7760_s20), 0 }
 0x59e   : > { %s7764_s20 = smov (!%p6168_p3, %s7762_s20), 255 }
 0x59f   : > { %s4116_s26 = scalar_lea.vmem %s7288_s2, %s7764_s20 }
 0x5a0   : > { %v4137_v45 = vld [vmem:[%s4116_s26] sm:$0x1] }
 0x5a1   : > { %6176 = vst [vmem:[%s7165_s23 + $0x7] sm:$0x1] %v4137_v45 }
 0x5a2   : > { %4164 = vsyncadd %s5081_s12, 16 }
 0x5a3 PF: > { %s6177_s22 = sshll.u32 %s6664_s19, 3  ;;  %s4165_s18 = scalar_lea.vmem [#allocation2], %s6090_s28  ;;  %v4191_v58 = vld [vmem:[%s7289_s3 + $0x18] sm:$0xff] (%p7150_p4)  ;;  %v6667_v59 = vmov (%p7150_p4), 0.0   ;;  %v4190_v60 = vld [vmem:[%s7289_s3 + $0x10] sm:$0xff] (%p7150_p4)  ;;  %vm6668_vm6 = vmmov (%p7150_p4), 0  }
 0x5a4   : > { %v4170_v46 = vstv %s6177_s22  ;;  %s7308_s19 = smov %s3623_s15  ;;  %6386 = vmatprep.subr.mxu0 (%p7150_p4), %v6667_v59  ;;  %6394 = vmatprep.mubr.msk.f32.mxu0 (%p7150_p4), %vm6668_vm6, %v6667_v59  ;;  %v4189_v62 = vld [vmem:[%s7289_s3 + $0x8] sm:$0xff] (%p7150_p4)  ;;  %v4188_v63 = vld [vmem:[%s7289_s3] sm:$0xff] (%p7150_p4)  ;;  %vm4282_vm7 = vcmask (%p7150_p4), 257024   ;;  %s4286_s3 = sld [smem:[#allocation7]] (%p7150_p4)  ;;  %vm4289_vm8 = vcmask (%p7150_p4), 3072   ;;  %vm4296_vm9 = vcmask (%p7150_p4), 1043456  }
 0x5a5   : > { %v4171_v48 = vadd.s32 %v4170_v46, %v6843_v19  ;;  %6387 = vmatpush3.msra.mxu0 (%p7150_p4), %v4191_v58  ;;  %v6178_v1 = vld [vmem:[%s7290_s4] ss:$0 sm:$0xff] (%p7150_p4)  ;;  %v6669_v21 = vmov (%p7150_p4), 4294967295   ;;  %vm4380_vm15 = vcmask (%p7150_p4), 191488   ;;  %vm4398_vm4 = vcmask (%p7150_p4), 188416   ;;  %s6670_s17 = smov (%p7150_p4), [#allocation13]  }
 0x5a6   :  { %6388 = vmatprep.subr.mxu0 (%p7150_p4), %v6667_v59  ;;  %v6180_v5 = vld [vmem:[%s7291_s5] ss:$0 sm:$0xff] (%p7150_p4)  ;;  %4375 = vst [vmem:[#allocation13] sm:$0x3] (%p7150_p4), %v6669_v21  ;;  %s4425_s20 = sshll.u32 (%p7150_p4), %s6670_s17, 4  ;;  %s6671_s6 = smov (%p7150_p4), [#allocation8]   ;;  %s4426_s20 = int_to_ptr.vmem [resolvable:$true] %s4425_s20 }
 0x5a7   : > { %vm4172_vm5 = vcmp.lt.s32.totalorder %v4171_v48, 24  ;;  %6389 = vmatpush3.msra.mxu0 (%p7150_p4), %v4190_v60  ;;  %v4376_v39 = vld [vmem:[%s7287_s1] sm:$0xf] (%p7150_p4)  ;;  %s6502_s22 = scalar_lea.vmem (%p7150_p4), %s4426_s20, 32  ;;  %p6507_p10 = scmp.lt.s32.totalorder (%p7150_p4), %s4426_s20, %s4426_s20 }
 0x5a8   : > { %v4166_v47 = vld [vmem:[%s4165_s18] sm:$0xff]  ;;  %6390 = vmatprep.subr.mxu0 (%p7150_p4), %v6667_v59  ;;  %p6508_p11 = scmp.lt.s32.totalorder (%p7150_p4), %s6502_s22, %s6502_s22 }
 0x5a9   : > { %v4175_v49 = vsel %vm4172_vm5, %v4166_v47, 0.0  ;;  %6391 = vmatpush3.msra.mxu0 (%p7150_p4), %v4189_v62 }
 0x5aa   : > { %v4177_v50 = vsel %vm1031_vm0, %v4175_v49, 0.0  ;;  %6392 = vmatprep.subr.mxu0 (%p7150_p4), %v6667_v59  ;;  %v4287_v9 = vstv (%p7150_p4), %s4286_s3  ;;  %p6509_p12 = por (%p7150_p4), %p6508_p11, %p6507_p10 }
 0x5ab   : > { %v4178_v51 = vrot.slane %v4177_v50, 4  ;;  %6393 = vmatpush3.msra.mxu0 (%p7150_p4), %v4188_v63 }
 0x5ad   : > { %v4179_v52 = vadd.f32 %v4178_v51, %v4177_v50 }
 0x5af   : > { %v4180_v53 = vrot.slane %v4179_v52, 2 }
 0x5b1   : > { %v4181_v54 = vadd.f32 %v4180_v53, %v4179_v52 }
 0x5b3   : > { %v4182_v55 = vrot.slane %v4181_v54, 1 }
 0x5b5   : > { %v4183_v56 = vadd.f32 %v4182_v55, %v4181_v54  ;;  %3575 = sbr.rel (!%p7150_p4) target bundleno = 1219 (0x4c3), region = 2898 }
 0x5b7   : > { %v4184_v57 = vadd.f32 %v6660_v37, %v4183_v56  }
 0x5b9   : > { %v7307_v37 = vmov %v4184_v57  ;;  %v4185_v61 = vmul.f32 (%p7150_p4), 0.041666668, %v4184_v57  ;;  %p6503_p4 = scmp.ne.s32.totalorder (%p7150_p4), %s4426_s20, %s6502_s22 }
 0x5bb   :  { %4186 = vst.msk [vmem:[#allocation4 + $0x3] sm:$0x1] %vm1041_vm2, %v4185_v61  ;;  %p6510_p13 = pnand %p6509_p12, %p6503_p4 }
 0x5c2   :  { %v4187_v0 = vld [vmem:[#allocation4] sm:$0xf] }
 0x5c3   :  { %6395 = vmatmul.mubr.msk.f32.vlgmr.msra.gmra.mxu0 %vm1031_vm0, %v4187_v0 }
 0x683   :  { %v4269_v2 = vpop.f32.mrf.mxu0 }
 0x684   :  { %v4270_v3 = vadd.f32 %v6178_v1, %v4269_v2 }
 0x685   :  { %v6396_v4 = vpop.f32.mrf.mxu0 }
 0x686   :  { %6480 = vtanh.f32 %v4270_v3 }
 0x693   :  { %v6481_v6 = vpop.eup %6480 }
 0x694   :  { %v4281_v7 = vmul.f32 %v6481_v6, %v6180_v5 }
 0x696   :  { %v4283_v8 = vsel %vm4282_vm7, %v4281_v7, 0.0 }
 0x697   :  { %4284 = vadd.xlane.f32.xlu0 %v4283_v8 }
 0x720   :  { %v4285_v10 = vpop.xlane.xlu0 %4284 }
 0x721   :  { %v7247_v11 = vadd.f32 %v4287_v9, %v4285_v10 }
 0x723   :  { %vm4291_vm10 = vcmp.ne.f32.partialorder %v7247_v11, %v7247_v11  ;;  %4290 = vst.msk [vmem:[%s7293_s7] sm:$0xf] %vm4289_vm8, %v7247_v11 }
 0x724   :  { %v4292_v12 = vsel %vm4291_vm10, -1000000.0, %v7247_v11  ;;  %v4293_v22 = vsel %vm4291_vm10, 1000000.0, %v7247_v11 }
 0x725   :  { %v4297_v13 = vsel %vm4296_vm9, %v4292_v12, -inf  ;;  %v4319_v23 = vsel %vm4296_vm9, %v4293_v22, inf }
 0x726   :  { %v4298_v14 = vrot.slane %v4297_v13, 4  ;;  %v4320_v24 = vrot.slane %v4319_v23, 4 }
 0x728   :  { %v4299_v15 = vmax.f32 %v4297_v13, %v4298_v14  ;;  %v4321_v25 = vmin.f32 %v4319_v23, %v4320_v24 }
 0x72a   :  { %v4300_v16 = vrot.slane %v4299_v15, 2  ;;  %v4322_v29 = vrot.slane %v4321_v25, 2 }
 0x72c   :  { %v4301_v17 = vmax.f32 %v4299_v15, %v4300_v16  ;;  %v4323_v32 = vmin.f32 %v4321_v25, %v4322_v29 }
 0x72e   :  { %v4302_v18 = vrot.slane %v4301_v17, 1  ;;  %v4324_v35 = vrot.slane %v4323_v32, 1 }
 0x730   :  { %v4303_v20 = vmax.f32 %v4301_v17, %v4302_v18  ;;  %v4325_v38 = vmin.f32 %v4323_v32, %v4324_v35 }
 0x732   :  { %6397 = vpush %v4303_v20 }
 0x763   :  { %s6398_s5 = spop %6397 }
 0x764   :  { %v4305_v26 = vstv %s6398_s5 }
 0x765   :  { %vm4306_vm11 = vcmp.eq.f32.partialorder %v4292_v12, %v4305_v26 }
 0x766   :  { %v4307_v27 = vsel %vm4306_vm11, %v6843_v19, 4 }
 0x767   :  { %v4308_v28 = vsel %vm4296_vm9, %v4307_v27, 2147483647 }
 0x768   :  { %v4309_v30 = vrot.slane %v4308_v28, 4 }
 0x76a   :  { %vm4310_vm12 = vcmp.lt.s32.totalorder %v4308_v28, %v4309_v30 }
 0x76b   :  { %v4311_v31 = vsel %vm4310_vm12, %v4308_v28, %v4309_v30 }
 0x76c   :  { %v4312_v33 = vrot.slane %v4311_v31, 2 }
 0x76e   :  { %vm4313_vm13 = vcmp.lt.s32.totalorder %v4311_v31, %v4312_v33 }
 0x76f   :  { %v4314_v34 = vsel %vm4313_vm13, %v4311_v31, %v4312_v33 }
 0x770   :  { %v4315_v36 = vrot.slane %v4314_v34, 1 }
 0x772   :  { %vm4316_vm14 = vcmp.lt.s32.totalorder %v4314_v34, %v4315_v36 }
 0x773   :  { %v4317_v37 = vsel %vm4316_vm14, %v4314_v34, %v4315_v36 }
 0x774   :  { %6399 = vpush %v4317_v37 }
 0x775   :  { %6401 = vpush %v4325_v38 }
 0x7a5   :  { %s6400_s7 = spop %6399 }
 0x7a6   :  { %v4345_v40 = vstv %s6400_s7  ;;  %s6402_s29 = spop %6401  ;;  %4342 = sst [smem:[#allocation8]] %s6400_s7 }
 0x7a7   :  { %vm4346_vm0 = vcmp.eq.s32.totalorder %v6843_v19, %v4345_v40  ;;  %v4327_v41 = vstv %s6402_s29 }
 0x7a8   :  { %v4379_v42 = vsel %vm4346_vm0, %v4376_v39, 0  ;;  %vm4328_vm1 = vcmp.eq.f32.partialorder %v4293_v22, %v4327_v41  ;;  %v4347_v43 = vsel %vm4346_vm0, %v7247_v11, 0.0 }
 0x7a9   :  { %v4381_v44 = vsel %vm4380_vm15, %v4379_v42, 0  ;;  %v4329_v45 = vsel %vm4328_vm1, %v6843_v19, 4  ;;  %v4348_v46 = vsel %vm4289_vm8, %v4347_v43, 0.0 }
 0x7aa   :  { %v4382_v47 = vrot.slane %v4381_v44, 4  ;;  %v4330_v48 = vsel %vm4296_vm9, %v4329_v45, 2147483647  ;;  %4349 = vadd.xlane.f32.xlu0 %v4348_v46 }
 0x7ab   :  { %v4331_v49 = vrot.slane %v4330_v48, 4 }
 0x7ac   :  { %v4383_v50 = vadd.s32 %v4382_v47, %v4381_v44 }
 0x7ad   :  { %vm4332_vm2 = vcmp.lt.s32.totalorder %v4330_v48, %v4331_v49 }
 0x7ae   :  { %v4384_v51 = vrot.slane %v4383_v50, 2  ;;  %v4333_v52 = vsel %vm4332_vm2, %v4330_v48, %v4331_v49 }
 0x7af   :  { %v4334_v53 = vrot.slane %v4333_v52, 2 }
 0x7b0   :  { %v4385_v54 = vadd.s32 %v4384_v51, %v4383_v50 }
 0x7b1   :  { %vm4335_vm3 = vcmp.lt.s32.totalorder %v4333_v52, %v4334_v53 }
 0x7b2   :  { %v4336_v55 = vsel %vm4335_vm3, %v4333_v52, %v4334_v53  ;;  %v4386_v56 = vrot.slane %v4385_v54, 1 }
 0x7b3   :  { %v4337_v57 = vrot.slane %v4336_v55, 1 }
 0x7b4   :  { %v4387_v58 = vadd.s32 %v4386_v56, %v4385_v54 }
 0x7b5   :  { %vm4338_vm5 = vcmp.lt.s32.totalorder %v4336_v55, %v4337_v57 }
 0x7b6   :  { %v4339_v59 = vsel %vm4338_vm5, %v4336_v55, %v4337_v57  ;;  %4399 = vst.msk [vmem:[#allocation13] sm:$0x1] %vm4398_vm4, %v4387_v58 }
 0x7b7   :  { %6403 = vpush %v4339_v59 }
 0x7e8   :  { %s6404_s1 = spop %6403 }
 0x7e9   :  { %v4360_v60 = vstv %s6404_s1  ;;  %4344 = sst [smem:[#allocation8 + $0x1]] %s6404_s1 }
 0x7ea   :  { %vm4361_vm6 = vcmp.eq.s32.totalorder %v6843_v19, %v4360_v60  ;;  %4410 = dma.smem_to_hbm %s6671_s6, 16, %s7294_s8, [#allocation10]  }
 0x7eb   :  { %v4362_v61 = vsel %vm4361_vm6, %v7247_v11, 0.0  ;;  %v4390_v62 = vsel %vm4361_vm6, %v4376_v39, 0 }
 0x7ec   :  { %v4363_v63 = vsel %vm4289_vm8, %v4362_v61, 0.0  ;;  %v4391_v0 = vsel %vm4380_vm15, %v4390_v62, 0 }
 0x7ed   :  { %v4392_v1 = vrot.slane %v4391_v0, 4  ;;  %4364 = vadd.xlane.f32.xlu1 %v4363_v63 }
 0x7ef   :  { %v4393_v2 = vadd.s32 %v4392_v1, %v4391_v0 }
 0x7f1   :  { %v4394_v3 = vrot.slane %v4393_v2, 2 }
 0x7f3   :  { %v4395_v4 = vadd.s32 %v4394_v3, %v4393_v2 }
 0x7f5   :  { %v4396_v5 = vrot.slane %v4395_v4, 1 }
 0x7f7   :  { %v4397_v6 = vadd.s32 %v4396_v5, %v4395_v4 }
 0x7f9   :  { %4400 = vst.msk [vmem:[#allocation13 + $0x1] sm:$0x1] %vm4398_vm4, %v4397_v6 }
 0x833   :  { %v4350_v7 = vpop.xlane.xlu0 %4349 }
 0x834   :  { %v4351_v8 = vrot.slane %v4350_v7, 4 }
 0x836   :  { %v4352_v19 = vadd.f32 %v4351_v8, %v4350_v7 }
 0x838   :  { %v4353_v9 = vrot.slane %v4352_v19, 2 }
 0x839   :  { %6513 = shalt.err (!%p6510_p13)
}
 0x83a   :  { %4428 = dma.vmem_to_hbm [thread:$0]  %s4426_s20, 32, %s7296_s10, [#allocation9]   ;;  %v4354_v10 = vadd.f32 %v4353_v9, %v4352_v19 }
 0x83b   :  { %s6672_s23 = smov [#allocation11]  }
 0x83c   :  { %v4355_v11 = vrot.slane %v4354_v10, 1 }
 0x83e   :  { %v4356_v12 = vadd.f32 %v4355_v11, %v4354_v10 }
 0x840   :  { %6405 = vpush %v4356_v12 }
 0x871   :  { %s6406_s28 = spop %6405 }
 0x872   :  { %4359 = sst [smem:[#allocation11]] %s6406_s28 }
 0x876   :  { %v4365_v13 = vpop.xlane.xlu1 %4364 }
 0x877   :  { %v4366_v14 = vrot.slane %v4365_v13, 4 }
 0x879   :  { %v4367_v15 = vadd.f32 %v4366_v14, %v4365_v13 }
 0x87b   :  { %v4368_v16 = vrot.slane %v4367_v15, 2 }
 0x87d   :  { %v4369_v17 = vadd.f32 %v4368_v16, %v4367_v15 }
 0x87f   :  { %v4370_v18 = vrot.slane %v4369_v17, 1 }
 0x881   :  { %v4371_v20 = vadd.f32 %v4370_v18, %v4369_v17 }
 0x883   :  { %6407 = vpush %v4371_v20 }
 0x8b4   :  { %s6408_s8 = spop %6407 }
 0x8b5   :  { %4374 = sst [smem:[#allocation11 + $0x1]] %s6408_s8 }
 0x8b6   :  { %4418 = dma.smem_to_hbm %s6672_s23, 16, %s7295_s9, [#allocation12]  }
 0x8b7   :  { %6628 = dma.done.wait [#allocation10], 16  }
 0x8b8   :  { %6629 = vsyncadd [#allocation10], 4294967280 }
 0x8b9   :  { %6630 = dma.done.wait [#allocation12], 16  }
 0x8ba   :  { %6631 = vsyncadd [#allocation12], 4294967280 }
 0x8bb   :  { %6632 = dma.done.wait [#allocation9], 32  }
 0x8bc   :  { %6633 = vsyncadd [#allocation9], 4294967264 }
 0x8bd   :  { %4440 = sfence }
 0x8be   :  { %4441 = vsyncpa [#allocation9], 1 }
 0x8bf   :  { %4442 = vsyncpa [#allocation10], 1 }
 0x8c0   :  { %4443 = vsyncpa [#allocation12], 1 }
 0x8c1   :  { %4444 = vsyncmov [#allocation3] }
 0x8c4   :  { %s4445_s10 = vpop.sfrf %4444 }
 0x8c5   :  { %p6181_p0 = scmp.ne.s32.totalorder %s4445_s10, 0 }
 0x8c7   :  { %4449 = shalt.err (%p6181_p0)  }
 0x8c8   :  { %4451 = vsyncmov [#allocation3 + $0x1] }
 0x8cb   :  { %s4452_s25 = vpop.sfrf %4451 }
 0x8cc   :  { %p6182_p1 = scmp.ne.s32.totalorder %s4452_s25, 0 }
 0x8ce   :  { %4456 = shalt.err (%p6182_p1)  }
 0x8cf   :  { %4458 = vsyncmov [#allocation3 + $0x2] }
 0x8d2   :  { %s4459_s9 = vpop.sfrf %4458 }
 0x8d3   :  { %p6183_p2 = scmp.ne.s32.totalorder %s4459_s9, 0 }
 0x8d5   :  { %4463 = shalt.err (%p6183_p2)  }
 0x8d6   :  { %4465 = vsyncmov [#allocation3 + $0x3] }
 0x8d9   :  { %s4466_s2 = vpop.sfrf %4465 }
 0x8da   :  { %p6184_p8 = scmp.ne.s32.totalorder %s4466_s2, 0 }
 0x8dc   :  { %4470 = shalt.err (%p6184_p8)  }
 0x8dd   :  { %4472 = vsyncmov [#allocation3 + $0x4] }
 0x8e0   :  { %s4473_s15 = vpop.sfrf %4472 }
 0x8e1   :  { %p6185_p5 = scmp.ne.s32.totalorder %s4473_s15, 0 }
 0x8e3   :  { %4477 = shalt.err (%p6185_p5)  }
 0x8e4   :  { %4479 = vsyncmov [#allocation3 + $0x5] }
 0x8e7   :  { %s4480_s16 = vpop.sfrf %4479 }
 0x8e8   :  { %p6186_p6 = scmp.ne.s32.totalorder %s4480_s16, 0 }
 0x8ea   :  { %4484 = shalt.err (%p6186_p6)  }
 0x8eb   :  { %4486 = vsyncmov [#allocation3 + $0x6] }
 0x8ee   :  { %s4487_s11 = vpop.sfrf %4486 }
 0x8ef   :  { %p6187_p7 = scmp.ne.s32.totalorder %s4487_s11, 0 }
 0x8f1   :  { %4491 = shalt.err (%p6187_p7)  }
 0x8f2   :  { %4493 = vsyncmov [#allocation3 + $0x7] }
 0x8f5   :  { %s4494_s24 = vpop.sfrf %4493 }
 0x8f6   :  { %p6188_p9 = scmp.ne.s32.totalorder %s4494_s24, 0 }
 0x8f8   :  { %4498 = shalt.err (%p6188_p9)  }
 0x8f9   :  { %4500 = vsyncmov [#allocation3 + $0x8] }
 0x8fc   :  { %s4501_s12 = vpop.sfrf %4500 }
 0x8fd   :  { %p6189_p3 = scmp.ne.s32.totalorder %s4501_s12, 0 }
 0x8ff   :  { %4505 = shalt.err (%p6189_p3)  }
 0x900   :  { %4507 = vsyncmov [#allocation3 + $0x9] }
 0x903   :  { %s4508_s3 = vpop.sfrf %4507 }
 0x904   :  { %p6190_p4 = scmp.ne.s32.totalorder %s4508_s3, 0 }
 0x906   :  { %4512 = shalt.err (%p6190_p4)  }
 0x907   :  { %4514 = vsyncmov [#allocation3 + $0xa] }
 0x90a   :  { %s4515_s4 = vpop.sfrf %4514 }
 0x90b   :  { %p6191_p10 = scmp.ne.s32.totalorder %s4515_s4, 0 }
 0x90d   :  { %4519 = shalt.err (%p6191_p10)  }
 0x90e   :  { %4521 = vsyncmov [#allocation3 + $0xb] }
 0x911   :  { %s4522_s27 = vpop.sfrf %4521 }
 0x912   :  { %p6192_p11 = scmp.ne.s32.totalorder %s4522_s27, 0 }
 0x914   :  { %4526 = shalt.err (%p6192_p11)  }
 0x915   :  { %4528 = vsyncmov [#allocation3 + $0xc] }
 0x918   :  { %s4529_s5 = vpop.sfrf %4528 }
 0x919   :  { %p6193_p12 = scmp.ne.s32.totalorder %s4529_s5, 0 }
 0x91b   :  { %4533 = shalt.err (%p6193_p12)  }
 0x91c   :  { %4535 = vsyncmov [#allocation3 + $0xd] }
 0x91f   :  { %s4536_s7 = vpop.sfrf %4535 }
 0x920   :  { %p6194_p13 = scmp.ne.s32.totalorder %s4536_s7, 0 }
 0x922   :  { %4540 = shalt.err (%p6194_p13)  }
 0x923   :  { %4542 = vsyncmov [#allocation3 + $0xe] }
 0x926   :  { %s4543_s21 = vpop.sfrf %4542 }
 0x927   :  { %p6195_p0 = scmp.ne.s32.totalorder %s4543_s21, 0 }
 0x929   :  { %4547 = shalt.err (%p6195_p0)  }
 0x92a   :  { %4549 = vsyncmov [#allocation3 + $0xf] }
 0x92d   :  { %s4550_s0 = vpop.sfrf %4549 }
 0x92e   :  { %p6196_p1 = scmp.ne.s32.totalorder %s4550_s0, 0 }
 0x930   :  { %4554 = shalt.err (%p6196_p1)  }

</bundles_post_ra>
